<compile_context>
chip_gen: v6e
topology: v6e:2x2x1
jax: 0.10.0
libtpu: 0.0.40
codegen_flags: <defaults>
</compile_context>

<pallas_src>
import functools
import numpy as np
import jax
import jax.numpy as jnp
from jax import lax
from jax.experimental import pallas as pl
from jax.experimental.pallas import tpu as pltpu

# ----------------------------------------------------------------------------------
# Filter bank ("kernel" class). scattering.__init__ hard-codes these parameters:
#   kernel(K=1, R=3, d=[0.5, 0.5], J=8, lamb_max=2)
# ----------------------------------------------------------------------------------
KERNEL_K = 1
KERNEL_R = 3.0
KERNEL_D = np.array([0.5, 0.5])
KERNEL_J = 8
KERNEL_LAMB_MAX = 2.0
KERNEL_A = KERNEL_R * np.log(KERNEL_LAMB_MAX) / (KERNEL_J - KERNEL_R + 1)


def _g_hat(x):
    a = KERNEL_A
    val = sum(float(KERNEL_D[k]) * jnp.cos(2.0 * np.pi * k * (x / a + 0.5))
              for k in range(KERNEL_K + 1))
    mask = ((-x) >= 0.0) & ((-x) <= a)
    return val * mask.astype(x.dtype)


def filter_bank_responses(E, J):
    """Return (B, J, V) responses [scaling, wavelet_1 .. wavelet_{J-1}].

    Faithfully reproduces the reference semantics, including the in-place clamping that
    kernel.wavelet performs on the eigenvalue tensor (after kernel.scaling runs, E is
    already clamped at exp(a*(J_k-1)/R - a) for the wavelet loop)."""
    a, R, d = KERNEL_A, KERNEL_R, KERNEL_D
    thr = lambda i: float(np.exp(a * i / R - a))

    lamb = E
    norm_sq = jnp.zeros_like(E)
    for i in range(1, KERNEL_J):                     # inside kernel.scaling
        lamb = jnp.maximum(lamb, thr(i))             # wavelet's in-place clamp
        w = _g_hat(jnp.log(lamb) - a * i / R)
        norm_sq = norm_sq + w * w
    eps_const = float(R * d[0] ** 2 + 0.5 * R * np.sum(d[1:] ** 2))
    scaling = jnp.sqrt(jnp.maximum(eps_const - norm_sq, 0.0))

    resp = [scaling]
    for j in range(1, J):                            # filtering_matrices loop
        lamb = jnp.maximum(lamb, thr(j))             # (no-op: E already clamped higher)
        resp.append(_g_hat(jnp.log(lamb) - a * j / R))
    return jnp.stack(resp, axis=1)                   # (B, J, V)


# ----------------------------------------------------------------------------------
# Spectrum of the normalized graph Laplacian (plain JAX glue)
# ----------------------------------------------------------------------------------
def compute_spectrum(W):
    B, Vn, _ = W.shape
    deg = W.sum(axis=1)                                           # (B, V)
    Lap = deg[:, :, None] * jnp.eye(Vn, dtype=W.dtype)[None] - W  # diag(deg) - W
    dinv = 1.0 / jnp.sqrt(jnp.maximum(jnp.ones_like(deg), deg))
    Lap = dinv[:, :, None] * Lap * dinv[:, None, :]
    # TODO(synk): torch.symeig (dense eigendecomposition) has no Pallas equivalent;
    # computed with XLA's jnp.linalg.eigh outside the kernel.
    E, Vec = jnp.linalg.eigh(Lap)
    return jnp.abs(E), Vec


def _round_up(x, m):
    return ((x + m - 1) // m) * m


# ----------------------------------------------------------------------------------
# Tile-size selection (adaptive TM, derived VMEM limit)
# ----------------------------------------------------------------------------------
def _choose_tm(M, Vp, J, write_layer, in_bytes, out_bytes, budget=28 << 20):
    """Pick row-tile TM and return (TM, estimated double-buffered VMEM bytes).

    Residency per grid step:
      fixed   = 2*Vp*Vp*in_bytes (Vec^T)  + 2*J*Vp*4 (filter responses)
      per-row = 2*Vp*in_bytes (U tile) + 2*J*4 (smean) [+ 2*J*Vp*out_bytes (layer out)]
    TM is as large as the budget allows, clamped to [128, 512] and a multiple of 128,
    so small-Vp layers get big tiles and Vp>=2048 drops to 128 (fits v7x's 64 MiB VMEM).
    Layers with fewer rows use a single full-extent tile; the smean-only variant still
    rounds up to a multiple of 128 rows so its only output store stays lane-dense."""
    per_row = 2 * Vp * in_bytes + 2 * J * 4
    if write_layer:
        per_row += 2 * J * Vp * out_bytes
    fixed = 2 * Vp * Vp * in_bytes + 2 * J * Vp * 4
    avail = max(budget - fixed, 2 << 20)
    cap = max(128, min(512, (int(avail // per_row) // 128) * 128))
    if M >= cap:
        tm = cap
    elif write_layer:
        tm = _round_up(M, 8)                 # full-extent tile: no padded-row HBM writes
    else:
        tm = min(cap, _round_up(M, 128))     # lane-dense smean store
    return tm, fixed + tm * per_row


# ----------------------------------------------------------------------------------
# Fused Pallas kernel: one scattering layer, spectral domain.
# ----------------------------------------------------------------------------------
def _scatter_kernel(u_ref, vecT_ref, h_ref, *out_refs, inv_n, J, write_layer):
    if write_layer:
        layer_ref, smean_ref = out_refs
    else:
        (smean_ref,) = out_refs

    u = u_ref[0]                        # (TM, Vp)  packed (path, channel) rows
    vecT = vecT_ref[0]                  # (Vp, Vp)  eigenvectors, transposed, zero-padded
    hmat = h_ref[0]                     # (J, Vp)   filter responses (f32, zero-padded)

    # One spectral projection per (b, row-tile), reused across all J filters.
    # Uv = U @ Vec = U @ (Vec^T)^T  ->  the only transposed contraction in the kernel.
    uv = lax.dot_general(u, vecT, (((1,), (1,)), ((), ())),
                         preferred_element_type=jnp.float32)          # (TM, Vp) f32

    # J is a small compile-time constant -> fully unrolled; every per-j matmul is
    # MXU-natural (rhs = Vec^T contracts its first dim), every layer store a lane-dense
    # (TM, Vp) slab, and node-sums are accumulated while the response is still in vregs.
    row_sums = []
    for j in range(J):
        hj = hmat[j:j + 1, :]                                          # (1, Vp)
        lhs = (uv * hj).astype(vecT.dtype)                             # bf16 opt-in path
        yj = jnp.dot(lhs, vecT, preferred_element_type=jnp.float32)    # (Uv*h_j) @ Vec^T
        aj = jnp.abs(yj)                                               # (TM, Vp) f32
        if write_layer:
            layer_ref[0, j] = aj.astype(layer_ref.dtype)
        row_sums.append(jnp.sum(aj, axis=-1))                          # (TM,)

    # Node-mean pooling: one bulk (J, TM) store per grid step (no VMEM re-read).
    smean_ref[0] = jnp.concatenate([r[None, :] for r in row_sums], axis=0) * inv_n


def scatter_layer(U_flat, vecT_p, h_p, n_nodes, *, write_layer=True,
                  mxu_dtype=jnp.float32, layer_dtype=jnp.float32):
    """One scattering layer.
    U_flat : (B, M, Vp)   packed rows (path-major, channel-minor), node axis zero-padded
    vecT_p : (B, Vp, Vp)  zero-padded eigenvectors, transposed (Vec^T)
    h_p    : (B, J, Vp)   zero-padded filter responses (f32)
    Returns (layer (B,J,M,Vp), smean (B,J,M)) if write_layer else smean (B,J,M) only.
    The final scattering layer uses write_layer=False: its |U@frame| tensor is never
    consumed, so skipping it removes the largest HBM write of the forward pass."""
    B, M, Vp = U_flat.shape
    J = h_p.shape[1]
    in_bytes = jnp.dtype(mxu_dtype).itemsize
    out_bytes = jnp.dtype(layer_dtype).itemsize
    TM, vmem_est = _choose_tm(M, Vp, J, write_layer, in_bytes, out_bytes)
    Mp = _round_up(M, TM)
    if Mp != M:
        U_flat = jnp.pad(U_flat, ((0, 0), (0, Mp - M), (0, 0)))  # zero rows -> zero out
    if U_flat.dtype != mxu_dtype:
        U_flat = U_flat.astype(mxu_dtype)
    if vecT_p.dtype != mxu_dtype:
        vecT_p = vecT_p.astype(mxu_dtype)

    grid = (B, Mp // TM)
    kern = functools.partial(_scatter_kernel, inv_n=1.0 / n_nodes, J=J,
                             write_layer=write_layer)

    flops = int(2 * B * Mp * Vp * Vp * (J + 1))
    bytes_accessed = int(B * (Mp * Vp * in_bytes + Vp * Vp * in_bytes
                              + J * Vp * 4 + J * Mp * 4
                              + (J * Mp * Vp * out_bytes if write_layer else 0)))

    in_specs = [
        pl.BlockSpec((1, TM, Vp), lambda b, m: (b, m, 0)),     # U row tile
        pl.BlockSpec((1, Vp, Vp), lambda b, m: (b, 0, 0)),     # Vec^T (constant across m)
        pl.BlockSpec((1, J, Vp), lambda b, m: (b, 0, 0)),      # filter responses
    ]
    smean_shape = jax.ShapeDtypeStruct((B, J, Mp), jnp.float32)
    smean_spec = pl.BlockSpec((1, J, TM), lambda b, m: (b, 0, m))
    if write_layer:
        out_shape = (jax.ShapeDtypeStruct((B, J, Mp, Vp), layer_dtype), smean_shape)
        out_specs = (pl.BlockSpec((1, J, TM, Vp), lambda b, m: (b, 0, m, 0)), smean_spec)
    else:
        out_shape = smean_shape
        out_specs = smean_spec

    vmem_limit = int(min(64 << 20, max(32 << 20, vmem_est + (8 << 20))))
    outs = pl.pallas_call(
        kern,
        out_shape=out_shape,
        grid=grid,
        in_specs=in_specs,
        out_specs=out_specs,
        compiler_params=pltpu.CompilerParams(
            dimension_semantics=("parallel", "parallel"),    # independent (b, row-tile)
            vmem_limit_bytes=vmem_limit),
        cost_estimate=pl.CostEstimate(flops=flops, transcendentals=0,
                                      bytes_accessed=bytes_accessed),
    )(U_flat, vecT_p, h_p)

    if write_layer:
        layer, smean = outs
        return layer[:, :, :M, :], smean[:, :, :M]
    return outs[:, :, :M]


# ----------------------------------------------------------------------------------
# Degenerate first layer (M = d_f rows): plain XLA spectral einsum (a Pallas grid step
# there would be Vec-DMA / per-step-overhead bound with almost no MXU work).
# ----------------------------------------------------------------------------------
def _xla_layer(U_flat, vec_p, h_p, n_nodes):
    uv = jnp.einsum('bmv,bvw->bmw', U_flat, vec_p)                     # U @ Vec
    y = jnp.einsum('bjmw,bnw->bjmn',
                   uv[:, None, :, :] * h_p[:, :, None, :], vec_p)      # (Uv*h_j) @ Vec^T
    layer = jnp.abs(y)                                                 # (B, J, M, Vp)
    smean = jnp.sum(layer, axis=-1) * (1.0 / n_nodes)                  # (B, J, M)
    return layer, smean


# ----------------------------------------------------------------------------------
# Forward pass (matches scattering.forward)
# ----------------------------------------------------------------------------------
def scattering_forward(W, f, J, L, *, mxu_dtype=jnp.float32, layer_dtype=jnp.float32,
                       min_pallas_rows=64):
    B, Vn, _ = W.shape
    d_f = f.shape[1]
    E, Vec = compute_spectrum(W.astype(jnp.float32))
    h = filter_bank_responses(E, J).astype(jnp.float32)               # (B, J, V)

    # Zero-pad the node axis to a lane-dense multiple of 128. Exact: padded rows/cols of
    # Vec/h/f are zero, so padded lanes carry zeros all the way through |.| and pooling.
    Vp = _round_up(max(Vn, 128), 128)
    vec_p = jnp.zeros((B, Vp, Vp), jnp.float32).at[:, :Vn, :Vn].set(Vec.astype(jnp.float32))
    vecT_p = jnp.swapaxes(vec_p, 1, 2).astype(mxu_dtype)              # Vec^T for the kernel
    h_p = jnp.zeros((B, J, Vp), jnp.float32).at[:, :, :Vn].set(h)
    f_p = jnp.zeros((B, d_f, Vp), jnp.float32).at[:, :, :Vn].set(f.astype(jnp.float32))

    S_parts = [jnp.mean(f.astype(jnp.float32), axis=2, keepdims=True)]   # S0 = f @ (1/V)1
    U = f_p                                                           # (B, M, Vp), M = d_f
    for l in range(1, L + 1):
        need_layer = l < L                                            # final layer: smean only
        if l == 1 and d_f < min_pallas_rows:
            layer, smean = _xla_layer(U, vec_p, h_p, Vn)
        elif need_layer:
            layer, smean = scatter_layer(U, vecT_p, h_p, Vn, write_layer=True,
                                         mxu_dtype=mxu_dtype, layer_dtype=layer_dtype)
        else:
            layer = None
            smean = scatter_layer(U, vecT_p, h_p, Vn, write_layer=False,
                                  mxu_dtype=mxu_dtype, layer_dtype=layer_dtype)
        # smean axes are (b, j_l, [j_{l-1},...,j_1, c]); the reference orders columns as
        # (c ; j_1, j_2, ..., j_l)  -> tiny transpose on the pooled tensor only.
        sm = smean.reshape((B,) + (J,) * l + (d_f,))
        perm = (0, l + 1) + tuple(range(l, 0, -1))
        S_parts.append(jnp.transpose(sm, perm).reshape(B, d_f, J ** l))
        if need_layer:
            # Next layer's packed rows: flatten (j_l, previous rows) — no big transpose.
            U = layer.reshape(B, layer.shape[1] * layer.shape[2], Vp)
    return jnp.concatenate(S_parts, axis=2)


# ----------------------------------------------------------------------------------
# Pure-JAX reference (mirrors the PyTorch forward, frames materialized) for validation
# ----------------------------------------------------------------------------------
def _reference_forward(W, f, J, L):
    B, Vn, _ = W.shape
    d_f = f.shape[1]
    E, Vec = compute_spectrum(W.astype(jnp.float32))
    h = filter_bank_responses(E, J).astype(jnp.float32)
    g = jnp.einsum('bvk,bjk,bwk->bjvw', Vec, h, Vec)                  # V diag(h_j) V^T
    S = [jnp.mean(f, axis=2, keepdims=True)]
    U = f[:, None, :, :]                                              # (B, 1, d_f, V)
    for _ in range(L):
        layer = jnp.abs(jnp.einsum('bpcv,bjvw->bpjcw', U, g))         # (B, P, J, d_f, V)
        pooled = jnp.mean(layer, axis=-1)                             # (B, P, J, d_f)
        S.append(jnp.transpose(pooled, (0, 3, 1, 2)).reshape(B, d_f, -1))
        U = layer.reshape(B, -1, d_f, Vn)
    return jnp.concatenate(S, axis=2)


if __name__ == "__main__":
    # small deterministic example: B=2 graphs, V=16 nodes, d_f=4 features, J=8, L=3
    # (L=3 so both kernel variants run: layer 2 = full variant, layer 3 = smean-only)
    B, Vn, d_f, J, L = 2, 16, 4, 8, 3
    key = jax.random.PRNGKey(0)
    kw, kf = jax.random.split(key)

    A = jax.random.uniform(kw, (B, Vn, Vn), dtype=jnp.float32)
    Wsym = ((A + jnp.swapaxes(A, 1, 2)) * 0.5 > 0.5).astype(jnp.float32)
    W = Wsym * (1.0 - jnp.eye(Vn, dtype=jnp.float32))                 # symmetric, zero diag
    f = jax.random.normal(kf, (B, d_f, Vn), dtype=jnp.float32)

    n_cols = sum(J ** l for l in range(L + 1))

    fwd = jax.jit(lambda w, x: scattering_forward(w, x, J, L))
    S = jax.block_until_ready(fwd(W, f))
    assert S.shape == (B, d_f, n_cols), S.shape
    assert bool(jnp.all(jnp.isfinite(S)))

    S_ref = jax.block_until_ready(_reference_forward(W, f, J, L))
    assert bool(jnp.allclose(S, S_ref, rtol=2e-3, atol=2e-3)), \
        float(jnp.max(jnp.abs(S - S_ref)))

    # bf16 MXU-operand + bf16 inter-layer-storage path (v6e/v7x throughput option).
    # Numerics change, so it is validated at a looser tolerance.
    fwd_bf16 = jax.jit(lambda w, x: scattering_forward(
        w, x, J, L, mxu_dtype=jnp.bfloat16, layer_dtype=jnp.bfloat16))
    S_bf16 = jax.block_until_ready(fwd_bf16(W, f))
    assert bool(jnp.all(jnp.isfinite(S_bf16)))
    assert bool(jnp.allclose(S_bf16, S_ref, rtol=5e-2, atol=5e-2)), \
        float(jnp.max(jnp.abs(S_bf16 - S_ref)))

    print("KERNEL_OK")
</pallas_src>

<mosaic_0001>
module attributes {stable_mosaic.version = 11 : i64} {
  func.func @_scatter_kernel(%arg0: i32, %arg1: i32, %arg2: memref<1x256x128xf32, #tpu.memory_space<vmem>>, %arg3: memref<1x128x128xf32, #tpu.memory_space<vmem>>, %arg4: memref<1x8x128xf32, #tpu.memory_space<vmem>>, %arg5: memref<1x8x256xf32, #tpu.memory_space<vmem>>) attributes {dimension_semantics = [#tpu.dimension_semantics<parallel>, #tpu.dimension_semantics<parallel>], iteration_bounds = array<i64: 2, 1>, scalar_prefetch = 0 : i64, scratch_operands = 0 : i64, tpu.core_type = #tpu.core_type<tc>, window_params = [{transform_indices = @transform_0, window_bounds = array<i64: 1, 256, 128>}, {transform_indices = @transform_1, window_bounds = array<i64: 1, 128, 128>}, {transform_indices = @transform_2, window_bounds = array<i64: 1, 8, 128>}, {transform_indices = @transform_3, window_bounds = array<i64: 1, 8, 256>}]} {
    %c0 = arith.constant 0 : index
    %c0_0 = arith.constant 0 : index
    %c0_1 = arith.constant 0 : index
    %0 = vector.load %arg2[%c0, %c0_0, %c0_1] : memref<1x256x128xf32, #tpu.memory_space<vmem>>, vector<1x256x128xf32>
    %1 = vector.shape_cast %0 : vector<1x256x128xf32> to vector<256x128xf32>
    %c0_2 = arith.constant 0 : index
    %c0_3 = arith.constant 0 : index
    %c0_4 = arith.constant 0 : index
    %2 = vector.load %arg3[%c0_2, %c0_3, %c0_4] : memref<1x128x128xf32, #tpu.memory_space<vmem>>, vector<1x128x128xf32>
    %3 = vector.shape_cast %2 : vector<1x128x128xf32> to vector<128x128xf32>
    %c0_5 = arith.constant 0 : index
    %c0_6 = arith.constant 0 : index
    %c0_7 = arith.constant 0 : index
    %4 = vector.load %arg4[%c0_5, %c0_6, %c0_7] : memref<1x8x128xf32, #tpu.memory_space<vmem>>, vector<1x8x128xf32>
    %5 = vector.shape_cast %4 : vector<1x8x128xf32> to vector<8x128xf32>
    %cst = arith.constant dense<0.000000e+00> : vector<256x128xf32>
    %6 = tpu.matmul %1, %3, %cst {dimension_numbers = #tpu.dot_dimension_numbers<[1], [1], [0], [0], [0, 0, 1, 0], [], []>} : vector<256x128xf32>, vector<128x128xf32>, vector<256x128xf32> -> vector<256x128xf32>
    %7 = vector.extract_strided_slice %5 {offsets = [0, 0], sizes = [1, 128], strides = [1, 1]} : vector<8x128xf32> to vector<1x128xf32>
    %8 = vector.broadcast %7 : vector<1x128xf32> to vector<256x128xf32>
    %9 = arith.mulf %6, %8 : vector<256x128xf32>
    %cst_8 = arith.constant dense<0.000000e+00> : vector<256x128xf32>
    %10 = tpu.matmul %9, %3, %cst_8 {dimension_numbers = #tpu.dot_dimension_numbers<[1], [0], [0], [1], [0, 0, 1, 1], [], []>} : vector<256x128xf32>, vector<128x128xf32>, vector<256x128xf32> -> vector<256x128xf32>
    %11 = math.absf %10 : vector<256x128xf32>
    %cst_9 = arith.constant dense<0.000000e+00> : vector<256xf32>
    %12 = vector.multi_reduction <add>, %11, %cst_9 [1] : vector<256x128xf32> to vector<256xf32>
    %13 = vector.extract_strided_slice %5 {offsets = [1, 0], sizes = [1, 128], strides = [1, 1]} : vector<8x128xf32> to vector<1x128xf32>
    %14 = vector.broadcast %13 : vector<1x128xf32> to vector<256x128xf32>
    %15 = arith.mulf %6, %14 : vector<256x128xf32>
    %cst_10 = arith.constant dense<0.000000e+00> : vector<256x128xf32>
    %16 = tpu.matmul %15, %3, %cst_10 {dimension_numbers = #tpu.dot_dimension_numbers<[1], [0], [0], [1], [0, 0, 1, 1], [], []>} : vector<256x128xf32>, vector<128x128xf32>, vector<256x128xf32> -> vector<256x128xf32>
    %17 = math.absf %16 : vector<256x128xf32>
    %cst_11 = arith.constant dense<0.000000e+00> : vector<256xf32>
    %18 = vector.multi_reduction <add>, %17, %cst_11 [1] : vector<256x128xf32> to vector<256xf32>
    %19 = vector.extract_strided_slice %5 {offsets = [2, 0], sizes = [1, 128], strides = [1, 1]} : vector<8x128xf32> to vector<1x128xf32>
    %20 = vector.broadcast %19 : vector<1x128xf32> to vector<256x128xf32>
    %21 = arith.mulf %6, %20 : vector<256x128xf32>
    %cst_12 = arith.constant dense<0.000000e+00> : vector<256x128xf32>
    %22 = tpu.matmul %21, %3, %cst_12 {dimension_numbers = #tpu.dot_dimension_numbers<[1], [0], [0], [1], [0, 0, 1, 1], [], []>} : vector<256x128xf32>, vector<128x128xf32>, vector<256x128xf32> -> vector<256x128xf32>
    %23 = math.absf %22 : vector<256x128xf32>
    %cst_13 = arith.constant dense<0.000000e+00> : vector<256xf32>
    %24 = vector.multi_reduction <add>, %23, %cst_13 [1] : vector<256x128xf32> to vector<256xf32>
    %25 = vector.extract_strided_slice %5 {offsets = [3, 0], sizes = [1, 128], strides = [1, 1]} : vector<8x128xf32> to vector<1x128xf32>
    %26 = vector.broadcast %25 : vector<1x128xf32> to vector<256x128xf32>
    %27 = arith.mulf %6, %26 : vector<256x128xf32>
    %cst_14 = arith.constant dense<0.000000e+00> : vector<256x128xf32>
    %28 = tpu.matmul %27, %3, %cst_14 {dimension_numbers = #tpu.dot_dimension_numbers<[1], [0], [0], [1], [0, 0, 1, 1], [], []>} : vector<256x128xf32>, vector<128x128xf32>, vector<256x128xf32> -> vector<256x128xf32>
    %29 = math.absf %28 : vector<256x128xf32>
    %cst_15 = arith.constant dense<0.000000e+00> : vector<256xf32>
    %30 = vector.multi_reduction <add>, %29, %cst_15 [1] : vector<256x128xf32> to vector<256xf32>
    %31 = vector.extract_strided_slice %5 {offsets = [4, 0], sizes = [1, 128], strides = [1, 1]} : vector<8x128xf32> to vector<1x128xf32>
    %32 = vector.broadcast %31 : vector<1x128xf32> to vector<256x128xf32>
    %33 = arith.mulf %6, %32 : vector<256x128xf32>
    %cst_16 = arith.constant dense<0.000000e+00> : vector<256x128xf32>
    %34 = tpu.matmul %33, %3, %cst_16 {dimension_numbers = #tpu.dot_dimension_numbers<[1], [0], [0], [1], [0, 0, 1, 1], [], []>} : vector<256x128xf32>, vector<128x128xf32>, vector<256x128xf32> -> vector<256x128xf32>
    %35 = math.absf %34 : vector<256x128xf32>
    %cst_17 = arith.constant dense<0.000000e+00> : vector<256xf32>
    %36 = vector.multi_reduction <add>, %35, %cst_17 [1] : vector<256x128xf32> to vector<256xf32>
    %37 = vector.extract_strided_slice %5 {offsets = [5, 0], sizes = [1, 128], strides = [1, 1]} : vector<8x128xf32> to vector<1x128xf32>
    %38 = vector.broadcast %37 : vector<1x128xf32> to vector<256x128xf32>
    %39 = arith.mulf %6, %38 : vector<256x128xf32>
    %cst_18 = arith.constant dense<0.000000e+00> : vector<256x128xf32>
    %40 = tpu.matmul %39, %3, %cst_18 {dimension_numbers = #tpu.dot_dimension_numbers<[1], [0], [0], [1], [0, 0, 1, 1], [], []>} : vector<256x128xf32>, vector<128x128xf32>, vector<256x128xf32> -> vector<256x128xf32>
    %41 = math.absf %40 : vector<256x128xf32>
    %cst_19 = arith.constant dense<0.000000e+00> : vector<256xf32>
    %42 = vector.multi_reduction <add>, %41, %cst_19 [1] : vector<256x128xf32> to vector<256xf32>
    %43 = vector.extract_strided_slice %5 {offsets = [6, 0], sizes = [1, 128], strides = [1, 1]} : vector<8x128xf32> to vector<1x128xf32>
    %44 = vector.broadcast %43 : vector<1x128xf32> to vector<256x128xf32>
    %45 = arith.mulf %6, %44 : vector<256x128xf32>
    %cst_20 = arith.constant dense<0.000000e+00> : vector<256x128xf32>
    %46 = tpu.matmul %45, %3, %cst_20 {dimension_numbers = #tpu.dot_dimension_numbers<[1], [0], [0], [1], [0, 0, 1, 1], [], []>} : vector<256x128xf32>, vector<128x128xf32>, vector<256x128xf32> -> vector<256x128xf32>
    %47 = math.absf %46 : vector<256x128xf32>
    %cst_21 = arith.constant dense<0.000000e+00> : vector<256xf32>
    %48 = vector.multi_reduction <add>, %47, %cst_21 [1] : vector<256x128xf32> to vector<256xf32>
    %49 = vector.extract_strided_slice %5 {offsets = [7, 0], sizes = [1, 128], strides = [1, 1]} : vector<8x128xf32> to vector<1x128xf32>
    %50 = vector.broadcast %49 : vector<1x128xf32> to vector<256x128xf32>
    %51 = arith.mulf %6, %50 : vector<256x128xf32>
    %cst_22 = arith.constant dense<0.000000e+00> : vector<256x128xf32>
    %52 = tpu.matmul %51, %3, %cst_22 {dimension_numbers = #tpu.dot_dimension_numbers<[1], [0], [0], [1], [0, 0, 1, 1], [], []>} : vector<256x128xf32>, vector<128x128xf32>, vector<256x128xf32> -> vector<256x128xf32>
    %53 = math.absf %52 : vector<256x128xf32>
    %cst_23 = arith.constant dense<0.000000e+00> : vector<256xf32>
    %54 = vector.multi_reduction <add>, %53, %cst_23 [1] : vector<256x128xf32> to vector<256xf32>
    %55 = vector.shape_cast %12 : vector<256xf32> to vector<1x256xf32>
    %56 = vector.shape_cast %18 : vector<256xf32> to vector<1x256xf32>
    %57 = vector.shape_cast %24 : vector<256xf32> to vector<1x256xf32>
    %58 = vector.shape_cast %30 : vector<256xf32> to vector<1x256xf32>
    %59 = vector.shape_cast %36 : vector<256xf32> to vector<1x256xf32>
    %60 = vector.shape_cast %42 : vector<256xf32> to vector<1x256xf32>
    %61 = vector.shape_cast %48 : vector<256xf32> to vector<1x256xf32>
    %62 = vector.shape_cast %54 : vector<256xf32> to vector<1x256xf32>
    %63 = tpu.concatenate %55, %56, %57, %58, %59, %60, %61, %62 in 0 : vector<1x256xf32>, vector<1x256xf32>, vector<1x256xf32>, vector<1x256xf32>, vector<1x256xf32>, vector<1x256xf32>, vector<1x256xf32>, vector<1x256xf32> -> vector<8x256xf32>
    %cst_24 = arith.constant 6.250000e-02 : f32
    %64 = vector.broadcast %cst_24 : f32 to vector<8x256xf32>
    %65 = arith.mulf %63, %64 : vector<8x256xf32>
    %c0_25 = arith.constant 0 : index
    %c0_26 = arith.constant 0 : index
    %c0_27 = arith.constant 0 : index
    %66 = vector.load %arg5[%c0_25, %c0_26, %c0_27] : memref<1x8x256xf32, #tpu.memory_space<vmem>>, vector<1x8x256xf32>
    %67 = vector.shape_cast %66 : vector<1x8x256xf32> to vector<8x256xf32>
    %68 = vector.shape_cast %65 : vector<8x256xf32> to vector<1x8x256xf32>
    tpu.vector_store %arg5[%c0_25, %c0_26, %c0_27], %68 {strides = array<i32>} : memref<1x8x256xf32, #tpu.memory_space<vmem>>, vector<1x8x256xf32>,
    return
  }
  func.func @transform_0(%arg0: i32, %arg1: i32) -> (i32, i32, i32) {
    %c0_i32 = arith.constant 0 : i32
    %c0_i32_0 = arith.constant 0 : i32
    return %arg0, %arg1, %c0_i32 : i32, i32, i32
  }
  func.func @transform_1(%arg0: i32, %arg1: i32) -> (i32, i32, i32) {
    %c0_i32 = arith.constant 0 : i32
    %c0_i32_0 = arith.constant 0 : i32
    %c0_i32_1 = arith.constant 0 : i32
    return %arg0, %c0_i32, %c0_i32_0 : i32, i32, i32
  }
  func.func @transform_2(%arg0: i32, %arg1: i32) -> (i32, i32, i32) {
    %c0_i32 = arith.constant 0 : i32
    %c0_i32_0 = arith.constant 0 : i32
    %c0_i32_1 = arith.constant 0 : i32
    return %arg0, %c0_i32, %c0_i32_0 : i32, i32, i32
  }
  func.func @transform_3(%arg0: i32, %arg1: i32) -> (i32, i32, i32) {
    %c0_i32 = arith.constant 0 : i32
    %c0_i32_0 = arith.constant 0 : i32
    return %arg0, %c0_i32, %arg1 : i32, i32, i32
  }
}

module attributes {stable_mosaic.version = 11 : i64} {
  func.func @_scatter_kernel(%arg0: i32, %arg1: i32, %arg2: memref<1x32x128xf32, #tpu.memory_space<vmem>>, %arg3: memref<1x128x128xf32, #tpu.memory_space<vmem>>, %arg4: memref<1x8x128xf32, #tpu.memory_space<vmem>>, %arg5: memref<1x8x32x128xf32, #tpu.memory_space<vmem>>, %arg6: memref<1x8x32xf32, #tpu.memory_space<vmem>>) attributes {dimension_semantics = [#tpu.dimension_semantics<parallel>, #tpu.dimension_semantics<parallel>], iteration_bounds = array<i64: 2, 1>, scalar_prefetch = 0 : i64, scratch_operands = 0 : i64, tpu.core_type = #tpu.core_type<tc>, window_params = [{transform_indices = @transform_0, window_bounds = array<i64: 1, 32, 128>}, {transform_indices = @transform_1, window_bounds = array<i64: 1, 128, 128>}, {transform_indices = @transform_2, window_bounds = array<i64: 1, 8, 128>}, {transform_indices = @transform_3, window_bounds = array<i64: 1, 8, 32, 128>}, {transform_indices = @transform_4, window_bounds = array<i64: 1, 8, 32>}]} {
    %c0 = arith.constant 0 : index
    %c0_0 = arith.constant 0 : index
    %c0_1 = arith.constant 0 : index
    %0 = vector.load %arg2[%c0, %c0_0, %c0_1] : memref<1x32x128xf32, #tpu.memory_space<vmem>>, vector<1x32x128xf32>
    %1 = vector.shape_cast %0 : vector<1x32x128xf32> to vector<32x128xf32>
    %c0_2 = arith.constant 0 : index
    %c0_3 = arith.constant 0 : index
    %c0_4 = arith.constant 0 : index
    %2 = vector.load %arg3[%c0_2, %c0_3, %c0_4] : memref<1x128x128xf32, #tpu.memory_space<vmem>>, vector<1x128x128xf32>
    %3 = vector.shape_cast %2 : vector<1x128x128xf32> to vector<128x128xf32>
    %c0_5 = arith.constant 0 : index
    %c0_6 = arith.constant 0 : index
    %c0_7 = arith.constant 0 : index
    %4 = vector.load %arg4[%c0_5, %c0_6, %c0_7] : memref<1x8x128xf32, #tpu.memory_space<vmem>>, vector<1x8x128xf32>
    %5 = vector.shape_cast %4 : vector<1x8x128xf32> to vector<8x128xf32>
    %cst = arith.constant dense<0.000000e+00> : vector<32x128xf32>
    %6 = tpu.matmul %1, %3, %cst {dimension_numbers = #tpu.dot_dimension_numbers<[1], [1], [0], [0], [0, 0, 1, 0], [], []>} : vector<32x128xf32>, vector<128x128xf32>, vector<32x128xf32> -> vector<32x128xf32>
    %7 = vector.extract_strided_slice %5 {offsets = [0, 0], sizes = [1, 128], strides = [1, 1]} : vector<8x128xf32> to vector<1x128xf32>
    %8 = vector.broadcast %7 : vector<1x128xf32> to vector<32x128xf32>
    %9 = arith.mulf %6, %8 : vector<32x128xf32>
    %cst_8 = arith.constant dense<0.000000e+00> : vector<32x128xf32>
    %10 = tpu.matmul %9, %3, %cst_8 {dimension_numbers = #tpu.dot_dimension_numbers<[1], [0], [0], [1], [0, 0, 1, 1], [], []>} : vector<32x128xf32>, vector<128x128xf32>, vector<32x128xf32> -> vector<32x128xf32>
    %11 = math.absf %10 : vector<32x128xf32>
    %c0_9 = arith.constant 0 : index
    %c0_10 = arith.constant 0 : index
    %c0_11 = arith.constant 0 : index
    %c0_12 = arith.constant 0 : index
    %12 = vector.load %arg5[%c0_9, %c0_10, %c0_11, %c0_12] : memref<1x8x32x128xf32, #tpu.memory_space<vmem>>, vector<1x1x32x128xf32>
    %13 = vector.shape_cast %12 : vector<1x1x32x128xf32> to vector<32x128xf32>
    %14 = vector.shape_cast %11 : vector<32x128xf32> to vector<1x1x32x128xf32>
    tpu.vector_store %arg5[%c0_9, %c0_10, %c0_11, %c0_12], %14 {strides = array<i32>} : memref<1x8x32x128xf32, #tpu.memory_space<vmem>>, vector<1x1x32x128xf32>,
    %cst_13 = arith.constant dense<0.000000e+00> : vector<32xf32>
    %15 = vector.multi_reduction <add>, %11, %cst_13 [1] : vector<32x128xf32> to vector<32xf32>
    %16 = vector.extract_strided_slice %5 {offsets = [1, 0], sizes = [1, 128], strides = [1, 1]} : vector<8x128xf32> to vector<1x128xf32>
    %17 = vector.broadcast %16 : vector<1x128xf32> to vector<32x128xf32>
    %18 = arith.mulf %6, %17 : vector<32x128xf32>
    %cst_14 = arith.constant dense<0.000000e+00> : vector<32x128xf32>
    %19 = tpu.matmul %18, %3, %cst_14 {dimension_numbers = #tpu.dot_dimension_numbers<[1], [0], [0], [1], [0, 0, 1, 1], [], []>} : vector<32x128xf32>, vector<128x128xf32>, vector<32x128xf32> -> vector<32x128xf32>
    %20 = math.absf %19 : vector<32x128xf32>
    %c0_15 = arith.constant 0 : index
    %c1 = arith.constant 1 : index
    %c0_16 = arith.constant 0 : index
    %c0_17 = arith.constant 0 : index
    %21 = vector.load %arg5[%c0_15, %c1, %c0_16, %c0_17] : memref<1x8x32x128xf32, #tpu.memory_space<vmem>>, vector<1x1x32x128xf32>
    %22 = vector.shape_cast %21 : vector<1x1x32x128xf32> to vector<32x128xf32>
    %23 = vector.shape_cast %20 : vector<32x128xf32> to vector<1x1x32x128xf32>
    tpu.vector_store %arg5[%c0_15, %c1, %c0_16, %c0_17], %23 {strides = array<i32>} : memref<1x8x32x128xf32, #tpu.memory_space<vmem>>, vector<1x1x32x128xf32>,
    %cst_18 = arith.constant dense<0.000000e+00> : vector<32xf32>
    %24 = vector.multi_reduction <add>, %20, %cst_18 [1] : vector<32x128xf32> to vector<32xf32>
    %25 = vector.extract_strided_slice %5 {offsets = [2, 0], sizes = [1, 128], strides = [1, 1]} : vector<8x128xf32> to vector<1x128xf32>
    %26 = vector.broadcast %25 : vector<1x128xf32> to vector<32x128xf32>
    %27 = arith.mulf %6, %26 : vector<32x128xf32>
    %cst_19 = arith.constant dense<0.000000e+00> : vector<32x128xf32>
    %28 = tpu.matmul %27, %3, %cst_19 {dimension_numbers = #tpu.dot_dimension_numbers<[1], [0], [0], [1], [0, 0, 1, 1], [], []>} : vector<32x128xf32>, vector<128x128xf32>, vector<32x128xf32> -> vector<32x128xf32>
    %29 = math.absf %28 : vector<32x128xf32>
    %c0_20 = arith.constant 0 : index
    %c2 = arith.constant 2 : index
    %c0_21 = arith.constant 0 : index
    %c0_22 = arith.constant 0 : index
    %30 = vector.load %arg5[%c0_20, %c2, %c0_21, %c0_22] : memref<1x8x32x128xf32, #tpu.memory_space<vmem>>, vector<1x1x32x128xf32>
    %31 = vector.shape_cast %30 : vector<1x1x32x128xf32> to vector<32x128xf32>
    %32 = vector.shape_cast %29 : vector<32x128xf32> to vector<1x1x32x128xf32>
    tpu.vector_store %arg5[%c0_20, %c2, %c0_21, %c0_22], %32 {strides = array<i32>} : memref<1x8x32x128xf32, #tpu.memory_space<vmem>>, vector<1x1x32x128xf32>,
    %cst_23 = arith.constant dense<0.000000e+00> : vector<32xf32>
    %33 = vector.multi_reduction <add>, %29, %cst_23 [1] : vector<32x128xf32> to vector<32xf32>
    %34 = vector.extract_strided_slice %5 {offsets = [3, 0], sizes = [1, 128], strides = [1, 1]} : vector<8x128xf32> to vector<1x128xf32>
    %35 = vector.broadcast %34 : vector<1x128xf32> to vector<32x128xf32>
    %36 = arith.mulf %6, %35 : vector<32x128xf32>
    %cst_24 = arith.constant dense<0.000000e+00> : vector<32x128xf32>
    %37 = tpu.matmul %36, %3, %cst_24 {dimension_numbers = #tpu.dot_dimension_numbers<[1], [0], [0], [1], [0, 0, 1, 1], [], []>} : vector<32x128xf32>, vector<128x128xf32>, vector<32x128xf32> -> vector<32x128xf32>
    %38 = math.absf %37 : vector<32x128xf32>
    %c0_25 = arith.constant 0 : index
    %c3 = arith.constant 3 : index
    %c0_26 = arith.constant 0 : index
    %c0_27 = arith.constant 0 : index
    %39 = vector.load %arg5[%c0_25, %c3, %c0_26, %c0_27] : memref<1x8x32x128xf32, #tpu.memory_space<vmem>>, vector<1x1x32x128xf32>
    %40 = vector.shape_cast %39 : vector<1x1x32x128xf32> to vector<32x128xf32>
    %41 = vector.shape_cast %38 : vector<32x128xf32> to vector<1x1x32x128xf32>
    tpu.vector_store %arg5[%c0_25, %c3, %c0_26, %c0_27], %41 {strides = array<i32>} : memref<1x8x32x128xf32, #tpu.memory_space<vmem>>, vector<1x1x32x128xf32>,
    %cst_28 = arith.constant dense<0.000000e+00> : vector<32xf32>
    %42 = vector.multi_reduction <add>, %38, %cst_28 [1] : vector<32x128xf32> to vector<32xf32>
    %43 = vector.extract_strided_slice %5 {offsets = [4, 0], sizes = [1, 128], strides = [1, 1]} : vector<8x128xf32> to vector<1x128xf32>
    %44 = vector.broadcast %43 : vector<1x128xf32> to vector<32x128xf32>
    %45 = arith.mulf %6, %44 : vector<32x128xf32>
    %cst_29 = arith.constant dense<0.000000e+00> : vector<32x128xf32>
    %46 = tpu.matmul %45, %3, %cst_29 {dimension_numbers = #tpu.dot_dimension_numbers<[1], [0], [0], [1], [0, 0, 1, 1], [], []>} : vector<32x128xf32>, vector<128x128xf32>, vector<32x128xf32> -> vector<32x128xf32>
    %47 = math.absf %46 : vector<32x128xf32>
    %c0_30 = arith.constant 0 : index
    %c4 = arith.constant 4 : index
    %c0_31 = arith.constant 0 : index
    %c0_32 = arith.constant 0 : index
    %48 = vector.load %arg5[%c0_30, %c4, %c0_31, %c0_32] : memref<1x8x32x128xf32, #tpu.memory_space<vmem>>, vector<1x1x32x128xf32>
    %49 = vector.shape_cast %48 : vector<1x1x32x128xf32> to vector<32x128xf32>
    %50 = vector.shape_cast %47 : vector<32x128xf32> to vector<1x1x32x128xf32>
    tpu.vector_store %arg5[%c0_30, %c4, %c0_31, %c0_32], %50 {strides = array<i32>} : memref<1x8x32x128xf32, #tpu.memory_space<vmem>>, vector<1x1x32x128xf32>,
    %cst_33 = arith.constant dense<0.000000e+00> : vector<32xf32>
    %51 = vector.multi_reduction <add>, %47, %cst_33 [1] : vector<32x128xf32> to vector<32xf32>
    %52 = vector.extract_strided_slice %5 {offsets = [5, 0], sizes = [1, 128], strides = [1, 1]} : vector<8x128xf32> to vector<1x128xf32>
    %53 = vector.broadcast %52 : vector<1x128xf32> to vector<32x128xf32>
    %54 = arith.mulf %6, %53 : vector<32x128xf32>
    %cst_34 = arith.constant dense<0.000000e+00> : vector<32x128xf32>
    %55 = tpu.matmul %54, %3, %cst_34 {dimension_numbers = #tpu.dot_dimension_numbers<[1], [0], [0], [1], [0, 0, 1, 1], [], []>} : vector<32x128xf32>, vector<128x128xf32>, vector<32x128xf32> -> vector<32x128xf32>
    %56 = math.absf %55 : vector<32x128xf32>
    %c0_35 = arith.constant 0 : index
    %c5 = arith.constant 5 : index
    %c0_36 = arith.constant 0 : index
    %c0_37 = arith.constant 0 : index
    %57 = vector.load %arg5[%c0_35, %c5, %c0_36, %c0_37] : memref<1x8x32x128xf32, #tpu.memory_space<vmem>>, vector<1x1x32x128xf32>
    %58 = vector.shape_cast %57 : vector<1x1x32x128xf32> to vector<32x128xf32>
    %59 = vector.shape_cast %56 : vector<32x128xf32> to vector<1x1x32x128xf32>
    tpu.vector_store %arg5[%c0_35, %c5, %c0_36, %c0_37], %59 {strides = array<i32>} : memref<1x8x32x128xf32, #tpu.memory_space<vmem>>, vector<1x1x32x128xf32>,
    %cst_38 = arith.constant dense<0.000000e+00> : vector<32xf32>
    %60 = vector.multi_reduction <add>, %56, %cst_38 [1] : vector<32x128xf32> to vector<32xf32>
    %61 = vector.extract_strided_slice %5 {offsets = [6, 0], sizes = [1, 128], strides = [1, 1]} : vector<8x128xf32> to vector<1x128xf32>
    %62 = vector.broadcast %61 : vector<1x128xf32> to vector<32x128xf32>
    %63 = arith.mulf %6, %62 : vector<32x128xf32>
    %cst_39 = arith.constant dense<0.000000e+00> : vector<32x128xf32>
    %64 = tpu.matmul %63, %3, %cst_39 {dimension_numbers = #tpu.dot_dimension_numbers<[1], [0], [0], [1], [0, 0, 1, 1], [], []>} : vector<32x128xf32>, vector<128x128xf32>, vector<32x128xf32> -> vector<32x128xf32>
    %65 = math.absf %64 : vector<32x128xf32>
    %c0_40 = arith.constant 0 : index
    %c6 = arith.constant 6 : index
    %c0_41 = arith.constant 0 : index
    %c0_42 = arith.constant 0 : index
    %66 = vector.load %arg5[%c0_40, %c6, %c0_41, %c0_42] : memref<1x8x32x128xf32, #tpu.memory_space<vmem>>, vector<1x1x32x128xf32>
    %67 = vector.shape_cast %66 : vector<1x1x32x128xf32> to vector<32x128xf32>
    %68 = vector.shape_cast %65 : vector<32x128xf32> to vector<1x1x32x128xf32>
    tpu.vector_store %arg5[%c0_40, %c6, %c0_41, %c0_42], %68 {strides = array<i32>} : memref<1x8x32x128xf32, #tpu.memory_space<vmem>>, vector<1x1x32x128xf32>,
    %cst_43 = arith.constant dense<0.000000e+00> : vector<32xf32>
    %69 = vector.multi_reduction <add>, %65, %cst_43 [1] : vector<32x128xf32> to vector<32xf32>
    %70 = vector.extract_strided_slice %5 {offsets = [7, 0], sizes = [1, 128], strides = [1, 1]} : vector<8x128xf32> to vector<1x128xf32>
    %71 = vector.broadcast %70 : vector<1x128xf32> to vector<32x128xf32>
    %72 = arith.mulf %6, %71 : vector<32x128xf32>
    %cst_44 = arith.constant dense<0.000000e+00> : vector<32x128xf32>
    %73 = tpu.matmul %72, %3, %cst_44 {dimension_numbers = #tpu.dot_dimension_numbers<[1], [0], [0], [1], [0, 0, 1, 1], [], []>} : vector<32x128xf32>, vector<128x128xf32>, vector<32x128xf32> -> vector<32x128xf32>
    %74 = math.absf %73 : vector<32x128xf32>
    %c0_45 = arith.constant 0 : index
    %c7 = arith.constant 7 : index
    %c0_46 = arith.constant 0 : index
    %c0_47 = arith.constant 0 : index
    %75 = vector.load %arg5[%c0_45, %c7, %c0_46, %c0_47] : memref<1x8x32x128xf32, #tpu.memory_space<vmem>>, vector<1x1x32x128xf32>
    %76 = vector.shape_cast %75 : vector<1x1x32x128xf32> to vector<32x128xf32>
    %77 = vector.shape_cast %74 : vector<32x128xf32> to vector<1x1x32x128xf32>
    tpu.vector_store %arg5[%c0_45, %c7, %c0_46, %c0_47], %77 {strides = array<i32>} : memref<1x8x32x128xf32, #tpu.memory_space<vmem>>, vector<1x1x32x128xf32>,
    %cst_48 = arith.constant dense<0.000000e+00> : vector<32xf32>
    %78 = vector.multi_reduction <add>, %74, %cst_48 [1] : vector<32x128xf32> to vector<32xf32>
    %79 = vector.shape_cast %15 : vector<32xf32> to vector<1x32xf32>
    %80 = vector.shape_cast %24 : vector<32xf32> to vector<1x32xf32>
    %81 = vector.shape_cast %33 : vector<32xf32> to vector<1x32xf32>
    %82 = vector.shape_cast %42 : vector<32xf32> to vector<1x32xf32>
    %83 = vector.shape_cast %51 : vector<32xf32> to vector<1x32xf32>
    %84 = vector.shape_cast %60 : vector<32xf32> to vector<1x32xf32>
    %85 = vector.shape_cast %69 : vector<32xf32> to vector<1x32xf32>
    %86 = vector.shape_cast %78 : vector<32xf32> to vector<1x32xf32>
    %87 = tpu.concatenate %79, %80, %81, %82, %83, %84, %85, %86 in 0 : vector<1x32xf32>, vector<1x32xf32>, vector<1x32xf32>, vector<1x32xf32>, vector<1x32xf32>, vector<1x32xf32>, vector<1x32xf32>, vector<1x32xf32> -> vector<8x32xf32>
    %cst_49 = arith.constant 6.250000e-02 : f32
    %88 = vector.broadcast %cst_49 : f32 to vector<8x32xf32>
    %89 = arith.mulf %87, %88 : vector<8x32xf32>
    %c0_50 = arith.constant 0 : index
    %c0_51 = arith.constant 0 : index
    %c0_52 = arith.constant 0 : index
    %90 = vector.load %arg6[%c0_50, %c0_51, %c0_52] : memref<1x8x32xf32, #tpu.memory_space<vmem>>, vector<1x8x32xf32>
    %91 = vector.shape_cast %90 : vector<1x8x32xf32> to vector<8x32xf32>
    %92 = vector.shape_cast %89 : vector<8x32xf32> to vector<1x8x32xf32>
    tpu.vector_store %arg6[%c0_50, %c0_51, %c0_52], %92 {strides = array<i32>} : memref<1x8x32xf32, #tpu.memory_space<vmem>>, vector<1x8x32xf32>,
    return
  }
  func.func @transform_0(%arg0: i32, %arg1: i32) -> (i32, i32, i32) {
    %c0_i32 = arith.constant 0 : i32
    %c0_i32_0 = arith.constant 0 : i32
    return %arg0, %arg1, %c0_i32 : i32, i32, i32
  }
  func.func @transform_1(%arg0: i32, %arg1: i32) -> (i32, i32, i32) {
    %c0_i32 = arith.constant 0 : i32
    %c0_i32_0 = arith.constant 0 : i32
    %c0_i32_1 = arith.constant 0 : i32
    return %arg0, %c0_i32, %c0_i32_0 : i32, i32, i32
  }
  func.func @transform_2(%arg0: i32, %arg1: i32) -> (i32, i32, i32) {
    %c0_i32 = arith.constant 0 : i32
    %c0_i32_0 = arith.constant 0 : i32
    %c0_i32_1 = arith.constant 0 : i32
    return %arg0, %c0_i32, %c0_i32_0 : i32, i32, i32
  }
  func.func @transform_3(%arg0: i32, %arg1: i32) -> (i32, i32, i32, i32) {
    %c0_i32 = arith.constant 0 : i32
    %c0_i32_0 = arith.constant 0 : i32
    %c0_i32_1 = arith.constant 0 : i32
    return %arg0, %c0_i32, %arg1, %c0_i32_0 : i32, i32, i32, i32
  }
  func.func @transform_4(%arg0: i32, %arg1: i32) -> (i32, i32, i32) {
    %c0_i32 = arith.constant 0 : i32
    %c0_i32_0 = arith.constant 0 : i32
    return %arg0, %c0_i32, %arg1 : i32, i32, i32
  }
}

</mosaic_0001>

<bundles_post_ra>
// kernel: custom-call.2
= control target key start
LH: loop header
LB: loop body
LE: loop exit
PB: predicated region body
PF: predicated region fallthrough
CT: control target
= control target key end

     0   :  { %s1688_s30 = smov 0   ;;  %s1690_s10 = smov 0   ;;  %s1997_s0 = inlined_call_operand.vmem [shape: f32[2,8,8], index: 0, kind: input, shape index: {}]   ;;  %s1998_s1 = inlined_call_operand.vmem [shape: f32[2,8,8], index: 1, kind: input, shape index: {}]   ;;  %s1999_s2 = inlined_call_operand.vmem [shape: f32[2,8,8], index: 2, kind: input, shape index: {}]   ;;  %s2000_s3 = inlined_call_operand.vmem [shape: f32[2,8,8], index: 3, kind: input, shape index: {}]   ;;  %s2001_s4 = inlined_call_operand.vmem [shape: f32[2,8], index: 4, kind: output, shape index: {0}]   ;;  %s2002_s5 = inlined_call_operand.vmem [shape: f32[2,8], index: 5, kind: output, shape index: {1}]   ;;  %s2003_s6 = inlined_call_operand.vmem [shape: f32[2,8,8], index: 6, kind: output, shape index: {2}]   ;;  %s2004_s7 = inlined_call_operand.vmem [shape: f32[2,8,8], index: 7, kind: output, shape index: {3}]   ;;  %s2005_s8 = inlined_call_operand.vmem [shape: f32[2,8,8], index: 8, kind: output, shape index: {4}]   ;;  %s2006_s9 = inlined_call_operand.vmem [shape: f32[2,8,8], index: 9, kind: output, shape index: {5}]  }
   0x1   :  { %s1692_s11 = smov 0  }
   0x2 LB: > { %s1704_s12 = sadd.s32 4294967295, %s1625_s11   ;;  %s1707_s13 = sadd.s32 1, %s1625_s11   ;;  %s1625_s11 = sphi %s1692_s11, %s2015_s11   ;;  %s1621_s10 = sphi %s1690_s10, %s2014_s10   ;;  %s1617_s30 = sphi %s1688_s30, %s2013_s30  }
   0x3   : > { %s20_s14 = sshrl.u32 %s1625_s11, 3  ;;  %s21_s15 = sshrl.u32 %s1707_s13, 3 }
   0x4   : > { %s22_s16 = ssub.s32 %s20_s14, %s21_s15  ;;  %s25_s17 = sadd.s32 1, %s1621_s10 }
   0x5   : > { %p23_p0 = scmp.eq.s32.totalorder %s22_s16, 0  ;;  %p35_p1 = scmp.ne.s32.totalorder %s1621_s10, %s1617_s30 }
   0x6   : > { %p36_p2 = scmp.eq.s32.totalorder %s1704_s12, 1  ;;  %p1486_p4 = scmp.ge.s32.totalorder %s1625_s11, 2 }
   0x7   : > { %s1716_s18 = scalar_select %p23_p0, %s1621_s10, %s25_s17  }
   0x8   : > { %p1718_p3 = por %p36_p2, %p35_p1  ;;  %86 = sbr.rel (%p1486_p4) target bundleno = 18 (0x12), region = 16 }
   0x9   : > { %2007 = sst [smem:[#allocation25_spill]] %s1716_s18  ;;  %s88_s20 = sand.u32 (!%p1486_p4), 1, %s1625_s11  }
   0xa   : > { %s1488_s21 = sshll.u32 (!%p1486_p4), %s1625_s11, 3  ;;  %s1487_s22 = sshll.u32 (!%p1486_p4), %s88_s20, 3 }
   0xb   : > { %s92_s25 = scalar_lea.vmem (!%p1486_p4), %s1997_s0, %s1488_s21  ;;  %s90_s26 = scalar_lea.vmem (!%p1486_p4), [#allocation0], %s1487_s22 }
   0xc   : > { %s131_s29 = scalar_lea.vmem (!%p1486_p4), %s1998_s1, %s1488_s21  ;;  %s170_s16 = scalar_lea.vmem (!%p1486_p4), %s1999_s2, %s1488_s21 }
   0xd   : > { %v121_v0 = vld [vmem:[%s92_s25] sm:$0xff]  ;;  %s129_s17 = scalar_lea.vmem [#allocation1], %s1487_s22  ;;  %s209_s23 = scalar_lea.vmem %s2000_s3, %s1488_s21 }
   0xe   : > { %122 = vst [vmem:[%s90_s26] sm:$0xff] %v121_v0  ;;  %v160_v1 = vld [vmem:[%s131_s29] sm:$0xff]  ;;  %s168_s24 = scalar_lea.vmem [#allocation2], %s1487_s22  ;;  %s207_s25 = scalar_lea.vmem [#allocation3], %s1487_s22 }
   0xf   : > { %161 = vst [vmem:[%s129_s17] sm:$0xff] %v160_v1  ;;  %v199_v2 = vld [vmem:[%s170_s16] sm:$0xff] }
  0x10   : > { %200 = vst [vmem:[%s168_s24] sm:$0xff] %v199_v2  ;;  %v238_v3 = vld [vmem:[%s209_s23] sm:$0xff] }
  0x11   : > { %239 = vst [vmem:[%s207_s25] sm:$0xff] %v238_v3 }
  0x12 PF: > { %p1495_p5 = scmp.ge.s32.totalorder %s1625_s11, 1  ;;  %p244_p6 = scmp.lt.s32.totalorder %s1625_s11, 3 }
  0x14   : > { %p245_p7 = pnand %p1495_p5, %p244_p6 }
  0x16   : > { %248 = sbr.rel (%p245_p7) target bundleno = 987 (0x3db), region = 156 }
  0x1b   : > { %s251_s26 = sand.u32 1, %s1704_s12   ;;  %s285_s27 = sand.u32 1, %s1617_s30   ;;  %v329_v4 = vlaneseq  ;;  %v1635_v11 = vmov 0.0  }
  0x1c   : > { %s1496_s28 = sshll.u32 %s251_s26, 3  ;;  %s1741_s18 = sshll.u32 %s285_s27, 1 }
  0x1d   : > { %v1743_v5 = vand.u32 127, %v329_v4  ;;  %v1745_v6 = vshrl.u32 %v329_v4, 7  ;;  %s253_s21 = scalar_lea.vmem [#allocation0], %s1496_s28  ;;  %s257_s22 = scalar_lea.vmem [#allocation1], %s1496_s28 }
  0x1e   : > { %v313_v7 = vld [vmem:[%s253_s21] sm:$0xff]  ;;  %v316_v8 = vld [vmem:[%s257_s22] sm:$0xff]  ;;  %s261_s29 = scalar_lea.vmem [#allocation2], %s1496_s28  ;;  %s265_s11 = scalar_lea.vmem [#allocation3], %s1496_s28 }
  0x1f   : > { %v319_v9 = vld [vmem:[%s261_s29] sm:$0xff]  ;;  %v322_v10 = vld [vmem:[%s265_s11] sm:$0xff]  ;;  %s1747_s14 = scalar_lea.vmem [#allocation8], %s1496_s28  ;;  %s1750_s30 = scalar_lea.vmem [#allocation9], %s1496_s28  ;;  %v331_v5 = vmov %v1743_v5  ;;  %v334_v6 = vmov %v1745_v6  ;;  %vm1375_vm2 = vcmp.lt.s32.totalorder %v1743_v5, 8 }
  0x20   : > { %324 = vst [vmem:[%s1747_s14] sm:$0xff] %v1635_v11  ;;  %325 = vst [vmem:[%s1750_s30] sm:$0xff] %v1635_v11  ;;  %s312_s15 = smov [#allocation12]  ;;  %s315_s16 = smov [#allocation13]  ;;  %v344_v5 = vmov %v1743_v5  ;;  %v347_v6 = vmov %v1745_v6  ;;  %vm338_vm0 = vcmp.eq.s32.totalorder %v334_v6, %v331_v5 }
  0x21   : > { %s1753_s17 = scalar_lea.vmem [#allocation10], %s1496_s28  ;;  %s1756_s20 = scalar_lea.vmem [#allocation11], %s1496_s28  ;;  %314 = vst [vmem:[%s312_s15] sm:$0xff] %v313_v7  ;;  %317 = vst [vmem:[%s315_s16] sm:$0xff] %v316_v8  ;;  %vm351_vm1 = vcmp.eq.s32.totalorder %v347_v6, %v344_v5  ;;  %v1367_v5 = vmov %v1743_v5  ;;  %v1370_v6 = vmov %v1745_v6 }
  0x22   : > { %326 = vst [vmem:[%s1753_s17] sm:$0xff] %v1635_v11  ;;  %327 = vst [vmem:[%s1756_s20] sm:$0xff] %v1635_v11  ;;  %s318_s23 = smov [#allocation14]  ;;  %s321_s24 = smov [#allocation15]  ;;  %vm1380_vm3 = vcmp.eq.s32.totalorder %v1370_v6, %v1367_v5  ;;  %v1418_v5 = vmov %v1743_v5  ;;  %v1387_v6 = vmov %v1745_v6 }
  0x23   : > { %320 = vst [vmem:[%s318_s23] sm:$0xff] %v319_v9  ;;  %323 = vst [vmem:[%s321_s24] sm:$0xff] %v322_v10  ;;  %s328_s14 = smov %s1747_s14  ;;  %s341_s20 = smov %s1756_s20  ;;  %v1384_v5 = vmov %v1743_v5  ;;  %v1421_v6 = vmov %v1745_v6 }
  0x24   : > { %s287_s25 = scalar_lea.vmem [#allocation5], %s1741_s18  ;;  %s1371_s27 = smov [#allocation12]  ;;  %v1401_v5 = vmov %v1743_v5  ;;  %v1404_v6 = vmov %v1745_v6  ;;  %vm1431_vm4 = vcmp.eq.s32.totalorder %v1421_v6, %v1418_v5 }
  0x25   : > { %s1388_s28 = smov [#allocation13]  ;;  %s1405_s21 = smov [#allocation14] }
  0x26   : > { %s1422_s22 = smov [#allocation15] }
  0x27   : > { %v335_v12 = vld [vmem:[%s328_s14] sm:$0xff] }
  0x28   : > { %v339_v13 = vsel %vm338_vm0, 1.0, %v335_v12  ;;  %v1377_v16 = vld [vmem:[%s1371_s27] sm:$0xff] }
  0x29   : > { %v348_v14 = vld [vmem:[%s341_s20] sm:$0xff]  ;;  %340 = vst [vmem:[%s328_s14] sm:$0xff] %v339_v13  ;;  %v1378_v18 = vsel %vm1375_vm2, %v1377_v16, 0.0 }
  0x2a   : > { %v352_v15 = vsel %vm351_vm1, 1.0, %v348_v14  ;;  %v1394_v17 = vld [vmem:[%s1388_s28] sm:$0xff]  ;;  %v1379_v22 = vmul.f32 %v1378_v18, %v1378_v18 }
  0x2b   : > { %353 = vst [vmem:[%s341_s20] sm:$0xff] %v352_v15  ;;  %v1395_v19 = vsel %vm1375_vm2, %v1394_v17, 0.0  ;;  %v1411_v20 = vld [vmem:[%s1405_s21] sm:$0xff] }
  0x2c   : > { %v1428_v21 = vld [vmem:[%s1422_s22] sm:$0xff]  ;;  %v1396_v23 = vmul.f32 %v1395_v19, %v1395_v19  ;;  %v1412_v24 = vsel %vm1375_vm2, %v1411_v20, 0.0  ;;  %v1381_v29 = vsel %vm1380_vm3, 0.0, %v1379_v22 }
  0x2d   : > { %v1429_v25 = vsel %vm1375_vm2, %v1428_v21, 0.0  ;;  %v1413_v26 = vmul.f32 %v1412_v24, %v1412_v24 }
  0x2e   : > { %v1398_v27 = vadd.f32 %v1396_v23, %v1379_v22  ;;  %v1430_v28 = vmul.f32 %v1429_v25, %v1429_v25  ;;  %v1397_v30 = vadd.f32 %v1396_v23, %v1381_v29 }
  0x30   : > { %v1415_v31 = vadd.f32 %v1413_v26, %v1398_v27  ;;  %v1414_v32 = vadd.f32 %v1413_v26, %v1397_v30  ;;  %v1432_v33 = vsel %vm1431_vm4, 0.0, %v1430_v28 }
  0x32   : > { %v1434_v34 = vadd.f32 %v1430_v28, %v1415_v31  ;;  %v1433_v35 = vadd.f32 %v1432_v33, %v1414_v32 }
  0x34   : > { %1435 = vadd.xlane.f32.xlu0 %v1434_v34 }
  0x38   : > { %1443 = vadd.xlane.f32.xlu0 %v1433_v35 }
  0xbd   : > { %v1436_v36 = vpop.xlane.xlu0 %1435 }
  0xbe   : > { %v1437_v37 = vrot.slane %v1436_v36, 4 }
  0xc0   : > { %v1438_v38 = vadd.f32 %v1437_v37, %v1436_v36 }
  0xc1   : > { %v1444_v39 = vpop.xlane.xlu0 %1443 }
  0xc2   : > { %v1439_v40 = vrot.slane %v1438_v38, 2  ;;  %v1445_v41 = vrot.slane %v1444_v39, 4 }
  0xc4   : > { %v1446_v42 = vadd.f32 %v1445_v41, %v1444_v39  ;;  %v1440_v43 = vadd.f32 %v1439_v40, %v1438_v38 }
  0xc6   : > { %v1447_v44 = vrot.slane %v1446_v42, 2  ;;  %v1441_v46 = vrot.slane %v1440_v43, 1 }
  0xc8   : > { %v1448_v45 = vadd.f32 %v1447_v44, %v1446_v42  ;;  %v1442_v49 = vadd.f32 %v1441_v46, %v1440_v43 }
  0xca   : > { %v1449_v47 = vrot.slane %v1448_v45, 1 }
  0xcc   : > { %v1450_v48 = vadd.f32 %v1449_v47, %v1448_v45 }
  0xce   : > { %1536 = vpush %v1450_v48 }
  0xcf   : > { %1538 = vpush %v1442_v49 }
  0xff   : > { %s1537_s29 = spop %1536 }
 0x100   : > { %s1539_s11 = spop %1538 }
 0x101   : > { %s1453_s15 = smul.f32 1e-10, %s1539_s11 }
 0x103   : > { %p1454_p8 = scmp.le.f32.partialorder %s1537_s29, %s1453_s15 }
 0x104   : > { %s1785_s16 = smov (!%p1454_p8), 0  }
 0x105   : > { %1457 = sbr.rel (%p1454_p8) target bundleno = 943 (0x3af), region = 499 }
 0x10a LB: >> { %s1790_s23 = smov 0   ;;  %s1629_s16 = sphi %s1785_s16, %s2009_s16  }
 0x10b LB: >>> { %s458_s24 = smov [#allocation12]  ;;  %v462_v5 = vmov %v1743_v5  ;;  %v465_v6 = vmov %v1745_v6  ;;  %s478_s27 = smov [#allocation13]  ;;  %vm781_vm14 = vcmp.eq.s32.totalorder %v1745_v6, 0  ;;  %vm793_vm15 = vcmp.eq.s32.totalorder %v1745_v6, 7  ;;  %s1633_s23 = sphi %s1790_s23, %s457_s23  }
 0x10c   : >>> { %v482_v5 = vmov %v1743_v5  ;;  %v485_v6 = vmov %v1745_v6  ;;  %v466_v50 = vld [vmem:[%s458_s24] sm:$0xff]  ;;  %vm469_vm5 = vcmp.eq.s32.totalorder %v465_v6, %v462_v5  ;;  %s498_s28 = smov [#allocation15]  ;;  %s459_s21 = smov [#allocation16] }
 0x10d   : >>> { %vm489_vm6 = vcmp.eq.s32.totalorder %v485_v6, %v482_v5  ;;  %v502_v5 = vmov %v1743_v5  ;;  %v505_v6 = vmov %v1745_v6  ;;  %v470_v51 = vsel %vm469_vm5, %v466_v50, 0.0  ;;  %v486_v52 = vld [vmem:[%s478_s27] sm:$0xff]  ;;  %s479_s22 = smov [#allocation17]  ;;  %s499_s29 = smov [#allocation18] }
 0x10e   : >>> { %vm509_vm7 = vcmp.eq.s32.totalorder %v505_v6, %v502_v5  ;;  %v471_v53 = vrot.slane %v470_v51, 4  ;;  %v490_v54 = vsel %vm489_vm6, %v486_v52, 0.0  ;;  %v506_v55 = vld [vmem:[%s498_s28] sm:$0xff]  ;;  %s522_s11 = smov [#allocation17]  ;;  %s520_s15 = smov [#allocation16]  ;;  %v571_v5 = vmov %v1743_v5 }
 0x10f   : >>> { %v491_v56 = vrot.slane %v490_v54, 4  ;;  %v510_v57 = vsel %vm509_vm7, %v506_v55, 0.0  ;;  %s524_s24 = smov [#allocation18]  ;;  %s559_s27 = smov [#allocation19]  ;;  %v574_v6 = vmov %v1745_v6  ;;  %v586_v5 = vmov %v1743_v5 }
 0x110   : >>> { %v472_v58 = vadd.f32 %v471_v53, %v470_v51  ;;  %v511_v59 = vrot.slane %v510_v57, 4  ;;  %s561_s28 = smov [#allocation20]  ;;  %v589_v6 = vmov %v1745_v6  ;;  %vm576_vm12 = vcmp.eq.s32.totalorder %v574_v6, %v571_v5  ;;  %s1812_s14 = smov %s1747_s14 }
 0x111   : >>> { %v492_v60 = vadd.f32 %v491_v56, %v490_v54  ;;  %vm591_vm13 = vcmp.eq.s32.totalorder %v589_v6, %v586_v5  ;;  %s1815_s30 = smov %s1750_s30  ;;  %s1818_s17 = smov %s1753_s17  ;;  %v829_v52 = vld [vmem:[%s1812_s14] sm:$0xff]  ;;  %v684_v5 = vmov %v1743_v5  ;;  %v687_v6 = vmov %v1745_v6 }
 0x112   : >>> { %v473_v61 = vrot.slane %v472_v58, 2  ;;  %v512_v62 = vadd.f32 %v511_v59, %v510_v57  ;;  %s1822_s20 = smov %s1756_s20  ;;  %v830_v53 = vld [vmem:[%s1815_s30] sm:$0xff]  ;;  %s823_s26 = smov [#allocation24]  ;;  %v657_v5 = vmov %v1743_v5  ;;  %v660_v6 = vmov %v1745_v6 }
 0x113   : >>> { %v493_v63 = vrot.slane %v492_v60, 2  ;;  %v831_v56 = vld [vmem:[%s1818_s17] sm:$0xff]  ;;  %v698_v5 = vmov %v1743_v5  ;;  %v701_v6 = vmov %v1745_v6  ;;  %vm691_vm0 = vcmp.eq.s32.totalorder %v687_v6, %v684_v5  ;;  %s457_s23 = sadd.s32 1, %s1633_s23  }
 0x114   : >>> { %v474_v0 = vadd.f32 %v473_v61, %v472_v58  ;;  %v513_v1 = vrot.slane %v512_v62, 2  ;;  %v832_v57 = vld [vmem:[%s1822_s20] sm:$0xff]  ;;  %v671_v5 = vmov %v1743_v5  ;;  %v674_v6 = vmov %v1745_v6  ;;  %p454_p9 = scmp.ge.s32.totalorder %s457_s23, 15  }
 0x115   : >>> { %v494_v2 = vadd.f32 %v493_v63, %v492_v60  ;;  %vm665_vm1 = vcmp.eq.s32.totalorder %v660_v6, %v657_v5  ;;  %vm706_vm3 = vcmp.eq.s32.totalorder %v701_v6, %v698_v5  ;;  %vm678_vm4 = vcmp.eq.s32.totalorder %v674_v6, %v671_v5 }
 0x116   : >>> { %v475_v3 = vrot.slane %v474_v0, 1  ;;  %v514_v4 = vadd.f32 %v513_v1, %v512_v62  ;;  %vm720_vm5 = vcmp.eq.s32.totalorder %v1743_v5, 0  ;;  %vm724_vm6 = vcmp.eq.s32.totalorder %v1743_v5, 1 }
 0x117   : >>> { %v495_v7 = vrot.slane %v494_v2, 1  ;;  %vm737_vm7 = vcmp.eq.s32.totalorder %v1743_v5, 7  ;;  %v358_v5 = vmov (%p454_p9), %v1743_v5  ;;  %v361_v6 = vmov (%p454_p9), %v1745_v6 }
 0x118   : >>> { %v476_v8 = vadd.f32 %v475_v3, %v474_v0  ;;  %v515_v9 = vrot.slane %v514_v4, 1  ;;  %v411_v5 = vmov (%p454_p9), %v1743_v5 }
 0x119   : >>> { %v496_v10 = vadd.f32 %v495_v7, %v494_v2 }
 0x11a   : >>> { %477 = vst [vmem:[%s459_s21] sm:$0x1] %v476_v8  ;;  %v516_v11 = vadd.f32 %v515_v9, %v514_v4  ;;  %s518_s21 = smov [#allocation21] }
 0x11b   : >>> { %497 = vst [vmem:[%s479_s22] sm:$0x1] %v496_v10  ;;  %s519_s22 = smov [#allocation22]  ;;  %s563_s21 = smov %s518_s21 }
 0x11c   : >>> { %517 = vst [vmem:[%s499_s29] sm:$0x1] %v516_v11  ;;  %s565_s22 = smov %s519_s22  ;;  %s567_s29 = smov [#allocation21] }
 0x121   : >>> { %v521_v14 = vld [vmem:[%s520_s15] sm:$0xff]  ;;  %s580_s15 = smov [#allocation23] }
 0x122   : >>> { %v523_v12 = vld [vmem:[%s522_s11] sm:$0xff]  ;;  %v544_v29 = vand.u32 2147483647, %v521_v14  ;;  %s582_s11 = smov [#allocation22] }
 0x123   : >>> { %v527_v13 = vmul.f32 2.0, %v523_v12  ;;  %v525_v15 = vld [vmem:[%s524_s24] sm:$0xff]  ;;  %v545_v32 = vand.u32 2147483647, %v523_v12  ;;  %s597_s24 = smov [#allocation23] }
 0x124   : >>> { %v526_v16 = vsub.f32 %v525_v15, %v521_v14  ;;  %v546_v30 = vand.u32 2147483647, %v525_v15 }
 0x125   : >>> { %1587 = vrcp.f32 %v527_v13 }
 0x126   : >>> { %v547_v31 = vmin.f32 %v544_v29, %v546_v30 }
 0x128   : >>> { %v548_v33 = vmul.f32 1.1920929e-08, %v547_v31 }
 0x12a   : >>> { %vm549_vm11 = vcmp.le.f32.partialorder %v545_v32, %v548_v33 }
 0x132   : >>> { %v1588_v17 = vpop.eup %1587 }
 0x133   : >>> { %v529_v18 = vmul.f32 %v1588_v17, %v526_v16 }
 0x135   : >>> { %v531_v19 = vmul.f32 %v529_v18, %v529_v18  ;;  %vm530_vm10 = vcmp.ge.f32.partialorder %v529_v18, 0.0 }
 0x137   : >>> { %v532_v20 = vadd.f32 1.0, %v531_v19 }
 0x139   : >>> { %1589 = vrsqrt.f32 %v532_v20  ;;  %vm535_vm8 = vcmp.eq.f32.partialorder %v532_v20, inf  ;;  %v538_v22 = vand.u32 2147483648, %v532_v20  ;;  %vm537_vm9 = vcmp.eq.f32.partialorder %v532_v20, 0.0 }
 0x146   : >>> { %v1590_v21 = vpop.eup %1589 }
 0x147   : >>> { %v534_v23 = vmul.f32 %v1590_v21, %v532_v20 }
 0x149   : >>> { %v536_v24 = vsel %vm535_vm8, %v532_v20, %v534_v23  ;;  %vm373_vm8 = vcmp.eq.s32.totalorder (%p454_p9), %v361_v6, %v358_v5  ;;  %v414_v6 = vmov (%p454_p9), %v1745_v6  ;;  %v377_v5 = vmov (%p454_p9), %v1743_v5 }
 0x14a   : >>> { %v539_v25 = vsel %vm537_vm9, %v538_v22, %v536_v24  ;;  %v380_v6 = vmov (%p454_p9), %v1745_v6  ;;  %v394_v5 = vmov (%p454_p9), %v1743_v5  ;;  %vm426_vm9 = vcmp.eq.s32.totalorder (%p454_p9), %v414_v6, %v411_v5 }
 0x14b   : >>> { %v540_v26 = vxor.u32 2147483648, %v539_v25  ;;  %v397_v6 = vmov (%p454_p9), %v1745_v6 }
 0x14d   : >>> { %v541_v27 = vsel %vm530_vm10, %v539_v25, %v540_v26 }
 0x14e   : >>> { %v542_v28 = vadd.f32 %v541_v27, %v529_v18 }
 0x150   : >>> { %1591 = vrcp.f32 %v542_v28 }
 0x15d   : >>> { %v1592_v34 = vpop.eup %1591 }
 0x15e   : >>> { %v550_v35 = vsel %vm549_vm11, 0.0, %v1592_v34 }
 0x15f   : >>> { %v551_v36 = vmul.f32 %v550_v35, %v550_v35  ;;  %v555_v37 = vmul.f32 %v550_v35, %v523_v12 }
 0x161   : >>> { %v552_v38 = vadd.f32 1.0, %v551_v36  ;;  %v556_v39 = vsub.f32 %v521_v14, %v555_v37  ;;  %v558_v40 = vadd.f32 %v555_v37, %v525_v15 }
 0x163   : >>> { %1593 = vrsqrt.f32 %v552_v38  ;;  %560 = vst [vmem:[%s559_s27] sm:$0xff] %v556_v39  ;;  %562 = vst [vmem:[%s561_s28] sm:$0xff] %v558_v40  ;;  %s1805_s27 = smov [#allocation12]  ;;  %s595_s28 = smov [#allocation24] }
 0x164   : >>> { %v605_v49 = vld [vmem:[%s1805_s27] sm:$0xff] }
 0x170   : >>> { %v1594_v41 = vpop.eup %1593 }
 0x171   : >>> { %564 = vst [vmem:[%s563_s21] sm:$0xff] %v1594_v41  ;;  %v554_v42 = vmul.f32 %v1594_v41, %v550_v35  ;;  %s1807_s21 = smov [#allocation13] }
 0x172   : >>> { %v606_v50 = vld [vmem:[%s1807_s21] sm:$0xff] }
 0x173   : >>> { %566 = vst [vmem:[%s565_s22] sm:$0xff] %v554_v42  ;;  %s1809_s22 = smov [#allocation15] }
 0x174   : >>> { %v608_v51 = vld [vmem:[%s1809_s22] sm:$0xff] }
 0x178   : >>> { %v568_v43 = vld [vmem:[%s567_s29] ss:$0 sm:$0xff]  ;;  %s821_s29 = smov [#allocation23] }
 0x179   : >>> { %v577_v44 = vsel %vm576_vm12, %v568_v43, 0.0 }
 0x17a   : >>> { %578 = vadd.xlane.f32.xlu0 %v577_v44  ;;  %v583_v45 = vld [vmem:[%s582_s11] ss:$0 sm:$0xff]  ;;  %s1824_s11 = smov [#allocation14] }
 0x17b   : >>> { %v592_v46 = vsel %vm591_vm13, %v583_v45, 0.0  ;;  %v607_v58 = vld [vmem:[%s1824_s11] sm:$0xff] }
 0x17e   : >>> { %593 = vadd.xlane.f32.xlu0 %v592_v46 }
 0x203   : >>> { %v579_v47 = vpop.xlane.xlu0 %578 }
 0x204   : >>> { %581 = vst [vmem:[%s580_s15] sm:$0xff] %v579_v47  ;;  %s599_s15 = smov [#allocation24] }
 0x207   : >>> { %v594_v48 = vpop.xlane.xlu0 %593 }
 0x208   : >>> { %596 = vst [vmem:[%s595_s28] sm:$0xff] %v594_v48  ;;  %s1851_s28 = smov [#allocation14] }
 0x20b   : >>> { %v598_v54 = vld [vmem:[%s597_s24] sm:$0xff]  ;;  %s627_s24 = smov [#allocation22] }
 0x20c   : >>> { %v822_v55 = vld [vmem:[%s821_s29] sm:$0xff]  ;;  %v609_v59 = vmul.f32 %v605_v49, %v598_v54  ;;  %v612_v60 = vmul.f32 %v606_v50, %v598_v54  ;;  %v619_v61 = vmul.f32 %v608_v51, %v598_v54  ;;  %v616_v4 = vmul.f32 %v607_v58, %v598_v54  ;;  %s654_s29 = smov [#allocation19] }
 0x20d   : >>> { %v833_v62 = vmul.f32 %v829_v52, %v822_v55  ;;  %v836_v63 = vmul.f32 %v830_v53, %v822_v55  ;;  %v840_v0 = vmul.f32 %v831_v56, %v822_v55  ;;  %v843_v1 = vmul.f32 %v832_v57, %v822_v55  ;;  %v628_v24 = vld [vmem:[%s627_s24] ss:$0 sm:$0xff]  ;;  %s694_s24 = smov [#allocation15] }
 0x20e   : >>> { %v661_v55 = vld [vmem:[%s654_s29] ss:$0 sm:$0xff]  ;;  %s710_s29 = smov [#allocation13] }
 0x20f   : >>> { %v600_v2 = vld [vmem:[%s599_s15] sm:$0xff]  ;;  %s681_s15 = smov [#allocation14] }
 0x210   : >>> { %v824_v3 = vld [vmem:[%s823_s26] sm:$0xff]  ;;  %v613_v7 = vmul.f32 %v608_v51, %v600_v2  ;;  %v615_v8 = vmul.f32 %v605_v49, %v600_v2  ;;  %v618_v9 = vmul.f32 %v606_v50, %v600_v2  ;;  %v610_v14 = vmul.f32 %v607_v58, %v600_v2  ;;  %s625_s26 = smov [#allocation21] }
 0x211   : >>> { %v834_v10 = vmul.f32 %v831_v56, %v824_v3  ;;  %v837_v11 = vmul.f32 %v832_v57, %v824_v3  ;;  %v839_v12 = vmul.f32 %v829_v52, %v824_v3  ;;  %v842_v13 = vmul.f32 %v830_v53, %v824_v3  ;;  %v626_v23 = vld [vmem:[%s625_s26] ss:$0 sm:$0xff]  ;;  %s653_s26 = smov [#allocation12] }
 0x212   : >>> { %v614_v15 = vsub.f32 %v612_v60, %v613_v7  ;;  %v620_v16 = vadd.f32 %v619_v61, %v618_v9  ;;  %v617_v18 = vadd.f32 %v616_v4, %v615_v8  ;;  %v611_v22 = vsub.f32 %v609_v59, %v610_v14 }
 0x213   : >>> { %v835_v17 = vsub.f32 %v833_v62, %v834_v10  ;;  %v838_v19 = vsub.f32 %v836_v63, %v837_v11  ;;  %v841_v20 = vadd.f32 %v840_v0, %v839_v12  ;;  %v844_v21 = vadd.f32 %v843_v1, %v842_v13 }
 0x214   : >>> { %622 = vst [vmem:[%s1807_s21] sm:$0xff] %v614_v15  ;;  %624 = vst [vmem:[%s1809_s22] sm:$0xff] %v620_v16  ;;  %s1853_s21 = smov [#allocation15]  ;;  %s1857_s22 = smov [#allocation13] }
 0x215   : >>> { %845 = vst [vmem:[%s1812_s14] sm:$0xff] %v835_v17  ;;  %623 = vst [vmem:[%s1824_s11] sm:$0xff] %v617_v18  ;;  %s849_s14 = smov %s1747_s14  ;;  %s695_s11 = smov [#allocation20] }
 0x216   : >>> { %846 = vst [vmem:[%s1815_s30] sm:$0xff] %v838_v19  ;;  %847 = vst [vmem:[%s1818_s17] sm:$0xff] %v841_v20  ;;  %s850_s17 = smov %s1753_s17  ;;  %s1844_s30 = smov %s1750_s30  ;;  %v702_v56 = vld [vmem:[%s695_s11] ss:$0 sm:$0xff] }
 0x217   : >>> { %848 = vst [vmem:[%s1822_s20] sm:$0xff] %v844_v21  ;;  %621 = vst [vmem:[%s1805_s27] sm:$0xff] %v611_v22  ;;  %s1847_s20 = smov %s1756_s20  ;;  %s1855_s27 = smov [#allocation12] }
 0x218   : >>> { %s1637_s11 = smov 127  }
 0x21b   : >>> { %v636_v39 = vld [vmem:[%s1853_s21] sm:$0xff] }
 0x21c   : >>> { %v851_v25 = vld [vmem:[%s849_s14] ss:$0 sm:$0xff]  ;;  %v1515_v27 = vld [vmem:[%s849_s14 + $0x7] ss:$0 sm:$0xff]  ;;  %v644_v42 = vmul.f32 %v636_v39, %v628_v24  ;;  %v647_v46 = vmul.f32 %v636_v39, %v626_v23 }
 0x21d   : >>> { %v1514_v26 = vld [vmem:[%s849_s14 - $0x1] sm:$0xfe]  ;;  %v1519_v34 = vld [vmem:[%s1844_s30 + $0x7] ss:$0 sm:$0xff] }
 0x21e   : >>> { %v858_v28 = vsel %vm781_vm14, %v851_v25, %v1514_v26  ;;  %v862_v29 = vld [vmem:[%s850_s17] ss:$0 sm:$0xff]  ;;  %v1517_v30 = vld [vmem:[%s850_s17 + $0x1] sm:$0x7f] }
 0x21f   : >>> { %v875_v31 = vld [vmem:[%s1844_s30] ss:$0 sm:$0xff]  ;;  %861 = vst [vmem:[%s849_s14] sm:$0xff] %v858_v28  ;;  %v870_v32 = vsel %vm793_vm15, %v1515_v27, %v1517_v30  ;;  %v1521_v37 = vld [vmem:[%s1847_s20 + $0x1] sm:$0x7f] }
 0x220   : >>> { %v1518_v33 = vld [vmem:[%s1844_s30 - $0x1] sm:$0xfe]  ;;  %1516 = vst [vmem:[%s849_s14 + $0x1] sm:$0x1] %v862_v29  ;;  %872 = vst [vmem:[%s850_s17] sm:$0xff] %v870_v32  ;;  %v894_v40 = vsel %vm793_vm15, %v1519_v34, %v1521_v37 }
 0x221   : >>> { %v886_v35 = vld [vmem:[%s1847_s20] ss:$0 sm:$0xff]  ;;  %v882_v36 = vsel %vm781_vm14, %v875_v31, %v1518_v33 }
 0x222   : >>> { %v635_v38 = vld [vmem:[%s1851_s28] sm:$0xff]  ;;  %885 = vst [vmem:[%s1844_s30] sm:$0xff] %v882_v36  ;;  %896 = vst [vmem:[%s1847_s20] sm:$0xff] %v894_v40 }
 0x223   : >>> { %v643_v41 = vmul.f32 %v635_v38, %v626_v23  ;;  %v646_v43 = vmul.f32 %v635_v38, %v628_v24  ;;  %v633_v44 = vld [vmem:[%s1855_s27] sm:$0xff]  ;;  %1520 = vst [vmem:[%s1844_s30 + $0x1] sm:$0x1] %v886_v35 }
 0x224   : >>> { %v634_v45 = vld [vmem:[%s1857_s22] sm:$0xff]  ;;  %v637_v47 = vmul.f32 %v633_v44, %v626_v23  ;;  %v640_v49 = vmul.f32 %v633_v44, %v628_v24 }
 0x225   : >>> { %v638_v48 = vmul.f32 %v634_v45, %v628_v24  ;;  %v645_v50 = vsub.f32 %v643_v41, %v644_v42  ;;  %v641_v51 = vmul.f32 %v634_v45, %v626_v23  ;;  %v648_v52 = vadd.f32 %v647_v46, %v646_v43 }
 0x227   : >>> { %v639_v53 = vsub.f32 %v637_v47, %v638_v48  ;;  %651 = vst [vmem:[%s1851_s28] sm:$0xff] %v645_v50  ;;  %v642_v54 = vadd.f32 %v641_v51, %v640_v49  ;;  %652 = vst [vmem:[%s1853_s21] sm:$0xff] %v648_v52  ;;  %s668_s28 = smov [#allocation13]  ;;  %s1891_s21 = smov [#allocation14] }
 0x229   : >>> { %649 = vst [vmem:[%s1855_s27] sm:$0xff] %v639_v53  ;;  %650 = vst [vmem:[%s1857_s22] sm:$0xff] %v642_v54  ;;  %s709_s27 = smov [#allocation12]  ;;  %s1636_s22 = smov 1  }
 0x22e   : >>> { %v688_v57 = vld [vmem:[%s681_s15] sm:$0xff] }
 0x22f   : >>> { %v692_v58 = vsel %vm691_vm0, 0.0, %v688_v57  ;;  %v703_v60 = vld [vmem:[%s694_s24] sm:$0xff] }
 0x230   : >>> { %v662_v59 = vld [vmem:[%s653_s26] sm:$0xff]  ;;  %693 = vst [vmem:[%s681_s15] sm:$0xff] %v692_v58  ;;  %v707_v63 = vsel %vm706_vm3, %v702_v56, %v703_v60  ;;  %s1894_s15 = smov [#allocation15] }
 0x231   : >>> { %v666_v61 = vsel %vm665_vm1, %v661_v55, %v662_v59  ;;  %v675_v62 = vld [vmem:[%s668_s28] sm:$0xff]  ;;  %708 = vst [vmem:[%s694_s24] sm:$0xff] %v707_v63  ;;  %s797_s24 = smov [#allocation13] }
 0x232   : >>> { %667 = vst [vmem:[%s653_s26] sm:$0xff] %v666_v61  ;;  %v679_v0 = vsel %vm678_vm4, 0.0, %v675_v62  ;;  %s773_s26 = smov [#allocation12] }
 0x233   : >>> { %680 = vst [vmem:[%s668_s28] sm:$0xff] %v679_v0  ;;  %s774_s28 = smov [#allocation14] }
 0x237   : >>> { %v747_v1 = vld [vmem:[%s1891_s21] sm:$0xff] }
 0x238   : >>> { %748 = vrot.lane.b32.xlu0 %v747_v1, %s1636_s22  ;;  %v743_v4 = vld [vmem:[%s1894_s15] sm:$0xff] }
 0x239   : >>> { %v715_v2 = vld [vmem:[%s709_s27] sm:$0xff] }
 0x23a   : >>> { %716 = vrot.lane.b32.xlu1 %v715_v2, %s1636_s22  ;;  %v711_v3 = vld [vmem:[%s710_s29] sm:$0xff] }
 0x23e   : >>> { %712 = vrot.lane.b32.xlu1 %v711_v3, %s1636_s22 }
 0x242   : >>> { %733 = vrot.lane.b32.xlu1 %v711_v3, %s1637_s11 }
 0x246   : >>> { %744 = vrot.lane.b32.xlu1 %v743_v4, %s1636_s22  ;;  %s362_s22 = smov (%p454_p9), [#allocation12] }
 0x24a   : >>> { %765 = vrot.lane.b32.xlu1 %v743_v4, %s1637_s11  ;;  %s398_s11 = smov (%p454_p9), [#allocation14] }
 0x2aa   : >>> { %v749_v13 = vpop.permute.xlu0 %748 }
 0x2ab   : >>> { %v753_v15 = vsel %vm720_vm5, %v747_v1, %v749_v13 }
 0x2ac   : >>> { %v717_v7 = vpop.permute.xlu1 %716 }
 0x2ad   : >>> { %v721_v8 = vsel %vm720_vm5, %v715_v2, %v717_v7 }
 0x2b0   : >>> { %v713_v9 = vpop.permute.xlu1 %712 }
 0x2b1   : >>> { %v725_v10 = vsel %vm724_vm6, %v713_v9, %v721_v8 }
 0x2b2   : >>> { %v731_v11 = vsel %vm1375_vm2, %v725_v10, 0.0 }
 0x2b3   : >>> { %739 = vst [vmem:[%s709_s27] sm:$0xff] %v731_v11  ;;  %s798_s27 = smov [#allocation15] }
 0x2b4   : >>> { %v734_v12 = vpop.permute.xlu1 %733 }
 0x2b5   : >>> { %v738_v14 = vsel %vm737_vm7, %v715_v2, %v734_v12 }
 0x2b6   : >>> { %740 = vst [vmem:[%s710_s29] sm:$0xff] %v738_v14  ;;  %s381_s29 = smov (%p454_p9), [#allocation13] }
 0x2b8   : >>> { %v745_v16 = vpop.permute.xlu1 %744 }
 0x2b9   : >>> { %v757_v17 = vsel %vm724_vm6, %v745_v16, %v753_v15 }
 0x2ba   : >>> { %v775_v18 = vld [vmem:[%s773_s26] ss:$0 sm:$0xff]  ;;  %v1507_v20 = vld [vmem:[%s773_s26 + $0x7] ss:$0 sm:$0xff]  ;;  %v763_v22 = vsel %vm1375_vm2, %v757_v17, 0.0 }
 0x2bb   : >>> { %v1506_v19 = vld [vmem:[%s773_s26 - $0x1] sm:$0xfe]  ;;  %771 = vst [vmem:[%s1891_s21] sm:$0xff] %v763_v22  ;;  %s897_s21 = sadd.s32 (%p454_p9), 1, %s1629_s16  }
 0x2bc   : >>> { %v782_v21 = vsel %vm781_vm14, %v775_v18, %v1506_v19  ;;  %v766_v23 = vpop.permute.xlu1 %765  ;;  %p450_p10 = scmp.ge.s32.totalorder (%p454_p9), %s897_s21, 15  ;;  %s2009_s16 = smov (%p454_p9), %s897_s21 }
 0x2bd   : >>> { %785 = vst [vmem:[%s773_s26] sm:$0xff] %v782_v21  ;;  %v799_v24 = vld [vmem:[%s797_s24] ss:$0 sm:$0xff]  ;;  %v1511_v26 = vld [vmem:[%s797_s24 + $0x7] ss:$0 sm:$0xff]  ;;  %v770_v27 = vsel %vm737_vm7, %v747_v1, %v766_v23 }
 0x2be   : >>> { %v1510_v25 = vld [vmem:[%s797_s24 - $0x1] sm:$0xfe]  ;;  %772 = vst [vmem:[%s1894_s15] sm:$0xff] %v770_v27  ;;  %s415_s15 = smov (%p454_p9), [#allocation15] }
 0x2bf   : >>> { %v806_v28 = vsel %vm781_vm14, %v799_v24, %v1510_v25 }
 0x2c0   : >>> { %809 = vst [vmem:[%s797_s24] sm:$0xff] %v806_v28 }
 0x2c2   : >>> { %v786_v29 = vld [vmem:[%s774_s28] ss:$0 sm:$0xff]  ;;  %v1509_v30 = vld [vmem:[%s774_s28 + $0x1] sm:$0x7f] }
 0x2c3   : >>> { %1508 = vst [vmem:[%s773_s26 + $0x1] sm:$0x1] %v786_v29  ;;  %v794_v31 = vsel %vm793_vm15, %v1507_v20, %v1509_v30 }
 0x2c4   : >>> { %796 = vst [vmem:[%s774_s28] sm:$0xff] %v794_v31 }
 0x2c5   : >>> { %v810_v32 = vld [vmem:[%s798_s27] ss:$0 sm:$0xff]  ;;  %v1513_v33 = vld [vmem:[%s798_s27 + $0x1] sm:$0x7f] }
 0x2c6   : >>> { %1512 = vst [vmem:[%s797_s24 + $0x1] sm:$0x1] %v810_v32  ;;  %v818_v34 = vsel %vm793_vm15, %v1511_v26, %v1513_v33 }
 0x2c7   : >>> { %820 = vst [vmem:[%s798_s27] sm:$0xff] %v818_v34  ;;  %456 = sbr.rel (!%p454_p9) target bundleno = 267 (0x10b), region = 494 }
 0x2ca   : >> { %v368_v35 = vld [vmem:[%s362_s22] sm:$0xff] (%p454_p9) }
 0x2cb   : >> { %v369_v37 = vsel (%p454_p9), %vm1375_vm2, %v368_v35, 0.0  ;;  %v404_v39 = vld [vmem:[%s398_s11] sm:$0xff] (%p454_p9) }
 0x2cc   : >> { %v370_v41 = vmul.f32 %v369_v37, %v369_v37  ;;  %v405_v43 = vsel %vm1375_vm2, %v404_v39, 0.0 }
 0x2cd   : >> { %v387_v36 = vld [vmem:[%s381_s29] sm:$0xff]  ;;  %v406_v45 = vmul.f32 %v405_v43, %v405_v43 }
 0x2ce   : >> { %v388_v38 = vsel %vm1375_vm2, %v387_v36, 0.0  ;;  %v421_v40 = vld [vmem:[%s415_s15] sm:$0xff]  ;;  %v374_v48 = vsel %vm373_vm8, 0.0, %v370_v41 }
 0x2cf   : >> { %v389_v42 = vmul.f32 %v388_v38, %v388_v38  ;;  %v422_v44 = vsel %vm1375_vm2, %v421_v40, 0.0 }
 0x2d0   : >> { %v423_v47 = vmul.f32 %v422_v44, %v422_v44 }
 0x2d1   : >> { %v391_v46 = vadd.f32 %v389_v42, %v370_v41  ;;  %v390_v49 = vadd.f32 %v389_v42, %v374_v48 }
 0x2d2   : >> { %v427_v52 = vsel %vm426_vm9, 0.0, %v423_v47 }
 0x2d3   : >> { %v408_v50 = vadd.f32 %v406_v45, %v391_v46  ;;  %v407_v51 = vadd.f32 %v406_v45, %v390_v49 }
 0x2d5   : >> { %v429_v53 = vadd.f32 %v423_v47, %v408_v50  ;;  %v428_v54 = vadd.f32 %v427_v52, %v407_v51 }
 0x2d7   : >> { %430 = vadd.xlane.f32.xlu0 %v429_v53 }
 0x2db   : >> { %438 = vadd.xlane.f32.xlu0 %v428_v54 }
 0x360   : >> { %v431_v55 = vpop.xlane.xlu0 %430 }
 0x361   : >> { %v432_v56 = vrot.slane %v431_v55, 4 }
 0x363   : >> { %v433_v57 = vadd.f32 %v432_v56, %v431_v55 }
 0x364   : >> { %v439_v58 = vpop.xlane.xlu0 %438 }
 0x365   : >> { %v434_v59 = vrot.slane %v433_v57, 2  ;;  %v440_v60 = vrot.slane %v439_v58, 4 }
 0x367   : >> { %v441_v61 = vadd.f32 %v440_v60, %v439_v58  ;;  %v435_v62 = vadd.f32 %v434_v59, %v433_v57 }
 0x369   : >> { %v442_v63 = vrot.slane %v441_v61, 2  ;;  %v436_v1 = vrot.slane %v435_v62, 1 }
 0x36b   : >> { %v443_v0 = vadd.f32 %v442_v63, %v441_v61  ;;  %v437_v4 = vadd.f32 %v436_v1, %v435_v62 }
 0x36d   : >> { %v444_v2 = vrot.slane %v443_v0, 1 }
 0x36f   : >> { %v445_v3 = vadd.f32 %v444_v2, %v443_v0 }
 0x371   : >> { %1540 = vpush %v445_v3 }
 0x372   : >> { %1542 = vpush %v437_v4 }
 0x3a2   : >> { %s1541_s23 = spop %1540 }
 0x3a3   : >> { %s1543_s26 = spop %1542 }
 0x3a4   : >> { %s448_s24 = smul.f32 1e-10, %s1543_s26 }
 0x3a6   : >> { %p449_p11 = scmp.le.f32.partialorder %s1541_s23, %s448_s24 }
 0x3a8   : >> { %p451_p12 = por %p450_p10, %p449_p11 }
 0x3aa   : > { %899 = sbr.rel (!%p451_p12) target bundleno = 266 (0x10a), region = 505 }
 0x3af PF: > { %s904_s28 = smov [#allocation12]  ;;  %v908_v5 = vmov %v1743_v5  ;;  %v911_v6 = vmov %v1745_v6  ;;  %s924_s27 = smov [#allocation15] }
 0x3b0   : > { %v928_v5 = vmov %v1743_v5  ;;  %v931_v6 = vmov %v1745_v6  ;;  %v912_v7 = vld [vmem:[%s904_s28] sm:$0xff]  ;;  %vm915_vm10 = vcmp.eq.s32.totalorder %v911_v6, %v908_v5  ;;  %s900_s16 = sand.u32 7, %s1704_s12   ;;  %s2010_s29 = scalar_lea.vmem [#allocation7], %s1741_s18 }
 0x3b1   : > { %vm935_vm11 = vcmp.eq.s32.totalorder %v931_v6, %v928_v5  ;;  %v916_v8 = vsel %vm915_vm10, %v912_v7, 0.0  ;;  %v932_v10 = vld [vmem:[%s924_s27] sm:$0xff]  ;;  %s901_s21 = scalar_lea.vmem [#allocation4], %s900_s16  ;;  %s903_s22 = scalar_lea.vmem [#allocation6], %s900_s16 }
 0x3b2   : > { %v917_v9 = vrot.slane %v916_v8, 4  ;;  %v936_v11 = vsel %vm935_vm11, %v932_v10, 0.0  ;;  %s905_s21 = smov %s901_s21  ;;  %s925_s22 = smov %s903_s22 }
 0x3b3   : > { %v937_v13 = vrot.slane %v936_v11, 4  ;;  %s987_s11 = sshrl.u32 (%p1718_p3), %s1704_s12, 3 }
 0x3b4   : > { %v918_v12 = vadd.f32 %v917_v9, %v916_v8  ;;  %s1528_s15 = sshll.u32 (%p1718_p3), %s987_s11, 1 }
 0x3b5   : > { %v938_v15 = vadd.f32 %v937_v13, %v936_v11  ;;  %s989_s24 = scalar_lea.vmem (%p1718_p3), %s2001_s4, %s1528_s15 }
 0x3b6   : > { %v919_v14 = vrot.slane %v918_v12, 2 }
 0x3b7   : > { %v939_v17 = vrot.slane %v938_v15, 2 }
 0x3b8   : > { %v920_v16 = vadd.f32 %v919_v14, %v918_v12 }
 0x3b9   : > { %v940_v19 = vadd.f32 %v939_v17, %v938_v15 }
 0x3ba   : > { %v921_v18 = vrot.slane %v920_v16, 1 }
 0x3bb   : > { %v941_v5 = vrot.slane %v940_v19, 1 }
 0x3bc   : > { %v922_v20 = vadd.f32 %v921_v18, %v920_v16 }
 0x3bd   : > { %v942_v6 = vadd.f32 %v941_v5, %v940_v19 }
 0x3be   : > { %923 = vst [vmem:[%s905_s21] sm:$0x1] %v922_v20 }
 0x3bf   : > { %943 = vst [vmem:[%s925_s22] sm:$0x1] %v942_v6 }
 0x3c3   : > { %986 = sbr.rel (!%p1718_p3) target bundleno = 975 (0x3cf), region = 174 }
 0x3c5   : > { %v948_v21 = vld [vmem:[#allocation4] sm:$0x3] }
 0x3c6   : > { %951 = vst [vmem:[%s287_s25] sm:$0x3] %v948_v21  ;;  %v956_v22 = vld [vmem:[#allocation6] sm:$0x3] }
 0x3c7   : > { %959 = vst [vmem:[%s2010_s29] sm:$0x3] %v956_v22 }
 0x3cd   : > { %v1006_v23 = vld [vmem:[%s287_s25] sm:$0x3] }
 0x3ce   : > { %1007 = vst [vmem:[%s989_s24] sm:$0x3] %v1006_v23 }
 0x3cf PF: > { %1025 = sbr.rel (!%p1718_p3) target bundleno = 983 (0x3d7), region = 208  ;;  %s1026_s28 = sshrl.u32 (%p1718_p3), %s1704_s12, 3 }
 0x3d0   : > { %s2011_s27 = scalar_lea.vmem (%p1718_p3), [#allocation7], %s1741_s18  ;;  %s1529_s16 = sshll.u32 (%p1718_p3), %s1026_s28, 1 }
 0x3d1   : > { %s1028_s25 = scalar_lea.vmem (%p1718_p3), %s2002_s5, %s1529_s16 }
 0x3d5   : > { %v1045_v24 = vld [vmem:[%s2011_s27] sm:$0x3] }
 0x3d6   : > { %1046 = vst [vmem:[%s1028_s25] sm:$0x3] %v1045_v24 }
 0x3d7 PF: > { %s1530_s29 = sshll.u32 %s1704_s12, 3  ;;  %v1092_v25 = vld [vmem:[%s1747_s14] sm:$0xff]  ;;  %v1127_v26 = vld [vmem:[%s1750_s30] sm:$0xff] }
 0x3d8   : > { %v1162_v27 = vld [vmem:[%s1753_s17] sm:$0xff]  ;;  %s1063_s18 = scalar_lea.vmem %s2003_s6, %s1530_s29  ;;  %s1098_s26 = scalar_lea.vmem %s2004_s7, %s1530_s29  ;;  %v1197_v28 = vld [vmem:[%s1756_s20] sm:$0xff] }
 0x3d9   : > { %1093 = vst [vmem:[%s1063_s18] sm:$0xff] %v1092_v25  ;;  %1128 = vst [vmem:[%s1098_s26] sm:$0xff] %v1127_v26  ;;  %s1133_s27 = scalar_lea.vmem %s2005_s8, %s1530_s29  ;;  %s1168_s14 = scalar_lea.vmem %s2006_s9, %s1530_s29 }
 0x3da   : > { %1163 = vst [vmem:[%s1133_s27] sm:$0xff] %v1162_v27  ;;  %1198 = vst [vmem:[%s1168_s14] sm:$0xff] %v1197_v28 }
 0x3db PF: > { %s2012_s17 = sld [smem:[#allocation25_spill]]  ;;  %p13_p13 = scmp.ge.s32.totalorder %s1707_s13, 4  }
 0x3dc   : > { %s2013_s30 = smov %s1621_s10  ;;  %s2015_s11 = smov %s1707_s13 }
 0x3dd   :  { %15 = sbr.rel (!%p13_p13) target bundleno = 2 (0x2), region = 516 }
 0x3e1   : > { %s2014_s10 = smov %s2012_s17 }

// kernel: _lambda_.2
= control target key start
LH: loop header
LB: loop body
LE: loop exit
PB: predicated region body
PF: predicated region fallthrough
CT: control target
= control target key end

     0   :  { %s2288_s15 = smov 0   ;;  %s2290_s16 = smov 0   ;;  %s2933_s0 = inlined_call_operand.vmem [shape: f32[2,32,128], index: 0, kind: input, shape index: {}]   ;;  %s2934_s1 = inlined_call_operand.vmem [shape: f32[2,128,128], index: 1, kind: input, shape index: {}]   ;;  %s2935_s2 = inlined_call_operand.vmem [shape: f32[2,8,128], index: 2, kind: input, shape index: {}]   ;;  %s2936_s3 = inlined_call_operand.vmem [shape: f32[2,8,32,128], index: 3, kind: output, shape index: {0}]   ;;  %s2937_s4 = inlined_call_operand.vmem [shape: f32[2,8,32], index: 4, kind: output, shape index: {1}]  }
   0x1   :  { %s2292_s17 = smov 0  }
   0x2 LB: > { %s27_s18 = sadd.s32 1, %s2257_s16  ;;  %p1651_p0 = scmp.ge.s32.totalorder %s2261_s17, 1  ;;  %s2261_s17 = sphi %s2292_s17, %s15_s17   ;;  %s2257_s16 = sphi %s2290_s16, %s2939_s16   ;;  %s2253_s15 = sphi %s2288_s15, %s2938_s15  }
   0x3   : > { %p29_p1 = scmp.ge.s32.totalorder %s27_s18, 2  ;;  %p207_p2 = scmp.lt.s32.totalorder %s2261_s17, 3 }
   0x5   : > { %s2941_s18 = smov (%p29_p1, %s27_s18), 0  ;;  %p208_p3 = pnand %p1651_p0, %p207_p2 }
   0x6   : > { %p258_p4 = scmp.lt.s32.totalorder (!%p208_p3), %s2253_s15, 1 }
   0x7   : > { %211 = sbr.rel (%p208_p3) target bundleno = 761 (0x2f9), region = 32 }
   0xc   : > { %s2943_s15 = smov (!%p258_p4, %s2253_s15), 1  ;;  %v399_v20 = vlaneseq  ;;  %vm1293_vm0 = vcmask 130112   ;;  %vm1300_vm1 = vcmask 195712   ;;  %vm1307_vm2 = vcmask 261312  }
   0xd   : > { %s1691_s19 = sshll.u32 %s2943_s15, 7  ;;  %s1690_s23 = sshll.u32 %s2943_s15, 5  ;;  %vm1478_vm3 = vcmask 1040384   ;;  %vm1480_vm4 = vcmask 1041408   ;;  %vm1482_vm5 = vcmask 1042432   ;;  %vm1484_vm6 = vcmask 1043456  }
   0xe   : > { %s2312_s22 = scalar_lea.vmem %s2934_s1, %s1691_s19  ;;  %s2327_s26 = scalar_lea.vmem %s2933_s0, %s1690_s23  ;;  %v2472_v21 = vshrl.u32 %v399_v20, 7  ;;  %vm1486_vm7 = vcmask 1044480   ;;  %vm1488_vm8 = vcmask 1045504   ;;  %vm1490_vm9 = vcmask 1046528  }
   0xf   : > { %v2315_v0 = vld [vmem:[%s2312_s22 + $0x78] sm:$0xff]  ;;  %v2318_v1 = vld [vmem:[%s2312_s22 + $0x70] sm:$0xff]  ;;  %v2333_v2 = vld [vmem:[%s2312_s22 + $0x68] sm:$0xff]  ;;  %s1656_s27 = sshll.u32 %s2943_s15, 3  ;;  %s1692_s5 = sshll.u32 %s2943_s15, 8  ;;  %vm1493_vm10 = vcmask 261120  }
  0x10   : > { %1873 = vmatprep.subr.mxu0 %v2315_v0  ;;  %1911 = vmatprep.subr.mxu1 %v2315_v0  ;;  %v293_v3 = vld [vmem:[%s2327_s26] sm:$0xff]  ;;  %v2346_v5 = vld [vmem:[%s2312_s22 + $0x58] sm:$0xff]  ;;  %v2353_v6 = vld [vmem:[%s2312_s22 + $0x50] sm:$0xff]  ;;  %s275_s30 = scalar_lea.vmem %s2935_s2, %s1656_s27  ;;  %v950_v22 = vsub.s32 5, %v2472_v21  ;;  %v1170_v23 = vsub.s32 7, %v2472_v21  ;;  %v401_v25 = vsub.s32 0, %v2472_v21  ;;  %s2785_s8 = scalar_lea.vmem %s2936_s3, %s1692_s5 }
  0x11   : > { %1874 = vmatpush3.xpose.msra.mxu0 %v2315_v0  ;;  %1912 = vmatpush3.msra.mxu1 %v2315_v0  ;;  %v2341_v4 = vld [vmem:[%s2312_s22 + $0x60] sm:$0xff]  ;;  %v2358_v7 = vld [vmem:[%s2312_s22 + $0x48] sm:$0xff]  ;;  %v2370_v9 = vld [vmem:[%s2312_s22 + $0x38] sm:$0xff]  ;;  %v620_v26 = vsub.s32 2, %v2472_v21  ;;  %v510_v43 = vsub.s32 1, %v2472_v21  ;;  %v840_v46 = vsub.s32 4, %v2472_v21  ;;  %s292_s11 = scalar_lea.vmem %s2937_s4, %s1656_s27 }
  0x12   : > { %1875 = vmatprep.subr.mxu0 %v2318_v1  ;;  %1913 = vmatprep.subr.mxu1 %v2318_v1  ;;  %v2365_v8 = vld [vmem:[%s2312_s22 + $0x40] sm:$0xff]  ;;  %v2377_v10 = vld [vmem:[%s2312_s22 + $0x30] sm:$0xff]  ;;  %v2382_v11 = vld [vmem:[%s2312_s22 + $0x28] sm:$0xff]  ;;  %v730_v58 = vsub.s32 3, %v2472_v21  ;;  %v1060_v60 = vsub.s32 6, %v2472_v21 }
  0x13   : > { %1914 = vmatpush3.msra.mxu1 %v2318_v1  ;;  %1905 = vmatprep.mubr.f32.mxu0 %v293_v3  ;;  %v2389_v12 = vld [vmem:[%s2312_s22 + $0x20] sm:$0xff]  ;;  %v2394_v13 = vld [vmem:[%s2312_s22 + $0x18] sm:$0xff]  ;;  %v2401_v14 = vld [vmem:[%s2312_s22 + $0x10] sm:$0xff] }
  0x14   : > { %1915 = vmatprep.subr.mxu1 %v2333_v2  ;;  %v2406_v15 = vld [vmem:[%s2312_s22 + $0x8] sm:$0xff]  ;;  %v2413_v16 = vld [vmem:[%s2312_s22] sm:$0xff]  ;;  %v295_v18 = vld [vmem:[%s2327_s26 + $0x10] sm:$0xff] }
  0x15   : > { %1876 = vmatpush3.xpose.msra.mxu0 %v2318_v1  ;;  %1916 = vmatpush3.msra.mxu1 %v2333_v2  ;;  %v294_v17 = vld [vmem:[%s2327_s26 + $0x8] sm:$0xff]  ;;  %v296_v19 = vld [vmem:[%s2327_s26 + $0x18] sm:$0xff]  ;;  %v2481_v24 = vld [vmem:[%s275_s30] sm:$0xff] }
  0x16   : > { %1877 = vmatprep.subr.mxu0 %v2333_v2  ;;  %1917 = vmatprep.subr.mxu1 %v2341_v4  ;;  %v2486_v27 = vrot.slane %v2481_v24, %v950_v22  ;;  %v2489_v28 = vrot.slane %v2481_v24, %v1170_v23  ;;  %v402_v30 = vrot.slane %v2481_v24, %v401_v25 }
  0x17   : > { %1918 = vmatpush3.msra.mxu1 %v2341_v4  ;;  %v621_v31 = vrot.slane %v2481_v24, %v620_v26  ;;  %v2539_v50 = vrot.slane %v2481_v24, %v510_v43  ;;  %v2547_v52 = vrot.slane %v2481_v24, %v840_v46  ;;  %v2626_v62 = vrot.slane %v2481_v24, %v730_v58 }
  0x18   : > { %1919 = vmatprep.subr.mxu1 %v2346_v5  ;;  %v2633_v3 = vrot.slane %v2481_v24, %v1060_v60 }
  0x19   : > { %1878 = vmatpush3.xpose.msra.mxu0 %v2333_v2  ;;  %1920 = vmatpush3.msra.mxu1 %v2346_v5 }
  0x1a   : > { %1879 = vmatprep.subr.mxu0 %v2341_v4  ;;  %1921 = vmatprep.subr.mxu1 %v2353_v6 }
  0x1b   : > { %1922 = vmatpush3.msra.mxu1 %v2353_v6 }
  0x1c   : > { %1923 = vmatprep.subr.mxu1 %v2358_v7 }
  0x1d   : > { %1880 = vmatpush3.xpose.msra.mxu0 %v2341_v4  ;;  %1924 = vmatpush3.msra.mxu1 %v2358_v7 }
  0x1e   : > { %1881 = vmatprep.subr.mxu0 %v2346_v5  ;;  %1925 = vmatprep.subr.mxu1 %v2365_v8 }
  0x1f   : > { %1926 = vmatpush3.msra.mxu1 %v2365_v8 }
  0x20   : > { %1927 = vmatprep.subr.mxu1 %v2370_v9 }
  0x21   : > { %1882 = vmatpush3.xpose.msra.mxu0 %v2346_v5  ;;  %1928 = vmatpush3.msra.mxu1 %v2370_v9 }
  0x22   : > { %1883 = vmatprep.subr.mxu0 %v2353_v6  ;;  %1929 = vmatprep.subr.mxu1 %v2377_v10 }
  0x23   : > { %1930 = vmatpush3.msra.mxu1 %v2377_v10 }
  0x24   : > { %1931 = vmatprep.subr.mxu1 %v2382_v11 }
  0x25   : > { %1884 = vmatpush3.xpose.msra.mxu0 %v2353_v6  ;;  %1932 = vmatpush3.msra.mxu1 %v2382_v11 }
  0x26   : > { %1885 = vmatprep.subr.mxu0 %v2358_v7  ;;  %1933 = vmatprep.subr.mxu1 %v2389_v12 }
  0x27   : > { %1934 = vmatpush3.msra.mxu1 %v2389_v12 }
  0x28   : > { %1935 = vmatprep.subr.mxu1 %v2394_v13 }
  0x29   : > { %1886 = vmatpush3.xpose.msra.mxu0 %v2358_v7  ;;  %1936 = vmatpush3.msra.mxu1 %v2394_v13 }
  0x2a   : > { %1887 = vmatprep.subr.mxu0 %v2365_v8  ;;  %1937 = vmatprep.subr.mxu1 %v2401_v14 }
  0x2b   : > { %1938 = vmatpush3.msra.mxu1 %v2401_v14 }
  0x2c   : > { %1939 = vmatprep.subr.mxu1 %v2406_v15 }
  0x2d   : > { %1888 = vmatpush3.xpose.msra.mxu0 %v2365_v8  ;;  %1940 = vmatpush3.msra.mxu1 %v2406_v15 }
  0x2e   : > { %1889 = vmatprep.subr.mxu0 %v2370_v9  ;;  %1941 = vmatprep.subr.mxu1 %v2413_v16 }
  0x2f   : > { %1942 = vmatpush3.msra.mxu1 %v2413_v16 }
  0x30   : > { %1949 = vmatprep.subr.mxu1 %v2315_v0 }
  0x31   : > { %1890 = vmatpush3.xpose.msra.mxu0 %v2370_v9 }
  0x32   : > { %1891 = vmatprep.subr.mxu0 %v2377_v10 }
  0x35   : > { %1892 = vmatpush3.xpose.msra.mxu0 %v2377_v10 }
  0x36   : > { %1893 = vmatprep.subr.mxu0 %v2382_v11 }
  0x39   : > { %1894 = vmatpush3.xpose.msra.mxu0 %v2382_v11 }
  0x3a   : > { %1895 = vmatprep.subr.mxu0 %v2389_v12 }
  0x3d   : > { %1896 = vmatpush3.xpose.msra.mxu0 %v2389_v12 }
  0x3e   : > { %1897 = vmatprep.subr.mxu0 %v2394_v13 }
  0x41   : > { %1898 = vmatpush3.xpose.msra.mxu0 %v2394_v13 }
  0x42   : > { %1899 = vmatprep.subr.mxu0 %v2401_v14 }
  0x45   : > { %1900 = vmatpush3.xpose.msra.mxu0 %v2401_v14 }
  0x46   : > { %1901 = vmatprep.subr.mxu0 %v2406_v15 }
  0x49   : > { %1902 = vmatpush3.xpose.msra.mxu0 %v2406_v15 }
  0x4a   : > { %1903 = vmatprep.subr.mxu0 %v2413_v16 }
  0x4d   : > { %1904 = vmatpush3.xpose.msra.mxu0 %v2413_v16 }
  0x4e   : > { %1987 = vmatprep.subr.mxu0 %v2315_v0 }
  0x50   : > { %1906 = vmatmul.mubr.f32.vlgmr.msra.gmra.mxu0 %v294_v17 }
  0x51   : > { %1908 = vmatprep.mubr.f32.mxu0 %v295_v18  ;;  %1988 = vmatpush3.msra.mxu0 %v2315_v0 }
  0x52   : > { %1989 = vmatprep.subr.mxu0 %v2318_v1 }
  0x53   : > { %1990 = vmatpush3.msra.mxu0 %v2318_v1 }
  0x54   : > { %1909 = vmatmul.mubr.f32.gmra.mxu0 %v296_v19  ;;  %1991 = vmatprep.subr.mxu0 %v2333_v2 }
  0x55   : > { %1992 = vmatpush3.msra.mxu0 %v2333_v2 }
  0x56   : > { %1993 = vmatprep.subr.mxu0 %v2341_v4 }
  0x57   : > { %1994 = vmatpush3.msra.mxu0 %v2341_v4 }
  0x58   : > { %1995 = vmatprep.subr.mxu0 %v2346_v5 }
  0x59   : > { %1996 = vmatpush3.msra.mxu0 %v2346_v5 }
  0x5a   : > { %1997 = vmatprep.subr.mxu0 %v2353_v6 }
  0x5b   : > { %1998 = vmatpush3.msra.mxu0 %v2353_v6 }
  0x5c   : > { %1999 = vmatprep.subr.mxu0 %v2358_v7 }
  0x5d   : > { %2000 = vmatpush3.msra.mxu0 %v2358_v7 }
  0x5e   : > { %2001 = vmatprep.subr.mxu0 %v2365_v8 }
  0x5f   : > { %2002 = vmatpush3.msra.mxu0 %v2365_v8 }
  0x60   : > { %2003 = vmatprep.subr.mxu0 %v2370_v9 }
  0x61   : > { %2004 = vmatpush3.msra.mxu0 %v2370_v9 }
  0x62   : > { %2005 = vmatprep.subr.mxu0 %v2377_v10 }
  0x63   : > { %2006 = vmatpush3.msra.mxu0 %v2377_v10 }
  0x64   : > { %2007 = vmatprep.subr.mxu0 %v2382_v11 }
  0x65   : > { %2008 = vmatpush3.msra.mxu0 %v2382_v11 }
  0x66   : > { %2009 = vmatprep.subr.mxu0 %v2389_v12 }
  0x67   : > { %2010 = vmatpush3.msra.mxu0 %v2389_v12 }
  0x68   : > { %2011 = vmatprep.subr.mxu0 %v2394_v13 }
  0x69   : > { %2012 = vmatpush3.msra.mxu0 %v2394_v13 }
  0x6a   : > { %2013 = vmatprep.subr.mxu0 %v2401_v14 }
  0x6b   : > { %2014 = vmatpush3.msra.mxu0 %v2401_v14 }
  0x6c   : > { %2015 = vmatprep.subr.mxu0 %v2406_v15 }
  0x6d   : > { %2016 = vmatpush3.msra.mxu0 %v2406_v15 }
  0x6e   : > { %2017 = vmatprep.subr.mxu0 %v2413_v16 }
  0x6f   : > { %2018 = vmatpush3.msra.mxu0 %v2413_v16 }
  0x70   : > { %2063 = vmatprep.subr.mxu0 %v2315_v0 }
 0x110   : > { %v2491_v29 = vpop.f32.mrf.mxu0 }
 0x111   : > { %v2499_v33 = vmul.f32 %v2491_v29, %v2486_v27  ;;  %v2503_v34 = vmul.f32 %v2491_v29, %v2489_v28  ;;  %v404_v38 = vmul.f32 %v2491_v29, %v402_v30  ;;  %v623_v39 = vmul.f32 %v2491_v29, %v621_v31 }
 0x112   : > { %v2495_v32 = vpop.f32.mrf.mxu0  ;;  %v513_v55 = vmul.f32 %v2491_v29, %v2539_v50  ;;  %v843_v56 = vmul.f32 %v2491_v29, %v2547_v52  ;;  %v733_v19 = vmul.f32 %v2491_v29, %v2626_v62  ;;  %v1063_v22 = vmul.f32 %v2491_v29, %v2633_v3 }
 0x113   : > { %v403_v35 = vmul.f32 %v402_v30, %v2495_v32  ;;  %v622_v36 = vmul.f32 %v621_v31, %v2495_v32  ;;  %v2513_v40 = vmul.f32 %v2486_v27, %v2495_v32  ;;  %v2517_v41 = vmul.f32 %v2489_v28, %v2495_v32 }
 0x114   : > { %v2507_v37 = vpop.f32.mrf.mxu0  ;;  %v512_v53 = vmul.f32 %v2539_v50, %v2495_v32  ;;  %v842_v54 = vmul.f32 %v2547_v52, %v2495_v32  ;;  %v732_v17 = vmul.f32 %v2626_v62, %v2495_v32  ;;  %v1062_v18 = vmul.f32 %v2633_v3, %v2495_v32 }
 0x115   : > { %1943 = vmatprep.mubr.f32.mxu1 %v403_v35  ;;  %2019 = vmatprep.mubr.f32.mxu0 %v622_v36  ;;  %v406_v47 = vmul.f32 %v2507_v37, %v402_v30  ;;  %v625_v48 = vmul.f32 %v2507_v37, %v621_v31  ;;  %v2535_v49 = vmul.f32 %v2507_v37, %v2486_v27 }
 0x116   : > { %v2519_v42 = vpop.f32.mrf.mxu0  ;;  %1944 = vmatmul.mubr.f32.vlgmr.msra.gmra.mxu1 %v404_v38  ;;  %2020 = vmatmul.mubr.f32.vlgmr.msra.gmra.mxu0 %v623_v39  ;;  %v2543_v51 = vmul.f32 %v2507_v37, %v2489_v28  ;;  %v515_v61 = vmul.f32 %v2507_v37, %v2539_v50  ;;  %v845_v63 = vmul.f32 %v2507_v37, %v2547_v52 }
 0x117   : > { %1950 = vmatpush3.msra.mxu1 %v2315_v0  ;;  %2064 = vmatpush3.msra.mxu0 %v2315_v0  ;;  %v405_v44 = vmul.f32 %v402_v30, %v2519_v42  ;;  %v624_v45 = vmul.f32 %v621_v31, %v2519_v42  ;;  %v514_v57 = vmul.f32 %v2539_v50, %v2519_v42 }
 0x118   : > { %1951 = vmatprep.subr.mxu1 %v2318_v1  ;;  %2065 = vmatprep.subr.mxu0 %v2318_v1  ;;  %v844_v59 = vmul.f32 %v2547_v52, %v2519_v42  ;;  %v734_v23 = vmul.f32 %v2626_v62, %v2519_v42  ;;  %v1064_v24 = vmul.f32 %v2633_v3, %v2519_v42 }
 0x119   : > { %1952 = vmatpush3.msra.mxu1 %v2318_v1  ;;  %2066 = vmatpush3.msra.mxu0 %v2318_v1  ;;  %v735_v25 = vmul.f32 %v2507_v37, %v2626_v62  ;;  %v1065_v26 = vmul.f32 %v2507_v37, %v2633_v3  ;;  %v954_v29 = vmul.f32 %v2486_v27, %v2519_v42 }
 0x11a   : > { %1946 = vmatprep.mubr.f32.mxu1 %v405_v44  ;;  %1953 = vmatprep.subr.mxu1 %v2333_v2 }
 0x11b   : > { %2022 = vmatprep.mubr.f32.mxu0 %v624_v45  ;;  %2067 = vmatprep.subr.mxu0 %v2333_v2 }
 0x11c   : > { %1947 = vmatmul.mubr.f32.gmra.mxu1 %v406_v47  ;;  %2023 = vmatmul.mubr.f32.gmra.mxu0 %v625_v48 }
 0x11d   : > { %1954 = vmatpush3.msra.mxu1 %v2333_v2  ;;  %2068 = vmatpush3.msra.mxu0 %v2333_v2 }
 0x11e   : > { %1955 = vmatprep.subr.mxu1 %v2341_v4  ;;  %1981 = vmatprep.mubr.f32.mxu1 %v512_v53 }
 0x11f   : > { %2069 = vmatprep.subr.mxu0 %v2341_v4  ;;  %2095 = vmatprep.mubr.f32.mxu0 %v842_v54 }
 0x120   : > { %1956 = vmatpush3.msra.mxu1 %v2341_v4  ;;  %2070 = vmatpush3.msra.mxu0 %v2341_v4 }
 0x121   : > { %1957 = vmatprep.subr.mxu1 %v2346_v5  ;;  %2071 = vmatprep.subr.mxu0 %v2346_v5 }
 0x122   : > { %1958 = vmatpush3.msra.mxu1 %v2346_v5  ;;  %2072 = vmatpush3.msra.mxu0 %v2346_v5 }
 0x123   : > { %1959 = vmatprep.subr.mxu1 %v2353_v6  ;;  %2073 = vmatprep.subr.mxu0 %v2353_v6 }
 0x124   : > { %1960 = vmatpush3.msra.mxu1 %v2353_v6  ;;  %2074 = vmatpush3.msra.mxu0 %v2353_v6 }
 0x125   : > { %1961 = vmatprep.subr.mxu1 %v2358_v7  ;;  %2075 = vmatprep.subr.mxu0 %v2358_v7 }
 0x126   : > { %1962 = vmatpush3.msra.mxu1 %v2358_v7  ;;  %2076 = vmatpush3.msra.mxu0 %v2358_v7 }
 0x127   : > { %1963 = vmatprep.subr.mxu1 %v2365_v8  ;;  %2077 = vmatprep.subr.mxu0 %v2365_v8 }
 0x128   : > { %1964 = vmatpush3.msra.mxu1 %v2365_v8  ;;  %2078 = vmatpush3.msra.mxu0 %v2365_v8 }
 0x129   : > { %1965 = vmatprep.subr.mxu1 %v2370_v9  ;;  %2079 = vmatprep.subr.mxu0 %v2370_v9 }
 0x12a   : > { %1966 = vmatpush3.msra.mxu1 %v2370_v9  ;;  %2080 = vmatpush3.msra.mxu0 %v2370_v9 }
 0x12b   : > { %1967 = vmatprep.subr.mxu1 %v2377_v10  ;;  %2081 = vmatprep.subr.mxu0 %v2377_v10 }
 0x12c   : > { %1968 = vmatpush3.msra.mxu1 %v2377_v10  ;;  %2082 = vmatpush3.msra.mxu0 %v2377_v10 }
 0x12d   : > { %1969 = vmatprep.subr.mxu1 %v2382_v11  ;;  %2083 = vmatprep.subr.mxu0 %v2382_v11 }
 0x12e   : > { %1970 = vmatpush3.msra.mxu1 %v2382_v11  ;;  %2084 = vmatpush3.msra.mxu0 %v2382_v11 }
 0x12f   : > { %1971 = vmatprep.subr.mxu1 %v2389_v12  ;;  %2085 = vmatprep.subr.mxu0 %v2389_v12 }
 0x130   : > { %1972 = vmatpush3.msra.mxu1 %v2389_v12  ;;  %2086 = vmatpush3.msra.mxu0 %v2389_v12 }
 0x131   : > { %1973 = vmatprep.subr.mxu1 %v2394_v13  ;;  %2087 = vmatprep.subr.mxu0 %v2394_v13 }
 0x132   : > { %1974 = vmatpush3.msra.mxu1 %v2394_v13  ;;  %2088 = vmatpush3.msra.mxu0 %v2394_v13 }
 0x133   : > { %1975 = vmatprep.subr.mxu1 %v2401_v14  ;;  %2089 = vmatprep.subr.mxu0 %v2401_v14 }
 0x134   : > { %1976 = vmatpush3.msra.mxu1 %v2401_v14  ;;  %2090 = vmatpush3.msra.mxu0 %v2401_v14 }
 0x135   : > { %1977 = vmatprep.subr.mxu1 %v2406_v15  ;;  %2091 = vmatprep.subr.mxu0 %v2406_v15 }
 0x136   : > { %1978 = vmatpush3.msra.mxu1 %v2406_v15  ;;  %2092 = vmatpush3.msra.mxu0 %v2406_v15 }
 0x137   : > { %1979 = vmatprep.subr.mxu1 %v2413_v16  ;;  %2093 = vmatprep.subr.mxu0 %v2413_v16 }
 0x138   : > { %1980 = vmatpush3.msra.mxu1 %v2413_v16  ;;  %2094 = vmatpush3.msra.mxu0 %v2413_v16 }
 0x139   : > { %1982 = vmatmul.mubr.f32.vlgmr.msra.gmra.mxu1 %v513_v55  ;;  %2025 = vmatprep.subr.mxu1 %v2315_v0 }
 0x13a   : > { %2096 = vmatmul.mubr.f32.vlgmr.msra.gmra.mxu0 %v843_v56  ;;  %2139 = vmatprep.subr.mxu0 %v2315_v0 }
 0x13b   : > { %1984 = vmatprep.mubr.f32.mxu1 %v514_v57  ;;  %2026 = vmatpush3.msra.mxu1 %v2315_v0 }
 0x13c   : > { %2098 = vmatprep.mubr.f32.mxu0 %v844_v59  ;;  %2140 = vmatpush3.msra.mxu0 %v2315_v0 }
 0x13d   : > { %2027 = vmatprep.subr.mxu1 %v2318_v1  ;;  %2141 = vmatprep.subr.mxu0 %v2318_v1 }
 0x13e   : > { %2028 = vmatpush3.msra.mxu1 %v2318_v1  ;;  %2142 = vmatpush3.msra.mxu0 %v2318_v1 }
 0x13f   : > { %1985 = vmatmul.mubr.f32.gmra.mxu1 %v515_v61  ;;  %2029 = vmatprep.subr.mxu1 %v2333_v2 }
 0x140   : > { %2099 = vmatmul.mubr.f32.gmra.mxu0 %v845_v63  ;;  %2143 = vmatprep.subr.mxu0 %v2333_v2 }
 0x141   : > { %2030 = vmatpush3.msra.mxu1 %v2333_v2  ;;  %2057 = vmatprep.mubr.f32.mxu1 %v732_v17 }
 0x142   : > { %2144 = vmatpush3.msra.mxu0 %v2333_v2  ;;  %2171 = vmatprep.mubr.f32.mxu0 %v1062_v18 }
 0x143   : > { %2031 = vmatprep.subr.mxu1 %v2341_v4  ;;  %2145 = vmatprep.subr.mxu0 %v2341_v4 }
 0x144   : > { %2032 = vmatpush3.msra.mxu1 %v2341_v4  ;;  %2146 = vmatpush3.msra.mxu0 %v2341_v4 }
 0x145   : > { %2033 = vmatprep.subr.mxu1 %v2346_v5  ;;  %2147 = vmatprep.subr.mxu0 %v2346_v5 }
 0x146   : > { %2034 = vmatpush3.msra.mxu1 %v2346_v5  ;;  %2148 = vmatpush3.msra.mxu0 %v2346_v5 }
 0x147   : > { %2035 = vmatprep.subr.mxu1 %v2353_v6  ;;  %2149 = vmatprep.subr.mxu0 %v2353_v6 }
 0x148   : > { %2036 = vmatpush3.msra.mxu1 %v2353_v6  ;;  %2150 = vmatpush3.msra.mxu0 %v2353_v6 }
 0x149   : > { %2037 = vmatprep.subr.mxu1 %v2358_v7  ;;  %2151 = vmatprep.subr.mxu0 %v2358_v7 }
 0x14a   : > { %2038 = vmatpush3.msra.mxu1 %v2358_v7  ;;  %2152 = vmatpush3.msra.mxu0 %v2358_v7 }
 0x14b   : > { %2039 = vmatprep.subr.mxu1 %v2365_v8  ;;  %2153 = vmatprep.subr.mxu0 %v2365_v8 }
 0x14c   : > { %2040 = vmatpush3.msra.mxu1 %v2365_v8  ;;  %2154 = vmatpush3.msra.mxu0 %v2365_v8 }
 0x14d   : > { %2041 = vmatprep.subr.mxu1 %v2370_v9  ;;  %2155 = vmatprep.subr.mxu0 %v2370_v9 }
 0x14e   : > { %2042 = vmatpush3.msra.mxu1 %v2370_v9  ;;  %2156 = vmatpush3.msra.mxu0 %v2370_v9 }
 0x14f   : > { %2043 = vmatprep.subr.mxu1 %v2377_v10  ;;  %2157 = vmatprep.subr.mxu0 %v2377_v10 }
 0x150   : > { %2044 = vmatpush3.msra.mxu1 %v2377_v10  ;;  %2158 = vmatpush3.msra.mxu0 %v2377_v10 }
 0x151   : > { %2045 = vmatprep.subr.mxu1 %v2382_v11  ;;  %2159 = vmatprep.subr.mxu0 %v2382_v11 }
 0x152   : > { %2046 = vmatpush3.msra.mxu1 %v2382_v11  ;;  %2160 = vmatpush3.msra.mxu0 %v2382_v11 }
 0x153   : > { %2047 = vmatprep.subr.mxu1 %v2389_v12  ;;  %2161 = vmatprep.subr.mxu0 %v2389_v12 }
 0x154   : > { %2048 = vmatpush3.msra.mxu1 %v2389_v12  ;;  %2162 = vmatpush3.msra.mxu0 %v2389_v12 }
 0x155   : > { %2049 = vmatprep.subr.mxu1 %v2394_v13  ;;  %2163 = vmatprep.subr.mxu0 %v2394_v13 }
 0x156   : > { %2050 = vmatpush3.msra.mxu1 %v2394_v13  ;;  %2164 = vmatpush3.msra.mxu0 %v2394_v13 }
 0x157   : > { %2051 = vmatprep.subr.mxu1 %v2401_v14  ;;  %2165 = vmatprep.subr.mxu0 %v2401_v14 }
 0x158   : > { %2052 = vmatpush3.msra.mxu1 %v2401_v14  ;;  %2166 = vmatpush3.msra.mxu0 %v2401_v14 }
 0x159   : > { %2053 = vmatprep.subr.mxu1 %v2406_v15  ;;  %2167 = vmatprep.subr.mxu0 %v2406_v15 }
 0x15a   : > { %2054 = vmatpush3.msra.mxu1 %v2406_v15  ;;  %2168 = vmatpush3.msra.mxu0 %v2406_v15 }
 0x15b   : > { %2055 = vmatprep.subr.mxu1 %v2413_v16  ;;  %2169 = vmatprep.subr.mxu0 %v2413_v16 }
 0x15c   : > { %2056 = vmatpush3.msra.mxu1 %v2413_v16  ;;  %2170 = vmatpush3.msra.mxu0 %v2413_v16 }
 0x15d   : > { %2058 = vmatmul.mubr.f32.vlgmr.msra.gmra.mxu1 %v733_v19  ;;  %2101 = vmatprep.subr.mxu1 %v2315_v0 }
 0x15e   : > { %2172 = vmatmul.mubr.f32.vlgmr.msra.gmra.mxu0 %v1063_v22  ;;  %2060 = vmatprep.mubr.f32.mxu1 %v734_v23 }
 0x15f   : > { %2102 = vmatpush3.msra.mxu1 %v2315_v0  ;;  %2174 = vmatprep.mubr.f32.mxu0 %v1064_v24 }
 0x160   : > { %2103 = vmatprep.subr.mxu1 %v2318_v1 }
 0x161   : > { %2104 = vmatpush3.msra.mxu1 %v2318_v1 }
 0x162   : > { %2061 = vmatmul.mubr.f32.gmra.mxu1 %v735_v25  ;;  %2105 = vmatprep.subr.mxu1 %v2333_v2 }
 0x163   : > { %2175 = vmatmul.mubr.f32.gmra.mxu0 %v1065_v26  ;;  %2106 = vmatpush3.msra.mxu1 %v2333_v2 }
 0x164   : > { %2133 = vmatprep.mubr.f32.mxu1 %v2513_v40  ;;  %2107 = vmatprep.subr.mxu1 %v2341_v4 }
 0x165   : > { %2108 = vmatpush3.msra.mxu1 %v2341_v4 }
 0x166   : > { %2109 = vmatprep.subr.mxu1 %v2346_v5 }
 0x167   : > { %2110 = vmatpush3.msra.mxu1 %v2346_v5 }
 0x168   : > { %2111 = vmatprep.subr.mxu1 %v2353_v6 }
 0x169   : > { %2112 = vmatpush3.msra.mxu1 %v2353_v6 }
 0x16a   : > { %2113 = vmatprep.subr.mxu1 %v2358_v7 }
 0x16b   : > { %2114 = vmatpush3.msra.mxu1 %v2358_v7 }
 0x16c   : > { %2115 = vmatprep.subr.mxu1 %v2365_v8 }
 0x16d   : > { %2116 = vmatpush3.msra.mxu1 %v2365_v8 }
 0x16e   : > { %2117 = vmatprep.subr.mxu1 %v2370_v9 }
 0x16f   : > { %2118 = vmatpush3.msra.mxu1 %v2370_v9 }
 0x170   : > { %2119 = vmatprep.subr.mxu1 %v2377_v10 }
 0x171   : > { %2120 = vmatpush3.msra.mxu1 %v2377_v10 }
 0x172   : > { %2121 = vmatprep.subr.mxu1 %v2382_v11 }
 0x173   : > { %2122 = vmatpush3.msra.mxu1 %v2382_v11 }
 0x174   : > { %2123 = vmatprep.subr.mxu1 %v2389_v12 }
 0x175   : > { %2124 = vmatpush3.msra.mxu1 %v2389_v12 }
 0x176   : > { %2125 = vmatprep.subr.mxu1 %v2394_v13 }
 0x177   : > { %2126 = vmatpush3.msra.mxu1 %v2394_v13 }
 0x178   : > { %2127 = vmatprep.subr.mxu1 %v2401_v14 }
 0x179   : > { %2128 = vmatpush3.msra.mxu1 %v2401_v14 }
 0x17a   : > { %2129 = vmatprep.subr.mxu1 %v2406_v15 }
 0x17b   : > { %2130 = vmatpush3.msra.mxu1 %v2406_v15 }
 0x17c   : > { %2131 = vmatprep.subr.mxu1 %v2413_v16 }
 0x17d   : > { %2132 = vmatpush3.msra.mxu1 %v2413_v16 }
 0x17e   : > { %2134 = vmatmul.mubr.f32.vlgmr.msra.gmra.mxu1 %v2499_v33  ;;  %2177 = vmatprep.subr.mxu1 %v2315_v0 }
 0x17f   : > { %2136 = vmatprep.mubr.f32.mxu1 %v954_v29  ;;  %2178 = vmatpush3.msra.mxu1 %v2315_v0  ;;  %v1174_v0 = vmul.f32 %v2489_v28, %v2519_v42 }
 0x180   : > { %2179 = vmatprep.subr.mxu1 %v2318_v1 }
 0x181   : > { %2180 = vmatpush3.msra.mxu1 %v2318_v1 }
 0x182   : > { %2137 = vmatmul.mubr.f32.gmra.mxu1 %v2535_v49  ;;  %2181 = vmatprep.subr.mxu1 %v2333_v2 }
 0x183   : > { %2182 = vmatpush3.msra.mxu1 %v2333_v2  ;;  %2209 = vmatprep.mubr.f32.mxu1 %v2517_v41 }
 0x184   : > { %2183 = vmatprep.subr.mxu1 %v2341_v4 }
 0x185   : > { %2184 = vmatpush3.msra.mxu1 %v2341_v4 }
 0x186   : > { %2185 = vmatprep.subr.mxu1 %v2346_v5 }
 0x187   : > { %2186 = vmatpush3.msra.mxu1 %v2346_v5 }
 0x188   : > { %2187 = vmatprep.subr.mxu1 %v2353_v6 }
 0x189   : > { %2188 = vmatpush3.msra.mxu1 %v2353_v6 }
 0x18a   : > { %2189 = vmatprep.subr.mxu1 %v2358_v7 }
 0x18b   : > { %2190 = vmatpush3.msra.mxu1 %v2358_v7 }
 0x18c   : > { %2191 = vmatprep.subr.mxu1 %v2365_v8 }
 0x18d   : > { %2192 = vmatpush3.msra.mxu1 %v2365_v8 }
 0x18e   : > { %2193 = vmatprep.subr.mxu1 %v2370_v9 }
 0x18f   : > { %2194 = vmatpush3.msra.mxu1 %v2370_v9 }
 0x190   : > { %2195 = vmatprep.subr.mxu1 %v2377_v10 }
 0x191   : > { %2196 = vmatpush3.msra.mxu1 %v2377_v10 }
 0x192   : > { %2197 = vmatprep.subr.mxu1 %v2382_v11 }
 0x193   : > { %2198 = vmatpush3.msra.mxu1 %v2382_v11 }
 0x194   : > { %2199 = vmatprep.subr.mxu1 %v2389_v12 }
 0x195   : > { %2200 = vmatpush3.msra.mxu1 %v2389_v12 }
 0x196   : > { %2201 = vmatprep.subr.mxu1 %v2394_v13 }
 0x197   : > { %2202 = vmatpush3.msra.mxu1 %v2394_v13 }
 0x198   : > { %2203 = vmatprep.subr.mxu1 %v2401_v14 }
 0x199   : > { %2204 = vmatpush3.msra.mxu1 %v2401_v14 }
 0x19a   : > { %2205 = vmatprep.subr.mxu1 %v2406_v15 }
 0x19b   : > { %2206 = vmatpush3.msra.mxu1 %v2406_v15 }
 0x19c   : > { %2207 = vmatprep.subr.mxu1 %v2413_v16 }
 0x19d   : > { %2208 = vmatpush3.msra.mxu1 %v2413_v16 }
 0x19e   : > { %2210 = vmatmul.mubr.f32.vlgmr.msra.gmra.mxu1 %v2503_v34 }
 0x19f   : > { %2212 = vmatprep.mubr.f32.mxu1 %v1174_v0 }
 0x1a2   : > { %2213 = vmatmul.mubr.f32.gmra.mxu1 %v2543_v51 }
 0x1d6   : > { %v1945_v1 = vpop.f32.mrf.mxu1  ;;  %v2021_v2 = vpop.f32.mrf.mxu0 }
 0x1d7   : > { %v493_v4 = vand.u32 2147483647, %v1945_v1  ;;  %v712_v5 = vand.u32 2147483647, %v2021_v2 }
 0x1d8   : > { %v473_v6 = vpop.f32.mrf.mxu1  ;;  %v692_v7 = vpop.f32.mrf.mxu0 }
 0x1d9   : > { %497 = vst [vmem:[%s2785_s8 + $0x8] sm:$0xff] %v493_v4  ;;  %1665 = vst [vmem:[%s2785_s8 + $0x48] sm:$0xff] %v712_v5  ;;  %v492_v8 = vand.u32 2147483647, %v473_v6  ;;  %v711_v9 = vand.u32 2147483647, %v692_v7  ;;  %502 = vadd.xlane.f32.xlu0 %v493_v4  ;;  %722 = vadd.xlane.f32.xlu1 %v712_v5 }
 0x1db   : > { %496 = vst [vmem:[%s2785_s8] sm:$0xff] %v492_v8  ;;  %1664 = vst [vmem:[%s2785_s8 + $0x40] sm:$0xff] %v711_v9 }
 0x1dc   : > { %v1948_v10 = vpop.f32.mrf.mxu1  ;;  %v2024_v11 = vpop.f32.mrf.mxu0 }
 0x1dd   : > { %500 = vadd.xlane.f32.xlu0 %v492_v8  ;;  %v495_v12 = vand.u32 2147483647, %v1948_v10  ;;  %v714_v13 = vand.u32 2147483647, %v2024_v11 }
 0x1de   : > { %v483_v14 = vpop.f32.mrf.mxu1  ;;  %v702_v15 = vpop.f32.mrf.mxu0 }
 0x1df   : > { %499 = vst [vmem:[%s2785_s8 + $0x18] sm:$0xff] %v495_v12  ;;  %v494_v16 = vand.u32 2147483647, %v483_v14  ;;  %1667 = vst [vmem:[%s2785_s8 + $0x58] sm:$0xff] %v714_v13  ;;  %v713_v27 = vand.u32 2147483647, %v702_v15  ;;  %726 = vadd.xlane.f32.xlu1 %v714_v13 }
 0x1e1   : > { %720 = vadd.xlane.f32.xlu0 %v711_v9  ;;  %498 = vst [vmem:[%s2785_s8 + $0x10] sm:$0xff] %v494_v16  ;;  %1666 = vst [vmem:[%s2785_s8 + $0x50] sm:$0xff] %v713_v27 }
 0x1e5   : > { %506 = vadd.xlane.f32.xlu0 %v495_v12 }
 0x1e9   : > { %504 = vadd.xlane.f32.xlu0 %v494_v16 }
 0x1ed   : > { %724 = vadd.xlane.f32.xlu0 %v713_v27 }
 0x1f9   : > { %v1983_v28 = vpop.f32.mrf.mxu1 }
 0x1fa   : > { %v602_v30 = vand.u32 2147483647, %v1983_v28  ;;  %v2097_v31 = vpop.f32.mrf.mxu0 }
 0x1fb   : > { %v932_v32 = vand.u32 2147483647, %v2097_v31  ;;  %v582_v33 = vpop.f32.mrf.mxu1 }
 0x1fc   : > { %1661 = vst [vmem:[%s2785_s8 + $0x28] sm:$0xff] %v602_v30  ;;  %v601_v34 = vand.u32 2147483647, %v582_v33  ;;  %v912_v35 = vpop.f32.mrf.mxu0  ;;  %612 = vadd.xlane.f32.xlu1 %v602_v30 }
 0x1fd   : > { %1673 = vst [vmem:[%s2785_s8 + $0x88] sm:$0xff] %v932_v32  ;;  %v931_v36 = vand.u32 2147483647, %v912_v35  ;;  %942 = vadd.xlane.f32.xlu0 %v932_v32  ;;  %v1283_v35 = vand.u32 127, %v399_v20 }
 0x1fe   : > { %1660 = vst [vmem:[%s2785_s8 + $0x20] sm:$0xff] %v601_v34 }
 0x1ff   : > { %1672 = vst [vmem:[%s2785_s8 + $0x80] sm:$0xff] %v931_v36  ;;  %v1986_v37 = vpop.f32.mrf.mxu1 }
 0x200   : > { %v604_v38 = vand.u32 2147483647, %v1986_v37  ;;  %v2100_v39 = vpop.f32.mrf.mxu0  ;;  %610 = vadd.xlane.f32.xlu1 %v601_v34 }
 0x201   : > { %v934_v40 = vand.u32 2147483647, %v2100_v39  ;;  %v592_v41 = vpop.f32.mrf.mxu1  ;;  %v1288_v39 = vadd.s32 4294967288, %v1283_v35 }
 0x202   : > { %1663 = vst [vmem:[%s2785_s8 + $0x38] sm:$0xff] %v604_v38  ;;  %v603_v42 = vand.u32 2147483647, %v592_v41  ;;  %v922_v43 = vpop.f32.mrf.mxu0  ;;  %v1302_v41 = vadd.s32 4294967272, %v1283_v35 }
 0x203   : > { %1675 = vst [vmem:[%s2785_s8 + $0x98] sm:$0xff] %v934_v40  ;;  %v933_v44 = vand.u32 2147483647, %v922_v43 }
 0x204   : > { %1662 = vst [vmem:[%s2785_s8 + $0x30] sm:$0xff] %v603_v42  ;;  %940 = vadd.xlane.f32.xlu1 %v931_v36 }
 0x205   : > { %1674 = vst [vmem:[%s2785_s8 + $0x90] sm:$0xff] %v933_v44  ;;  %944 = vadd.xlane.f32.xlu0 %v933_v44 }
 0x208   : > { %616 = vadd.xlane.f32.xlu1 %v604_v38  ;;  %v1295_v38 = vadd.s32 4294967280, %v1283_v35 }
 0x20a   : > { %v2842_v43 = vsub.s32 %v1295_v38, %v2472_v21 }
 0x20c   : > { %946 = vadd.xlane.f32.xlu1 %v934_v40  ;;  %v2837_v40 = vsub.s32 %v1283_v35, %v2472_v21 }
 0x210   : > { %614 = vadd.xlane.f32.xlu1 %v603_v42 }
 0x21d   : > { %v2059_v45 = vpop.f32.mrf.mxu1 }
 0x21e   : > { %v822_v46 = vand.u32 2147483647, %v2059_v45  ;;  %v2173_v47 = vpop.f32.mrf.mxu0  ;;  %v2847_v45 = vsub.s32 %v1288_v39, %v2472_v21 }
 0x21f   : > { %v1152_v48 = vand.u32 2147483647, %v2173_v47  ;;  %v802_v49 = vpop.f32.mrf.mxu1 }
 0x220   : > { %1669 = vst [vmem:[%s2785_s8 + $0x68] sm:$0xff] %v822_v46  ;;  %v821_v50 = vand.u32 2147483647, %v802_v49  ;;  %v1132_v51 = vpop.f32.mrf.mxu0  ;;  %832 = vadd.xlane.f32.xlu0 %v822_v46 }
 0x221   : > { %1681 = vst [vmem:[%s2785_s8 + $0xc8] sm:$0xff] %v1152_v48  ;;  %v1151_v52 = vand.u32 2147483647, %v1132_v51 }
 0x222   : > { %1668 = vst [vmem:[%s2785_s8 + $0x60] sm:$0xff] %v821_v50  ;;  %v2062_v53 = vpop.f32.mrf.mxu1  ;;  %830 = vadd.xlane.f32.xlu1 %v821_v50 }
 0x223   : > { %1680 = vst [vmem:[%s2785_s8 + $0xc0] sm:$0xff] %v1151_v52  ;;  %v824_v54 = vand.u32 2147483647, %v2062_v53  ;;  %v2176_v55 = vpop.f32.mrf.mxu0 }
 0x224   : > { %v1154_v56 = vand.u32 2147483647, %v2176_v55  ;;  %v812_v57 = vpop.f32.mrf.mxu1  ;;  %1162 = vadd.xlane.f32.xlu0 %v1152_v48  ;;  %v2853_v48 = vsub.s32 %v1302_v41, %v2472_v21 }
 0x225   : > { %1671 = vst [vmem:[%s2785_s8 + $0x78] sm:$0xff] %v824_v54  ;;  %v823_v58 = vand.u32 2147483647, %v812_v57  ;;  %v1142_v59 = vpop.f32.mrf.mxu0 }
 0x226   : > { %1683 = vst [vmem:[%s2785_s8 + $0xd8] sm:$0xff] %v1154_v56  ;;  %v1153_v60 = vand.u32 2147483647, %v1142_v59  ;;  %1160 = vadd.xlane.f32.xlu1 %v1151_v52 }
 0x227   : > { %1670 = vst [vmem:[%s2785_s8 + $0x70] sm:$0xff] %v823_v58 }
 0x228   : > { %1682 = vst [vmem:[%s2785_s8 + $0xd0] sm:$0xff] %v1153_v60  ;;  %834 = vadd.xlane.f32.xlu0 %v823_v58 }
 0x22a   : > { %836 = vadd.xlane.f32.xlu1 %v824_v54 }
 0x22c   : > { %1164 = vadd.xlane.f32.xlu0 %v1153_v60 }
 0x22e   : > { %1166 = vadd.xlane.f32.xlu1 %v1154_v56 }
 0x23e   : > { %v2135_v61 = vpop.f32.mrf.mxu1 }
 0x23f   : > { %v1042_v62 = vand.u32 2147483647, %v2135_v61 }
 0x240   : > { %v1022_v63 = vpop.f32.mrf.mxu1 }
 0x241   : > { %1677 = vst [vmem:[%s2785_s8 + $0xa8] sm:$0xff] %v1042_v62  ;;  %v1041_v3 = vand.u32 2147483647, %v1022_v63  ;;  %1052 = vadd.xlane.f32.xlu0 %v1042_v62 }
 0x242   : > { %v2138_v17 = vpop.f32.mrf.mxu1 }
 0x243   : > { %1676 = vst [vmem:[%s2785_s8 + $0xa0] sm:$0xff] %v1041_v3  ;;  %v1044_v18 = vand.u32 2147483647, %v2138_v17  ;;  %1050 = vadd.xlane.f32.xlu1 %v1041_v3 }
 0x244   : > { %v1032_v19 = vpop.f32.mrf.mxu1 }
 0x245   : > { %1679 = vst [vmem:[%s2785_s8 + $0xb8] sm:$0xff] %v1044_v18  ;;  %v1043_v22 = vand.u32 2147483647, %v1032_v19 }
 0x247   : > { %1678 = vst [vmem:[%s2785_s8 + $0xb0] sm:$0xff] %v1043_v22  ;;  %1056 = vadd.xlane.f32.xlu1 %v1044_v18  ;;  %1054 = vadd.xlane.f32.xlu0 %v1043_v22 }
 0x25e   : > { %v2211_v23 = vpop.f32.mrf.mxu1 }
 0x25f   : > { %v1262_v24 = vand.u32 2147483647, %v2211_v23 }
 0x260   : > { %v1242_v25 = vpop.f32.mrf.mxu1 }
 0x261   : > { %1685 = vst [vmem:[%s2785_s8 + $0xe8] sm:$0xff] %v1262_v24  ;;  %v1261_v26 = vand.u32 2147483647, %v1242_v25  ;;  %1272 = vadd.xlane.f32.xlu0 %v1262_v24 }
 0x262   : > { %v2214_v29 = vpop.f32.mrf.mxu1  ;;  %v503_v4 = vpop.xlane.xlu0 %502 }
 0x263   : > { %1684 = vst [vmem:[%s2785_s8 + $0xe0] sm:$0xff] %v1261_v26  ;;  %v1264_v0 = vand.u32 2147483647, %v2214_v29  ;;  %1270 = vadd.xlane.f32.xlu1 %v1261_v26  ;;  %v723_v5 = vpop.xlane.xlu1 %722  ;;  %v1292_v54 = vrot.slane %v503_v4, %v2847_v45 }
 0x264   : > { %v1252_v1 = vpop.f32.mrf.mxu1  ;;  %v1345_v21 = vrot.slane %v723_v5, %v2847_v45 }
 0x265   : > { %1687 = vst [vmem:[%s2785_s8 + $0xf8] sm:$0xff] %v1264_v0  ;;  %v1263_v2 = vand.u32 2147483647, %v1252_v1 }
 0x266   : > { %v501_v7 = vpop.xlane.xlu0 %500 }
 0x267   : > { %1686 = vst [vmem:[%s2785_s8 + $0xf0] sm:$0xff] %v1263_v2  ;;  %1276 = vadd.xlane.f32.xlu1 %v1264_v0  ;;  %1274 = vadd.xlane.f32.xlu0 %v1263_v2  ;;  %v1287_v47 = vrot.slane %v501_v7, %v2837_v40 }
 0x268   : > { %v2819_v6 = vpop.xlane.xlu1 %726 }
 0x269   : > { %v1294_v60 = vsel %vm1293_vm0, %v1292_v54, %v1287_v47  ;;  %v1355_v19 = vrot.slane %v2819_v6, %v2853_v48 }
 0x26a   : > { %v721_v9 = vpop.xlane.xlu0 %720 }
 0x26b   : > { %v1341_v51 = vrot.slane %v721_v9, %v2837_v40 }
 0x26d   : > { %v1346_v17 = vsel %vm1293_vm0, %v1345_v21, %v1341_v51 }
 0x26e   : > { %v2821_v11 = vpop.xlane.xlu0 %506 }
 0x26f   : > { %v1306_v61 = vrot.slane %v2821_v11, %v2853_v48 }
 0x272   : > { %v505_v13 = vpop.xlane.xlu0 %504 }
 0x273   : > { %v1299_v52 = vrot.slane %v505_v13, %v2842_v43 }
 0x275   : > { %v1301_v18 = vsel %vm1300_vm1, %v1299_v52, %v1294_v60 }
 0x276   : > { %v725_v15 = vpop.xlane.xlu0 %724  ;;  %v1308_v4 = vsel %vm1307_vm2, %v1306_v61, %v1301_v18 }
 0x277   : > { %v1350_v57 = vrot.slane %v725_v15, %v2842_v43 }
 0x279   : > { %v1351_v26 = vsel %vm1300_vm1, %v1350_v57, %v1346_v17 }
 0x285   : > { %v613_v8 = vpop.xlane.xlu1 %612 }
 0x286   : > { %v2827_v27 = vpop.xlane.xlu0 %942  ;;  %v1321_v49 = vrot.slane %v613_v8, %v2847_v45  ;;  %v1356_v8 = vsel %vm1307_vm2, %v1355_v19, %v1351_v26 }
 0x287   : > { %v1393_v6 = vrot.slane %v2827_v27, %v2847_v45 }
 0x289   : > { %v611_v10 = vpop.xlane.xlu1 %610 }
 0x28a   : > { %v1317_v20 = vrot.slane %v611_v10, %v2837_v40 }
 0x28c   : > { %v1322_v55 = vsel %vm1293_vm0, %v1321_v49, %v1317_v20 }
 0x28d   : > { %v2823_v12 = vpop.xlane.xlu1 %940 }
 0x28e   : > { %v2829_v28 = vpop.xlane.xlu0 %944  ;;  %v1389_v29 = vrot.slane %v2823_v12, %v2837_v40 }
 0x28f   : > { %v1398_v27 = vrot.slane %v2829_v28, %v2842_v43 }
 0x290   : > { %v1394_v12 = vsel %vm1293_vm0, %v1393_v6, %v1389_v29 }
 0x291   : > { %v617_v14 = vpop.xlane.xlu1 %616 }
 0x292   : > { %v1331_v62 = vrot.slane %v617_v14, %v2853_v48 }
 0x295   : > { %v2825_v16 = vpop.xlane.xlu1 %946 }
 0x296   : > { %v1403_v13 = vrot.slane %v2825_v16, %v2853_v48 }
 0x299   : > { %v615_v30 = vpop.xlane.xlu1 %614 }
 0x29a   : > { %v1326_v46 = vrot.slane %v615_v30, %v2842_v43 }
 0x29c   : > { %v1327_v58 = vsel %vm1300_vm1, %v1326_v46, %v1322_v55 }
 0x29d   : > { %v1332_v22 = vsel %vm1307_vm2, %v1331_v62, %v1327_v58 }
 0x29e   : > { %v1479_v7 = vsel %vm1478_vm3, %v1308_v4, %v1332_v22 }
 0x29f   : > { %v1481_v30 = vsel %vm1480_vm4, %v1479_v7, %v1356_v8 }
 0x2a9   : > { %v833_v31 = vpop.xlane.xlu0 %832 }
 0x2aa   : > { %v1369_v63 = vrot.slane %v833_v31, %v2847_v45 }
 0x2ab   : > { %v831_v32 = vpop.xlane.xlu1 %830 }
 0x2ac   : > { %v1365_v56 = vrot.slane %v831_v32, %v2837_v40 }
 0x2ad   : > { %v2831_v33 = vpop.xlane.xlu0 %1162 }
 0x2ae   : > { %v1370_v23 = vsel %vm1293_vm0, %v1369_v63, %v1365_v56 }
 0x2af   : > { %v2833_v34 = vpop.xlane.xlu1 %1160 }
 0x2b0   : > { %v1437_v14 = vrot.slane %v2833_v34, %v2837_v40 }
 0x2b1   : > { %v835_v36 = vpop.xlane.xlu0 %834 }
 0x2b2   : > { %v1374_v59 = vrot.slane %v835_v36, %v2842_v43  ;;  %v1441_v36 = vrot.slane %v2831_v33, %v2847_v45 }
 0x2b3   : > { %v837_v37 = vpop.xlane.xlu1 %836 }
 0x2b4   : > { %v1379_v24 = vrot.slane %v837_v37, %v2853_v48  ;;  %v1375_v0 = vsel %vm1300_vm1, %v1374_v59, %v1370_v23  ;;  %v1399_v37 = vsel %vm1300_vm1, %v1398_v27, %v1394_v12  ;;  %v1442_v39 = vsel %vm1293_vm0, %v1441_v36, %v1437_v14 }
 0x2b5   : > { %v2839_v42 = vpop.xlane.xlu0 %1164  ;;  %v1404_v28 = vsel %vm1307_vm2, %v1403_v13, %v1399_v37 }
 0x2b6   : > { %v1380_v9 = vsel %vm1307_vm2, %v1379_v24, %v1375_v0  ;;  %v1446_v31 = vrot.slane %v2839_v42, %v2842_v43 }
 0x2b7   : > { %v2844_v44 = vpop.xlane.xlu1 %1166  ;;  %v1483_v16 = vsel %vm1482_vm5, %v1481_v30, %v1380_v9 }
 0x2b8   : > { %v1451_v41 = vrot.slane %v2844_v44, %v2853_v48  ;;  %v1485_v42 = vsel %vm1484_vm6, %v1483_v16, %v1404_v28  ;;  %v1447_v33 = vsel %vm1300_vm1, %v1446_v31, %v1442_v39 }
 0x2ba   : > { %v1452_v52 = vsel %vm1307_vm2, %v1451_v41, %v1447_v33 }
 0x2ca   : > { %v1053_v50 = vpop.xlane.xlu0 %1052 }
 0x2cb   : > { %v1417_v5 = vrot.slane %v1053_v50, %v2847_v45 }
 0x2cc   : > { %v1051_v53 = vpop.xlane.xlu1 %1050 }
 0x2cd   : > { %v1413_v25 = vrot.slane %v1051_v53, %v2837_v40 }
 0x2cf   : > { %v1418_v10 = vsel %vm1293_vm0, %v1417_v5, %v1413_v25 }
 0x2d0   : > { %v1055_v3 = vpop.xlane.xlu0 %1054  ;;  %v1057_v1 = vpop.xlane.xlu1 %1056 }
 0x2d1   : > { %v1422_v2 = vrot.slane %v1055_v3, %v2842_v43  ;;  %v1427_v11 = vrot.slane %v1057_v1, %v2853_v48 }
 0x2d3   : > { %v1423_v15 = vsel %vm1300_vm1, %v1422_v2, %v1418_v10 }
 0x2d4   : > { %v1428_v34 = vsel %vm1307_vm2, %v1427_v11, %v1423_v15 }
 0x2d5   : > { %v1487_v49 = vsel %vm1486_vm7, %v1485_v42, %v1428_v34 }
 0x2d6   : > { %v1489_v53 = vsel %vm1488_vm8, %v1487_v49, %v1452_v52 }
 0x2ea   : > { %v1273_v32 = vpop.xlane.xlu0 %1272 }
 0x2eb   : > { %v1465_v20 = vrot.slane %v1273_v32, %v2847_v45 }
 0x2ec   : > { %v1271_v35 = vpop.xlane.xlu1 %1270 }
 0x2ed   : > { %v1461_v38 = vrot.slane %v1271_v35, %v2837_v40 }
 0x2ef   : > { %v1466_v51 = vsel %vm1293_vm0, %v1465_v20, %v1461_v38 }
 0x2f0   : > { %v1277_v46 = vpop.xlane.xlu1 %1276  ;;  %v1275_v47 = vpop.xlane.xlu0 %1274 }
 0x2f1   : > { %v1475_v50 = vrot.slane %v1277_v46, %v2853_v48  ;;  %v1470_v40 = vrot.slane %v1275_v47, %v2842_v43 }
 0x2f3   : > { %v1471_v44 = vsel %vm1300_vm1, %v1470_v40, %v1466_v51 }
 0x2f4   : > { %v1476_v54 = vsel %vm1307_vm2, %v1475_v50, %v1471_v44 }
 0x2f5   : > { %v1491_v45 = vsel %vm1490_vm9, %v1489_v53, %v1476_v54 }
 0x2f6   : > { %v1492_v48 = vmul.f32 0.0625, %v1491_v45 }
 0x2f8   : > { %1494 = vst.msk [vmem:[%s292_s11] sm:$0xff] %vm1493_vm10, %v1492_v48 }
 0x2f9 PF: > { %s15_s17 = sadd.s32 1, %s2261_s17   ;;  %s2938_s15 = smov %s2257_s16 }
 0x2fa   : > { %p12_p5 = scmp.ge.s32.totalorder %s15_s17, 4   ;;  %s2939_s16 = smov %s2941_s18 }
 0x2fc   :  { %14 = sbr.rel (!%p12_p5) target bundleno = 2 (0x2), region = 87 }

// kernel: _lambda_.3
= control target key start
LH: loop header
LB: loop body
LE: loop exit
PB: predicated region body
PF: predicated region fallthrough
CT: control target
= control target key end

     0   :  { %s6367_s12 = smov 0   ;;  %s6369_s13 = smov 0   ;;  %s8682_s0 = inlined_call_operand.vmem [shape: f32[2,256,128], index: 0, kind: input, shape index: {}]   ;;  %s8683_s1 = inlined_call_operand.vmem [shape: f32[2,128,128], index: 1, kind: input, shape index: {}]   ;;  %s8684_s2 = inlined_call_operand.vmem [shape: f32[2,8,128], index: 2, kind: input, shape index: {}]   ;;  %s8685_s3 = inlined_call_operand.vmem [shape: f32[2,8,256], index: 3, kind: output, shape index: {}]  }
   0x1   :  { %s6371_s14 = smov 0  }
   0x2 LB: > { %s25_s15 = sadd.s32 1, %s6341_s13  ;;  %p5085_p0 = scmp.ge.s32.totalorder %s6345_s14, 1  ;;  %s6345_s14 = sphi %s6371_s14, %s13_s14   ;;  %s6341_s13 = sphi %s6369_s13, %s8836_s13   ;;  %s6337_s12 = sphi %s6367_s12, %s8835_s12  }
   0x3   : > { %p27_p1 = scmp.ge.s32.totalorder %s25_s15, 2  ;;  %p177_p2 = scmp.lt.s32.totalorder %s6345_s14, 3 }
   0x5   : > { %s8838_s15 = smov (%p27_p1, %s25_s15), 0  ;;  %p178_p3 = pnand %p5085_p0, %p177_p2 }
   0x7   : > { %181 = sbr.rel (%p178_p3) target bundleno = 1129 (0x469), region = 32 }
   0xc   : > { %p219_p4 = scmp.lt.s32.totalorder %s6337_s12, 1  ;;  %v8686_v48 = vlaneseq  ;;  %vm3420_vm0 = vcmask 130112   ;;  %vm3427_vm1 = vcmask 195712   ;;  %vm3434_vm2 = vcmask 261312  }
   0xd   : > { %vm3441_vm3 = vcmask 326912   ;;  %vm3448_vm4 = vcmask 392512   ;;  %vm3455_vm5 = vcmask 458112   ;;  %vm8703_vm6 = vcmask 523712  }
   0xe   : > { %s8840_s12 = smov (!%p219_p4, %s6337_s12), 1  ;;  %v6579_v49 = vshrl.u32 %v8686_v48, 7  ;;  %vm3469_vm7 = vcmask 589312   ;;  %vm8701_vm8 = vcmask 654912   ;;  %vm3483_vm9 = vcmask 720512  }
   0xf   : > { %s5096_s16 = sshll.u32 %s8840_s12, 7  ;;  %s5095_s17 = sshll.u32 %s8840_s12, 8  ;;  %vm8702_vm10 = vcmask 786112   ;;  %vm8700_vm11 = vcmask 851712   ;;  %vm3504_vm12 = vcmask 917312   ;;  %vm3511_vm13 = vcmask 982912  }
  0x10   : > { %s6392_s20 = scalar_lea.vmem %s8683_s1, %s5096_s16  ;;  %s6405_s23 = scalar_lea.vmem %s8682_s0, %s5095_s17  ;;  %8704 = vst [vmem:[#allocation2_spill] sm:$0xff] %v6579_v49  ;;  %v1594_v50 = vsub.s32 3, %v6579_v49  ;;  %v2308_v51 = vsub.s32 5, %v6579_v49  ;;  %v2665_v52 = vsub.s32 6, %v6579_v49  ;;  %v523_v54 = vsub.s32 0, %v6579_v49 }
  0x11   : > { %v6395_v0 = vld [vmem:[%s6392_s20 + $0x78] sm:$0xff]  ;;  %v6398_v1 = vld [vmem:[%s6392_s20 + $0x70] sm:$0xff]  ;;  %v6411_v2 = vld [vmem:[%s6392_s20 + $0x68] sm:$0xff]  ;;  %s5090_s24 = sshll.u32 %s8840_s12, 3  ;;  %v1237_v55 = vsub.s32 2, %v6579_v49  ;;  %vm3518_vm14 = vcmask 1048512  }
  0x12   : > { %5530 = vmatprep.subr.mxu0 %v6395_v0  ;;  %5610 = vmatprep.subr.mxu1 %v6395_v0  ;;  %v247_v3 = vld [vmem:[%s6405_s23] sm:$0xff]  ;;  %v6426_v5 = vld [vmem:[%s6392_s20 + $0x58] sm:$0xff]  ;;  %v6432_v6 = vld [vmem:[%s6392_s20 + $0x50] sm:$0xff]  ;;  %s6584_s27 = scalar_lea.vmem %s8684_s2, %s5090_s24  ;;  %vm4945_vm15 = vcmask 1040384   ;;  %s5097_s28 = sshll.u32 %s8840_s12, 4 }
  0x13   : > { %5531 = vmatpush3.xpose.msra.mxu0 %v6395_v0  ;;  %5611 = vmatpush3.msra.mxu1 %v6395_v0  ;;  %v6420_v4 = vld [vmem:[%s6392_s20 + $0x60] sm:$0xff]  ;;  %v6438_v7 = vld [vmem:[%s6392_s20 + $0x48] sm:$0xff]  ;;  %v6450_v9 = vld [vmem:[%s6392_s20 + $0x38] sm:$0xff]  ;;  %s245_s4 = scalar_lea.vmem %s8685_s3, %s5097_s28 }
  0x14   : > { %5532 = vmatprep.subr.mxu0 %v6398_v1  ;;  %5612 = vmatprep.subr.mxu1 %v6398_v1  ;;  %v6444_v8 = vld [vmem:[%s6392_s20 + $0x40] sm:$0xff]  ;;  %v6456_v10 = vld [vmem:[%s6392_s20 + $0x30] sm:$0xff]  ;;  %v6462_v11 = vld [vmem:[%s6392_s20 + $0x28] sm:$0xff] }
  0x15   : > { %5613 = vmatpush3.msra.mxu1 %v6398_v1  ;;  %5562 = vmatprep.mubr.f32.mxu0 %v247_v3  ;;  %v6468_v12 = vld [vmem:[%s6392_s20 + $0x20] sm:$0xff]  ;;  %v6474_v13 = vld [vmem:[%s6392_s20 + $0x18] sm:$0xff]  ;;  %v6480_v14 = vld [vmem:[%s6392_s20 + $0x10] sm:$0xff] }
  0x16   : > { %5614 = vmatprep.subr.mxu1 %v6411_v2  ;;  %v6486_v15 = vld [vmem:[%s6392_s20 + $0x8] sm:$0xff]  ;;  %v6492_v16 = vld [vmem:[%s6392_s20] sm:$0xff]  ;;  %v249_v18 = vld [vmem:[%s6405_s23 + $0x10] sm:$0xff] }
  0x17   : > { %5533 = vmatpush3.xpose.msra.mxu0 %v6398_v1  ;;  %5615 = vmatpush3.msra.mxu1 %v6411_v2  ;;  %v248_v17 = vld [vmem:[%s6405_s23 + $0x8] sm:$0xff]  ;;  %v250_v19 = vld [vmem:[%s6405_s23 + $0x18] sm:$0xff]  ;;  %v251_v20 = vld [vmem:[%s6405_s23 + $0x20] sm:$0xff] }
  0x18   : > { %5534 = vmatprep.subr.mxu0 %v6411_v2  ;;  %5616 = vmatprep.subr.mxu1 %v6420_v4  ;;  %v252_v21 = vld [vmem:[%s6405_s23 + $0x28] sm:$0xff]  ;;  %v253_v22 = vld [vmem:[%s6405_s23 + $0x30] sm:$0xff]  ;;  %v254_v23 = vld [vmem:[%s6405_s23 + $0x38] sm:$0xff] }
  0x19   : > { %5617 = vmatpush3.msra.mxu1 %v6420_v4  ;;  %v255_v24 = vld [vmem:[%s6405_s23 + $0x40] sm:$0xff]  ;;  %v256_v25 = vld [vmem:[%s6405_s23 + $0x48] sm:$0xff]  ;;  %v257_v26 = vld [vmem:[%s6405_s23 + $0x50] sm:$0xff] }
  0x1a   : > { %5618 = vmatprep.subr.mxu1 %v6426_v5  ;;  %v258_v27 = vld [vmem:[%s6405_s23 + $0x58] sm:$0xff]  ;;  %v259_v28 = vld [vmem:[%s6405_s23 + $0x60] sm:$0xff]  ;;  %v260_v29 = vld [vmem:[%s6405_s23 + $0x68] sm:$0xff] }
  0x1b   : > { %5535 = vmatpush3.xpose.msra.mxu0 %v6411_v2  ;;  %5619 = vmatpush3.msra.mxu1 %v6426_v5  ;;  %v261_v30 = vld [vmem:[%s6405_s23 + $0x70] sm:$0xff]  ;;  %v262_v31 = vld [vmem:[%s6405_s23 + $0x78] sm:$0xff]  ;;  %v263_v32 = vld [vmem:[%s6405_s23 + $0x80] sm:$0xff] }
  0x1c   : > { %5536 = vmatprep.subr.mxu0 %v6420_v4  ;;  %5620 = vmatprep.subr.mxu1 %v6432_v6  ;;  %v264_v33 = vld [vmem:[%s6405_s23 + $0x88] sm:$0xff]  ;;  %v265_v34 = vld [vmem:[%s6405_s23 + $0x90] sm:$0xff]  ;;  %v266_v35 = vld [vmem:[%s6405_s23 + $0x98] sm:$0xff] }
  0x1d   : > { %5621 = vmatpush3.msra.mxu1 %v6432_v6  ;;  %v267_v36 = vld [vmem:[%s6405_s23 + $0xa0] sm:$0xff]  ;;  %v268_v37 = vld [vmem:[%s6405_s23 + $0xa8] sm:$0xff]  ;;  %v269_v38 = vld [vmem:[%s6405_s23 + $0xb0] sm:$0xff] }
  0x1e   : > { %5622 = vmatprep.subr.mxu1 %v6438_v7  ;;  %v270_v39 = vld [vmem:[%s6405_s23 + $0xb8] sm:$0xff]  ;;  %v271_v40 = vld [vmem:[%s6405_s23 + $0xc0] sm:$0xff]  ;;  %v272_v41 = vld [vmem:[%s6405_s23 + $0xc8] sm:$0xff] }
  0x1f   : > { %5537 = vmatpush3.xpose.msra.mxu0 %v6420_v4  ;;  %5623 = vmatpush3.msra.mxu1 %v6438_v7  ;;  %v273_v42 = vld [vmem:[%s6405_s23 + $0xd0] sm:$0xff]  ;;  %v274_v43 = vld [vmem:[%s6405_s23 + $0xd8] sm:$0xff]  ;;  %v275_v44 = vld [vmem:[%s6405_s23 + $0xe0] sm:$0xff] }
  0x20   : > { %5538 = vmatprep.subr.mxu0 %v6426_v5  ;;  %5624 = vmatprep.subr.mxu1 %v6444_v8  ;;  %v276_v45 = vld [vmem:[%s6405_s23 + $0xe8] sm:$0xff]  ;;  %v277_v46 = vld [vmem:[%s6405_s23 + $0xf0] sm:$0xff]  ;;  %v278_v47 = vld [vmem:[%s6405_s23 + $0xf8] sm:$0xff] }
  0x21   : > { %5625 = vmatpush3.msra.mxu1 %v6444_v8  ;;  %v6590_v53 = vld [vmem:[%s6584_s27] sm:$0xff] }
  0x22   : > { %5626 = vmatprep.subr.mxu1 %v6450_v9  ;;  %v6595_v56 = vrot.slane %v6590_v53, %v1594_v50  ;;  %v6598_v57 = vrot.slane %v6590_v53, %v2308_v51  ;;  %v6601_v58 = vrot.slane %v6590_v53, %v2665_v52  ;;  %v6604_v59 = vrot.slane %v6590_v53, %v523_v54 }
  0x23   : > { %5539 = vmatpush3.xpose.msra.mxu0 %v6426_v5  ;;  %5627 = vmatpush3.msra.mxu1 %v6450_v9  ;;  %v6607_v60 = vrot.slane %v6590_v53, %v1237_v55 }
  0x24   : > { %5540 = vmatprep.subr.mxu0 %v6432_v6  ;;  %5628 = vmatprep.subr.mxu1 %v6456_v10 }
  0x25   : > { %5629 = vmatpush3.msra.mxu1 %v6456_v10 }
  0x26   : > { %5630 = vmatprep.subr.mxu1 %v6462_v11 }
  0x27   : > { %5541 = vmatpush3.xpose.msra.mxu0 %v6432_v6  ;;  %5631 = vmatpush3.msra.mxu1 %v6462_v11 }
  0x28   : > { %5542 = vmatprep.subr.mxu0 %v6438_v7  ;;  %5632 = vmatprep.subr.mxu1 %v6468_v12 }
  0x29   : > { %5633 = vmatpush3.msra.mxu1 %v6468_v12 }
  0x2a   : > { %5634 = vmatprep.subr.mxu1 %v6474_v13 }
  0x2b   : > { %5543 = vmatpush3.xpose.msra.mxu0 %v6438_v7  ;;  %5635 = vmatpush3.msra.mxu1 %v6474_v13 }
  0x2c   : > { %5544 = vmatprep.subr.mxu0 %v6444_v8  ;;  %5636 = vmatprep.subr.mxu1 %v6480_v14 }
  0x2d   : > { %5637 = vmatpush3.msra.mxu1 %v6480_v14 }
  0x2e   : > { %5638 = vmatprep.subr.mxu1 %v6486_v15 }
  0x2f   : > { %5545 = vmatpush3.xpose.msra.mxu0 %v6444_v8  ;;  %5639 = vmatpush3.msra.mxu1 %v6486_v15 }
  0x30   : > { %5546 = vmatprep.subr.mxu0 %v6450_v9  ;;  %5640 = vmatprep.subr.mxu1 %v6492_v16 }
  0x31   : > { %5641 = vmatpush3.msra.mxu1 %v6492_v16 }
  0x32   : > { %5690 = vmatprep.subr.mxu1 %v6395_v0 }
  0x33   : > { %5547 = vmatpush3.xpose.msra.mxu0 %v6450_v9 }
  0x34   : > { %5548 = vmatprep.subr.mxu0 %v6456_v10 }
  0x37   : > { %5549 = vmatpush3.xpose.msra.mxu0 %v6456_v10 }
  0x38   : > { %5550 = vmatprep.subr.mxu0 %v6462_v11 }
  0x3b   : > { %5551 = vmatpush3.xpose.msra.mxu0 %v6462_v11 }
  0x3c   : > { %5552 = vmatprep.subr.mxu0 %v6468_v12 }
  0x3f   : > { %5553 = vmatpush3.xpose.msra.mxu0 %v6468_v12 }
  0x40   : > { %5554 = vmatprep.subr.mxu0 %v6474_v13 }
  0x43   : > { %5555 = vmatpush3.xpose.msra.mxu0 %v6474_v13 }
  0x44   : > { %5556 = vmatprep.subr.mxu0 %v6480_v14 }
  0x47   : > { %5557 = vmatpush3.xpose.msra.mxu0 %v6480_v14 }
  0x48   : > { %5558 = vmatprep.subr.mxu0 %v6486_v15 }
  0x4b   : > { %5559 = vmatpush3.xpose.msra.mxu0 %v6486_v15 }
  0x4c   : > { %5560 = vmatprep.subr.mxu0 %v6492_v16 }
  0x4f   : > { %5561 = vmatpush3.xpose.msra.mxu0 %v6492_v16 }
  0x50   : > { %5770 = vmatprep.subr.mxu0 %v6395_v0 }
  0x52   : > { %5563 = vmatmul.mubr.f32.vlgmr.msra.gmra.mxu0 %v248_v17 }
  0x53   : > { %5565 = vmatprep.mubr.f32.mxu0 %v249_v18  ;;  %5771 = vmatpush3.msra.mxu0 %v6395_v0 }
  0x54   : > { %5772 = vmatprep.subr.mxu0 %v6398_v1 }
  0x55   : > { %5773 = vmatpush3.msra.mxu0 %v6398_v1 }
  0x56   : > { %5566 = vmatmul.mubr.f32.gmra.mxu0 %v250_v19  ;;  %5774 = vmatprep.subr.mxu0 %v6411_v2 }
  0x57   : > { %5568 = vmatprep.mubr.f32.mxu0 %v251_v20  ;;  %5775 = vmatpush3.msra.mxu0 %v6411_v2 }
  0x58   : > { %5776 = vmatprep.subr.mxu0 %v6420_v4 }
  0x59   : > { %5777 = vmatpush3.msra.mxu0 %v6420_v4 }
  0x5a   : > { %5569 = vmatmul.mubr.f32.gmra.mxu0 %v252_v21  ;;  %5778 = vmatprep.subr.mxu0 %v6426_v5 }
  0x5b   : > { %5571 = vmatprep.mubr.f32.mxu0 %v253_v22  ;;  %5779 = vmatpush3.msra.mxu0 %v6426_v5 }
  0x5c   : > { %5780 = vmatprep.subr.mxu0 %v6432_v6 }
  0x5d   : > { %5781 = vmatpush3.msra.mxu0 %v6432_v6 }
  0x5e   : > { %5572 = vmatmul.mubr.f32.gmra.mxu0 %v254_v23  ;;  %5782 = vmatprep.subr.mxu0 %v6438_v7 }
  0x5f   : > { %5574 = vmatprep.mubr.f32.mxu0 %v255_v24  ;;  %5783 = vmatpush3.msra.mxu0 %v6438_v7 }
  0x60   : > { %5784 = vmatprep.subr.mxu0 %v6444_v8 }
  0x61   : > { %5785 = vmatpush3.msra.mxu0 %v6444_v8 }
  0x62   : > { %5575 = vmatmul.mubr.f32.gmra.mxu0 %v256_v25  ;;  %5786 = vmatprep.subr.mxu0 %v6450_v9 }
  0x63   : > { %5577 = vmatprep.mubr.f32.mxu0 %v257_v26  ;;  %5787 = vmatpush3.msra.mxu0 %v6450_v9 }
  0x64   : > { %5788 = vmatprep.subr.mxu0 %v6456_v10 }
  0x65   : > { %5789 = vmatpush3.msra.mxu0 %v6456_v10 }
  0x66   : > { %5578 = vmatmul.mubr.f32.gmra.mxu0 %v258_v27  ;;  %5790 = vmatprep.subr.mxu0 %v6462_v11 }
  0x67   : > { %5580 = vmatprep.mubr.f32.mxu0 %v259_v28  ;;  %5791 = vmatpush3.msra.mxu0 %v6462_v11 }
  0x68   : > { %5792 = vmatprep.subr.mxu0 %v6468_v12 }
  0x69   : > { %5793 = vmatpush3.msra.mxu0 %v6468_v12 }
  0x6a   : > { %5581 = vmatmul.mubr.f32.gmra.mxu0 %v260_v29  ;;  %5794 = vmatprep.subr.mxu0 %v6474_v13 }
  0x6b   : > { %5583 = vmatprep.mubr.f32.mxu0 %v261_v30  ;;  %5795 = vmatpush3.msra.mxu0 %v6474_v13 }
  0x6c   : > { %5796 = vmatprep.subr.mxu0 %v6480_v14 }
  0x6d   : > { %5797 = vmatpush3.msra.mxu0 %v6480_v14 }
  0x6e   : > { %5584 = vmatmul.mubr.f32.gmra.mxu0 %v262_v31  ;;  %5798 = vmatprep.subr.mxu0 %v6486_v15 }
  0x6f   : > { %5586 = vmatprep.mubr.f32.mxu0 %v263_v32  ;;  %5799 = vmatpush3.msra.mxu0 %v6486_v15 }
  0x70   : > { %5800 = vmatprep.subr.mxu0 %v6492_v16 }
  0x71   : > { %5801 = vmatpush3.msra.mxu0 %v6492_v16 }
  0x72   : > { %5587 = vmatmul.mubr.f32.gmra.mxu0 %v264_v33  ;;  %5930 = vmatprep.subr.mxu0 %v6395_v0 }
  0x73   : > { %5589 = vmatprep.mubr.f32.mxu0 %v265_v34 }
  0x76   : > { %5590 = vmatmul.mubr.f32.gmra.mxu0 %v266_v35 }
  0x77   : > { %5592 = vmatprep.mubr.f32.mxu0 %v267_v36 }
  0x7a   : > { %5593 = vmatmul.mubr.f32.gmra.mxu0 %v268_v37 }
  0x7b   : > { %5595 = vmatprep.mubr.f32.mxu0 %v269_v38 }
  0x7e   : > { %5596 = vmatmul.mubr.f32.gmra.mxu0 %v270_v39 }
  0x7f   : > { %5598 = vmatprep.mubr.f32.mxu0 %v271_v40 }
  0x82   : > { %5599 = vmatmul.mubr.f32.gmra.mxu0 %v272_v41 }
  0x83   : > { %5601 = vmatprep.mubr.f32.mxu0 %v273_v42 }
  0x86   : > { %5602 = vmatmul.mubr.f32.gmra.mxu0 %v274_v43 }
  0x87   : > { %5604 = vmatprep.mubr.f32.mxu0 %v275_v44 }
  0x8a   : > { %5605 = vmatmul.mubr.f32.gmra.mxu0 %v276_v45 }
  0x8b   : > { %5607 = vmatprep.mubr.f32.mxu0 %v277_v46 }
  0x8e   : > { %5608 = vmatmul.mubr.f32.gmra.mxu0 %v278_v47 }
 0x112   : > { %v6609_v61 = vpop.f32.mrf.mxu0 }
 0x113   : > { %v6615_v63 = vmul.f32 %v6609_v61, %v6595_v56  ;;  %v6619_v3 = vmul.f32 %v6609_v61, %v6601_v58  ;;  %v6623_v17 = vmul.f32 %v6609_v61, %v6598_v57  ;;  %v526_v21 = vmul.f32 %v6609_v61, %v6604_v59 }
 0x114   : > { %v6611_v62 = vpop.f32.mrf.mxu0  ;;  %v1240_v22 = vmul.f32 %v6609_v61, %v6607_v60 }
 0x115   : > { %8705 = vst [vmem:[#allocation3_spill] sm:$0xff] %v6623_v17  ;;  %v525_v18 = vmul.f32 %v6604_v59, %v6611_v62  ;;  %v1239_v19 = vmul.f32 %v6607_v60, %v6611_v62 }
 0x116   : > { %v6629_v20 = vpop.f32.mrf.mxu0 }
 0x117   : > { %5642 = vmatprep.mubr.f32.mxu1 %v525_v18  ;;  %5802 = vmatprep.mubr.f32.mxu0 %v1239_v19  ;;  %v6639_v24 = vmul.f32 %v6629_v20, %v6595_v56  ;;  %v6643_v25 = vmul.f32 %v6629_v20, %v6601_v58  ;;  %v528_v29 = vmul.f32 %v6629_v20, %v6604_v59 }
 0x118   : > { %v6635_v23 = vpop.f32.mrf.mxu0  ;;  %5643 = vmatmul.mubr.f32.vlgmr.msra.gmra.mxu1 %v526_v21  ;;  %5803 = vmatmul.mubr.f32.vlgmr.msra.gmra.mxu0 %v1240_v22  ;;  %v1242_v30 = vmul.f32 %v6629_v20, %v6607_v60 }
 0x119   : > { %v527_v26 = vmul.f32 %v6604_v59, %v6635_v23  ;;  %v1241_v27 = vmul.f32 %v6607_v60, %v6635_v23  ;;  %5691 = vmatpush3.msra.mxu1 %v6395_v0  ;;  %5931 = vmatpush3.msra.mxu0 %v6395_v0 }
 0x11a   : > { %v6651_v28 = vpop.f32.mrf.mxu0  ;;  %5692 = vmatprep.subr.mxu1 %v6398_v1  ;;  %5932 = vmatprep.subr.mxu0 %v6398_v1 }
 0x11b   : > { %5645 = vmatprep.mubr.f32.mxu1 %v527_v26  ;;  %5805 = vmatprep.mubr.f32.mxu0 %v1241_v27  ;;  %v530_v31 = vmul.f32 %v6651_v28, %v6604_v59  ;;  %v1244_v33 = vmul.f32 %v6651_v28, %v6607_v60  ;;  %v6667_v34 = vmul.f32 %v6651_v28, %v6595_v56 }
 0x11c   : > { %v6661_v32 = vpop.f32.mrf.mxu0  ;;  %5646 = vmatmul.mubr.f32.gmra.mxu1 %v528_v29  ;;  %5806 = vmatmul.mubr.f32.gmra.mxu0 %v1242_v30  ;;  %v6671_v35 = vmul.f32 %v6651_v28, %v6601_v58 }
 0x11d   : > { %v529_v36 = vmul.f32 %v6604_v59, %v6661_v32  ;;  %v1243_v37 = vmul.f32 %v6607_v60, %v6661_v32  ;;  %5693 = vmatpush3.msra.mxu1 %v6398_v1  ;;  %5933 = vmatpush3.msra.mxu0 %v6398_v1 }
 0x11e   : > { %v6679_v38 = vpop.f32.mrf.mxu0  ;;  %5694 = vmatprep.subr.mxu1 %v6411_v2  ;;  %5934 = vmatprep.subr.mxu0 %v6411_v2 }
 0x11f   : > { %5648 = vmatprep.mubr.f32.mxu1 %v529_v36  ;;  %5808 = vmatprep.mubr.f32.mxu0 %v1243_v37  ;;  %v532_v39 = vmul.f32 %v6679_v38, %v6604_v59  ;;  %v1246_v41 = vmul.f32 %v6679_v38, %v6607_v60  ;;  %v6691_v42 = vmul.f32 %v6679_v38, %v6595_v56 }
 0x120   : > { %v6685_v40 = vpop.f32.mrf.mxu0  ;;  %5649 = vmatmul.mubr.f32.gmra.mxu1 %v530_v31  ;;  %5809 = vmatmul.mubr.f32.gmra.mxu0 %v1244_v33  ;;  %v6695_v43 = vmul.f32 %v6679_v38, %v6601_v58 }
 0x121   : > { %v531_v44 = vmul.f32 %v6604_v59, %v6685_v40  ;;  %v1245_v45 = vmul.f32 %v6607_v60, %v6685_v40  ;;  %5695 = vmatpush3.msra.mxu1 %v6411_v2  ;;  %5935 = vmatpush3.msra.mxu0 %v6411_v2 }
 0x122   : > { %v6703_v46 = vpop.f32.mrf.mxu0  ;;  %5696 = vmatprep.subr.mxu1 %v6420_v4  ;;  %5936 = vmatprep.subr.mxu0 %v6420_v4 }
 0x123   : > { %8706 = vst [vmem:[#allocation4_spill] sm:$0xff] %v6703_v46  ;;  %5651 = vmatprep.mubr.f32.mxu1 %v531_v44  ;;  %5811 = vmatprep.mubr.f32.mxu0 %v1245_v45  ;;  %v534_v47 = vmul.f32 %v6703_v46, %v6604_v59  ;;  %v1248_v51 = vmul.f32 %v6703_v46, %v6607_v60 }
 0x124   : > { %v6709_v50 = vpop.f32.mrf.mxu0  ;;  %5652 = vmatmul.mubr.f32.gmra.mxu1 %v532_v39  ;;  %5812 = vmatmul.mubr.f32.gmra.mxu0 %v1246_v41  ;;  %v6715_v52 = vmul.f32 %v6703_v46, %v6595_v56  ;;  %v6719_v54 = vmul.f32 %v6703_v46, %v6601_v58 }
 0x125   : > { %v533_v55 = vmul.f32 %v6604_v59, %v6709_v50  ;;  %v1247_v18 = vmul.f32 %v6607_v60, %v6709_v50  ;;  %5697 = vmatpush3.msra.mxu1 %v6420_v4  ;;  %5937 = vmatpush3.msra.mxu0 %v6420_v4 }
 0x126   : > { %8707 = vst [vmem:[#allocation5_spill] sm:$0xff] %v6719_v54  ;;  %v6727_v19 = vpop.f32.mrf.mxu0  ;;  %5698 = vmatprep.subr.mxu1 %v6426_v5  ;;  %5938 = vmatprep.subr.mxu0 %v6426_v5 }
 0x127   : > { %8708 = vst [vmem:[#allocation6_spill] sm:$0xff] %v6727_v19  ;;  %5654 = vmatprep.mubr.f32.mxu1 %v533_v55  ;;  %5814 = vmatprep.mubr.f32.mxu0 %v1247_v18  ;;  %v536_v21 = vmul.f32 %v6727_v19, %v6604_v59  ;;  %v1250_v26 = vmul.f32 %v6727_v19, %v6607_v60 }
 0x128   : > { %v6733_v22 = vpop.f32.mrf.mxu0  ;;  %5655 = vmatmul.mubr.f32.gmra.mxu1 %v534_v47  ;;  %5815 = vmatmul.mubr.f32.gmra.mxu0 %v1248_v51  ;;  %v6739_v27 = vmul.f32 %v6727_v19, %v6595_v56  ;;  %v6743_v29 = vmul.f32 %v6727_v19, %v6601_v58 }
 0x129   : > { %v535_v30 = vmul.f32 %v6604_v59, %v6733_v22  ;;  %v1249_v31 = vmul.f32 %v6607_v60, %v6733_v22  ;;  %5699 = vmatpush3.msra.mxu1 %v6426_v5  ;;  %5939 = vmatpush3.msra.mxu0 %v6426_v5 }
 0x12a   : > { %8709 = vst [vmem:[#allocation7_spill] sm:$0xff] %v6739_v27  ;;  %8710 = vst [vmem:[#allocation8_spill] sm:$0xff] %v6743_v29  ;;  %v6751_v33 = vpop.f32.mrf.mxu0  ;;  %5700 = vmatprep.subr.mxu1 %v6432_v6  ;;  %5940 = vmatprep.subr.mxu0 %v6432_v6 }
 0x12b   : > { %8711 = vst [vmem:[#allocation9_spill] sm:$0xff] %v6751_v33  ;;  %5657 = vmatprep.mubr.f32.mxu1 %v535_v30  ;;  %5817 = vmatprep.mubr.f32.mxu0 %v1249_v31  ;;  %v538_v36 = vmul.f32 %v6751_v33, %v6604_v59  ;;  %v1252_v39 = vmul.f32 %v6751_v33, %v6607_v60 }
 0x12c   : > { %v6757_v37 = vpop.f32.mrf.mxu0  ;;  %5658 = vmatmul.mubr.f32.gmra.mxu1 %v536_v21  ;;  %5818 = vmatmul.mubr.f32.gmra.mxu0 %v1250_v26  ;;  %v6763_v5 = vmul.f32 %v6751_v33, %v6595_v56  ;;  %v6767_v41 = vmul.f32 %v6751_v33, %v6601_v58 }
 0x12d   : > { %v537_v44 = vmul.f32 %v6604_v59, %v6757_v37  ;;  %v1251_v45 = vmul.f32 %v6607_v60, %v6757_v37  ;;  %5701 = vmatpush3.msra.mxu1 %v6432_v6  ;;  %5941 = vmatpush3.msra.mxu0 %v6432_v6 }
 0x12e   : > { %8712 = vst [vmem:[#allocation10_spill] sm:$0xff] %v6763_v5  ;;  %8713 = vst [vmem:[#allocation11_spill] sm:$0xff] %v6767_v41  ;;  %v6775_v47 = vpop.f32.mrf.mxu0  ;;  %5702 = vmatprep.subr.mxu1 %v6438_v7  ;;  %5942 = vmatprep.subr.mxu0 %v6438_v7 }
 0x12f   : > { %8714 = vst [vmem:[#allocation12_spill] sm:$0xff] %v6775_v47  ;;  %5660 = vmatprep.mubr.f32.mxu1 %v537_v44  ;;  %5820 = vmatprep.mubr.f32.mxu0 %v1251_v45  ;;  %v540_v51 = vmul.f32 %v6775_v47, %v6604_v59  ;;  %v1254_v18 = vmul.f32 %v6775_v47, %v6607_v60 }
 0x130   : > { %v6781_v55 = vpop.f32.mrf.mxu0  ;;  %5661 = vmatmul.mubr.f32.gmra.mxu1 %v538_v36  ;;  %5821 = vmatmul.mubr.f32.gmra.mxu0 %v1252_v39  ;;  %v6787_v6 = vmul.f32 %v6775_v47, %v6595_v56  ;;  %v6791_v21 = vmul.f32 %v6775_v47, %v6601_v58 }
 0x131   : > { %v539_v26 = vmul.f32 %v6604_v59, %v6781_v55  ;;  %v1253_v30 = vmul.f32 %v6607_v60, %v6781_v55  ;;  %5703 = vmatpush3.msra.mxu1 %v6438_v7  ;;  %5943 = vmatpush3.msra.mxu0 %v6438_v7 }
 0x132   : > { %8715 = vst [vmem:[#allocation13_spill] sm:$0xff] %v6787_v6  ;;  %8716 = vst [vmem:[#allocation14_spill] sm:$0xff] %v6791_v21  ;;  %v6799_v31 = vpop.f32.mrf.mxu0  ;;  %5704 = vmatprep.subr.mxu1 %v6444_v8  ;;  %5944 = vmatprep.subr.mxu0 %v6444_v8 }
 0x133   : > { %8717 = vst [vmem:[#allocation15_spill] sm:$0xff] %v6799_v31  ;;  %5663 = vmatprep.mubr.f32.mxu1 %v539_v26  ;;  %5823 = vmatprep.mubr.f32.mxu0 %v1253_v30  ;;  %v542_v36 = vmul.f32 %v6799_v31, %v6604_v59  ;;  %v1256_v44 = vmul.f32 %v6799_v31, %v6607_v60 }
 0x134   : > { %v6805_v39 = vpop.f32.mrf.mxu0  ;;  %5664 = vmatmul.mubr.f32.gmra.mxu1 %v540_v51  ;;  %5824 = vmatmul.mubr.f32.gmra.mxu0 %v1254_v18  ;;  %v6811_v7 = vmul.f32 %v6799_v31, %v6595_v56  ;;  %v6815_v45 = vmul.f32 %v6799_v31, %v6601_v58 }
 0x135   : > { %v541_v26 = vmul.f32 %v6604_v59, %v6805_v39  ;;  %v1255_v30 = vmul.f32 %v6607_v60, %v6805_v39  ;;  %5705 = vmatpush3.msra.mxu1 %v6444_v8  ;;  %5945 = vmatpush3.msra.mxu0 %v6444_v8 }
 0x136   : > { %8718 = vst [vmem:[#allocation16_spill] sm:$0xff] %v6811_v7  ;;  %8719 = vst [vmem:[#allocation17_spill] sm:$0xff] %v6815_v45  ;;  %v6823_v51 = vpop.f32.mrf.mxu0  ;;  %5706 = vmatprep.subr.mxu1 %v6450_v9  ;;  %5946 = vmatprep.subr.mxu0 %v6450_v9 }
 0x137   : > { %8720 = vst [vmem:[#allocation18_spill] sm:$0xff] %v6823_v51  ;;  %5666 = vmatprep.mubr.f32.mxu1 %v541_v26  ;;  %5826 = vmatprep.mubr.f32.mxu0 %v1255_v30  ;;  %v544_v18 = vmul.f32 %v6823_v51, %v6604_v59  ;;  %v1258_v17 = vmul.f32 %v6823_v51, %v6607_v60 }
 0x138   : > { %v6829_v48 = vpop.f32.mrf.mxu0  ;;  %5667 = vmatmul.mubr.f32.gmra.mxu1 %v542_v36  ;;  %5827 = vmatmul.mubr.f32.gmra.mxu0 %v1256_v44  ;;  %v6835_v8 = vmul.f32 %v6823_v51, %v6595_v56  ;;  %v6839_v45 = vmul.f32 %v6823_v51, %v6601_v58 }
 0x139   : > { %v543_v26 = vmul.f32 %v6604_v59, %v6829_v48  ;;  %v1257_v30 = vmul.f32 %v6607_v60, %v6829_v48  ;;  %5707 = vmatpush3.msra.mxu1 %v6450_v9  ;;  %5947 = vmatpush3.msra.mxu0 %v6450_v9 }
 0x13a   : > { %8721 = vst [vmem:[#allocation19_spill] sm:$0xff] %v6835_v8  ;;  %8722 = vst [vmem:[#allocation20_spill] sm:$0xff] %v6839_v45  ;;  %v6847_v36 = vpop.f32.mrf.mxu0  ;;  %5708 = vmatprep.subr.mxu1 %v6456_v10  ;;  %5948 = vmatprep.subr.mxu0 %v6456_v10 }
 0x13b   : > { %8723 = vst [vmem:[#allocation21_spill] sm:$0xff] %v6847_v36  ;;  %5669 = vmatprep.mubr.f32.mxu1 %v543_v26  ;;  %5829 = vmatprep.mubr.f32.mxu0 %v1257_v30  ;;  %v546_v44 = vmul.f32 %v6847_v36, %v6604_v59  ;;  %v1260_v8 = vmul.f32 %v6847_v36, %v6607_v60 }
 0x13c   : > { %v6853_v45 = vpop.f32.mrf.mxu0  ;;  %5670 = vmatmul.mubr.f32.gmra.mxu1 %v544_v18  ;;  %5830 = vmatmul.mubr.f32.gmra.mxu0 %v1258_v17  ;;  %v6859_v9 = vmul.f32 %v6847_v36, %v6595_v56  ;;  %v6863_v7 = vmul.f32 %v6847_v36, %v6601_v58 }
 0x13d   : > { %v545_v26 = vmul.f32 %v6604_v59, %v6853_v45  ;;  %v1259_v30 = vmul.f32 %v6607_v60, %v6853_v45  ;;  %5709 = vmatpush3.msra.mxu1 %v6456_v10  ;;  %5949 = vmatpush3.msra.mxu0 %v6456_v10 }
 0x13e   : > { %8724 = vst [vmem:[#allocation22_spill] sm:$0xff] %v6859_v9  ;;  %8725 = vst [vmem:[#allocation23_spill] sm:$0xff] %v6863_v7  ;;  %v6871_v17 = vpop.f32.mrf.mxu0  ;;  %5710 = vmatprep.subr.mxu1 %v6462_v11  ;;  %5950 = vmatprep.subr.mxu0 %v6462_v11 }
 0x13f   : > { %5672 = vmatprep.mubr.f32.mxu1 %v545_v26  ;;  %5832 = vmatprep.mubr.f32.mxu0 %v1259_v30  ;;  %v548_v18 = vmul.f32 %v6871_v17, %v6604_v59  ;;  %v1262_v9 = vmul.f32 %v6871_v17, %v6607_v60  ;;  %v6883_v10 = vmul.f32 %v6871_v17, %v6595_v56 }
 0x140   : > { %v6877_v7 = vpop.f32.mrf.mxu0  ;;  %5673 = vmatmul.mubr.f32.gmra.mxu1 %v546_v44  ;;  %5833 = vmatmul.mubr.f32.gmra.mxu0 %v1260_v8  ;;  %v6887_v21 = vmul.f32 %v6871_v17, %v6601_v58 }
 0x141   : > { %8726 = vst [vmem:[#allocation24_spill] sm:$0xff] %v6883_v10  ;;  %v547_v26 = vmul.f32 %v6604_v59, %v6877_v7  ;;  %v1261_v30 = vmul.f32 %v6607_v60, %v6877_v7  ;;  %5711 = vmatpush3.msra.mxu1 %v6462_v11  ;;  %5951 = vmatpush3.msra.mxu0 %v6462_v11 }
 0x142   : > { %8727 = vst [vmem:[#allocation25_spill] sm:$0xff] %v6887_v21  ;;  %v6895_v8 = vpop.f32.mrf.mxu0  ;;  %5712 = vmatprep.subr.mxu1 %v6468_v12  ;;  %5952 = vmatprep.subr.mxu0 %v6468_v12 }
 0x143   : > { %5675 = vmatprep.mubr.f32.mxu1 %v547_v26  ;;  %5835 = vmatprep.mubr.f32.mxu0 %v1261_v30  ;;  %v550_v44 = vmul.f32 %v6895_v8, %v6604_v59  ;;  %v1264_v10 = vmul.f32 %v6895_v8, %v6607_v60  ;;  %v6907_v11 = vmul.f32 %v6895_v8, %v6595_v56 }
 0x144   : > { %v6901_v21 = vpop.f32.mrf.mxu0  ;;  %5676 = vmatmul.mubr.f32.gmra.mxu1 %v548_v18  ;;  %5836 = vmatmul.mubr.f32.gmra.mxu0 %v1262_v9  ;;  %v6911_v6 = vmul.f32 %v6895_v8, %v6601_v58 }
 0x145   : > { %8728 = vst [vmem:[#allocation26_spill] sm:$0xff] %v6901_v21  ;;  %8729 = vst [vmem:[#allocation27_spill] sm:$0xff] %v6907_v11  ;;  %v549_v26 = vmul.f32 %v6604_v59, %v6901_v21  ;;  %v1263_v30 = vmul.f32 %v6607_v60, %v6901_v21  ;;  %5713 = vmatpush3.msra.mxu1 %v6468_v12  ;;  %5953 = vmatpush3.msra.mxu0 %v6468_v12 }
 0x146   : > { %8730 = vst [vmem:[#allocation28_spill] sm:$0xff] %v6911_v6  ;;  %v6919_v9 = vpop.f32.mrf.mxu0  ;;  %5714 = vmatprep.subr.mxu1 %v6474_v13  ;;  %5954 = vmatprep.subr.mxu0 %v6474_v13  ;;  %v6925_v18 = vmul.f32 %v6595_v56, %v6901_v21  ;;  %v6929_v6 = vmul.f32 %v6601_v58, %v6901_v21 }
 0x147   : > { %5678 = vmatprep.mubr.f32.mxu1 %v549_v26  ;;  %5838 = vmatprep.mubr.f32.mxu0 %v1263_v30  ;;  %v552_v11 = vmul.f32 %v6919_v9, %v6604_v59  ;;  %v1266_v41 = vmul.f32 %v6919_v9, %v6607_v60  ;;  %v6939_v5 = vmul.f32 %v6919_v9, %v6595_v56  ;;  %v880_v26 = vsub.s32 1, %v6579_v49 }
 0x148   : > { %8731 = vst [vmem:[#allocation29_spill] sm:$0xff] %v6925_v18  ;;  %8732 = vst [vmem:[#allocation30_spill] sm:$0xff] %v6929_v6  ;;  %v6933_v12 = vpop.f32.mrf.mxu0  ;;  %5679 = vmatmul.mubr.f32.gmra.mxu1 %v550_v44  ;;  %5839 = vmatmul.mubr.f32.gmra.mxu0 %v1264_v10  ;;  %v6943_v18 = vmul.f32 %v6919_v9, %v6601_v58  ;;  %v1951_v10 = vsub.s32 4, %v6579_v49 }
 0x149   : > { %8733 = vst [vmem:[#allocation31_spill] sm:$0xff] %v6933_v12  ;;  %8734 = vst [vmem:[#allocation32_spill] sm:$0xff] %v6939_v5  ;;  %v551_v30 = vmul.f32 %v6604_v59, %v6933_v12  ;;  %v1265_v44 = vmul.f32 %v6607_v60, %v6933_v12  ;;  %5715 = vmatpush3.msra.mxu1 %v6474_v13  ;;  %5955 = vmatpush3.msra.mxu0 %v6474_v13 }
 0x14a   : > { %8735 = vst [vmem:[#allocation33_spill] sm:$0xff] %v6943_v18  ;;  %v6953_v6 = vpop.f32.mrf.mxu0  ;;  %5716 = vmatprep.subr.mxu1 %v6480_v14  ;;  %5956 = vmatprep.subr.mxu0 %v6480_v14  ;;  %v6959_v18 = vmul.f32 %v6595_v56, %v6933_v12  ;;  %v6963_v5 = vmul.f32 %v6601_v58, %v6933_v12 }
 0x14b   : > { %5681 = vmatprep.mubr.f32.mxu1 %v551_v30  ;;  %5841 = vmatprep.mubr.f32.mxu0 %v1265_v44  ;;  %v554_v13 = vmul.f32 %v6953_v6, %v6604_v59  ;;  %v1268_v29 = vmul.f32 %v6953_v6, %v6607_v60  ;;  %v6973_v27 = vmul.f32 %v6953_v6, %v6595_v56 }
 0x14c   : > { %8736 = vst [vmem:[#allocation34_spill] sm:$0xff] %v6959_v18  ;;  %8737 = vst [vmem:[#allocation35_spill] sm:$0xff] %v6963_v5  ;;  %v6967_v49 = vpop.f32.mrf.mxu0  ;;  %5682 = vmatmul.mubr.f32.gmra.mxu1 %v552_v11  ;;  %5842 = vmatmul.mubr.f32.gmra.mxu0 %v1266_v41  ;;  %v6977_v18 = vmul.f32 %v6953_v6, %v6601_v58  ;;  %v6980_v30 = vrot.slane %v6590_v53, %v880_v26 }
 0x14d   : > { %8738 = vst [vmem:[#allocation36_spill] sm:$0xff] %v6967_v49  ;;  %8739 = vst [vmem:[#allocation37_spill] sm:$0xff] %v6973_v27  ;;  %v553_v44 = vmul.f32 %v6604_v59, %v6967_v49  ;;  %v1267_v41 = vmul.f32 %v6607_v60, %v6967_v49  ;;  %5717 = vmatpush3.msra.mxu1 %v6480_v14  ;;  %5957 = vmatpush3.msra.mxu0 %v6480_v14 }
 0x14e   : > { %8740 = vst [vmem:[#allocation38_spill] sm:$0xff] %v6977_v18  ;;  %v6989_v11 = vrot.slane %v6590_v53, %v1951_v10  ;;  %v6991_v27 = vpop.f32.mrf.mxu0  ;;  %5718 = vmatprep.subr.mxu1 %v6486_v15  ;;  %5958 = vmatprep.subr.mxu0 %v6486_v15  ;;  %v6997_v26 = vmul.f32 %v6595_v56, %v6967_v49 }
 0x14f   : > { %8741 = vst [vmem:[#allocation39_spill] sm:$0xff] %v6991_v27  ;;  %v7001_v18 = vmul.f32 %v6601_v58, %v6967_v49  ;;  %5684 = vmatprep.mubr.f32.mxu1 %v553_v44  ;;  %5844 = vmatprep.mubr.f32.mxu0 %v1267_v41  ;;  %v556_v14 = vmul.f32 %v6991_v27, %v6604_v59 }
 0x150   : > { %8742 = vst [vmem:[#allocation40_spill] sm:$0xff] %v6997_v26  ;;  %v1270_v53 = vmul.f32 %v6991_v27, %v6607_v60  ;;  %v7009_v10 = vmul.f32 %v6991_v27, %v6980_v30  ;;  %v7011_v5 = vpop.f32.mrf.mxu0  ;;  %5685 = vmatmul.mubr.f32.gmra.mxu1 %v554_v13  ;;  %5845 = vmatmul.mubr.f32.gmra.mxu0 %v1268_v29 }
 0x151   : > { %8743 = vst [vmem:[#allocation41_spill] sm:$0xff] %v7001_v18  ;;  %v7015_v26 = vmul.f32 %v6991_v27, %v6989_v11  ;;  %v7019_v44 = vmul.f32 %v6991_v27, %v6595_v56  ;;  %v7023_v41 = vmul.f32 %v6991_v27, %v6601_v58  ;;  %v555_v18 = vmul.f32 %v6604_v59, %v7011_v5 }
 0x152   : > { %v1269_v54 = vmul.f32 %v6607_v60, %v7011_v5  ;;  %5719 = vmatpush3.msra.mxu1 %v6486_v15  ;;  %5959 = vmatpush3.msra.mxu0 %v6486_v15  ;;  %v882_v29 = vmul.f32 %v6980_v30, %v6611_v62  ;;  %v1953_v13 = vmul.f32 %v6989_v11, %v6611_v62 }
 0x153   : > { %5720 = vmatprep.subr.mxu1 %v6492_v16  ;;  %5960 = vmatprep.subr.mxu0 %v6492_v16  ;;  %v7039_v59 = vmul.f32 %v6629_v20, %v6598_v57  ;;  %v7043_v15 = vmul.f32 %v6651_v28, %v6598_v57  ;;  %v883_v60 = vmul.f32 %v6609_v61, %v6980_v30 }
 0x154   : > { %5687 = vmatprep.mubr.f32.mxu1 %v555_v18  ;;  %5847 = vmatprep.mubr.f32.mxu0 %v1269_v54  ;;  %v1954_v54 = vmul.f32 %v6609_v61, %v6989_v11  ;;  %v7053_v18 = vmul.f32 %v6679_v38, %v6598_v57 }
 0x155   : > { %5688 = vmatmul.mubr.f32.gmra.mxu1 %v556_v14  ;;  %5848 = vmatmul.mubr.f32.gmra.mxu0 %v1270_v53  ;;  %8744 = vst [vmem:[#allocation42_spill] sm:$0xff] %v7043_v15  ;;  %v884_v14 = vmul.f32 %v6980_v30, %v6635_v23  ;;  %v1955_v53 = vmul.f32 %v6989_v11, %v6635_v23 }
 0x156   : > { %5722 = vmatprep.mubr.f32.mxu1 %v882_v29  ;;  %5962 = vmatprep.mubr.f32.mxu0 %v1953_v13  ;;  %8745 = vst [vmem:[#allocation43_spill] sm:$0xff] %v7053_v18  ;;  %v7067_v29 = vmul.f32 %v6727_v19, %v6598_v57  ;;  %v7071_v13 = vmul.f32 %v6751_v33, %v6598_v57 }
 0x157   : > { %5721 = vmatpush3.msra.mxu1 %v6492_v16  ;;  %5961 = vmatpush3.msra.mxu0 %v6492_v16  ;;  %v7063_v16 = vmul.f32 %v6703_v46, %v6598_v57  ;;  %v885_v18 = vmul.f32 %v6629_v20, %v6980_v30  ;;  %v1956_v15 = vmul.f32 %v6629_v20, %v6989_v11 }
 0x158   : > { %5850 = vmatprep.subr.mxu1 %v6395_v0  ;;  %6090 = vmatprep.subr.mxu0 %v6395_v0  ;;  %8747 = vst [vmem:[#allocation45_spill] sm:$0xff] %v7067_v29  ;;  %8748 = vst [vmem:[#allocation46_spill] sm:$0xff] %v7071_v13  ;;  %v886_v13 = vmul.f32 %v6980_v30, %v6661_v32  ;;  %v7113_v29 = vmul.f32 %v6895_v8, %v6598_v57 }
 0x159   : > { %8746 = vst [vmem:[#allocation44_spill] sm:$0xff] %v7063_v16  ;;  %5723 = vmatmul.mubr.f32.vlgmr.msra.gmra.mxu1 %v883_v60  ;;  %5963 = vmatmul.mubr.f32.vlgmr.msra.gmra.mxu0 %v1954_v54  ;;  %v7079_v60 = vmul.f32 %v6775_v47, %v6598_v57  ;;  %v887_v54 = vmul.f32 %v6651_v28, %v6980_v30 }
 0x15a   : > { %5725 = vmatprep.mubr.f32.mxu1 %v884_v14  ;;  %5965 = vmatprep.mubr.f32.mxu0 %v1955_v53  ;;  %v7087_v14 = vmul.f32 %v6799_v31, %v6598_v57  ;;  %v7091_v53 = vmul.f32 %v6823_v51, %v6598_v57  ;;  %v7117_v16 = vmul.f32 %v6598_v57, %v6933_v12 }
 0x15b   : > { %8749 = vst [vmem:[#allocation47_spill] sm:$0xff] %v7079_v60  ;;  %5851 = vmatpush3.msra.mxu1 %v6395_v0  ;;  %6091 = vmatpush3.msra.mxu0 %v6395_v0  ;;  %v1957_v60 = vmul.f32 %v6989_v11, %v6661_v32  ;;  %v7101_v0 = vmul.f32 %v6847_v36, %v6598_v57 }
 0x15c   : > { %8750 = vst [vmem:[#allocation48_spill] sm:$0xff] %v7087_v14  ;;  %8751 = vst [vmem:[#allocation49_spill] sm:$0xff] %v7091_v53  ;;  %5852 = vmatprep.subr.mxu1 %v6398_v1  ;;  %6092 = vmatprep.subr.mxu0 %v6398_v1  ;;  %v7105_v14 = vmul.f32 %v6871_v17, %v6598_v57  ;;  %v7109_v53 = vmul.f32 %v6598_v57, %v6901_v21 }
 0x15d   : > { %5726 = vmatmul.mubr.f32.gmra.mxu1 %v885_v18  ;;  %5966 = vmatmul.mubr.f32.gmra.mxu0 %v1956_v15  ;;  %v7121_v15 = vmul.f32 %v6919_v9, %v6598_v57  ;;  %v7125_v18 = vmul.f32 %v6598_v57, %v6967_v49 }
 0x15e   : > { %8752 = vst [vmem:[#allocation50_spill] sm:$0xff] %v7109_v53  ;;  %5728 = vmatprep.mubr.f32.mxu1 %v886_v13  ;;  %5968 = vmatprep.mubr.f32.mxu0 %v1957_v60  ;;  %v1958_v53 = vmul.f32 %v6651_v28, %v6989_v11  ;;  %v7133_v13 = vmul.f32 %v6953_v6, %v6598_v57 }
 0x15f   : > { %8753 = vst [vmem:[#allocation51_spill] sm:$0xff] %v7121_v15  ;;  %8754 = vst [vmem:[#allocation52_spill] sm:$0xff] %v7125_v18  ;;  %5853 = vmatpush3.msra.mxu1 %v6398_v1  ;;  %6093 = vmatpush3.msra.mxu0 %v6398_v1  ;;  %v7137_v60 = vmul.f32 %v6991_v27, %v6598_v57  ;;  %v888_v15 = vmul.f32 %v6980_v30, %v6685_v40 }
 0x160   : > { %v1959_v18 = vmul.f32 %v6989_v11, %v6685_v40  ;;  %5854 = vmatprep.subr.mxu1 %v6411_v2  ;;  %6094 = vmatprep.subr.mxu0 %v6411_v2  ;;  %v889_v1 = vmul.f32 %v6679_v38, %v6980_v30  ;;  %v1960_v27 = vmul.f32 %v6679_v38, %v6989_v11 }
 0x161   : > { %8755 = vst [vmem:[#allocation53_spill] sm:$0xff] %v7137_v60  ;;  %5729 = vmatmul.mubr.f32.gmra.mxu1 %v887_v54  ;;  %5969 = vmatmul.mubr.f32.gmra.mxu0 %v1958_v53  ;;  %v7151_v60 = vld [vmem:[%s6392_s20 + $0x68] sm:$0xff]  ;;  %v890_v54 = vmul.f32 %v6980_v30, %v6709_v50  ;;  %v1961_v53 = vmul.f32 %v6989_v11, %v6709_v50 }
 0x162   : > { %5731 = vmatprep.mubr.f32.mxu1 %v888_v15  ;;  %5971 = vmatprep.mubr.f32.mxu0 %v1959_v18  ;;  %v1962_v15 = vmul.f32 %v6703_v46, %v6989_v11  ;;  %v7165_v18 = vld [vmem:[%s6392_s20 + $0x60] sm:$0xff] }
 0x163   : > { %5855 = vmatpush3.msra.mxu1 %v6411_v2  ;;  %6095 = vmatpush3.msra.mxu0 %v7151_v60  ;;  %v891_v2 = vmul.f32 %v6703_v46, %v6980_v30  ;;  %v894_v46 = vmul.f32 %v6980_v30, %v6757_v37 }
 0x164   : > { %5856 = vmatprep.subr.mxu1 %v6420_v4  ;;  %6096 = vmatprep.subr.mxu0 %v6420_v4  ;;  %v892_v4 = vmul.f32 %v6980_v30, %v6733_v22 }
 0x165   : > { %5732 = vmatmul.mubr.f32.gmra.mxu1 %v889_v1  ;;  %5972 = vmatmul.mubr.f32.gmra.mxu0 %v1960_v27  ;;  %v1963_v27 = vmul.f32 %v6989_v11, %v6733_v22  ;;  %v7174_v1 = vld [vmem:[%s6392_s20 + $0x58] sm:$0xff] }
 0x166   : > { %5734 = vmatprep.mubr.f32.mxu1 %v890_v54  ;;  %5974 = vmatprep.mubr.f32.mxu0 %v1961_v53  ;;  %v893_v54 = vmul.f32 %v6727_v19, %v6980_v30  ;;  %v1964_v53 = vmul.f32 %v6727_v19, %v6989_v11  ;;  %v896_v19 = vmul.f32 %v6980_v30, %v6781_v55 }
 0x167   : > { %5857 = vmatpush3.msra.mxu1 %v7165_v18  ;;  %6097 = vmatpush3.msra.mxu0 %v7165_v18 }
 0x168   : > { %5858 = vmatprep.subr.mxu1 %v7174_v1  ;;  %6098 = vmatprep.subr.mxu0 %v7174_v1 }
 0x169   : > { %5735 = vmatmul.mubr.f32.gmra.mxu1 %v891_v2  ;;  %5975 = vmatmul.mubr.f32.gmra.mxu0 %v1962_v15  ;;  %v1965_v2 = vmul.f32 %v6989_v11, %v6757_v37  ;;  %v7189_v15 = vld [vmem:[%s6392_s20 + $0x50] sm:$0xff] }
 0x16a   : > { %5737 = vmatprep.mubr.f32.mxu1 %v892_v4  ;;  %5977 = vmatprep.mubr.f32.mxu0 %v1963_v27  ;;  %v895_v4 = vmul.f32 %v6751_v33, %v6980_v30  ;;  %v1966_v27 = vmul.f32 %v6751_v33, %v6989_v11  ;;  %v898_v33 = vmul.f32 %v6980_v30, %v6805_v39 }
 0x16b   : > { %5859 = vmatpush3.msra.mxu1 %v7174_v1  ;;  %6099 = vmatpush3.msra.mxu0 %v7174_v1 }
 0x16c   : > { %5860 = vmatprep.subr.mxu1 %v7189_v15  ;;  %6100 = vmatprep.subr.mxu0 %v7189_v15 }
 0x16d   : > { %5738 = vmatmul.mubr.f32.gmra.mxu1 %v893_v54  ;;  %5978 = vmatmul.mubr.f32.gmra.mxu0 %v1964_v53  ;;  %v1967_v54 = vmul.f32 %v6989_v11, %v6781_v55  ;;  %v7204_v53 = vld [vmem:[%s6392_s20 + $0x48] sm:$0xff] }
 0x16e   : > { %5740 = vmatprep.mubr.f32.mxu1 %v894_v46  ;;  %5980 = vmatprep.mubr.f32.mxu0 %v1965_v2  ;;  %v897_v46 = vmul.f32 %v6775_v47, %v6980_v30  ;;  %v1968_v2 = vmul.f32 %v6775_v47, %v6989_v11  ;;  %v900_v47 = vmul.f32 %v6980_v30, %v6829_v48 }
 0x16f   : > { %5861 = vmatpush3.msra.mxu1 %v7189_v15  ;;  %6101 = vmatpush3.msra.mxu0 %v7189_v15 }
 0x170   : > { %5862 = vmatprep.subr.mxu1 %v7204_v53  ;;  %6102 = vmatprep.subr.mxu0 %v7204_v53 }
 0x171   : > { %5741 = vmatmul.mubr.f32.gmra.mxu1 %v895_v4  ;;  %5981 = vmatmul.mubr.f32.gmra.mxu0 %v1966_v27  ;;  %v1969_v4 = vmul.f32 %v6989_v11, %v6805_v39  ;;  %v7219_v27 = vld [vmem:[%s6392_s20 + $0x40] sm:$0xff] }
 0x172   : > { %5743 = vmatprep.mubr.f32.mxu1 %v896_v19  ;;  %5983 = vmatprep.mubr.f32.mxu0 %v1967_v54  ;;  %v899_v19 = vmul.f32 %v6799_v31, %v6980_v30  ;;  %v1970_v54 = vmul.f32 %v6799_v31, %v6989_v11  ;;  %v902_v31 = vmul.f32 %v6980_v30, %v6853_v45 }
 0x173   : > { %5863 = vmatpush3.msra.mxu1 %v7204_v53  ;;  %6103 = vmatpush3.msra.mxu0 %v7204_v53 }
 0x174   : > { %5864 = vmatprep.subr.mxu1 %v7219_v27  ;;  %6104 = vmatprep.subr.mxu0 %v7219_v27 }
 0x175   : > { %5744 = vmatmul.mubr.f32.gmra.mxu1 %v897_v46  ;;  %5984 = vmatmul.mubr.f32.gmra.mxu0 %v1968_v2  ;;  %v1971_v46 = vmul.f32 %v6989_v11, %v6829_v48  ;;  %v7234_v2 = vld [vmem:[%s6392_s20 + $0x38] sm:$0xff] }
 0x176   : > { %5746 = vmatprep.mubr.f32.mxu1 %v898_v33  ;;  %5986 = vmatprep.mubr.f32.mxu0 %v1969_v4  ;;  %v901_v33 = vmul.f32 %v6823_v51, %v6980_v30  ;;  %v1972_v4 = vmul.f32 %v6823_v51, %v6989_v11  ;;  %v904_v51 = vmul.f32 %v6980_v30, %v6877_v7 }
 0x177   : > { %5865 = vmatpush3.msra.mxu1 %v7219_v27  ;;  %6105 = vmatpush3.msra.mxu0 %v7219_v27 }
 0x178   : > { %5866 = vmatprep.subr.mxu1 %v7234_v2  ;;  %6106 = vmatprep.subr.mxu0 %v7234_v2 }
 0x179   : > { %5747 = vmatmul.mubr.f32.gmra.mxu1 %v899_v19  ;;  %5987 = vmatmul.mubr.f32.gmra.mxu0 %v1970_v54  ;;  %v1973_v19 = vmul.f32 %v6989_v11, %v6853_v45  ;;  %v7249_v54 = vld [vmem:[%s6392_s20 + $0x30] sm:$0xff] }
 0x17a   : > { %5749 = vmatprep.mubr.f32.mxu1 %v900_v47  ;;  %5989 = vmatprep.mubr.f32.mxu0 %v1971_v46  ;;  %v903_v47 = vmul.f32 %v6847_v36, %v6980_v30  ;;  %v1974_v46 = vmul.f32 %v6847_v36, %v6989_v11  ;;  %v906_v36 = vmul.f32 %v6980_v30, %v6901_v21 }
 0x17b   : > { %5867 = vmatpush3.msra.mxu1 %v7234_v2  ;;  %6107 = vmatpush3.msra.mxu0 %v7234_v2 }
 0x17c   : > { %5868 = vmatprep.subr.mxu1 %v7249_v54  ;;  %6108 = vmatprep.subr.mxu0 %v7249_v54 }
 0x17d   : > { %5750 = vmatmul.mubr.f32.gmra.mxu1 %v901_v33  ;;  %5990 = vmatmul.mubr.f32.gmra.mxu0 %v1972_v4  ;;  %v1975_v33 = vmul.f32 %v6989_v11, %v6877_v7  ;;  %v7264_v4 = vld [vmem:[%s6392_s20 + $0x28] sm:$0xff] }
 0x17e   : > { %5752 = vmatprep.mubr.f32.mxu1 %v902_v31  ;;  %5992 = vmatprep.mubr.f32.mxu0 %v1973_v19  ;;  %v905_v31 = vmul.f32 %v6871_v17, %v6980_v30  ;;  %v1976_v19 = vmul.f32 %v6871_v17, %v6989_v11 }
 0x17f   : > { %5869 = vmatpush3.msra.mxu1 %v7249_v54  ;;  %6109 = vmatpush3.msra.mxu0 %v7249_v54 }
 0x180   : > { %5870 = vmatprep.subr.mxu1 %v7264_v4  ;;  %6110 = vmatprep.subr.mxu0 %v7264_v4 }
 0x181   : > { %5753 = vmatmul.mubr.f32.gmra.mxu1 %v903_v47  ;;  %5993 = vmatmul.mubr.f32.gmra.mxu0 %v1974_v46  ;;  %v1977_v47 = vmul.f32 %v6989_v11, %v6901_v21  ;;  %v7279_v46 = vld [vmem:[%s6392_s20 + $0x20] sm:$0xff]  ;;  %v908_v21 = vmul.f32 %v6980_v30, %v6933_v12 }
 0x182   : > { %5755 = vmatprep.mubr.f32.mxu1 %v904_v51  ;;  %5995 = vmatprep.mubr.f32.mxu0 %v1975_v33  ;;  %v907_v51 = vmul.f32 %v6895_v8, %v6980_v30  ;;  %v1978_v33 = vmul.f32 %v6895_v8, %v6989_v11 }
 0x183   : > { %5871 = vmatpush3.msra.mxu1 %v7264_v4  ;;  %6111 = vmatpush3.msra.mxu0 %v7264_v4 }
 0x184   : > { %5872 = vmatprep.subr.mxu1 %v7279_v46  ;;  %6112 = vmatprep.subr.mxu0 %v7279_v46 }
 0x185   : > { %5756 = vmatmul.mubr.f32.gmra.mxu1 %v905_v31  ;;  %5996 = vmatmul.mubr.f32.gmra.mxu0 %v1976_v19  ;;  %v1979_v31 = vmul.f32 %v6989_v11, %v6933_v12  ;;  %v7294_v19 = vld [vmem:[%s6392_s20 + $0x18] sm:$0xff]  ;;  %v910_v12 = vmul.f32 %v6980_v30, %v6967_v49 }
 0x186   : > { %5758 = vmatprep.mubr.f32.mxu1 %v906_v36  ;;  %5998 = vmatprep.mubr.f32.mxu0 %v1977_v47  ;;  %v909_v36 = vmul.f32 %v6919_v9, %v6980_v30  ;;  %v1980_v47 = vmul.f32 %v6919_v9, %v6989_v11 }
 0x187   : > { %5873 = vmatpush3.msra.mxu1 %v7279_v46  ;;  %6113 = vmatpush3.msra.mxu0 %v7279_v46 }
 0x188   : > { %5874 = vmatprep.subr.mxu1 %v7294_v19  ;;  %6114 = vmatprep.subr.mxu0 %v7294_v19 }
 0x189   : > { %5759 = vmatmul.mubr.f32.gmra.mxu1 %v907_v51  ;;  %5999 = vmatmul.mubr.f32.gmra.mxu0 %v1978_v33  ;;  %v1981_v51 = vmul.f32 %v6989_v11, %v6967_v49  ;;  %v7309_v33 = vld [vmem:[%s6392_s20 + $0x10] sm:$0xff]  ;;  %v912_v49 = vmul.f32 %v6980_v30, %v7011_v5 }
 0x18a   : > { %5761 = vmatprep.mubr.f32.mxu1 %v908_v21  ;;  %6001 = vmatprep.mubr.f32.mxu0 %v1979_v31  ;;  %v911_v21 = vmul.f32 %v6953_v6, %v6980_v30  ;;  %v1982_v31 = vmul.f32 %v6953_v6, %v6989_v11  ;;  %v2667_v30 = vmul.f32 %v6601_v58, %v6611_v62 }
 0x18b   : > { %5875 = vmatpush3.msra.mxu1 %v7294_v19  ;;  %6115 = vmatpush3.msra.mxu0 %v7294_v19 }
 0x18c   : > { %5876 = vmatprep.subr.mxu1 %v7309_v33  ;;  %6116 = vmatprep.subr.mxu0 %v7309_v33 }
 0x18d   : > { %5762 = vmatmul.mubr.f32.gmra.mxu1 %v909_v36  ;;  %6002 = vmatmul.mubr.f32.gmra.mxu0 %v1980_v47  ;;  %v1983_v36 = vmul.f32 %v6989_v11, %v7011_v5  ;;  %v7324_v47 = vld [vmem:[%s6392_s20 + $0x8] sm:$0xff]  ;;  %v7335_v11 = vld [vmem:[%s6392_s20] sm:$0xff] }
 0x18e   : > { %5764 = vmatprep.mubr.f32.mxu1 %v910_v12  ;;  %6004 = vmatprep.mubr.f32.mxu0 %v1981_v51  ;;  %v1596_v12 = vmul.f32 %v6595_v56, %v6611_v62  ;;  %v2669_v51 = vmul.f32 %v6601_v58, %v6635_v23 }
 0x18f   : > { %5877 = vmatpush3.msra.mxu1 %v7309_v33  ;;  %6117 = vmatpush3.msra.mxu0 %v7309_v33 }
 0x190   : > { %5878 = vmatprep.subr.mxu1 %v7324_v47  ;;  %6118 = vmatprep.subr.mxu0 %v7324_v47 }
 0x191   : > { %5765 = vmatmul.mubr.f32.gmra.mxu1 %v911_v21  ;;  %6005 = vmatmul.mubr.f32.gmra.mxu0 %v1982_v31  ;;  %v7348_v21 = vld [vmem:[%s6392_s20 + $0x78] sm:$0xff]  ;;  %v7361_v31 = vld [vmem:[%s6392_s20 + $0x70] sm:$0xff] }
 0x192   : > { %5767 = vmatprep.mubr.f32.mxu1 %v912_v49  ;;  %6007 = vmatprep.mubr.f32.mxu0 %v1983_v36  ;;  %v1598_v49 = vmul.f32 %v6595_v56, %v6635_v23  ;;  %v2679_v36 = vmul.f32 %v6601_v58, %v6757_v37 }
 0x193   : > { %5879 = vmatpush3.msra.mxu1 %v7324_v47  ;;  %6119 = vmatpush3.msra.mxu0 %v7324_v47 }
 0x194   : > { %5880 = vmatprep.subr.mxu1 %v7335_v11  ;;  %6120 = vmatprep.subr.mxu0 %v7335_v11 }
 0x195   : > { %5768 = vmatmul.mubr.f32.gmra.mxu1 %v7009_v10  ;;  %6008 = vmatmul.mubr.f32.gmra.mxu0 %v7015_v26  ;;  %v1600_v26 = vmul.f32 %v6595_v56, %v6661_v32  ;;  %v2671_v10 = vmul.f32 %v6601_v58, %v6661_v32 }
 0x196   : > { %5882 = vmatprep.mubr.f32.mxu1 %v1596_v12  ;;  %6122 = vmatprep.mubr.f32.mxu0 %v2667_v30  ;;  %v8757_v12 = vld [vmem:[#allocation7_spill] sm:$0xff]  ;;  %v1610_v30 = vmul.f32 %v6595_v56, %v6781_v55 }
 0x197   : > { %5881 = vmatpush3.msra.mxu1 %v7335_v11  ;;  %6121 = vmatpush3.msra.mxu0 %v7335_v11 }
 0x198   : > { %6010 = vmatprep.subr.mxu1 %v7348_v21  ;;  %6170 = vmatprep.subr.mxu0 %v7348_v21 }
 0x199   : > { %5883 = vmatmul.mubr.f32.vlgmr.msra.gmra.mxu1 %v6615_v63  ;;  %6123 = vmatmul.mubr.f32.vlgmr.msra.gmra.mxu0 %v6619_v3  ;;  %v1602_v63 = vmul.f32 %v6595_v56, %v6685_v40  ;;  %v2673_v3 = vmul.f32 %v6601_v58, %v6685_v40 }
 0x19a   : > { %5885 = vmatprep.mubr.f32.mxu1 %v1598_v49  ;;  %6125 = vmatprep.mubr.f32.mxu0 %v2669_v51  ;;  %v2681_v49 = vmul.f32 %v6601_v58, %v6781_v55  ;;  %v8759_v51 = vld [vmem:[#allocation10_spill] sm:$0xff] }
 0x19b   : > { %6011 = vmatpush3.msra.mxu1 %v7348_v21  ;;  %6171 = vmatpush3.msra.mxu0 %v7348_v21 }
 0x19c   : > { %6012 = vmatprep.subr.mxu1 %v7361_v31  ;;  %6172 = vmatprep.subr.mxu0 %v7361_v31 }
 0x19d   : > { %5886 = vmatmul.mubr.f32.gmra.mxu1 %v6639_v24  ;;  %6126 = vmatmul.mubr.f32.gmra.mxu0 %v6643_v25  ;;  %v1604_v24 = vmul.f32 %v6595_v56, %v6709_v50  ;;  %v2675_v25 = vmul.f32 %v6601_v58, %v6709_v50 }
 0x19e   : > { %5888 = vmatprep.mubr.f32.mxu1 %v1600_v26  ;;  %6128 = vmatprep.mubr.f32.mxu0 %v2671_v10  ;;  %v8760_v26 = vld [vmem:[#allocation11_spill] sm:$0xff]  ;;  %v1612_v10 = vmul.f32 %v6595_v56, %v6805_v39 }
 0x19f   : > { %6013 = vmatpush3.msra.mxu1 %v7361_v31  ;;  %6173 = vmatpush3.msra.mxu0 %v7361_v31 }
 0x1a0   : > { %6014 = vmatprep.subr.mxu1 %v7151_v60  ;;  %6174 = vmatprep.subr.mxu0 %v7151_v60 }
 0x1a1   : > { %5889 = vmatmul.mubr.f32.gmra.mxu1 %v6667_v34  ;;  %6129 = vmatmul.mubr.f32.gmra.mxu0 %v6671_v35  ;;  %v1606_v34 = vmul.f32 %v6595_v56, %v6733_v22  ;;  %v2677_v35 = vmul.f32 %v6601_v58, %v6733_v22 }
 0x1a2   : > { %5891 = vmatprep.mubr.f32.mxu1 %v1602_v63  ;;  %6131 = vmatprep.mubr.f32.mxu0 %v2673_v3  ;;  %v2683_v63 = vmul.f32 %v6601_v58, %v6805_v39  ;;  %v8761_v3 = vld [vmem:[#allocation13_spill] sm:$0xff] }
 0x1a3   : > { %6015 = vmatpush3.msra.mxu1 %v7151_v60  ;;  %6175 = vmatpush3.msra.mxu0 %v7151_v60 }
 0x1a4   : > { %6016 = vmatprep.subr.mxu1 %v7165_v18  ;;  %6176 = vmatprep.subr.mxu0 %v7165_v18 }
 0x1a5   : > { %5892 = vmatmul.mubr.f32.gmra.mxu1 %v6691_v42  ;;  %6132 = vmatmul.mubr.f32.gmra.mxu0 %v6695_v43  ;;  %v8756_v42 = vld [vmem:[#allocation5_spill] sm:$0xff]  ;;  %v1608_v43 = vmul.f32 %v6595_v56, %v6757_v37 }
 0x1a6   : > { %5894 = vmatprep.mubr.f32.mxu1 %v1604_v24  ;;  %6134 = vmatprep.mubr.f32.mxu0 %v2675_v25  ;;  %v8762_v24 = vld [vmem:[#allocation14_spill] sm:$0xff]  ;;  %v1614_v25 = vmul.f32 %v6595_v56, %v6829_v48 }
 0x1a7   : > { %6017 = vmatpush3.msra.mxu1 %v7165_v18  ;;  %6177 = vmatpush3.msra.mxu0 %v7165_v18 }
 0x1a8   : > { %6018 = vmatprep.subr.mxu1 %v7174_v1  ;;  %6178 = vmatprep.subr.mxu0 %v7174_v1 }
 0x1a9   : > { %5895 = vmatmul.mubr.f32.gmra.mxu1 %v6715_v52  ;;  %6135 = vmatmul.mubr.f32.gmra.mxu0 %v8756_v42  ;;  %v8758_v52 = vld [vmem:[#allocation8_spill] sm:$0xff]  ;;  %v8764_v42 = vld [vmem:[#allocation17_spill] sm:$0xff] }
 0x1aa   : > { %5897 = vmatprep.mubr.f32.mxu1 %v1606_v34  ;;  %6137 = vmatprep.mubr.f32.mxu0 %v2677_v35  ;;  %v2685_v34 = vmul.f32 %v6601_v58, %v6829_v48  ;;  %v8763_v35 = vld [vmem:[#allocation16_spill] sm:$0xff] }
 0x1ab   : > { %6019 = vmatpush3.msra.mxu1 %v7174_v1  ;;  %6179 = vmatpush3.msra.mxu0 %v7174_v1 }
 0x1ac   : > { %6020 = vmatprep.subr.mxu1 %v7189_v15  ;;  %6180 = vmatprep.subr.mxu0 %v7189_v15 }
 0x1ad   : > { %5898 = vmatmul.mubr.f32.gmra.mxu1 %v8757_v12  ;;  %6138 = vmatmul.mubr.f32.gmra.mxu0 %v8758_v52  ;;  %v8765_v12 = vld [vmem:[#allocation19_spill] sm:$0xff]  ;;  %v8766_v52 = vld [vmem:[#allocation20_spill] sm:$0xff] }
 0x1ae   : > { %5900 = vmatprep.mubr.f32.mxu1 %v1608_v43  ;;  %6140 = vmatprep.mubr.f32.mxu0 %v2679_v36  ;;  %v1616_v43 = vmul.f32 %v6595_v56, %v6853_v45  ;;  %v2687_v36 = vmul.f32 %v6601_v58, %v6853_v45 }
 0x1af   : > { %6021 = vmatpush3.msra.mxu1 %v7189_v15  ;;  %6181 = vmatpush3.msra.mxu0 %v7189_v15 }
 0x1b0   : > { %6022 = vmatprep.subr.mxu1 %v7204_v53  ;;  %6182 = vmatprep.subr.mxu0 %v7204_v53 }
 0x1b1   : > { %5901 = vmatmul.mubr.f32.gmra.mxu1 %v8759_v51  ;;  %6141 = vmatmul.mubr.f32.gmra.mxu0 %v8760_v26  ;;  %v8767_v51 = vld [vmem:[#allocation22_spill] sm:$0xff]  ;;  %v8768_v26 = vld [vmem:[#allocation23_spill] sm:$0xff] }
 0x1b2   : > { %5903 = vmatprep.mubr.f32.mxu1 %v1610_v30  ;;  %6143 = vmatprep.mubr.f32.mxu0 %v2681_v49  ;;  %v1618_v30 = vmul.f32 %v6595_v56, %v6877_v7  ;;  %v2689_v49 = vmul.f32 %v6601_v58, %v6877_v7 }
 0x1b3   : > { %6023 = vmatpush3.msra.mxu1 %v7204_v53  ;;  %6183 = vmatpush3.msra.mxu0 %v7204_v53 }
 0x1b4   : > { %6024 = vmatprep.subr.mxu1 %v7219_v27  ;;  %6184 = vmatprep.subr.mxu0 %v7219_v27 }
 0x1b5   : > { %5904 = vmatmul.mubr.f32.gmra.mxu1 %v8761_v3  ;;  %6144 = vmatmul.mubr.f32.gmra.mxu0 %v8762_v24  ;;  %v8771_v3 = vld [vmem:[#allocation29_spill] sm:$0xff]  ;;  %v8772_v24 = vld [vmem:[#allocation30_spill] sm:$0xff] }
 0x1b6   : > { %5906 = vmatprep.mubr.f32.mxu1 %v1612_v10  ;;  %6146 = vmatprep.mubr.f32.mxu0 %v2683_v63  ;;  %v8769_v10 = vld [vmem:[#allocation24_spill] sm:$0xff]  ;;  %v8770_v63 = vld [vmem:[#allocation25_spill] sm:$0xff] }
 0x1b7   : > { %6025 = vmatpush3.msra.mxu1 %v7219_v27  ;;  %6185 = vmatpush3.msra.mxu0 %v7219_v27 }
 0x1b8   : > { %6026 = vmatprep.subr.mxu1 %v7234_v2  ;;  %6186 = vmatprep.subr.mxu0 %v7234_v2 }
 0x1b9   : > { %5907 = vmatmul.mubr.f32.gmra.mxu1 %v8763_v35  ;;  %6147 = vmatmul.mubr.f32.gmra.mxu0 %v8764_v42  ;;  %v8775_v35 = vld [vmem:[#allocation34_spill] sm:$0xff]  ;;  %v8776_v42 = vld [vmem:[#allocation35_spill] sm:$0xff] }
 0x1ba   : > { %5909 = vmatprep.mubr.f32.mxu1 %v1614_v25  ;;  %6149 = vmatprep.mubr.f32.mxu0 %v2685_v34  ;;  %v8773_v25 = vld [vmem:[#allocation27_spill] sm:$0xff]  ;;  %v8774_v34 = vld [vmem:[#allocation28_spill] sm:$0xff] }
 0x1bb   : > { %6027 = vmatpush3.msra.mxu1 %v7234_v2  ;;  %6187 = vmatpush3.msra.mxu0 %v7234_v2 }
 0x1bc   : > { %6028 = vmatprep.subr.mxu1 %v7249_v54  ;;  %6188 = vmatprep.subr.mxu0 %v7249_v54 }
 0x1bd   : > { %5910 = vmatmul.mubr.f32.gmra.mxu1 %v8765_v12  ;;  %6150 = vmatmul.mubr.f32.gmra.mxu0 %v8766_v52  ;;  %v8779_v12 = vld [vmem:[#allocation2_spill] sm:$0xff] }
 0x1be   : > { %5912 = vmatprep.mubr.f32.mxu1 %v1616_v43  ;;  %6152 = vmatprep.mubr.f32.mxu0 %v2687_v36  ;;  %v8777_v43 = vld [vmem:[#allocation32_spill] sm:$0xff]  ;;  %v8778_v36 = vld [vmem:[#allocation33_spill] sm:$0xff]  ;;  %v3022_v52 = vsub.s32 7, %v8779_v12 }
 0x1bf   : > { %6029 = vmatpush3.msra.mxu1 %v7249_v54  ;;  %6189 = vmatpush3.msra.mxu0 %v7249_v54 }
 0x1c0   : > { %6030 = vmatprep.subr.mxu1 %v7264_v4  ;;  %6190 = vmatprep.subr.mxu0 %v7264_v4 }
 0x1c1   : > { %5913 = vmatmul.mubr.f32.gmra.mxu1 %v8767_v51  ;;  %6153 = vmatmul.mubr.f32.gmra.mxu0 %v8768_v26  ;;  %v1626_v51 = vmul.f32 %v6595_v56, %v7011_v5  ;;  %v2697_v26 = vmul.f32 %v6601_v58, %v7011_v5  ;;  %v2310_v56 = vmul.f32 %v6598_v57, %v6611_v62 }
 0x1c2   : > { %5915 = vmatprep.mubr.f32.mxu1 %v1618_v30  ;;  %6155 = vmatprep.mubr.f32.mxu0 %v2689_v49  ;;  %v8780_v30 = vld [vmem:[#allocation40_spill] sm:$0xff]  ;;  %v8781_v49 = vld [vmem:[#allocation41_spill] sm:$0xff] }
 0x1c3   : > { %6031 = vmatpush3.msra.mxu1 %v7264_v4  ;;  %6191 = vmatpush3.msra.mxu0 %v7264_v4 }
 0x1c4   : > { %6032 = vmatprep.subr.mxu1 %v7279_v46  ;;  %6192 = vmatprep.subr.mxu0 %v7279_v46 }
 0x1c5   : > { %5916 = vmatmul.mubr.f32.gmra.mxu1 %v8769_v10  ;;  %6156 = vmatmul.mubr.f32.gmra.mxu0 %v8770_v63  ;;  %v8782_v10 = vld [vmem:[#allocation37_spill] sm:$0xff]  ;;  %v8783_v63 = vld [vmem:[#allocation38_spill] sm:$0xff] }
 0x1c6   : > { %5918 = vmatprep.mubr.f32.mxu1 %v8771_v3  ;;  %6158 = vmatprep.mubr.f32.mxu0 %v8772_v24  ;;  %v6322_v3 = vld [vmem:[%s6584_s27] sm:$0xff] }
 0x1c7   : > { %6033 = vmatpush3.msra.mxu1 %v7279_v46  ;;  %6193 = vmatpush3.msra.mxu0 %v7279_v46  ;;  %v7493_v24 = vrot.slane %v6322_v3, %v3022_v52  ;;  %v8785_v3 = vld [vmem:[#allocation42_spill] sm:$0xff] }
 0x1c8   : > { %6034 = vmatprep.subr.mxu1 %v7294_v19  ;;  %6194 = vmatprep.subr.mxu0 %v7294_v19 }
 0x1c9   : > { %5919 = vmatmul.mubr.f32.gmra.mxu1 %v8773_v25  ;;  %6159 = vmatmul.mubr.f32.gmra.mxu0 %v8774_v34  ;;  %v3024_v58 = vmul.f32 %v7493_v24, %v6611_v62  ;;  %v3025_v25 = vmul.f32 %v6609_v61, %v7493_v24  ;;  %v2312_v62 = vmul.f32 %v6598_v57, %v6635_v23 }
 0x1ca   : > { %5921 = vmatprep.mubr.f32.mxu1 %v8775_v35  ;;  %6161 = vmatprep.mubr.f32.mxu0 %v8776_v42  ;;  %v3026_v34 = vmul.f32 %v7493_v24, %v6635_v23  ;;  %v3027_v61 = vmul.f32 %v6629_v20, %v7493_v24  ;;  %v2314_v23 = vmul.f32 %v6598_v57, %v6661_v32 }
 0x1cb   : > { %6035 = vmatpush3.msra.mxu1 %v7294_v19  ;;  %6195 = vmatpush3.msra.mxu0 %v7294_v19 }
 0x1cc   : > { %6036 = vmatprep.subr.mxu1 %v7309_v33  ;;  %6196 = vmatprep.subr.mxu0 %v7309_v33 }
 0x1cd   : > { %5922 = vmatmul.mubr.f32.gmra.mxu1 %v8777_v43  ;;  %6162 = vmatmul.mubr.f32.gmra.mxu0 %v8778_v36 }
 0x1ce   : > { %5924 = vmatprep.mubr.f32.mxu1 %v8780_v30  ;;  %6164 = vmatprep.mubr.f32.mxu0 %v8781_v49  ;;  %v3028_v30 = vmul.f32 %v7493_v24, %v6661_v32  ;;  %v2316_v32 = vmul.f32 %v6598_v57, %v6685_v40 }
 0x1cf   : > { %6037 = vmatpush3.msra.mxu1 %v7309_v33  ;;  %6197 = vmatpush3.msra.mxu0 %v7309_v33 }
 0x1d0   : > { %6038 = vmatprep.subr.mxu1 %v7324_v47  ;;  %6198 = vmatprep.subr.mxu0 %v7324_v47 }
 0x1d1   : > { %5925 = vmatmul.mubr.f32.gmra.mxu1 %v8782_v10  ;;  %6165 = vmatmul.mubr.f32.gmra.mxu0 %v8783_v63 }
 0x1d2   : > { %5927 = vmatprep.mubr.f32.mxu1 %v1626_v51  ;;  %6167 = vmatprep.mubr.f32.mxu0 %v2697_v26 }
 0x1d3   : > { %6039 = vmatpush3.msra.mxu1 %v7324_v47  ;;  %6199 = vmatpush3.msra.mxu0 %v7324_v47 }
 0x1d4   : > { %6040 = vmatprep.subr.mxu1 %v7335_v11  ;;  %6200 = vmatprep.subr.mxu0 %v7335_v11 }
 0x1d5   : > { %5928 = vmatmul.mubr.f32.gmra.mxu1 %v7019_v44  ;;  %6168 = vmatmul.mubr.f32.gmra.mxu0 %v7023_v41  ;;  %v8784_v41 = vld [vmem:[#allocation3_spill] sm:$0xff] }
 0x1d6   : > { %6042 = vmatprep.mubr.f32.mxu1 %v2310_v56  ;;  %6202 = vmatprep.mubr.f32.mxu0 %v3024_v58 }
 0x1d7   : > { %6041 = vmatpush3.msra.mxu1 %v7335_v11  ;;  %6201 = vmatpush3.msra.mxu0 %v7335_v11 }
 0x1d8   : > { %6250 = vmatprep.subr.mxu1 %v7348_v21  ;;  %v5644_v44 = vpop.f32.mrf.mxu1  ;;  %v5804_v35 = vpop.f32.mrf.mxu0 }
 0x1d9   : > { %6043 = vmatmul.mubr.f32.vlgmr.msra.gmra.mxu1 %v8784_v41  ;;  %6203 = vmatmul.mubr.f32.vlgmr.msra.gmra.mxu0 %v3025_v25  ;;  %v783_v42 = vand.u32 2147483647, %v5644_v44  ;;  %v1497_v43 = vand.u32 2147483647, %v5804_v35  ;;  %v8786_v44 = vld [vmem:[#allocation43_spill] sm:$0xff] }
 0x1da   : > { %6045 = vmatprep.mubr.f32.mxu1 %v2312_v62  ;;  %6205 = vmatprep.mubr.f32.mxu0 %v3026_v34  ;;  %v623_v36 = vpop.f32.mrf.mxu1  ;;  %v1337_v52 = vpop.f32.mrf.mxu0  ;;  %v3031_v62 = vmul.f32 %v6679_v38, %v7493_v24  ;;  %v2320_v38 = vmul.f32 %v6598_v57, %v6733_v22 }
 0x1db   : > { %6266 = vmatpush3.msra.mxu1 %v7348_v21  ;;  %816 = vadd.xlane.f32.xlu0 %v783_v42  ;;  %v782_v26 = vand.u32 2147483647, %v623_v36  ;;  %v3029_v21 = vmul.f32 %v6651_v28, %v7493_v24  ;;  %v1496_v56 = vand.u32 2147483647, %v1337_v52  ;;  %v8787_v36 = vld [vmem:[#allocation44_spill] sm:$0xff] }
 0x1dc   : > { %1530 = vadd.xlane.f32.xlu1 %v1497_v43  ;;  %v5647_v49 = vpop.f32.mrf.mxu1  ;;  %v5807_v10 = vpop.f32.mrf.mxu0  ;;  %6251 = vmatprep.subr.mxu1 %v7361_v31 }
 0x1dd   : > { %6046 = vmatmul.mubr.f32.gmra.mxu1 %v7039_v59  ;;  %6206 = vmatmul.mubr.f32.gmra.mxu0 %v3027_v61  ;;  %v785_v51 = vand.u32 2147483647, %v5647_v49  ;;  %v3030_v59 = vmul.f32 %v7493_v24, %v6685_v40  ;;  %v1499_v58 = vand.u32 2147483647, %v5807_v10  ;;  %v2318_v40 = vmul.f32 %v6598_v57, %v6709_v50 }
 0x1de   : > { %6048 = vmatprep.mubr.f32.mxu1 %v2314_v23  ;;  %6208 = vmatprep.mubr.f32.mxu0 %v3028_v30  ;;  %v633_v20 = vpop.f32.mrf.mxu1  ;;  %v1347_v25 = vpop.f32.mrf.mxu0 }
 0x1df   : > { %814 = vadd.xlane.f32.xlu0 %v782_v26  ;;  %6267 = vmatpush3.msra.mxu1 %v7361_v31  ;;  %v1498_v35 = vand.u32 2147483647, %v1347_v25  ;;  %v784_v41 = vand.u32 2147483647, %v633_v20 }
 0x1e0   : > { %820 = vadd.xlane.f32.xlu1 %v785_v51  ;;  %v5650_v63 = vpop.f32.mrf.mxu1  ;;  %6252 = vmatprep.subr.mxu1 %v7151_v60  ;;  %v5810_v42 = vpop.f32.mrf.mxu0  ;;  %v8788_v51 = vld [vmem:[#allocation45_spill] sm:$0xff] }
 0x1e1   : > { %6049 = vmatmul.mubr.f32.gmra.mxu1 %v8785_v3  ;;  %6209 = vmatmul.mubr.f32.gmra.mxu0 %v3029_v21  ;;  %v787_v52 = vand.u32 2147483647, %v5650_v63  ;;  %v1501_v26 = vand.u32 2147483647, %v5810_v42  ;;  %v2324_v21 = vmul.f32 %v6598_v57, %v6781_v55 }
 0x1e2   : > { %6051 = vmatprep.mubr.f32.mxu1 %v2316_v32  ;;  %6211 = vmatprep.mubr.f32.mxu0 %v3030_v59  ;;  %v643_v28 = vpop.f32.mrf.mxu1  ;;  %v1357_v23 = vpop.f32.mrf.mxu0  ;;  %v8789_v59 = vld [vmem:[#allocation46_spill] sm:$0xff] }
 0x1e3   : > { %1528 = vadd.xlane.f32.xlu0 %v1496_v56  ;;  %6268 = vmatpush3.msra.mxu1 %v7151_v60  ;;  %v786_v61 = vand.u32 2147483647, %v643_v28  ;;  %v2322_v60 = vmul.f32 %v6598_v57, %v6757_v37  ;;  %v1500_v10 = vand.u32 2147483647, %v1357_v23  ;;  %v8790_v28 = vld [vmem:[#allocation47_spill] sm:$0xff] }
 0x1e4   : > { %1534 = vadd.xlane.f32.xlu1 %v1499_v58  ;;  %v5653_v34 = vpop.f32.mrf.mxu1  ;;  %6253 = vmatprep.subr.mxu1 %v7165_v18  ;;  %v5813_v20 = vpop.f32.mrf.mxu0  ;;  %v2326_v58 = vmul.f32 %v6598_v57, %v6805_v39 }
 0x1e5   : > { %6052 = vmatmul.mubr.f32.gmra.mxu1 %v8786_v44  ;;  %6212 = vmatmul.mubr.f32.gmra.mxu0 %v3031_v62  ;;  %v789_v63 = vand.u32 2147483647, %v5653_v34  ;;  %v1503_v62 = vand.u32 2147483647, %v5813_v20  ;;  %v2328_v44 = vmul.f32 %v6598_v57, %v6829_v48 }
 0x1e6   : > { %6054 = vmatprep.mubr.f32.mxu1 %v2318_v40  ;;  %v653_v43 = vpop.f32.mrf.mxu1  ;;  %6269 = vmatpush3.msra.mxu1 %v7165_v18 }
 0x1e7   : > { %1532 = vadd.xlane.f32.xlu0 %v1498_v35  ;;  %6254 = vmatprep.subr.mxu1 %v7174_v1  ;;  %v788_v3 = vand.u32 2147483647, %v653_v43 }
 0x1e8   : > { %818 = vadd.xlane.f32.xlu1 %v784_v41  ;;  %v5656_v31 = vpop.f32.mrf.mxu1  ;;  %6270 = vmatpush3.msra.mxu1 %v7174_v1  ;;  %v1367_v1 = vpop.f32.mrf.mxu0  ;;  %v8791_v41 = vld [vmem:[#allocation48_spill] sm:$0xff] }
 0x1e9   : > { %6055 = vmatmul.mubr.f32.gmra.mxu1 %v8787_v36  ;;  %6255 = vmatprep.subr.mxu1 %v7189_v15  ;;  %v1502_v40 = vand.u32 2147483647, %v1367_v1  ;;  %v791_v42 = vand.u32 2147483647, %v5656_v31  ;;  %v2330_v36 = vmul.f32 %v6598_v57, %v6853_v45 }
 0x1ea   : > { %6057 = vmatprep.mubr.f32.mxu1 %v2320_v38  ;;  %v663_v30 = vpop.f32.mrf.mxu1  ;;  %6271 = vmatpush3.msra.mxu1 %v7189_v15  ;;  %v5816_v15 = vpop.f32.mrf.mxu0 }
 0x1eb   : > { %822 = vadd.xlane.f32.xlu0 %v786_v61  ;;  %6256 = vmatprep.subr.mxu1 %v7204_v53  ;;  %v790_v43 = vand.u32 2147483647, %v663_v30  ;;  %v8792_v61 = vld [vmem:[#allocation49_spill] sm:$0xff]  ;;  %v1505_v23 = vand.u32 2147483647, %v5816_v15 }
 0x1ec   : > { %824 = vadd.xlane.f32.xlu1 %v787_v52  ;;  %v7547_v49 = vpop.f32.mrf.mxu1  ;;  %6272 = vmatpush3.msra.mxu1 %v7204_v53  ;;  %v1377_v53 = vpop.f32.mrf.mxu0 }
 0x1ed   : > { %6058 = vmatmul.mubr.f32.gmra.mxu1 %v8788_v51  ;;  %6257 = vmatprep.subr.mxu1 %v7219_v27  ;;  %v1504_v31 = vand.u32 2147483647, %v1377_v53  ;;  %v8797_v53 = vld [vmem:[#allocation4_spill] sm:$0xff] }
 0x1ee   : > { %6060 = vmatprep.mubr.f32.mxu1 %v2322_v60  ;;  %v7551_v18 = vpop.f32.mrf.mxu1  ;;  %6273 = vmatpush3.msra.mxu1 %v7219_v27  ;;  %v5819_v27 = vpop.f32.mrf.mxu0  ;;  %v2332_v60 = vmul.f32 %v6598_v57, %v6877_v7 }
 0x1ef   : > { %1536 = vadd.xlane.f32.xlu0 %v1500_v10  ;;  %6258 = vmatprep.subr.mxu1 %v7234_v2  ;;  %v792_v10 = vand.u32 2147483647, %v7551_v18 }
 0x1f0   : > { %1538 = vadd.xlane.f32.xlu1 %v1501_v26  ;;  %v7556_v32 = vpop.f32.mrf.mxu1  ;;  %6274 = vmatpush3.msra.mxu1 %v7234_v2  ;;  %v793_v26 = vand.u32 2147483647, %v7547_v49  ;;  %v1387_v2 = vpop.f32.mrf.mxu0 }
 0x1f1   : > { %6061 = vmatmul.mubr.f32.gmra.mxu1 %v8789_v59  ;;  %6259 = vmatprep.subr.mxu1 %v7249_v54  ;;  %v1507_v59 = vand.u32 2147483647, %v5819_v27 }
 0x1f2   : > { %6063 = vmatprep.mubr.f32.mxu1 %v2324_v21  ;;  %v7560_v56 = vpop.f32.mrf.mxu1  ;;  %6275 = vmatpush3.msra.mxu1 %v7249_v54  ;;  %v5822_v49 = vpop.f32.mrf.mxu0 }
 0x1f3   : > { %826 = vadd.xlane.f32.xlu0 %v788_v3  ;;  %6260 = vmatprep.subr.mxu1 %v7264_v4  ;;  %v795_v3 = vand.u32 2147483647, %v7556_v32  ;;  %v8795_v32 = vld [vmem:[#allocation52_spill] sm:$0xff] }
 0x1f4   : > { %828 = vadd.xlane.f32.xlu1 %v789_v63  ;;  %v7565_v25 = vpop.f32.mrf.mxu1  ;;  %v8793_v63 = vld [vmem:[#allocation50_spill] sm:$0xff]  ;;  %6276 = vmatpush3.msra.mxu1 %v7264_v4  ;;  %v1397_v4 = vpop.f32.mrf.mxu0 }
 0x1f5   : > { %6064 = vmatmul.mubr.f32.gmra.mxu1 %v8790_v28  ;;  %6261 = vmatprep.subr.mxu1 %v7279_v46  ;;  %v8794_v28 = vld [vmem:[#allocation51_spill] sm:$0xff]  ;;  %v797_v15 = vand.u32 2147483647, %v7565_v25 }
 0x1f6   : > { %6066 = vmatprep.mubr.f32.mxu1 %v2326_v58  ;;  %v7569_v34 = vpop.f32.mrf.mxu1  ;;  %6277 = vmatpush3.msra.mxu1 %v7279_v46  ;;  %v2340_v46 = vmul.f32 %v6598_v57, %v7011_v5  ;;  %v3032_v57 = vmul.f32 %v7493_v24, %v6709_v50 }
 0x1f7   : > { %1540 = vadd.xlane.f32.xlu0 %v1502_v40  ;;  %6262 = vmatprep.subr.mxu1 %v7294_v19 }
 0x1f8   : > { %1542 = vadd.xlane.f32.xlu1 %v1503_v62  ;;  %v7574_v35 = vpop.f32.mrf.mxu1  ;;  %v1508_v62 = vand.u32 2147483647, %v1397_v4  ;;  %6278 = vmatpush3.msra.mxu1 %v7294_v19 }
 0x1f9   : > { %6067 = vmatmul.mubr.f32.gmra.mxu1 %v8791_v41  ;;  %6263 = vmatprep.subr.mxu1 %v7309_v33 }
 0x1fa   : > { %6069 = vmatprep.mubr.f32.mxu1 %v2328_v44  ;;  %v7578_v38 = vpop.f32.mrf.mxu1  ;;  %v796_v44 = vand.u32 2147483647, %v7569_v34  ;;  %6279 = vmatpush3.msra.mxu1 %v7309_v33 }
 0x1fb   : > { %830 = vadd.xlane.f32.xlu0 %v790_v43  ;;  %6264 = vmatprep.subr.mxu1 %v7324_v47 }
 0x1fc   : > { %832 = vadd.xlane.f32.xlu1 %v791_v42  ;;  %v7583_v52 = vpop.f32.mrf.mxu1  ;;  %6280 = vmatpush3.msra.mxu1 %v7324_v47  ;;  %v799_v47 = vand.u32 2147483647, %v7574_v35 }
 0x1fd   : > { %6070 = vmatmul.mubr.f32.gmra.mxu1 %v8792_v61  ;;  %6265 = vmatprep.subr.mxu1 %v7335_v11  ;;  %v3034_v61 = vmul.f32 %v7493_v24, %v6733_v22 }
 0x1fe   : > { %6072 = vmatprep.mubr.f32.mxu1 %v2330_v36  ;;  %v7587_v30 = vpop.f32.mrf.mxu1  ;;  %v3033_v36 = vmul.f32 %v8797_v53, %v7493_v24  ;;  %6281 = vmatpush3.msra.mxu1 %v7335_v11 }
 0x1ff   : > { %1544 = vadd.xlane.f32.xlu0 %v1504_v31 }
 0x200   : > { %1546 = vadd.xlane.f32.xlu1 %v1505_v23  ;;  %v7592_v51 = vpop.f32.mrf.mxu1  ;;  %v798_v23 = vand.u32 2147483647, %v7578_v38 }
 0x201   : > { %6073 = vmatmul.mubr.f32.gmra.mxu1 %v7101_v0  ;;  %v1506_v0 = vand.u32 2147483647, %v1387_v2 }
 0x202   : > { %6075 = vmatprep.mubr.f32.mxu1 %v2332_v60  ;;  %v7598_v20 = vpop.f32.mrf.mxu1  ;;  %v8798_v60 = vld [vmem:[#allocation6_spill] sm:$0xff] }
 0x203   : > { %834 = vadd.xlane.f32.xlu0 %v792_v10  ;;  %v3036_v10 = vmul.f32 %v7493_v24, %v6757_v37  ;;  %v800_v37 = vand.u32 2147483647, %v7587_v30 }
 0x204   : > { %836 = vadd.xlane.f32.xlu1 %v793_v26  ;;  %v7601_v21 = vpop.f32.mrf.mxu1  ;;  %v3035_v26 = vmul.f32 %v8798_v60, %v7493_v24  ;;  %v3046_v60 = vmul.f32 %v7493_v24, %v6877_v7 }
 0x205   : > { %6076 = vmatmul.mubr.f32.gmra.mxu1 %v7105_v14  ;;  %v794_v14 = vand.u32 2147483647, %v7560_v56 }
 0x206   : > { %6078 = vmatprep.mubr.f32.mxu1 %v8793_v63  ;;  %v7606_v18 = vpop.f32.mrf.mxu1 }
 0x207   : > { %1548 = vadd.xlane.f32.xlu0 %v1506_v0 }
 0x208   : > { %1550 = vadd.xlane.f32.xlu1 %v1507_v59  ;;  %v7609_v54 = vpop.f32.mrf.mxu1  ;;  %v8799_v59 = vld [vmem:[#allocation9_spill] sm:$0xff] }
 0x209   : > { %6079 = vmatmul.mubr.f32.gmra.mxu1 %v7113_v29  ;;  %v1509_v29 = vand.u32 2147483647, %v5822_v49  ;;  %v3037_v0 = vmul.f32 %v8799_v59, %v7493_v24  ;;  %v3038_v49 = vmul.f32 %v7493_v24, %v6781_v55  ;;  %v8804_v59 = vld [vmem:[#allocation26_spill] sm:$0xff] }
 0x20a   : > { %6081 = vmatprep.mubr.f32.mxu1 %v7117_v16  ;;  %v7616_v1 = vpop.f32.mrf.mxu1  ;;  %v5825_v16 = vpop.f32.mrf.mxu0 }
 0x20b   : > { %838 = vadd.xlane.f32.xlu0 %v794_v14  ;;  %v1511_v25 = vand.u32 2147483647, %v5825_v16 }
 0x20c   : > { %840 = vadd.xlane.f32.xlu1 %v795_v3  ;;  %v7619_v58 = vpop.f32.mrf.mxu1  ;;  %v1407_v19 = vpop.f32.mrf.mxu0  ;;  %v801_v3 = vand.u32 2147483647, %v7583_v52 }
 0x20d   : > { %6082 = vmatmul.mubr.f32.gmra.mxu1 %v8794_v28  ;;  %v1510_v43 = vand.u32 2147483647, %v1407_v19  ;;  %v8800_v28 = vld [vmem:[#allocation12_spill] sm:$0xff]  ;;  %v3042_v19 = vmul.f32 %v7493_v24, %v6829_v48 }
 0x20e   : > { %6084 = vmatprep.mubr.f32.mxu1 %v8795_v32  ;;  %v7624_v56 = vpop.f32.mrf.mxu1  ;;  %v5828_v33 = vpop.f32.mrf.mxu0  ;;  %v3040_v32 = vmul.f32 %v7493_v24, %v6805_v39  ;;  %v802_v39 = vand.u32 2147483647, %v7598_v20 }
 0x20f   : > { %1552 = vadd.xlane.f32.xlu0 %v1508_v62  ;;  %v1513_v22 = vand.u32 2147483647, %v5828_v33 }
 0x210   : > { %1554 = vadd.xlane.f32.xlu1 %v1509_v29  ;;  %v7629_v40 = vpop.f32.mrf.mxu1  ;;  %v1417_v31 = vpop.f32.mrf.mxu0  ;;  %v3039_v29 = vmul.f32 %v8800_v28, %v7493_v24  ;;  %v807_v28 = vand.u32 2147483647, %v7609_v54 }
 0x211   : > { %6085 = vmatmul.mubr.f32.gmra.mxu1 %v7133_v13  ;;  %v8796_v13 = vld [vmem:[#allocation53_spill] sm:$0xff]  ;;  %v1512_v2 = vand.u32 2147483647, %v1417_v31 }
 0x212   : > { %6087 = vmatprep.mubr.f32.mxu1 %v2340_v46  ;;  %v7635_v41 = vpop.f32.mrf.mxu1  ;;  %v5831_v35 = vpop.f32.mrf.mxu0  ;;  %v8801_v46 = vld [vmem:[#allocation15_spill] sm:$0xff] }
 0x213   : > { %842 = vadd.xlane.f32.xlu0 %v796_v44  ;;  %v1515_v55 = vand.u32 2147483647, %v5831_v35 }
 0x214   : > { %844 = vadd.xlane.f32.xlu1 %v797_v15  ;;  %v1427_v14 = vpop.f32.mrf.mxu0  ;;  %v3041_v15 = vmul.f32 %v8801_v46, %v7493_v24 }
 0x215   : > { %v7640_v42 = vpop.f32.mrf.mxu1  ;;  %6088 = vmatmul.mubr.f32.gmra.mxu1 %v8796_v13  ;;  %v1514_v16 = vand.u32 2147483647, %v1427_v14 }
 0x216   : > { %6214 = vmatprep.mubr.f32.mxu1 %v3032_v57  ;;  %v5834_v52 = vpop.f32.mrf.mxu0  ;;  %v803_v57 = vand.u32 2147483647, %v7592_v51 }
 0x217   : > { %v7644_v34 = vpop.f32.mrf.mxu1  ;;  %1556 = vadd.xlane.f32.xlu0 %v1510_v43  ;;  %v8802_v43 = vld [vmem:[#allocation18_spill] sm:$0xff]  ;;  %v1517_v48 = vand.u32 2147483647, %v5834_v52  ;;  %v8806_v52 = vld [vmem:[#allocation36_spill] sm:$0xff] }
 0x218   : > { %1558 = vadd.xlane.f32.xlu1 %v1511_v25  ;;  %v1437_v13 = vpop.f32.mrf.mxu0  ;;  %v3043_v33 = vmul.f32 %v8802_v43, %v7493_v24  ;;  %v3052_v46 = vmul.f32 %v7493_v24, %v8806_v52 }
 0x219   : > { %v7650_v50 = vpop.f32.mrf.mxu1  ;;  %6215 = vmatmul.mubr.f32.vlgmr.msra.gmra.mxu1 %v3033_v36  ;;  %v3044_v36 = vmul.f32 %v7493_v24, %v6853_v45  ;;  %v804_v45 = vand.u32 2147483647, %v7606_v18 }
 0x21a   : > { %6217 = vmatprep.mubr.f32.mxu1 %v3034_v61  ;;  %v1516_v61 = vand.u32 2147483647, %v1437_v13  ;;  %v5837_v51 = vpop.f32.mrf.mxu0  ;;  %v808_v13 = vand.u32 2147483647, %v7624_v56 }
 0x21b   : > { %v7656_v27 = vpop.f32.mrf.mxu1  ;;  %846 = vadd.xlane.f32.xlu0 %v798_v23  ;;  %v1519_v7 = vand.u32 2147483647, %v5837_v51 }
 0x21c   : > { %848 = vadd.xlane.f32.xlu1 %v799_v47  ;;  %v8803_v47 = vld [vmem:[#allocation21_spill] sm:$0xff] }
 0x21d   : > { %v7660_v11 = vpop.f32.mrf.mxu1  ;;  %6218 = vmatmul.mubr.f32.gmra.mxu1 %v3035_v26  ;;  %v3045_v23 = vmul.f32 %v8803_v47, %v7493_v24  ;;  %v805_v26 = vand.u32 2147483647, %v7601_v21 }
 0x21e   : > { %6220 = vmatprep.mubr.f32.mxu1 %v3036_v10  ;;  %v1447_v10 = vpop.f32.mrf.mxu0  ;;  %v1142_v52 = vand.u32 2147483647, %v7660_v11 }
 0x21f   : > { %v7664_v38 = vpop.f32.mrf.mxu1  ;;  %1560 = vadd.xlane.f32.xlu0 %v1512_v2  ;;  %v3047_v2 = vmul.f32 %v6871_v17, %v7493_v24  ;;  %v8805_v17 = vld [vmem:[#allocation31_spill] sm:$0xff] }
 0x220   : > { %1562 = vadd.xlane.f32.xlu1 %v1513_v22  ;;  %v5840_v21 = vpop.f32.mrf.mxu0  ;;  %v3050_v14 = vmul.f32 %v7493_v24, %v8805_v17 }
 0x221   : > { %v7668_v63 = vpop.f32.mrf.mxu1  ;;  %6221 = vmatmul.mubr.f32.gmra.mxu1 %v3037_v0  ;;  %v3048_v0 = vmul.f32 %v7493_v24, %v8804_v59 }
 0x222   : > { %6223 = vmatprep.mubr.f32.mxu1 %v3038_v49  ;;  %v1518_v49 = vand.u32 2147483647, %v1447_v10  ;;  %v813_v10 = vand.u32 2147483647, %v7640_v42 }
 0x223   : > { %v7674_v4 = vpop.f32.mrf.mxu1  ;;  %850 = vadd.xlane.f32.xlu0 %v800_v37 }
 0x224   : > { %852 = vadd.xlane.f32.xlu1 %v801_v3  ;;  %v3049_v3 = vmul.f32 %v6895_v8, %v7493_v24 }
 0x225   : > { %v7678_v62 = vpop.f32.mrf.mxu1  ;;  %6224 = vmatmul.mubr.f32.gmra.mxu1 %v3039_v29  ;;  %v806_v29 = vand.u32 2147483647, %v7616_v1 }
 0x226   : > { %6226 = vmatprep.mubr.f32.mxu1 %v3040_v32  ;;  %v1457_v32 = vpop.f32.mrf.mxu0 }
 0x227   : > { %v7682_v30 = vpop.f32.mrf.mxu1  ;;  %1564 = vadd.xlane.f32.xlu0 %v1514_v16  ;;  %v3051_v16 = vmul.f32 %v6919_v9, %v7493_v24  ;;  %v3054_v9 = vmul.f32 %v7493_v24, %v7011_v5  ;;  %v811_v5 = vand.u32 2147483647, %v7629_v40 }
 0x228   : > { %1566 = vadd.xlane.f32.xlu1 %v1515_v55  ;;  %v5843_v54 = vpop.f32.mrf.mxu0 }
 0x229   : > { %v7686_v44 = vpop.f32.mrf.mxu1  ;;  %6227 = vmatmul.mubr.f32.gmra.mxu1 %v3041_v15  ;;  %v1521_v15 = vand.u32 2147483647, %v5840_v21  ;;  %v1140_v21 = vand.u32 2147483647, %v7650_v50  ;;  %v1141_v50 = vand.u32 2147483647, %v7664_v38 }
 0x22a   : > { %6229 = vmatprep.mubr.f32.mxu1 %v3042_v19  ;;  %v1520_v19 = vand.u32 2147483647, %v1457_v32  ;;  %v1467_v43 = vpop.f32.mrf.mxu0 }
 0x22b   : > { %v7692_v25 = vpop.f32.mrf.mxu1  ;;  %854 = vadd.xlane.f32.xlu0 %v802_v39  ;;  %v809_v39 = vand.u32 2147483647, %v7619_v58  ;;  %v1522_v51 = vand.u32 2147483647, %v1467_v43  ;;  %v810_v58 = vand.u32 2147483647, %v7635_v41 }
 0x22c   : > { %856 = vadd.xlane.f32.xlu1 %v803_v57  ;;  %v3053_v57 = vmul.f32 %v6953_v6, %v7493_v24  ;;  %v5846_v6 = vpop.f32.mrf.mxu0 }
 0x22d   : > { %v7696_v53 = vpop.f32.mrf.mxu1  ;;  %6230 = vmatmul.mubr.f32.gmra.mxu1 %v3043_v33 }
 0x22e   : > { %6232 = vmatprep.mubr.f32.mxu1 %v3044_v36  ;;  %v8807_v36 = vld [vmem:[#allocation39_spill] sm:$0xff]  ;;  %v1477_v56 = vpop.f32.mrf.mxu0 }
 0x22f   : > { %v7700_v20 = vpop.f32.mrf.mxu1  ;;  %1568 = vadd.xlane.f32.xlu0 %v1516_v61  ;;  %v1523_v61 = vand.u32 2147483647, %v5843_v54 }
 0x230   : > { %1570 = vadd.xlane.f32.xlu1 %v1517_v48  ;;  %v3055_v48 = vmul.f32 %v8807_v36, %v7493_v24  ;;  %v5849_v24 = vpop.f32.mrf.mxu0 }
 0x231   : > { %v7704_v31 = vpop.f32.mrf.mxu1  ;;  %6233 = vmatmul.mubr.f32.gmra.mxu1 %v3045_v23  ;;  %v1527_v41 = vand.u32 2147483647, %v5849_v24 }
 0x232   : > { %6235 = vmatprep.mubr.f32.mxu1 %v3046_v60  ;;  %v1525_v60 = vand.u32 2147483647, %v5846_v6  ;;  %v1487_v59 = vpop.f32.mrf.mxu0 }
 0x233   : > { %v7710_v22 = vpop.f32.mrf.mxu1  ;;  %858 = vadd.xlane.f32.xlu0 %v804_v45 }
 0x234   : > { %860 = vadd.xlane.f32.xlu1 %v805_v26  ;;  %v1524_v26 = vand.u32 2147483647, %v1477_v56 }
 0x235   : > { %v7714_v35 = vpop.f32.mrf.mxu1  ;;  %6236 = vmatmul.mubr.f32.gmra.mxu1 %v3047_v2  ;;  %v812_v2 = vand.u32 2147483647, %v7644_v34 }
 0x236   : > { %6238 = vmatprep.mubr.f32.mxu1 %v3048_v0  ;;  %v1526_v0 = vand.u32 2147483647, %v1487_v59 }
 0x237   : > { %v7718_v18 = vpop.f32.mrf.mxu1  ;;  %1572 = vadd.xlane.f32.xlu0 %v1518_v49 }
 0x238   : > { %1574 = vadd.xlane.f32.xlu1 %v1519_v7  ;;  %v5964_v7 = vpop.f32.mrf.mxu0 }
 0x239   : > { %v7722_v37 = vpop.f32.mrf.mxu1  ;;  %6239 = vmatmul.mubr.f32.gmra.mxu1 %v3049_v3  ;;  %v1139_v3 = vand.u32 2147483647, %v7656_v27  ;;  %v2211_v34 = vand.u32 2147483647, %v5964_v7 }
 0x23a   : > { %6241 = vmatprep.mubr.f32.mxu1 %v3050_v14  ;;  %v2051_v17 = vpop.f32.mrf.mxu0 }
 0x23b   : > { %v7728_v55 = vpop.f32.mrf.mxu1  ;;  %862 = vadd.xlane.f32.xlu0 %v806_v29  ;;  %v2210_v14 = vand.u32 2147483647, %v2051_v17 }
 0x23c   : > { %864 = vadd.xlane.f32.xlu1 %v807_v28  ;;  %v8808_v28 = vlaneseq  ;;  %v5967_v32 = vpop.f32.mrf.mxu0 }
 0x23d   : > { %v7732_v8 = vpop.f32.mrf.mxu1  ;;  %6242 = vmatmul.mubr.f32.gmra.mxu1 %v3051_v16 }
 0x23e   : > { %6244 = vmatprep.mubr.f32.mxu1 %v3052_v46  ;;  %v7767_v29 = vand.u32 127, %v8808_v28  ;;  %v2061_v46 = vpop.f32.mrf.mxu0 }
 0x23f   : > { %v7736_v1 = vpop.f32.mrf.mxu1  ;;  %1576 = vadd.xlane.f32.xlu0 %v1520_v19 }
 0x240   : > { %1578 = vadd.xlane.f32.xlu1 %v1521_v15  ;;  %v3415_v27 = vadd.s32 4294967288, %v7767_v29  ;;  %v5970_v11 = vpop.f32.mrf.mxu0  ;;  %v3436_v59 = vadd.s32 4294967264, %v7767_v29 }
 0x241   : > { %6245 = vmatmul.mubr.f32.gmra.mxu1 %v3053_v57  ;;  %v7744_v33 = vpop.f32.mrf.mxu1  ;;  %v2213_v57 = vand.u32 2147483647, %v5967_v32 }
 0x242   : > { %6247 = vmatprep.mubr.f32.mxu1 %v3054_v9  ;;  %v2212_v9 = vand.u32 2147483647, %v2061_v46 }
 0x243   : > { %866 = vadd.xlane.f32.xlu0 %v808_v13  ;;  %v7748_v47 = vpop.f32.mrf.mxu1  ;;  %v7781_v13 = vsub.s32 %v7767_v29, %v8779_v12 }
 0x244   : > { %868 = vadd.xlane.f32.xlu1 %v809_v39  ;;  %v7777_v39 = vsub.s32 %v3415_v27, %v8779_v12 }
 0x245   : > { %6248 = vmatmul.mubr.f32.gmra.mxu1 %v3055_v48  ;;  %v7752_v23 = vpop.f32.mrf.mxu1  ;;  %v3422_v48 = vadd.s32 4294967280, %v7767_v29 }
 0x247   : > { %1580 = vadd.xlane.f32.xlu0 %v1522_v51  ;;  %v7754_v45 = vpop.f32.mrf.mxu1 }
 0x248   : > { %1582 = vadd.xlane.f32.xlu1 %v1523_v61  ;;  %v1144_v61 = vand.u32 2147483647, %v7668_v63  ;;  %v3443_v63 = vadd.s32 4294967256, %v7767_v29 }
 0x249   : > { %v7758_v40 = vpop.f32.mrf.mxu1 }
 0x24a   : > { %v7808_v32 = vsub.s32 %v3443_v63, %v8779_v12 }
 0x24b   : > { %870 = vadd.xlane.f32.xlu0 %v810_v58  ;;  %v7760_v49 = vpop.f32.mrf.mxu1  ;;  %v2071_v58 = vpop.f32.mrf.mxu0 }
 0x24c   : > { %872 = vadd.xlane.f32.xlu1 %v811_v5  ;;  %v1143_v5 = vand.u32 2147483647, %v7674_v4  ;;  %v2214_v4 = vand.u32 2147483647, %v2071_v58 }
 0x24d   : > { %v7764_v42 = vpop.f32.mrf.mxu1 }
 0x24f   : > { %1584 = vadd.xlane.f32.xlu0 %v1524_v26  ;;  %v7769_v16 = vpop.f32.mrf.mxu1 }
 0x250   : > { %1586 = vadd.xlane.f32.xlu1 %v1525_v60  ;;  %v3429_v60 = vadd.s32 4294967272, %v7767_v29 }
 0x251   : > { %v7774_v15 = vpop.f32.mrf.mxu1 }
 0x252   : > { %v7804_v17 = vsub.s32 %v3429_v60, %v8779_v12 }
 0x253   : > { %874 = vadd.xlane.f32.xlu0 %v812_v2  ;;  %v7783_v38 = vpop.f32.mrf.mxu1  ;;  %v7795_v2 = vsub.s32 %v3422_v48, %v8779_v12 }
 0x254   : > { %876 = vadd.xlane.f32.xlu1 %v813_v10 }
 0x255   : > { %v7790_v56 = vpop.f32.mrf.mxu1 }
 0x257   : > { %1588 = vadd.xlane.f32.xlu0 %v1526_v0 }
 0x258   : > { %1590 = vadd.xlane.f32.xlu1 %v1527_v41  ;;  %v2215_v41 = vand.u32 2147483647, %v5970_v11 }
 0x25b   : > { %1171 = vadd.xlane.f32.xlu0 %v1139_v3  ;;  %v7801_v3 = vpop.f32.mrf.mxu1 }
 0x25c   : > { %1173 = vadd.xlane.f32.xlu1 %v1140_v21  ;;  %v5973_v21 = vpop.f32.mrf.mxu0 }
 0x25f   : > { %2242 = vadd.xlane.f32.xlu0 %v2210_v14 }
 0x260   : > { %2244 = vadd.xlane.f32.xlu1 %v2211_v34 }
 0x263   : > { %1175 = vadd.xlane.f32.xlu0 %v1141_v50  ;;  %v1146_v50 = vand.u32 2147483647, %v7678_v62  ;;  %v3457_v62 = vadd.s32 4294967240, %v7767_v29 }
 0x264   : > { %1177 = vadd.xlane.f32.xlu1 %v1142_v52  ;;  %v817_v19 = vpop.xlane.xlu0 %816  ;;  %v7811_v52 = vsub.s32 %v3436_v59, %v8779_v12 }
 0x265   : > { %v1531_v54 = vpop.xlane.xlu1 %1530  ;;  %v3419_v51 = vrot.slane %v817_v19, %v7777_v39  ;;  %v1145_v19 = vand.u32 2147483647, %v7682_v30 }
 0x266   : > { %v3832_v0 = vrot.slane %v1531_v54, %v7777_v39  ;;  %v2081_v54 = vpop.f32.mrf.mxu0 }
 0x267   : > { %2246 = vadd.xlane.f32.xlu0 %v2212_v9  ;;  %v2216_v58 = vand.u32 2147483647, %v2081_v54 }
 0x268   : > { %2248 = vadd.xlane.f32.xlu1 %v2213_v57  ;;  %v815_v43 = vpop.xlane.xlu0 %814  ;;  %v7817_v57 = vpop.f32.mrf.mxu1 }
 0x269   : > { %v821_v36 = vpop.xlane.xlu1 %820  ;;  %v3414_v6 = vrot.slane %v815_v43, %v7781_v13 }
 0x26a   : > { %v3433_v9 = vrot.slane %v821_v36, %v7804_v17  ;;  %v3450_v36 = vadd.s32 4294967248, %v7767_v29 }
 0x26b   : > { %v3421_v26 = vsel %vm3420_vm0, %v3419_v51, %v3414_v6  ;;  %1179 = vadd.xlane.f32.xlu0 %v1143_v5  ;;  %v2217_v5 = vand.u32 2147483647, %v5973_v21  ;;  %v1148_v21 = vand.u32 2147483647, %v7686_v44  ;;  %v3471_v44 = vadd.s32 4294967224, %v7767_v29 }
 0x26c   : > { %1181 = vadd.xlane.f32.xlu1 %v1144_v61  ;;  %v1529_v24 = vpop.xlane.xlu0 %1528 }
 0x26d   : > { %v1535_v10 = vpop.xlane.xlu1 %1534  ;;  %v3828_v7 = vrot.slane %v1529_v24, %v7781_v13  ;;  %v5976_v24 = vpop.f32.mrf.mxu0 }
 0x26e   : > { %v3842_v11 = vrot.slane %v1535_v10, %v7804_v17  ;;  %v7829_v10 = vpop.f32.mrf.mxu1 }
 0x26f   : > { %v3833_v34 = vsel %vm3420_vm0, %v3832_v0, %v3828_v7  ;;  %2250 = vadd.xlane.f32.xlu0 %v2214_v4  ;;  %v7833_v4 = vsub.s32 %v3457_v62, %v8779_v12  ;;  %v7837_v7 = vsub.s32 %v3450_v36, %v8779_v12 }
 0x270   : > { %2252 = vadd.xlane.f32.xlu1 %v2215_v41  ;;  %v1533_v28 = vpop.xlane.xlu0 %1532 }
 0x271   : > { %v819_v14 = vpop.xlane.xlu1 %818  ;;  %v3837_v46 = vrot.slane %v1533_v28, %v7795_v2 }
 0x272   : > { %v3426_v27 = vrot.slane %v819_v14, %v7795_v2 }
 0x273   : > { %v3838_v48 = vsel %vm3427_vm1, %v3837_v46, %v3833_v34  ;;  %1183 = vadd.xlane.f32.xlu0 %v1145_v19  ;;  %v1147_v34 = vand.u32 2147483647, %v7692_v25  ;;  %v3464_v25 = vadd.s32 4294967232, %v7767_v29 }
 0x274   : > { %v3428_v43 = vsel %vm3427_vm1, %v3426_v27, %v3421_v26  ;;  %1185 = vadd.xlane.f32.xlu1 %v1146_v50  ;;  %v823_v30 = vpop.xlane.xlu0 %822  ;;  %v3843_v6 = vsel %vm3434_vm2, %v3842_v11, %v3838_v48  ;;  %v2091_v50 = vpop.f32.mrf.mxu0  ;;  %v2219_v11 = vand.u32 2147483647, %v5976_v24  ;;  %v1149_v24 = vand.u32 2147483647, %v7700_v20 }
 0x275   : > { %v825_v61 = vpop.xlane.xlu1 %824  ;;  %v3435_v51 = vsel %vm3434_vm2, %v3433_v9, %v3428_v43  ;;  %v3440_v26 = vrot.slane %v823_v30, %v7811_v52  ;;  %v7843_v27 = vpop.f32.mrf.mxu1  ;;  %v2218_v43 = vand.u32 2147483647, %v2091_v50  ;;  %v3478_v20 = vadd.s32 4294967216, %v7767_v29 }
 0x276   : > { %v3447_v60 = vrot.slane %v825_v61, %v7808_v32  ;;  %v5979_v61 = vpop.f32.mrf.mxu0 }
 0x277   : > { %v3442_v63 = vsel %vm3441_vm3, %v3440_v26, %v3435_v51  ;;  %2254 = vadd.xlane.f32.xlu0 %v2216_v58  ;;  %v7851_v51 = vpop.f32.mrf.mxu1  ;;  %v1150_v26 = vand.u32 2147483647, %v7696_v53  ;;  %v3485_v53 = vadd.s32 4294967208, %v7767_v29  ;;  %v2221_v50 = vand.u32 2147483647, %v5979_v61 }
 0x278   : > { %2256 = vadd.xlane.f32.xlu1 %v2217_v5  ;;  %v1537_v41 = vpop.xlane.xlu0 %1536  ;;  %v3449_v0 = vsel %vm3448_vm4, %v3447_v60, %v3442_v63  ;;  %v7855_v5 = vsub.s32 %v3471_v44, %v8779_v12  ;;  %v7859_v60 = vsub.s32 %v3464_v25, %v8779_v12  ;;  %v7881_v61 = vsub.s32 %v3478_v20, %v8779_v12 }
 0x279   : > { %v1539_v59 = vpop.xlane.xlu1 %1538  ;;  %v3847_v28 = vrot.slane %v1537_v41, %v7811_v52  ;;  %v2101_v41 = vpop.f32.mrf.mxu0 }
 0x27a   : > { %v3852_v14 = vrot.slane %v1539_v59, %v7808_v32 }
 0x27b   : > { %v3848_v46 = vsel %vm3441_vm3, %v3847_v28, %v3843_v6  ;;  %1187 = vadd.xlane.f32.xlu0 %v1147_v34  ;;  %v5982_v44 = vpop.f32.mrf.mxu0 }
 0x27c   : > { %1189 = vadd.xlane.f32.xlu1 %v1148_v21  ;;  %v827_v54 = vpop.xlane.xlu0 %826  ;;  %v3853_v9 = vsel %vm3448_vm4, %v3852_v14, %v3848_v46  ;;  %v2220_v46 = vand.u32 2147483647, %v2101_v41 }
 0x27d   : > { %v829_v19 = vpop.xlane.xlu1 %828  ;;  %v3454_v62 = vrot.slane %v827_v54, %v7837_v7 }
 0x27e   : > { %v3461_v48 = vrot.slane %v829_v19, %v7833_v4 }
 0x27f   : > { %v3456_v30 = vsel %vm3455_vm5, %v3454_v62, %v3449_v0  ;;  %2258 = vadd.xlane.f32.xlu0 %v2218_v43  ;;  %v7865_v0 = vpop.f32.mrf.mxu1 }
 0x280   : > { %2260 = vadd.xlane.f32.xlu1 %v2219_v11  ;;  %v1541_v36 = vpop.xlane.xlu0 %1540  ;;  %v3463_v58 = vsel %vm8703_vm6, %v3461_v48, %v3456_v30  ;;  %v7877_v48 = vsub.s32 %v3485_v53, %v8779_v12  ;;  %v1152_v30 = vand.u32 2147483647, %v7704_v31  ;;  %v3499_v31 = vadd.s32 4294967192, %v7767_v29 }
 0x281   : > { %v1543_v6 = vpop.xlane.xlu1 %1542  ;;  %v3857_v59 = vrot.slane %v1541_v36, %v7837_v7 }
 0x282   : > { %v3862_v63 = vrot.slane %v1543_v6, %v7833_v4  ;;  %v1151_v6 = vand.u32 2147483647, %v7710_v22  ;;  %v3492_v22 = vadd.s32 4294967200, %v7767_v29 }
 0x283   : > { %v3858_v21 = vsel %vm3455_vm5, %v3857_v59, %v3853_v9  ;;  %1191 = vadd.xlane.f32.xlu0 %v1149_v24  ;;  %v7873_v9 = vpop.f32.mrf.mxu1 }
 0x284   : > { %1193 = vadd.xlane.f32.xlu1 %v1150_v26  ;;  %v831_v14 = vpop.xlane.xlu0 %830  ;;  %v3863_v28 = vsel %vm8703_vm6, %v3862_v63, %v3858_v21  ;;  %v2111_v26 = vpop.f32.mrf.mxu0 }
 0x285   : > { %v833_v34 = vpop.xlane.xlu1 %832  ;;  %v3468_v54 = vrot.slane %v831_v14, %v7859_v60  ;;  %v7887_v24 = vpop.f32.mrf.mxu1  ;;  %v2222_v14 = vand.u32 2147483647, %v2111_v26 }
 0x286   : > { %v3475_v19 = vrot.slane %v833_v34, %v7855_v5  ;;  %v2223_v34 = vand.u32 2147483647, %v5982_v44  ;;  %v7903_v44 = vsub.s32 %v3492_v22, %v8779_v12 }
 0x287   : > { %v3470_v25 = vsel %vm3469_vm7, %v3468_v54, %v3463_v58  ;;  %2262 = vadd.xlane.f32.xlu0 %v2220_v46 }
 0x288   : > { %2264 = vadd.xlane.f32.xlu1 %v2221_v50  ;;  %v1545_v43 = vpop.xlane.xlu0 %1544  ;;  %v3477_v62 = vsel %vm8701_vm8, %v3475_v19, %v3470_v25  ;;  %v5985_v50 = vpop.f32.mrf.mxu0  ;;  %v7899_v25 = vsub.s32 %v3499_v31, %v8779_v12 }
 0x289   : > { %v1547_v11 = vpop.xlane.xlu1 %1546  ;;  %v3867_v58 = vrot.slane %v1545_v43, %v7859_v60  ;;  %v1154_v43 = vand.u32 2147483647, %v7714_v35  ;;  %v3513_v35 = vadd.s32 4294967176, %v7767_v29  ;;  %v2225_v31 = vand.u32 2147483647, %v5985_v50 }
 0x28a   : > { %v3872_v36 = vrot.slane %v1547_v11, %v7855_v5 }
 0x28b   : > { %v3868_v63 = vsel %vm3469_vm7, %v3867_v58, %v3863_v28  ;;  %1195 = vadd.xlane.f32.xlu0 %v1151_v6  ;;  %v7895_v28 = vpop.f32.mrf.mxu1 }
 0x28c   : > { %1197 = vadd.xlane.f32.xlu1 %v1152_v30  ;;  %v835_v41 = vpop.xlane.xlu0 %834  ;;  %v3873_v21 = vsel %vm8701_vm8, %v3872_v36, %v3868_v63  ;;  %v1153_v30 = vand.u32 2147483647, %v7718_v18  ;;  %v2121_v36 = vpop.f32.mrf.mxu0  ;;  %v3506_v18 = vadd.s32 4294967184, %v7767_v29 }
 0x28d   : > { %v837_v59 = vpop.xlane.xlu1 %836  ;;  %v3482_v20 = vrot.slane %v835_v41, %v7881_v61  ;;  %v7909_v58 = vpop.f32.mrf.mxu1  ;;  %v2224_v22 = vand.u32 2147483647, %v2121_v36 }
 0x28e   : > { %v3489_v53 = vrot.slane %v837_v59, %v7877_v48  ;;  %v7925_v50 = vsub.s32 %v3506_v18, %v8779_v12 }
 0x28f   : > { %v3484_v46 = vsel %vm3483_vm9, %v3482_v20, %v3477_v62  ;;  %2266 = vadd.xlane.f32.xlu0 %v2222_v14 }
 0x290   : > { %2268 = vadd.xlane.f32.xlu1 %v2223_v34  ;;  %v1549_v54 = vpop.xlane.xlu0 %1548  ;;  %v3491_v11 = vsel %vm8702_vm10, %v3489_v53, %v3484_v46  ;;  %v5988_v53 = vpop.f32.mrf.mxu0 }
 0x291   : > { %v1551_v19 = vpop.xlane.xlu1 %1550  ;;  %v3877_v62 = vrot.slane %v1549_v54, %v7881_v61  ;;  %v7921_v54 = vsub.s32 %v3513_v35, %v8779_v12 }
 0x292   : > { %v3882_v6 = vrot.slane %v1551_v19, %v7877_v48 }
 0x293   : > { %v3878_v26 = vsel %vm3483_vm9, %v3877_v62, %v3873_v21  ;;  %1199 = vadd.xlane.f32.xlu0 %v1153_v30  ;;  %v7917_v21 = vpop.f32.mrf.mxu1  ;;  %v1155_v30 = vand.u32 2147483647, %v7728_v55  ;;  %v2131_v62 = vpop.f32.mrf.mxu0 }
 0x294   : > { %1201 = vadd.xlane.f32.xlu1 %v1154_v43  ;;  %v839_v59 = vpop.xlane.xlu0 %838  ;;  %v3883_v41 = vsel %vm8702_vm10, %v3882_v6, %v3878_v26  ;;  %v1156_v43 = vand.u32 2147483647, %v7722_v37  ;;  %v2227_v37 = vand.u32 2147483647, %v5988_v53  ;;  %v2226_v35 = vand.u32 2147483647, %v2131_v62 }
 0x295   : > { %v841_v63 = vpop.xlane.xlu1 %840  ;;  %v3496_v14 = vrot.slane %v839_v59, %v7903_v44  ;;  %v7931_v36 = vpop.f32.mrf.mxu1  ;;  %v1157_v53 = vand.u32 2147483647, %v7736_v1 }
 0x296   : > { %v3503_v34 = vrot.slane %v841_v63, %v7899_v25 }
 0x297   : > { %v3498_v20 = vsel %vm8700_vm11, %v3496_v14, %v3491_v11  ;;  %2270 = vadd.xlane.f32.xlu0 %v2224_v22  ;;  %v7937_v22 = vpop.f32.mrf.mxu1 }
 0x298   : > { %2272 = vadd.xlane.f32.xlu1 %v2225_v31  ;;  %v1553_v19 = vpop.xlane.xlu0 %1552  ;;  %v3505_v29 = vsel %vm3504_vm12, %v3503_v34, %v3498_v20  ;;  %v5991_v31 = vpop.f32.mrf.mxu0 }
 0x299   : > { %v1555_v46 = vpop.xlane.xlu1 %1554  ;;  %v3887_v11 = vrot.slane %v1553_v19, %v7903_v44 }
 0x29a   : > { %v3892_v6 = vrot.slane %v1555_v46, %v7899_v25  ;;  %v1158_v46 = vand.u32 2147483647, %v7732_v8 }
 0x29b   : > { %v3888_v26 = vsel %vm8700_vm11, %v3887_v11, %v3883_v41  ;;  %1203 = vadd.xlane.f32.xlu0 %v1155_v30  ;;  %v2141_v30 = vpop.f32.mrf.mxu0 }
 0x29c   : > { %1205 = vadd.xlane.f32.xlu1 %v1156_v43  ;;  %v843_v12 = vpop.xlane.xlu0 %842  ;;  %v3893_v59 = vsel %vm3504_vm12, %v3892_v6, %v3888_v26  ;;  %v7947_v6 = vpop.f32.mrf.mxu1  ;;  %v2228_v8 = vand.u32 2147483647, %v2141_v30 }
 0x29d   : > { %v845_v63 = vpop.xlane.xlu1 %844  ;;  %v3510_v18 = vrot.slane %v843_v12, %v7925_v50 }
 0x29e   : > { %v3517_v55 = vrot.slane %v845_v63, %v7921_v54  ;;  %v2229_v63 = vand.u32 2147483647, %v5991_v31 }
 0x29f   : > { %v3512_v34 = vsel %vm3511_vm13, %v3510_v18, %v3505_v29  ;;  %2274 = vadd.xlane.f32.xlu0 %v2226_v35  ;;  %v7955_v35 = vpop.f32.mrf.mxu1 }
 0x2a0   : > { %2276 = vadd.xlane.f32.xlu1 %v2227_v37  ;;  %v7941_v41 = vsel %vm3518_vm14, %v3517_v55, %v3512_v34  ;;  %v1557_v20 = vpop.xlane.xlu0 %1556  ;;  %v5994_v37 = vpop.f32.mrf.mxu0  ;;  %v1160_v34 = vand.u32 2147483647, %v7744_v33 }
 0x2a1   : > { %v1559_v14 = vpop.xlane.xlu1 %1558  ;;  %v3897_v43 = vrot.slane %v1557_v20, %v7925_v50 }
 0x2a2   : > { %v3902_v19 = vrot.slane %v1559_v14, %v7921_v54  ;;  %v1159_v14 = vand.u32 2147483647, %v7748_v47 }
 0x2a3   : > { %v3898_v29 = vsel %vm3511_vm13, %v3897_v43, %v3893_v59  ;;  %1207 = vadd.xlane.f32.xlu0 %v1157_v53  ;;  %v7962_v53 = vpop.f32.mrf.mxu1 }
 0x2a4   : > { %1209 = vadd.xlane.f32.xlu1 %v1158_v46  ;;  %v7951_v11 = vsel %vm3518_vm14, %v3902_v19, %v3898_v29  ;;  %v847_v26 = vpop.xlane.xlu0 %846  ;;  %v2151_v46 = vpop.f32.mrf.mxu0  ;;  %v2231_v29 = vand.u32 2147483647, %v5994_v37  ;;  %v1161_v37 = vand.u32 2147483647, %v7754_v45 }
 0x2a5   : > { %v849_v62 = vpop.xlane.xlu1 %848  ;;  %v3523_v12 = vrot.slane %v847_v26, %v7781_v13 }
 0x2a6   : > { %v3527_v1 = vrot.slane %v849_v62, %v7777_v39  ;;  %v2230_v62 = vand.u32 2147483647, %v2151_v46  ;;  %v5997_v47 = vpop.f32.mrf.mxu0 }
 0x2a7   : > { %2278 = vadd.xlane.f32.xlu0 %v2228_v8 }
 0x2a8   : > { %v3528_v55 = vsel %vm3420_vm0, %v3527_v1, %v3523_v12  ;;  %2280 = vadd.xlane.f32.xlu1 %v2229_v63  ;;  %v1561_v18 = vpop.xlane.xlu0 %1560  ;;  %v7967_v63 = vpop.f32.mrf.mxu1 }
 0x2a9   : > { %v1563_v59 = vpop.xlane.xlu1 %1562  ;;  %v3907_v20 = vrot.slane %v1561_v18, %v7781_v13  ;;  %v1162_v18 = vand.u32 2147483647, %v7752_v23 }
 0x2aa   : > { %v3911_v31 = vrot.slane %v1563_v59, %v7777_v39 }
 0x2ab   : > { %1211 = vadd.xlane.f32.xlu0 %v1159_v14 }
 0x2ac   : > { %v3912_v19 = vsel %vm3420_vm0, %v3911_v31, %v3907_v20  ;;  %1213 = vadd.xlane.f32.xlu1 %v1160_v34  ;;  %v851_v30 = vpop.xlane.xlu0 %850  ;;  %v2161_v31 = vpop.f32.mrf.mxu0 }
 0x2ad   : > { %v853_v43 = vpop.xlane.xlu1 %852  ;;  %v3532_v33 = vrot.slane %v851_v30, %v7795_v2  ;;  %v7975_v20 = vpop.f32.mrf.mxu1 }
 0x2ae   : > { %v3537_v26 = vrot.slane %v853_v43, %v7804_v17 }
 0x2af   : > { %v3533_v8 = vsel %vm3427_vm1, %v3532_v33, %v3528_v55  ;;  %2282 = vadd.xlane.f32.xlu0 %v2230_v62  ;;  %v2232_v62 = vand.u32 2147483647, %v2161_v31  ;;  %v7981_v33 = vpop.f32.mrf.mxu1 }
 0x2b0   : > { %2284 = vadd.xlane.f32.xlu1 %v2231_v29  ;;  %v1565_v12 = vpop.xlane.xlu0 %1564  ;;  %v3538_v59 = vsel %vm3434_vm2, %v3537_v26, %v3533_v8  ;;  %v2233_v29 = vand.u32 2147483647, %v5997_v47  ;;  %v6000_v26 = vpop.f32.mrf.mxu0  ;;  %v1163_v47 = vand.u32 2147483647, %v7760_v49 }
 0x2b1   : > { %v1567_v1 = vpop.xlane.xlu1 %1566  ;;  %v3916_v14 = vrot.slane %v1565_v12, %v7795_v2  ;;  %v7989_v31 = vpop.f32.mrf.mxu1 }
 0x2b2   : > { %v3921_v34 = vrot.slane %v1567_v1, %v7804_v17 }
 0x2b3   : > { %v3917_v46 = vsel %vm3427_vm1, %v3916_v14, %v3912_v19  ;;  %1215 = vadd.xlane.f32.xlu0 %v1161_v37  ;;  %v2171_v14 = vpop.f32.mrf.mxu0 }
 0x2b4   : > { %1217 = vadd.xlane.f32.xlu1 %v1162_v18  ;;  %v855_v43 = vpop.xlane.xlu0 %854  ;;  %v3922_v30 = vsel %vm3434_vm2, %v3921_v34, %v3917_v46  ;;  %v1164_v18 = vand.u32 2147483647, %v7758_v40 }
 0x2b5   : > { %v857_v55 = vpop.xlane.xlu1 %856  ;;  %v3542_v45 = vrot.slane %v855_v43, %v7811_v52 }
 0x2b6   : > { %v3547_v23 = vrot.slane %v857_v55, %v7808_v32 }
 0x2b7   : > { %v3543_v8 = vsel %vm3441_vm3, %v3542_v45, %v3538_v59  ;;  %2286 = vadd.xlane.f32.xlu0 %v2232_v62  ;;  %v2234_v62 = vand.u32 2147483647, %v2171_v14  ;;  %v7995_v45 = vpop.f32.mrf.mxu1 }
 0x2b8   : > { %2288 = vadd.xlane.f32.xlu1 %v2233_v29  ;;  %v1569_v1 = vpop.xlane.xlu0 %1568  ;;  %v3548_v12 = vsel %vm3448_vm4, %v3547_v23, %v3543_v8  ;;  %v2235_v29 = vand.u32 2147483647, %v6000_v26  ;;  %v6003_v23 = vpop.f32.mrf.mxu0  ;;  %v1165_v26 = vand.u32 2147483647, %v7769_v16 }
 0x2b9   : > { %v1571_v19 = vpop.xlane.xlu1 %1570  ;;  %v3926_v34 = vrot.slane %v1569_v1, %v7811_v52  ;;  %v8003_v14 = vpop.f32.mrf.mxu1 }
 0x2ba   : > { %v3931_v37 = vrot.slane %v1571_v19, %v7808_v32 }
 0x2bb   : > { %v3927_v46 = vsel %vm3441_vm3, %v3926_v34, %v3922_v30  ;;  %1219 = vadd.xlane.f32.xlu0 %v1163_v47  ;;  %v2181_v34 = vpop.f32.mrf.mxu0 }
 0x2bc   : > { %1221 = vadd.xlane.f32.xlu1 %v1164_v18  ;;  %v859_v55 = vpop.xlane.xlu0 %858  ;;  %v3932_v43 = vsel %vm3448_vm4, %v3931_v37, %v3927_v46  ;;  %v1166_v18 = vand.u32 2147483647, %v7764_v42 }
 0x2bd   : > { %v861_v59 = vpop.xlane.xlu1 %860  ;;  %v3552_v49 = vrot.slane %v859_v55, %v7837_v7 }
 0x2be   : > { %v3557_v40 = vrot.slane %v861_v59, %v7833_v4 }
 0x2bf   : > { %v3553_v8 = vsel %vm3455_vm5, %v3552_v49, %v3548_v12  ;;  %2290 = vadd.xlane.f32.xlu0 %v2234_v62  ;;  %v2236_v62 = vand.u32 2147483647, %v2181_v34  ;;  %v8009_v49 = vpop.f32.mrf.mxu1 }
 0x2c0   : > { %2292 = vadd.xlane.f32.xlu1 %v2235_v29  ;;  %v1573_v19 = vpop.xlane.xlu0 %1572  ;;  %v3558_v1 = vsel %vm8703_vm6, %v3557_v40, %v3553_v8  ;;  %v2237_v29 = vand.u32 2147483647, %v6003_v23  ;;  %v6006_v40 = vpop.f32.mrf.mxu0  ;;  %v1167_v23 = vand.u32 2147483647, %v7783_v38 }
 0x2c1   : > { %v1575_v30 = vpop.xlane.xlu1 %1574  ;;  %v3936_v37 = vrot.slane %v1573_v19, %v7837_v7  ;;  %v8017_v34 = vpop.f32.mrf.mxu1 }
 0x2c2   : > { %v3941_v47 = vrot.slane %v1575_v30, %v7833_v4 }
 0x2c3   : > { %v3937_v46 = vsel %vm3455_vm5, %v3936_v37, %v3932_v43  ;;  %1223 = vadd.xlane.f32.xlu0 %v1165_v26  ;;  %v2191_v37 = vpop.f32.mrf.mxu0 }
 0x2c4   : > { %1225 = vadd.xlane.f32.xlu1 %v1166_v18  ;;  %v863_v59 = vpop.xlane.xlu0 %862  ;;  %v3942_v55 = vsel %vm8703_vm6, %v3941_v47, %v3937_v46  ;;  %v1168_v18 = vand.u32 2147483647, %v7774_v15 }
 0x2c5   : > { %v865_v12 = vpop.xlane.xlu1 %864  ;;  %v3562_v16 = vrot.slane %v863_v59, %v7859_v60 }
 0x2c6   : > { %v3567_v42 = vrot.slane %v865_v12, %v7855_v5 }
 0x2c7   : > { %v3563_v8 = vsel %vm3469_vm7, %v3562_v16, %v3558_v1  ;;  %2294 = vadd.xlane.f32.xlu0 %v2236_v62  ;;  %v2238_v62 = vand.u32 2147483647, %v2191_v37  ;;  %v8023_v16 = vpop.f32.mrf.mxu1 }
 0x2c8   : > { %2296 = vadd.xlane.f32.xlu1 %v2237_v29  ;;  %v1577_v30 = vpop.xlane.xlu0 %1576  ;;  %v3568_v19 = vsel %vm8701_vm8, %v3567_v42, %v3563_v8  ;;  %v2239_v29 = vand.u32 2147483647, %v6006_v40  ;;  %v6009_v42 = vpop.f32.mrf.mxu0  ;;  %v1169_v40 = vand.u32 2147483647, %v7801_v3 }
 0x2c9   : > { %v1579_v43 = vpop.xlane.xlu1 %1578  ;;  %v3946_v47 = vrot.slane %v1577_v30, %v7859_v60  ;;  %v8031_v37 = vpop.f32.mrf.mxu1 }
 0x2ca   : > { %v3951_v26 = vrot.slane %v1579_v43, %v7855_v5 }
 0x2cb   : > { %v3947_v46 = vsel %vm3469_vm7, %v3946_v47, %v3942_v55  ;;  %1227 = vadd.xlane.f32.xlu0 %v1167_v23  ;;  %v2201_v47 = vpop.f32.mrf.mxu0 }
 0x2cc   : > { %1229 = vadd.xlane.f32.xlu1 %v1168_v18  ;;  %v867_v12 = vpop.xlane.xlu0 %866  ;;  %v3952_v59 = vsel %vm8701_vm8, %v3951_v26, %v3947_v46  ;;  %v1170_v18 = vand.u32 2147483647, %v7790_v56 }
 0x2cd   : > { %v869_v1 = vpop.xlane.xlu1 %868  ;;  %v3572_v38 = vrot.slane %v867_v12, %v7881_v61 }
 0x2ce   : > { %v3577_v15 = vrot.slane %v869_v1, %v7877_v48 }
 0x2cf   : > { %v3573_v8 = vsel %vm3483_vm9, %v3572_v38, %v3568_v19  ;;  %2298 = vadd.xlane.f32.xlu0 %v2238_v62  ;;  %v2240_v62 = vand.u32 2147483647, %v2201_v47  ;;  %v8037_v38 = vpop.f32.mrf.mxu1 }
 0x2d0   : > { %2300 = vadd.xlane.f32.xlu1 %v2239_v29  ;;  %v1581_v43 = vpop.xlane.xlu0 %1580  ;;  %v3578_v30 = vsel %vm8702_vm10, %v3577_v15, %v3573_v8  ;;  %v2241_v29 = vand.u32 2147483647, %v6009_v42  ;;  %v6124_v15 = vpop.f32.mrf.mxu0  ;;  %v1853_v42 = vand.u32 2147483647, %v7829_v10 }
 0x2d1   : > { %v1583_v55 = vpop.xlane.xlu1 %1582  ;;  %v3956_v26 = vrot.slane %v1581_v43, %v7881_v61  ;;  %v8045_v47 = vpop.f32.mrf.mxu1 }
 0x2d2   : > { %v3961_v23 = vrot.slane %v1583_v55, %v7877_v48 }
 0x2d3   : > { %v3957_v46 = vsel %vm3483_vm9, %v3956_v26, %v3952_v59  ;;  %1231 = vadd.xlane.f32.xlu0 %v1169_v40  ;;  %v2765_v26 = vpop.f32.mrf.mxu0 }
 0x2d4   : > { %1233 = vadd.xlane.f32.xlu1 %v1170_v18  ;;  %v871_v1 = vpop.xlane.xlu0 %870  ;;  %v3962_v12 = vsel %vm8702_vm10, %v3961_v23, %v3957_v46  ;;  %v1854_v18 = vand.u32 2147483647, %v7817_v57 }
 0x2d5   : > { %v873_v19 = vpop.xlane.xlu1 %872  ;;  %v3582_v3 = vrot.slane %v871_v1, %v7903_v44 }
 0x2d6   : > { %v3587_v56 = vrot.slane %v873_v19, %v7899_v25 }
 0x2d7   : > { %v3583_v8 = vsel %vm8700_vm11, %v3582_v3, %v3578_v30  ;;  %2302 = vadd.xlane.f32.xlu0 %v2240_v62  ;;  %v2924_v62 = vand.u32 2147483647, %v2765_v26  ;;  %v8051_v3 = vpop.f32.mrf.mxu1 }
 0x2d8   : > { %2304 = vadd.xlane.f32.xlu1 %v2241_v29  ;;  %v1585_v55 = vpop.xlane.xlu0 %1584  ;;  %v3588_v43 = vsel %vm3504_vm12, %v3587_v56, %v3583_v8  ;;  %v2925_v29 = vand.u32 2147483647, %v6124_v15  ;;  %v6127_v56 = vpop.f32.mrf.mxu0  ;;  %v1855_v15 = vand.u32 2147483647, %v7851_v51 }
 0x2d9   : > { %v1587_v59 = vpop.xlane.xlu1 %1586  ;;  %v3966_v23 = vrot.slane %v1585_v55, %v7903_v44  ;;  %v8061_v26 = vpop.f32.mrf.mxu1 }
 0x2da   : > { %v3971_v40 = vrot.slane %v1587_v59, %v7899_v25 }
 0x2db   : > { %v3967_v46 = vsel %vm8700_vm11, %v3966_v23, %v3962_v12  ;;  %1885 = vadd.xlane.f32.xlu0 %v1853_v42  ;;  %v2775_v23 = vpop.f32.mrf.mxu0 }
 0x2dc   : > { %1887 = vadd.xlane.f32.xlu1 %v1854_v18  ;;  %v875_v19 = vpop.xlane.xlu0 %874  ;;  %v3972_v1 = vsel %vm3504_vm12, %v3971_v40, %v3967_v46  ;;  %v1856_v18 = vand.u32 2147483647, %v7843_v27  ;;  %v2926_v27 = vand.u32 2147483647, %v2775_v23 }
 0x2dd   : > { %v877_v30 = vpop.xlane.xlu1 %876  ;;  %v3592_v10 = vrot.slane %v875_v19, %v7925_v50 }
 0x2de   : > { %v3597_v57 = vrot.slane %v877_v30, %v7921_v54 }
 0x2df   : > { %v3593_v8 = vsel %vm3511_vm13, %v3592_v10, %v3588_v43  ;;  %2956 = vadd.xlane.f32.xlu0 %v2924_v62  ;;  %v8069_v10 = vpop.f32.mrf.mxu1 }
 0x2e0   : > { %2958 = vadd.xlane.f32.xlu1 %v2925_v29  ;;  %v8055_v12 = vsel %vm3518_vm14, %v3597_v57, %v3593_v8  ;;  %v1589_v55 = vpop.xlane.xlu0 %1588  ;;  %v2927_v29 = vand.u32 2147483647, %v6127_v56  ;;  %v6130_v57 = vpop.f32.mrf.mxu0 }
 0x2e1   : > { %v1591_v59 = vpop.xlane.xlu1 %1590  ;;  %v3976_v40 = vrot.slane %v1589_v55, %v7925_v50  ;;  %v1858_v55 = vand.u32 2147483647, %v7865_v0 }
 0x2e2   : > { %v3981_v42 = vrot.slane %v1591_v59, %v7921_v54 }
 0x2e3   : > { %v3977_v43 = vsel %vm3511_vm13, %v3976_v40, %v3972_v1  ;;  %1889 = vadd.xlane.f32.xlu0 %v1855_v15  ;;  %v8076_v40 = vpop.f32.mrf.mxu1 }
 0x2e4   : > { %1891 = vadd.xlane.f32.xlu1 %v1856_v18  ;;  %v8065_v46 = vsel %vm3518_vm14, %v3981_v42, %v3977_v43  ;;  %v1172_v19 = vpop.xlane.xlu0 %1171  ;;  %v1857_v18 = vand.u32 2147483647, %v7873_v9  ;;  %v2785_v42 = vpop.f32.mrf.mxu0 }
 0x2e5   : > { %v1174_v30 = vpop.xlane.xlu1 %1173  ;;  %v3636_v62 = vrot.slane %v1172_v19, %v7781_v13  ;;  %v2929_v19 = vand.u32 2147483647, %v6130_v57  ;;  %v1859_v57 = vand.u32 2147483647, %v7895_v28 }
 0x2e6   : > { %v3640_v51 = vrot.slane %v1174_v30, %v7777_v39  ;;  %v6133_v9 = vpop.f32.mrf.mxu0 }
 0x2e7   : > { %2960 = vadd.xlane.f32.xlu0 %v2926_v27 }
 0x2e8   : > { %v3641_v8 = vsel %vm3420_vm0, %v3640_v51, %v3636_v62  ;;  %2962 = vadd.xlane.f32.xlu1 %v2927_v29  ;;  %v2243_v59 = vpop.xlane.xlu0 %2242  ;;  %v2928_v29 = vand.u32 2147483647, %v2785_v42  ;;  %v8081_v51 = vpop.f32.mrf.mxu1 }
 0x2e9   : > { %v2245_v1 = vpop.xlane.xlu1 %2244  ;;  %v4212_v15 = vrot.slane %v2243_v59, %v7781_v13  ;;  %v2795_v42 = vpop.f32.mrf.mxu0 }
 0x2ea   : > { %v4216_v56 = vrot.slane %v2245_v1, %v7777_v39 }
 0x2eb   : > { %1893 = vadd.xlane.f32.xlu0 %v1857_v18  ;;  %v1860_v18 = vand.u32 2147483647, %v7887_v24 }
 0x2ec   : > { %v4217_v23 = vsel %vm3420_vm0, %v4216_v56, %v4212_v15  ;;  %1895 = vadd.xlane.f32.xlu1 %v1858_v55  ;;  %v1176_v30 = vpop.xlane.xlu0 %1175 }
 0x2ed   : > { %v1178_v43 = vpop.xlane.xlu1 %1177  ;;  %v3645_v0 = vrot.slane %v1176_v30, %v7795_v2 }
 0x2ee   : > { %v3650_v27 = vrot.slane %v1178_v43, %v7804_v17  ;;  %v8089_v43 = vpop.f32.mrf.mxu1 }
 0x2ef   : > { %v3646_v62 = vsel %vm3427_vm1, %v3645_v0, %v3641_v8  ;;  %2964 = vadd.xlane.f32.xlu0 %v2928_v29  ;;  %v2930_v0 = vand.u32 2147483647, %v2795_v42 }
 0x2f0   : > { %2966 = vadd.xlane.f32.xlu1 %v2929_v19  ;;  %v2247_v59 = vpop.xlane.xlu0 %2246  ;;  %v3651_v55 = vsel %vm3434_vm2, %v3650_v27, %v3646_v62  ;;  %v2931_v27 = vand.u32 2147483647, %v6133_v9  ;;  %v6136_v62 = vpop.f32.mrf.mxu0  ;;  %v1861_v9 = vand.u32 2147483647, %v7917_v21 }
 0x2f1   : > { %v2249_v1 = vpop.xlane.xlu1 %2248  ;;  %v4221_v15 = vrot.slane %v2247_v59, %v7795_v2 }
 0x2f2   : > { %v4226_v56 = vrot.slane %v2249_v1, %v7804_v17  ;;  %v8095_v1 = vpop.f32.mrf.mxu1 }
 0x2f3   : > { %v4222_v30 = vsel %vm3427_vm1, %v4221_v15, %v4217_v23  ;;  %1897 = vadd.xlane.f32.xlu0 %v1859_v57  ;;  %v1862_v15 = vand.u32 2147483647, %v7909_v58 }
 0x2f4   : > { %1899 = vadd.xlane.f32.xlu1 %v1860_v18  ;;  %v1180_v19 = vpop.xlane.xlu0 %1179  ;;  %v4227_v29 = vsel %vm3434_vm2, %v4226_v56, %v4222_v30  ;;  %v2805_v30 = vpop.f32.mrf.mxu0 }
 0x2f5   : > { %v1182_v8 = vpop.xlane.xlu1 %1181  ;;  %v3655_v28 = vrot.slane %v1180_v19, %v7811_v52 }
 0x2f6   : > { %v3660_v24 = vrot.slane %v1182_v8, %v7808_v32  ;;  %v8103_v8 = vpop.f32.mrf.mxu1 }
 0x2f7   : > { %v3656_v59 = vsel %vm3441_vm3, %v3655_v28, %v3651_v55  ;;  %2968 = vadd.xlane.f32.xlu0 %v2930_v0  ;;  %v2932_v28 = vand.u32 2147483647, %v2805_v30 }
 0x2f8   : > { %2970 = vadd.xlane.f32.xlu1 %v2931_v27  ;;  %v2251_v18 = vpop.xlane.xlu0 %2250  ;;  %v3661_v57 = vsel %vm3448_vm4, %v3660_v24, %v3656_v59  ;;  %v2933_v24 = vand.u32 2147483647, %v6136_v62  ;;  %v6139_v59 = vpop.f32.mrf.mxu0  ;;  %v1863_v62 = vand.u32 2147483647, %v7937_v22 }
 0x2f9   : > { %v2253_v23 = vpop.xlane.xlu1 %2252  ;;  %v4231_v42 = vrot.slane %v2251_v18, %v7811_v52 }
 0x2fa   : > { %v4236_v56 = vrot.slane %v2253_v23, %v7808_v32  ;;  %v8109_v23 = vpop.f32.mrf.mxu1 }
 0x2fb   : > { %v4232_v19 = vsel %vm3441_vm3, %v4231_v42, %v4227_v29  ;;  %1901 = vadd.xlane.f32.xlu0 %v1861_v9  ;;  %v1864_v42 = vand.u32 2147483647, %v7931_v36 }
 0x2fc   : > { %1903 = vadd.xlane.f32.xlu1 %v1862_v15  ;;  %v1184_v27 = vpop.xlane.xlu0 %1183  ;;  %v4237_v0 = vsel %vm3448_vm4, %v4236_v56, %v4232_v19  ;;  %v2815_v19 = vpop.f32.mrf.mxu0 }
 0x2fd   : > { %v1186_v55 = vpop.xlane.xlu1 %1185  ;;  %v3665_v21 = vrot.slane %v1184_v27, %v7837_v7 }
 0x2fe   : > { %v3670_v58 = vrot.slane %v1186_v55, %v7833_v4  ;;  %v8117_v55 = vpop.f32.mrf.mxu1 }
 0x2ff   : > { %v3666_v18 = vsel %vm3455_vm5, %v3665_v21, %v3661_v57  ;;  %2972 = vadd.xlane.f32.xlu0 %v2932_v28  ;;  %v2934_v21 = vand.u32 2147483647, %v2815_v19 }
 0x300   : > { %2974 = vadd.xlane.f32.xlu1 %v2933_v24  ;;  %v2255_v15 = vpop.xlane.xlu0 %2254  ;;  %v3671_v9 = vsel %vm8703_vm6, %v3670_v58, %v3666_v18  ;;  %v2935_v58 = vand.u32 2147483647, %v6139_v59  ;;  %v6142_v18 = vpop.f32.mrf.mxu0  ;;  %v1865_v59 = vand.u32 2147483647, %v7955_v35 }
 0x301   : > { %v2257_v29 = vpop.xlane.xlu1 %2256  ;;  %v4241_v30 = vrot.slane %v2255_v15, %v7837_v7 }
 0x302   : > { %v4246_v56 = vrot.slane %v2257_v29, %v7833_v4  ;;  %v8123_v29 = vpop.f32.mrf.mxu1 }
 0x303   : > { %v4242_v27 = vsel %vm3455_vm5, %v4241_v30, %v4237_v0  ;;  %1905 = vadd.xlane.f32.xlu0 %v1863_v62  ;;  %v1866_v30 = vand.u32 2147483647, %v7947_v6 }
 0x304   : > { %1907 = vadd.xlane.f32.xlu1 %v1864_v42  ;;  %v1188_v24 = vpop.xlane.xlu0 %1187  ;;  %v4247_v28 = vsel %vm8703_vm6, %v4246_v56, %v4242_v27  ;;  %v2825_v27 = vpop.f32.mrf.mxu0 }
 0x305   : > { %v1190_v57 = vpop.xlane.xlu1 %1189  ;;  %v3675_v22 = vrot.slane %v1188_v24, %v7859_v60 }
 0x306   : > { %v3680_v36 = vrot.slane %v1190_v57, %v7855_v5  ;;  %v8131_v57 = vpop.f32.mrf.mxu1 }
 0x307   : > { %v3676_v15 = vsel %vm3469_vm7, %v3675_v22, %v3671_v9  ;;  %2976 = vadd.xlane.f32.xlu0 %v2934_v21  ;;  %v2936_v22 = vand.u32 2147483647, %v2825_v27 }
 0x308   : > { %2978 = vadd.xlane.f32.xlu1 %v2935_v58  ;;  %v2259_v42 = vpop.xlane.xlu0 %2258  ;;  %v3681_v62 = vsel %vm8701_vm8, %v3680_v36, %v3676_v15  ;;  %v2937_v36 = vand.u32 2147483647, %v6142_v18  ;;  %v6145_v15 = vpop.f32.mrf.mxu0  ;;  %v1867_v18 = vand.u32 2147483647, %v7967_v63 }
 0x309   : > { %v2261_v0 = vpop.xlane.xlu1 %2260  ;;  %v4251_v19 = vrot.slane %v2259_v42, %v7859_v60 }
 0x30a   : > { %v4256_v56 = vrot.slane %v2261_v0, %v7855_v5  ;;  %v8137_v0 = vpop.f32.mrf.mxu1 }
 0x30b   : > { %v4252_v24 = vsel %vm3469_vm7, %v4251_v19, %v4247_v28  ;;  %1909 = vadd.xlane.f32.xlu0 %v1865_v59  ;;  %v1868_v19 = vand.u32 2147483647, %v7962_v53 }
 0x30c   : > { %1911 = vadd.xlane.f32.xlu1 %v1866_v30  ;;  %v1192_v58 = vpop.xlane.xlu0 %1191  ;;  %v4257_v21 = vsel %vm8701_vm8, %v4256_v56, %v4252_v24  ;;  %v2835_v24 = vpop.f32.mrf.mxu0 }
 0x30d   : > { %v1194_v9 = vpop.xlane.xlu1 %1193  ;;  %v3685_v35 = vrot.slane %v1192_v58, %v7881_v61 }
 0x30e   : > { %v3690_v6 = vrot.slane %v1194_v9, %v7877_v48  ;;  %v8145_v9 = vpop.f32.mrf.mxu1 }
 0x30f   : > { %v3686_v42 = vsel %vm3483_vm9, %v3685_v35, %v3681_v62  ;;  %2980 = vadd.xlane.f32.xlu0 %v2936_v22  ;;  %v2938_v35 = vand.u32 2147483647, %v2835_v24 }
 0x310   : > { %2982 = vadd.xlane.f32.xlu1 %v2937_v36  ;;  %v2263_v30 = vpop.xlane.xlu0 %2262  ;;  %v3691_v59 = vsel %vm8702_vm10, %v3690_v6, %v3686_v42  ;;  %v2939_v6 = vand.u32 2147483647, %v6145_v15  ;;  %v6148_v42 = vpop.f32.mrf.mxu0  ;;  %v1869_v15 = vand.u32 2147483647, %v7981_v33 }
 0x311   : > { %v2265_v28 = vpop.xlane.xlu1 %2264  ;;  %v4261_v27 = vrot.slane %v2263_v30, %v7881_v61 }
 0x312   : > { %v4266_v56 = vrot.slane %v2265_v28, %v7877_v48  ;;  %v8151_v28 = vpop.f32.mrf.mxu1 }
 0x313   : > { %v4262_v58 = vsel %vm3483_vm9, %v4261_v27, %v4257_v21  ;;  %1913 = vadd.xlane.f32.xlu0 %v1867_v18  ;;  %v1870_v27 = vand.u32 2147483647, %v7975_v20 }
 0x314   : > { %1915 = vadd.xlane.f32.xlu1 %v1868_v19  ;;  %v1196_v36 = vpop.xlane.xlu0 %1195  ;;  %v4267_v22 = vsel %vm8702_vm10, %v4266_v56, %v4262_v58  ;;  %v2845_v58 = vpop.f32.mrf.mxu0 }
 0x315   : > { %v1198_v62 = vpop.xlane.xlu1 %1197  ;;  %v3695_v63 = vrot.slane %v1196_v36, %v7903_v44 }
 0x316   : > { %v3700_v53 = vrot.slane %v1198_v62, %v7899_v25  ;;  %v8159_v62 = vpop.f32.mrf.mxu1 }
 0x317   : > { %v3696_v30 = vsel %vm8700_vm11, %v3695_v63, %v3691_v59  ;;  %2984 = vadd.xlane.f32.xlu0 %v2938_v35  ;;  %v2940_v63 = vand.u32 2147483647, %v2845_v58 }
 0x318   : > { %2986 = vadd.xlane.f32.xlu1 %v2939_v6  ;;  %v2267_v19 = vpop.xlane.xlu0 %2266  ;;  %v3701_v18 = vsel %vm3504_vm12, %v3700_v53, %v3696_v30  ;;  %v2941_v53 = vand.u32 2147483647, %v6148_v42  ;;  %v6151_v30 = vpop.f32.mrf.mxu0 }
 0x319   : > { %v2269_v21 = vpop.xlane.xlu1 %2268  ;;  %v4271_v24 = vrot.slane %v2267_v19, %v7903_v44 }
 0x31a   : > { %v4276_v56 = vrot.slane %v2269_v21, %v7899_v25  ;;  %v8165_v21 = vpop.f32.mrf.mxu1 }
 0x31b   : > { %v4272_v36 = vsel %vm8700_vm11, %v4271_v24, %v4267_v22  ;;  %1917 = vadd.xlane.f32.xlu0 %v1869_v15  ;;  %vm4948_vm11 = vcmask 1041408   ;;  %v1872_v22 = vand.u32 2147483647, %v7989_v31 }
 0x31c   : > { %1919 = vadd.xlane.f32.xlu1 %v1870_v27  ;;  %v1200_v6 = vpop.xlane.xlu0 %1199  ;;  %v4277_v35 = vsel %vm3504_vm12, %v4276_v56, %v4272_v36  ;;  %v1871_v56 = vand.u32 2147483647, %v7995_v45 }
 0x31d   : > { %v1202_v59 = vpop.xlane.xlu1 %1201  ;;  %v3705_v33 = vrot.slane %v1200_v6, %v7925_v50 }
 0x31e   : > { %v3710_v20 = vrot.slane %v1202_v59, %v7921_v54  ;;  %v2855_v59 = vpop.f32.mrf.mxu0 }
 0x31f   : > { %v3706_v19 = vsel %vm3511_vm13, %v3705_v33, %v3701_v18  ;;  %2988 = vadd.xlane.f32.xlu0 %v2940_v63  ;;  %v8175_v18 = vpop.f32.mrf.mxu1  ;;  %v2943_v63 = vand.u32 2147483647, %v6151_v30 }
 0x320   : > { %2990 = vadd.xlane.f32.xlu1 %v2941_v53  ;;  %v3711_v27 = vsel %vm3518_vm14, %v3710_v20, %v3706_v19  ;;  %v2271_v42 = vpop.xlane.xlu0 %2270  ;;  %v2942_v20 = vand.u32 2147483647, %v2855_v59 }
 0x321   : > { %v2273_v15 = vpop.xlane.xlu1 %2272  ;;  %v4946_v24 = vsel %vm4945_vm15, %v7941_v41, %v3711_v27  ;;  %v4281_v36 = vrot.slane %v2271_v42, %v7925_v50  ;;  %v6154_v27 = vpop.f32.mrf.mxu0  ;;  %v1874_v42 = vand.u32 2147483647, %v8003_v14 }
 0x322   : > { %v4286_v58 = vrot.slane %v2273_v15, %v7921_v54  ;;  %v8179_v6 = vsel %vm4948_vm11, %v4946_v24, %v7951_v11  ;;  %v8187_v15 = vpop.f32.mrf.mxu1 }
 0x323   : > { %v4282_v31 = vsel %vm3511_vm13, %v4281_v36, %v4277_v35  ;;  %1921 = vadd.xlane.f32.xlu0 %v1871_v56  ;;  %v1873_v56 = vand.u32 2147483647, %v8009_v49 }
 0x324   : > { %1923 = vadd.xlane.f32.xlu1 %v1872_v22  ;;  %v8183_v45 = vsel %vm3518_vm14, %v4286_v58, %v4282_v31  ;;  %v1204_v41 = vpop.xlane.xlu0 %1203  ;;  %v2865_v58 = vpop.f32.mrf.mxu0 }
 0x325   : > { %v1206_v53 = vpop.xlane.xlu1 %1205  ;;  %v3715_v19 = vrot.slane %v1204_v41, %v7781_v13  ;;  %v8194_v36 = vpop.f32.mrf.mxu1  ;;  %v2945_v41 = vand.u32 2147483647, %v6154_v27  ;;  %v1875_v27 = vand.u32 2147483647, %v8023_v16 }
 0x326   : > { %v3719_v33 = vrot.slane %v1206_v53, %v7777_v39  ;;  %v6157_v49 = vpop.f32.mrf.mxu0 }
 0x327   : > { %2992 = vadd.xlane.f32.xlu0 %v2942_v20 }
 0x328   : > { %v3720_v11 = vsel %vm3420_vm0, %v3719_v33, %v3715_v19  ;;  %2994 = vadd.xlane.f32.xlu1 %v2943_v63  ;;  %v2275_v22 = vpop.xlane.xlu0 %2274  ;;  %v2944_v63 = vand.u32 2147483647, %v2865_v58  ;;  %v8199_v33 = vpop.f32.mrf.mxu1 }
 0x329   : > { %v2277_v35 = vpop.xlane.xlu1 %2276  ;;  %v4291_v24 = vrot.slane %v2275_v22, %v7781_v13  ;;  %v2875_v58 = vpop.f32.mrf.mxu0 }
 0x32a   : > { %v4295_v30 = vrot.slane %v2277_v35, %v7777_v39 }
 0x32b   : > { %1925 = vadd.xlane.f32.xlu0 %v1873_v56  ;;  %v1876_v56 = vand.u32 2147483647, %v8017_v34 }
 0x32c   : > { %v4296_v59 = vsel %vm3420_vm0, %v4295_v30, %v4291_v24  ;;  %1927 = vadd.xlane.f32.xlu1 %v1874_v42  ;;  %v1208_v53 = vpop.xlane.xlu0 %1207 }
 0x32d   : > { %v1210_v31 = vpop.xlane.xlu1 %1209  ;;  %v3724_v14 = vrot.slane %v1208_v53, %v7795_v2 }
 0x32e   : > { %v3729_v20 = vrot.slane %v1210_v31, %v7804_v17  ;;  %v8207_v31 = vpop.f32.mrf.mxu1 }
 0x32f   : > { %v3725_v19 = vsel %vm3427_vm1, %v3724_v14, %v3720_v11  ;;  %2996 = vadd.xlane.f32.xlu0 %v2944_v63  ;;  %v2946_v14 = vand.u32 2147483647, %v2875_v58 }
 0x330   : > { %2998 = vadd.xlane.f32.xlu1 %v2945_v41  ;;  %v2279_v22 = vpop.xlane.xlu0 %2278  ;;  %v3730_v42 = vsel %vm3434_vm2, %v3729_v20, %v3725_v19  ;;  %v2947_v20 = vand.u32 2147483647, %v6157_v49  ;;  %v6160_v19 = vpop.f32.mrf.mxu0  ;;  %v1877_v49 = vand.u32 2147483647, %v8037_v38 }
 0x331   : > { %v2281_v35 = vpop.xlane.xlu1 %2280  ;;  %v4300_v24 = vrot.slane %v2279_v22, %v7795_v2 }
 0x332   : > { %v4305_v30 = vrot.slane %v2281_v35, %v7804_v17  ;;  %v8213_v35 = vpop.f32.mrf.mxu1 }
 0x333   : > { %v4301_v53 = vsel %vm3427_vm1, %v4300_v24, %v4296_v59  ;;  %1929 = vadd.xlane.f32.xlu0 %v1875_v27  ;;  %v1878_v24 = vand.u32 2147483647, %v8031_v37 }
 0x334   : > { %1931 = vadd.xlane.f32.xlu1 %v1876_v56  ;;  %v1212_v41 = vpop.xlane.xlu0 %1211  ;;  %v4306_v63 = vsel %vm3434_vm2, %v4305_v30, %v4301_v53  ;;  %v2885_v53 = vpop.f32.mrf.mxu0 }
 0x335   : > { %v1214_v11 = vpop.xlane.xlu1 %1213  ;;  %v3734_v16 = vrot.slane %v1212_v41, %v7811_v52 }
 0x336   : > { %v3739_v34 = vrot.slane %v1214_v11, %v7808_v32  ;;  %v8221_v11 = vpop.f32.mrf.mxu1 }
 0x337   : > { %v3735_v22 = vsel %vm3441_vm3, %v3734_v16, %v3730_v42  ;;  %3000 = vadd.xlane.f32.xlu0 %v2946_v14  ;;  %v2948_v16 = vand.u32 2147483647, %v2885_v53 }
 0x338   : > { %3002 = vadd.xlane.f32.xlu1 %v2947_v20  ;;  %v2283_v56 = vpop.xlane.xlu0 %2282  ;;  %v3740_v27 = vsel %vm3448_vm4, %v3739_v34, %v3735_v22  ;;  %v2949_v34 = vand.u32 2147483647, %v6160_v19  ;;  %v6163_v22 = vpop.f32.mrf.mxu0  ;;  %v1879_v19 = vand.u32 2147483647, %v8051_v3 }
 0x339   : > { %v2285_v59 = vpop.xlane.xlu1 %2284  ;;  %v4310_v58 = vrot.slane %v2283_v56, %v7811_v52 }
 0x33a   : > { %v4315_v30 = vrot.slane %v2285_v59, %v7808_v32  ;;  %v8227_v59 = vpop.f32.mrf.mxu1 }
 0x33b   : > { %v4311_v41 = vsel %vm3441_vm3, %v4310_v58, %v4306_v63  ;;  %1933 = vadd.xlane.f32.xlu0 %v1877_v49  ;;  %v1880_v58 = vand.u32 2147483647, %v8045_v47 }
 0x33c   : > { %1935 = vadd.xlane.f32.xlu1 %v1878_v24  ;;  %v1216_v20 = vpop.xlane.xlu0 %1215  ;;  %v4316_v14 = vsel %vm3448_vm4, %v4315_v30, %v4311_v41  ;;  %v2895_v41 = vpop.f32.mrf.mxu0 }
 0x33d   : > { %v1218_v42 = vpop.xlane.xlu1 %1217  ;;  %v3744_v38 = vrot.slane %v1216_v20, %v7837_v7 }
 0x33e   : > { %v3749_v37 = vrot.slane %v1218_v42, %v7833_v4  ;;  %v8235_v42 = vpop.f32.mrf.mxu1 }
 0x33f   : > { %v3745_v56 = vsel %vm3455_vm5, %v3744_v38, %v3740_v27  ;;  %3004 = vadd.xlane.f32.xlu0 %v2948_v16  ;;  %v2950_v38 = vand.u32 2147483647, %v2895_v41 }
 0x340   : > { %3006 = vadd.xlane.f32.xlu1 %v2949_v34  ;;  %v2287_v24 = vpop.xlane.xlu0 %2286  ;;  %v3750_v49 = vsel %vm8703_vm6, %v3749_v37, %v3745_v56  ;;  %v2951_v37 = vand.u32 2147483647, %v6163_v22  ;;  %v6166_v56 = vpop.f32.mrf.mxu0  ;;  %v1881_v22 = vand.u32 2147483647, %v8069_v10 }
 0x341   : > { %v2289_v63 = vpop.xlane.xlu1 %2288  ;;  %v4320_v53 = vrot.slane %v2287_v24, %v7837_v7 }
 0x342   : > { %v4325_v30 = vrot.slane %v2289_v63, %v7833_v4  ;;  %v8241_v63 = vpop.f32.mrf.mxu1 }
 0x343   : > { %v4321_v20 = vsel %vm3455_vm5, %v4320_v53, %v4316_v14  ;;  %1937 = vadd.xlane.f32.xlu0 %v1879_v19  ;;  %v1882_v53 = vand.u32 2147483647, %v8061_v26 }
 0x344   : > { %1939 = vadd.xlane.f32.xlu1 %v1880_v58  ;;  %v1220_v34 = vpop.xlane.xlu0 %1219  ;;  %v4326_v16 = vsel %vm8703_vm6, %v4325_v30, %v4321_v20  ;;  %v2905_v20 = vpop.f32.mrf.mxu0 }
 0x345   : > { %v1222_v27 = vpop.xlane.xlu1 %1221  ;;  %v3754_v3 = vrot.slane %v1220_v34, %v7859_v60 }
 0x346   : > { %v3759_v47 = vrot.slane %v1222_v27, %v7855_v5  ;;  %v8249_v27 = vpop.f32.mrf.mxu1 }
 0x347   : > { %v3755_v24 = vsel %vm3469_vm7, %v3754_v3, %v3750_v49  ;;  %3008 = vadd.xlane.f32.xlu0 %v2950_v38  ;;  %v2952_v3 = vand.u32 2147483647, %v2905_v20 }
 0x348   : > { %3010 = vadd.xlane.f32.xlu1 %v2951_v37  ;;  %v2291_v58 = vpop.xlane.xlu0 %2290  ;;  %v3760_v19 = vsel %vm8701_vm8, %v3759_v47, %v3755_v24  ;;  %v2953_v47 = vand.u32 2147483647, %v6166_v56  ;;  %v6169_v24 = vpop.f32.mrf.mxu0  ;;  %v1883_v56 = vand.u32 2147483647, %v8081_v51 }
 0x349   : > { %v2293_v14 = vpop.xlane.xlu1 %2292  ;;  %v4330_v41 = vrot.slane %v2291_v58, %v7859_v60 }
 0x34a   : > { %v4335_v30 = vrot.slane %v2293_v14, %v7855_v5  ;;  %v8255_v14 = vpop.f32.mrf.mxu1 }
 0x34b   : > { %v4331_v34 = vsel %vm3469_vm7, %v4330_v41, %v4326_v16  ;;  %1941 = vadd.xlane.f32.xlu0 %v1881_v22  ;;  %v1884_v41 = vand.u32 2147483647, %v8076_v40 }
 0x34c   : > { %1943 = vadd.xlane.f32.xlu1 %v1882_v53  ;;  %v1224_v37 = vpop.xlane.xlu0 %1223  ;;  %v4336_v38 = vsel %vm8701_vm8, %v4335_v30, %v4331_v34  ;;  %v2915_v34 = vpop.f32.mrf.mxu0  ;;  %vm8809_vm8 = vcmask 851712  }
 0x34d   : > { %v1226_v49 = vpop.xlane.xlu1 %1225  ;;  %v3764_v10 = vrot.slane %v1224_v37, %v7881_v61 }
 0x34e   : > { %v3769_v26 = vrot.slane %v1226_v49, %v7877_v48  ;;  %v8263_v49 = vpop.f32.mrf.mxu1 }
 0x34f   : > { %v3765_v58 = vsel %vm3483_vm9, %v3764_v10, %v3760_v19  ;;  %3012 = vadd.xlane.f32.xlu0 %v2952_v3  ;;  %v2954_v10 = vand.u32 2147483647, %v2915_v34 }
 0x350   : > { %3014 = vadd.xlane.f32.xlu1 %v2953_v47  ;;  %v2295_v53 = vpop.xlane.xlu0 %2294  ;;  %v3770_v22 = vsel %vm8702_vm10, %v3769_v26, %v3765_v58  ;;  %v2955_v26 = vand.u32 2147483647, %v6169_v24  ;;  %v6204_v58 = vpop.f32.mrf.mxu0 }
 0x351   : > { %v2297_v16 = vpop.xlane.xlu1 %2296  ;;  %v4340_v20 = vrot.slane %v2295_v53, %v7881_v61 }
 0x352   : > { %v4345_v30 = vrot.slane %v2297_v16, %v7877_v48  ;;  %v8269_v16 = vpop.f32.mrf.mxu1 }
 0x353   : > { %v4341_v37 = vsel %vm3483_vm9, %v4340_v20, %v4336_v38  ;;  %1945 = vadd.xlane.f32.xlu0 %v1883_v56  ;;  %v2568_v20 = vand.u32 2147483647, %v8089_v43 }
 0x354   : > { %1947 = vadd.xlane.f32.xlu1 %v1884_v41  ;;  %v1228_v47 = vpop.xlane.xlu0 %1227  ;;  %v4346_v3 = vsel %vm8702_vm10, %v4345_v30, %v4341_v37  ;;  %v3282_v30 = vand.u32 2147483647, %v6204_v58  ;;  %v3122_v37 = vpop.f32.mrf.mxu0  ;;  %vm8810_vm10 = vmmov %vm8809_vm8 }
 0x355   : > { %v1230_v19 = vpop.xlane.xlu1 %1229  ;;  %v3774_v51 = vrot.slane %v1228_v47, %v7903_v44 }
 0x356   : > { %v3779_v40 = vrot.slane %v1230_v19, %v7899_v25  ;;  %v8276_v19 = vpop.f32.mrf.mxu1 }
 0x357   : > { %v3775_v53 = vsel %vm8809_vm8, %v3774_v51, %v3770_v22  ;;  %3016 = vadd.xlane.f32.xlu0 %v2954_v10  ;;  %v3281_v51 = vand.u32 2147483647, %v3122_v37  ;;  %vm8811_vm8 = vcmask 654912  }
 0x358   : > { %3018 = vadd.xlane.f32.xlu1 %v2955_v26  ;;  %v2299_v41 = vpop.xlane.xlu0 %2298  ;;  %v3780_v56 = vsel %vm3504_vm12, %v3779_v40, %v3775_v53  ;;  %v2567_v40 = vand.u32 2147483647, %v8095_v1  ;;  %v6207_v53 = vpop.f32.mrf.mxu0  ;;  %v2569_v1 = vand.u32 2147483647, %v8109_v23 }
 0x359   : > { %v2301_v38 = vpop.xlane.xlu1 %2300  ;;  %v4350_v34 = vrot.slane %v2299_v41, %v7903_v44 }
 0x35a   : > { %v4355_v24 = vrot.slane %v2301_v38, %v7899_v25  ;;  %v8283_v38 = vpop.f32.mrf.mxu1 }
 0x35b   : > { %v4351_v47 = vsel %vm8810_vm10, %v4350_v34, %v4346_v3  ;;  %3315 = vadd.xlane.f32.xlu0 %v3282_v30  ;;  %v2570_v3 = vand.u32 2147483647, %v8103_v8  ;;  %vm8812_vm10 = vmmov %vm8811_vm8 }
 0x35c   : > { %2601 = vadd.xlane.f32.xlu1 %v2568_v20  ;;  %v1232_v26 = vpop.xlane.xlu0 %1231  ;;  %v4356_v10 = vsel %vm3504_vm12, %v4355_v24, %v4351_v47 }
 0x35d   : > { %v1234_v22 = vpop.xlane.xlu1 %1233  ;;  %v3784_v58 = vrot.slane %v1232_v26, %v7925_v50  ;;  %v8293_v26 = vpop.f32.mrf.mxu1 }
 0x35e   : > { %v3789_v43 = vrot.slane %v1234_v22, %v7921_v54  ;;  %v3132_v22 = vpop.f32.mrf.mxu0 }
 0x35f   : > { %v3785_v41 = vsel %vm3511_vm13, %v3784_v58, %v3780_v56  ;;  %2599 = vadd.xlane.f32.xlu0 %v2567_v40 }
 0x360   : > { %3313 = vadd.xlane.f32.xlu1 %v3281_v51  ;;  %v3790_v20 = vsel %vm3518_vm14, %v3789_v43, %v3785_v41  ;;  %v2303_v24 = vpop.xlane.xlu0 %2302  ;;  %v3284_v51 = vand.u32 2147483647, %v6207_v53  ;;  %v3283_v43 = vand.u32 2147483647, %v3132_v22 }
 0x361   : > { %v2305_v30 = vpop.xlane.xlu1 %2304  ;;  %v4947_v34 = vsel %vm4945_vm15, %v8055_v12, %v3790_v20  ;;  %v4360_v47 = vrot.slane %v2303_v24, %v7925_v50  ;;  %v6210_v20 = vpop.f32.mrf.mxu0  ;;  %v2572_v24 = vand.u32 2147483647, %v8117_v55 }
 0x362   : > { %v4365_v37 = vrot.slane %v2305_v30, %v7921_v54  ;;  %v8297_v56 = vsel %vm4948_vm11, %v4947_v34, %v8065_v46  ;;  %v8305_v30 = vpop.f32.mrf.mxu1  ;;  %vm8813_vm11 = vcmask 786112  }
 0x363   : > { %v4361_v8 = vsel %vm3511_vm13, %v4360_v47, %v4356_v10  ;;  %2603 = vadd.xlane.f32.xlu0 %v2569_v1  ;;  %v2571_v1 = vand.u32 2147483647, %v8123_v29  ;;  %vm8814_vm15 = vmmov %vm8813_vm11 }
 0x364   : > { %2605 = vadd.xlane.f32.xlu1 %v2570_v3  ;;  %v8301_v23 = vsel %vm3518_vm14, %v4365_v37, %v4361_v8  ;;  %v1886_v12 = vpop.xlane.xlu0 %1885  ;;  %v3142_v37 = vpop.f32.mrf.mxu0 }
 0x365   : > { %v1888_v40 = vpop.xlane.xlu1 %1887  ;;  %v4020_v41 = vrot.slane %v1886_v12, %v7781_v13  ;;  %v8312_v47 = vpop.f32.mrf.mxu1  ;;  %v3286_v12 = vand.u32 2147483647, %v6210_v20  ;;  %v2573_v20 = vand.u32 2147483647, %v8137_v0 }
 0x366   : > { %v4024_v58 = vrot.slane %v1888_v40, %v7777_v39  ;;  %v6213_v29 = vpop.f32.mrf.mxu0 }
 0x367   : > { %3317 = vadd.xlane.f32.xlu0 %v3283_v43 }
 0x368   : > { %v4025_v46 = vsel %vm3420_vm0, %v4024_v58, %v4020_v41  ;;  %3319 = vadd.xlane.f32.xlu1 %v3284_v51  ;;  %v2957_v3 = vpop.xlane.xlu0 %2956  ;;  %v3285_v51 = vand.u32 2147483647, %v3142_v37  ;;  %v8317_v58 = vpop.f32.mrf.mxu1 }
 0x369   : > { %v2959_v10 = vpop.xlane.xlu1 %2958  ;;  %v4596_v34 = vrot.slane %v2957_v3, %v7781_v13  ;;  %v3152_v37 = vpop.f32.mrf.mxu0 }
 0x36a   : > { %v4600_v53 = vrot.slane %v2959_v10, %v7777_v39 }
 0x36b   : > { %2607 = vadd.xlane.f32.xlu0 %v2571_v1  ;;  %v2574_v1 = vand.u32 2147483647, %v8131_v57 }
 0x36c   : > { %v4601_v22 = vsel %vm3420_vm0, %v4600_v53, %v4596_v34  ;;  %2609 = vadd.xlane.f32.xlu1 %v2572_v24  ;;  %v1890_v40 = vpop.xlane.xlu0 %1889 }
 0x36d   : > { %v1892_v8 = vpop.xlane.xlu1 %1891  ;;  %v4029_v55 = vrot.slane %v1890_v40, %v7795_v2 }
 0x36e   : > { %v4034_v43 = vrot.slane %v1892_v8, %v7804_v17  ;;  %v8325_v8 = vpop.f32.mrf.mxu1 }
 0x36f   : > { %v4030_v41 = vsel %vm3427_vm1, %v4029_v55, %v4025_v46  ;;  %3321 = vadd.xlane.f32.xlu0 %v3285_v51  ;;  %v3287_v55 = vand.u32 2147483647, %v3152_v37 }
 0x370   : > { %3323 = vadd.xlane.f32.xlu1 %v3286_v12  ;;  %v2961_v3 = vpop.xlane.xlu0 %2960  ;;  %v4035_v24 = vsel %vm3434_vm2, %v4034_v43, %v4030_v41  ;;  %v3288_v43 = vand.u32 2147483647, %v6213_v29  ;;  %v8331_v41 = vpop.f32.mrf.mxu1 }
 0x371   : > { %v2963_v10 = vpop.xlane.xlu1 %2962  ;;  %v4605_v34 = vrot.slane %v2961_v3, %v7795_v2 }
 0x372   : > { %v4610_v53 = vrot.slane %v2963_v10, %v7804_v17  ;;  %v8339_v37 = vpop.f32.mrf.mxu1 }
 0x373   : > { %v4606_v40 = vsel %vm3427_vm1, %v4605_v34, %v4601_v22  ;;  %2611 = vadd.xlane.f32.xlu0 %v2573_v20  ;;  %v2576_v20 = vand.u32 2147483647, %v8145_v9  ;;  %v2577_v9 = vand.u32 2147483647, %v8165_v21 }
 0x374   : > { %2613 = vadd.xlane.f32.xlu1 %v2574_v1  ;;  %v1894_v12 = vpop.xlane.xlu0 %1893  ;;  %v4611_v51 = vsel %vm3434_vm2, %v4610_v53, %v4606_v40  ;;  %v2575_v53 = vand.u32 2147483647, %v8151_v28 }
 0x375   : > { %v1896_v46 = vpop.xlane.xlu1 %1895  ;;  %v4039_v0 = vrot.slane %v1894_v12, %v7811_v52 }
 0x376   : > { %v4044_v57 = vrot.slane %v1896_v46, %v7808_v32 }
 0x377   : > { %v4040_v10 = vsel %vm3441_vm3, %v4039_v0, %v4035_v24  ;;  %3325 = vadd.xlane.f32.xlu0 %v3287_v55 }
 0x378   : > { %3327 = vadd.xlane.f32.xlu1 %v3288_v43  ;;  %v2965_v22 = vpop.xlane.xlu0 %2964  ;;  %v4045_v1 = vsel %vm3448_vm4, %v4044_v57, %v4040_v10  ;;  %v2578_v43 = vand.u32 2147483647, %v8159_v62  ;;  %v8347_v57 = vpop.f32.mrf.mxu1  ;;  %v2579_v62 = vand.u32 2147483647, %v8187_v15 }
 0x379   : > { %v2967_v3 = vpop.xlane.xlu1 %2966  ;;  %v4615_v34 = vrot.slane %v2965_v22, %v7811_v52  ;;  %v2580_v22 = vand.u32 2147483647, %v8175_v18  ;;  %v2581_v18 = vand.u32 2147483647, %v8199_v33 }
 0x37a   : > { %v4620_v29 = vrot.slane %v2967_v3, %v7808_v32 }
 0x37b   : > { %v4616_v40 = vsel %vm3441_vm3, %v4615_v34, %v4611_v51  ;;  %2615 = vadd.xlane.f32.xlu0 %v2575_v53  ;;  %v8355_v53 = vpop.f32.mrf.mxu1 }
 0x37c   : > { %2617 = vadd.xlane.f32.xlu1 %v2576_v20  ;;  %v1898_v46 = vpop.xlane.xlu0 %1897  ;;  %v4621_v12 = vsel %vm3448_vm4, %v4620_v29, %v4616_v40 }
 0x37d   : > { %v1900_v24 = vpop.xlane.xlu1 %1899  ;;  %v4049_v55 = vrot.slane %v1898_v46, %v7837_v7 }
 0x37e   : > { %v4054_v28 = vrot.slane %v1900_v24, %v7833_v4  ;;  %v2582_v24 = vand.u32 2147483647, %v8194_v36  ;;  %v2583_v36 = vand.u32 2147483647, %v8213_v35 }
 0x37f   : > { %v4050_v0 = vsel %vm3455_vm5, %v4049_v55, %v4045_v1  ;;  %2619 = vadd.xlane.f32.xlu0 %v2577_v9 }
 0x380   : > { %2621 = vadd.xlane.f32.xlu1 %v2578_v43  ;;  %v2969_v10 = vpop.xlane.xlu0 %2968  ;;  %v4055_v3 = vsel %vm8703_vm6, %v4054_v28, %v4050_v0  ;;  %v8363_v43 = vpop.f32.mrf.mxu1  ;;  %v2584_v0 = vand.u32 2147483647, %v8207_v31  ;;  %v2585_v31 = vand.u32 2147483647, %v8227_v59 }
 0x381   : > { %v2971_v51 = vpop.xlane.xlu1 %2970  ;;  %v4625_v20 = vrot.slane %v2969_v10, %v7837_v7 }
 0x382   : > { %v4630_v21 = vrot.slane %v2971_v51, %v7833_v4  ;;  %v8371_v10 = vpop.f32.mrf.mxu1 }
 0x383   : > { %v4626_v29 = vsel %vm3455_vm5, %v4625_v20, %v4621_v12  ;;  %2623 = vadd.xlane.f32.xlu0 %v2579_v62  ;;  %v2586_v20 = vand.u32 2147483647, %v8221_v11  ;;  %v2587_v11 = vand.u32 2147483647, %v8241_v63 }
 0x384   : > { %2625 = vadd.xlane.f32.xlu1 %v2580_v22  ;;  %v1902_v34 = vpop.xlane.xlu0 %1901  ;;  %v4631_v40 = vsel %vm8703_vm6, %v4630_v21, %v4626_v29 }
 0x385   : > { %v1904_v1 = vpop.xlane.xlu1 %1903  ;;  %v4059_v46 = vrot.slane %v1902_v34, %v7859_v60 }
 0x386   : > { %v4064_v15 = vrot.slane %v1904_v1, %v7855_v5  ;;  %v8379_v1 = vpop.f32.mrf.mxu1 }
 0x387   : > { %v4060_v9 = vsel %vm3469_vm7, %v4059_v46, %v4055_v3  ;;  %2627 = vadd.xlane.f32.xlu0 %v2581_v18 }
 0x388   : > { %2629 = vadd.xlane.f32.xlu1 %v2582_v24  ;;  %v2973_v28 = vpop.xlane.xlu0 %2972  ;;  %v4065_v55 = vsel %vm8811_vm8, %v4064_v15, %v4060_v9  ;;  %v2588_v15 = vand.u32 2147483647, %v8235_v42  ;;  %v8387_v9 = vpop.f32.mrf.mxu1  ;;  %v2589_v42 = vand.u32 2147483647, %v8255_v14  ;;  %vm8815_vm8 = vcmask 851712  }
 0x389   : > { %v2975_v12 = vpop.xlane.xlu1 %2974  ;;  %v4635_v51 = vrot.slane %v2973_v28, %v7859_v60 }
 0x38a   : > { %v4640_v33 = vrot.slane %v2975_v12, %v7855_v5 }
 0x38b   : > { %v4636_v22 = vsel %vm3469_vm7, %v4635_v51, %v4631_v40  ;;  %2631 = vadd.xlane.f32.xlu0 %v2583_v36  ;;  %v2590_v36 = vand.u32 2147483647, %v8249_v27  ;;  %v8395_v51 = vpop.f32.mrf.mxu1  ;;  %v2591_v27 = vand.u32 2147483647, %v8269_v16 }
 0x38c   : > { %2633 = vadd.xlane.f32.xlu1 %v2584_v0  ;;  %v1906_v62 = vpop.xlane.xlu0 %1905  ;;  %v4641_v21 = vsel %vm8812_vm10, %v4640_v33, %v4636_v22  ;;  %vm8816_vm10 = vmmov %vm8815_vm8 }
 0x38d   : > { %v1908_v3 = vpop.xlane.xlu1 %1907  ;;  %v4069_v29 = vrot.slane %v1906_v62, %v7881_v61 }
 0x38e   : > { %v4074_v35 = vrot.slane %v1908_v3, %v7877_v48 }
 0x38f   : > { %v4070_v34 = vsel %vm3483_vm9, %v4069_v29, %v4065_v55  ;;  %2635 = vadd.xlane.f32.xlu0 %v2585_v31 }
 0x390   : > { %2637 = vadd.xlane.f32.xlu1 %v2586_v20  ;;  %v2977_v24 = vpop.xlane.xlu0 %2976  ;;  %v4075_v18 = vsel %vm8813_vm11, %v4074_v35, %v4070_v34  ;;  %v2592_v20 = vand.u32 2147483647, %v8263_v49  ;;  %v8403_v35 = vpop.f32.mrf.mxu1  ;;  %v2593_v49 = vand.u32 2147483647, %v8283_v38  ;;  %vm4951_vm11 = vcmask 1042432  }
 0x391   : > { %v2979_v40 = vpop.xlane.xlu1 %2978  ;;  %v4645_v46 = vrot.slane %v2977_v24, %v7881_v61  ;;  %v2595_v38 = vand.u32 2147483647, %v8305_v30 }
 0x392   : > { %v4650_v59 = vrot.slane %v2979_v40, %v7877_v48 }
 0x393   : > { %v4646_v12 = vsel %vm3483_vm9, %v4645_v46, %v4641_v21  ;;  %2639 = vadd.xlane.f32.xlu0 %v2587_v11  ;;  %v8411_v11 = vpop.f32.mrf.mxu1  ;;  %v2596_v46 = vand.u32 2147483647, %v8293_v26 }
 0x394   : > { %2641 = vadd.xlane.f32.xlu1 %v2588_v15  ;;  %v1910_v55 = vpop.xlane.xlu0 %1909  ;;  %v4651_v0 = vsel %vm8814_vm15, %v4650_v59, %v4646_v12  ;;  %vm4954_vm15 = vcmask 1043456  }
 0x395   : > { %v1912_v28 = vpop.xlane.xlu1 %1911  ;;  %v4079_v33 = vrot.slane %v1910_v55, %v7903_v44 }
 0x396   : > { %v4084_v63 = vrot.slane %v1912_v28, %v7899_v25 }
 0x397   : > { %v4080_v22 = vsel %vm8815_vm8, %v4079_v33, %v4075_v18  ;;  %2643 = vadd.xlane.f32.xlu0 %v2589_v42  ;;  %v2594_v18 = vand.u32 2147483647, %v8276_v19  ;;  %v8421_v42 = vpop.f32.mrf.mxu1  ;;  %vm8817_vm8 = vcmask 654912  }
 0x398   : > { %2645 = vadd.xlane.f32.xlu1 %v2590_v36  ;;  %v2981_v62 = vpop.xlane.xlu0 %2980  ;;  %v4085_v21 = vsel %vm3504_vm12, %v4084_v63, %v4080_v22 }
 0x399   : > { %v2983_v3 = vpop.xlane.xlu1 %2982  ;;  %v4655_v31 = vrot.slane %v2981_v62, %v7903_v44 }
 0x39a   : > { %v4660_v14 = vrot.slane %v2983_v3, %v7899_v25  ;;  %v2597_v3 = vand.u32 2147483647, %v8317_v58 }
 0x39b   : > { %v4656_v29 = vsel %vm8816_vm10, %v4655_v31, %v4651_v0  ;;  %2647 = vadd.xlane.f32.xlu0 %v2591_v27  ;;  %v3290_v31 = vand.u32 2147483647, %v8325_v8  ;;  %vm8818_vm10 = vmmov %vm8817_vm8 }
 0x39c   : > { %2649 = vadd.xlane.f32.xlu1 %v2592_v20  ;;  %v1914_v40 = vpop.xlane.xlu0 %1913  ;;  %v4661_v24 = vsel %vm3504_vm12, %v4660_v14, %v4656_v29  ;;  %v8435_v20 = vpop.f32.mrf.mxu1  ;;  %v3289_v29 = vand.u32 2147483647, %v8331_v41 }
 0x39d   : > { %v1916_v34 = vpop.xlane.xlu1 %1915  ;;  %v4089_v15 = vrot.slane %v1914_v40, %v7925_v50 }
 0x39e   : > { %v4094_v16 = vrot.slane %v1916_v34, %v7921_v54  ;;  %v8442_v34 = vpop.f32.mrf.mxu1 }
 0x39f   : > { %v4090_v59 = vsel %vm3511_vm13, %v4089_v15, %v4085_v21  ;;  %2651 = vadd.xlane.f32.xlu0 %v2593_v49  ;;  %v3292_v49 = vand.u32 2147483647, %v8339_v37 }
 0x3a0   : > { %2653 = vadd.xlane.f32.xlu1 %v2594_v18  ;;  %v4095_v12 = vsel %vm3518_vm14, %v4094_v16, %v4090_v59  ;;  %v2985_v19 = vpop.xlane.xlu0 %2984  ;;  %v3291_v16 = vand.u32 2147483647, %v8347_v57  ;;  %v3232_v15 = vpop.f32.mrf.mxu1 }
 0x3a1   : > { %v2987_v28 = vpop.xlane.xlu1 %2986  ;;  %v4952_v55 = vsel %vm4951_vm11, %v8179_v6, %v4095_v12  ;;  %v4665_v36 = vrot.slane %v2985_v19, %v7925_v50  ;;  %v2598_v6 = vand.u32 2147483647, %v8312_v47  ;;  %v3294_v19 = vand.u32 2147483647, %v8355_v53 }
 0x3a2   : > { %v4670_v0 = vrot.slane %v2987_v28, %v7921_v54  ;;  %v8425_v63 = vsel %vm4954_vm15, %v4952_v55, %v8183_v45  ;;  %v8455_v55 = vpop.f32.mrf.mxu1  ;;  %v3297_v53 = vand.u32 2147483647, %v8395_v51 }
 0x3a3   : > { %v4666_v26 = vsel %vm3511_vm13, %v4665_v36, %v4661_v24  ;;  %2655 = vadd.xlane.f32.xlu0 %v2595_v38  ;;  %v3293_v38 = vand.u32 2147483647, %v8363_v43 }
 0x3a4   : > { %2657 = vadd.xlane.f32.xlu1 %v2596_v46  ;;  %v8429_v33 = vsel %vm3518_vm14, %v4670_v0, %v4666_v26  ;;  %v1918_v22 = vpop.xlane.xlu0 %1917 }
 0x3a5   : > { %v1920_v30 = vpop.xlane.xlu1 %1919  ;;  %v4099_v21 = vrot.slane %v1918_v22, %v7781_v13  ;;  %v3295_v22 = vand.u32 2147483647, %v8379_v1 }
 0x3a6   : > { %v4103_v62 = vrot.slane %v1920_v30, %v7777_v39 }
 0x3a7   : > { %2659 = vadd.xlane.f32.xlu0 %v2597_v3  ;;  %v3242_v3 = vpop.f32.mrf.mxu1 }
 0x3a8   : > { %v4104_v45 = vsel %vm3420_vm0, %v4103_v62, %v4099_v21  ;;  %2661 = vadd.xlane.f32.xlu1 %v2598_v6  ;;  %v2989_v14 = vpop.xlane.xlu0 %2988 }
 0x3a9   : > { %v2991_v27 = vpop.xlane.xlu1 %2990  ;;  %v4675_v58 = vrot.slane %v2989_v14, %v7781_v13  ;;  %v3298_v14 = vand.u32 2147483647, %v8387_v9 }
 0x3aa   : > { %v4679_v47 = vrot.slane %v2991_v27, %v7777_v39 }
 0x3ab   : > { %3329 = vadd.xlane.f32.xlu0 %v3289_v29  ;;  %v6243_v29 = vpop.f32.mrf.mxu1 }
 0x3ac   : > { %v4680_v40 = vsel %vm3420_vm0, %v4679_v47, %v4675_v58  ;;  %3331 = vadd.xlane.f32.xlu1 %v3290_v31  ;;  %v1922_v18 = vpop.xlane.xlu0 %1921  ;;  %v3299_v31 = vand.u32 2147483647, %v8411_v11 }
 0x3ad   : > { %v1924_v24 = vpop.xlane.xlu1 %1923  ;;  %v4108_v41 = vrot.slane %v1922_v18, %v7795_v2  ;;  %v3300_v18 = vand.u32 2147483647, %v8403_v35 }
 0x3ae   : > { %v4113_v8 = vrot.slane %v1924_v24, %v7804_v17 }
 0x3af   : > { %v4109_v59 = vsel %vm3427_vm1, %v4108_v41, %v4104_v45  ;;  %3333 = vadd.xlane.f32.xlu0 %v3291_v16  ;;  %v3252_v16 = vpop.f32.mrf.mxu1 }
 0x3b0   : > { %3335 = vadd.xlane.f32.xlu1 %v3292_v49  ;;  %v2993_v12 = vpop.xlane.xlu0 %2992  ;;  %v4114_v28 = vsel %vm3434_vm2, %v4113_v8, %v4109_v59  ;;  %v3301_v49 = vand.u32 2147483647, %v8435_v20 }
 0x3b1   : > { %v2995_v46 = vpop.xlane.xlu1 %2994  ;;  %v4684_v57 = vrot.slane %v2993_v12, %v7795_v2  ;;  %v3302_v12 = vand.u32 2147483647, %v8421_v42 }
 0x3b2   : > { %v4689_v37 = vrot.slane %v2995_v46, %v7804_v17 }
 0x3b3   : > { %v4685_v0 = vsel %vm3427_vm1, %v4684_v57, %v4680_v40  ;;  %3337 = vadd.xlane.f32.xlu0 %v3293_v38 }
 0x3b4   : > { %3339 = vadd.xlane.f32.xlu1 %v3294_v19  ;;  %v1926_v26 = vpop.xlane.xlu0 %1925  ;;  %v4690_v30 = vsel %vm3434_vm2, %v4689_v37, %v4685_v0  ;;  %v6246_v19 = vpop.f32.mrf.mxu1 }
 0x3b5   : > { %v1928_v36 = vpop.xlane.xlu1 %1927  ;;  %v4118_v6 = vrot.slane %v1926_v26, %v7811_v52  ;;  %v3305_v26 = vand.u32 2147483647, %v3242_v3 }
 0x3b6   : > { %v4123_v43 = vrot.slane %v1928_v36, %v7808_v32  ;;  %v3304_v36 = vand.u32 2147483647, %v8442_v34 }
 0x3b7   : > { %v4119_v62 = vsel %vm3441_vm3, %v4118_v6, %v4114_v28  ;;  %3341 = vadd.xlane.f32.xlu0 %v3295_v22  ;;  %v3303_v28 = vand.u32 2147483647, %v3232_v15  ;;  %v3262_v15 = vpop.f32.mrf.mxu1 }
 0x3b8   : > { %3345 = vadd.xlane.f32.xlu1 %v3297_v53  ;;  %v2997_v45 = vpop.xlane.xlu0 %2996  ;;  %v4124_v27 = vsel %vm3448_vm4, %v4123_v43, %v4119_v62  ;;  %v3306_v62 = vand.u32 2147483647, %v8455_v55 }
 0x3b9   : > { %v2999_v21 = vpop.xlane.xlu1 %2998  ;;  %v4694_v51 = vrot.slane %v2997_v45, %v7811_v52  ;;  %v6249_v3 = vpop.f32.mrf.mxu1 }
 0x3ba   : > { %v4699_v1 = vrot.slane %v2999_v21, %v7808_v32  ;;  %v3307_v21 = vand.u32 2147483647, %v3252_v16 }
 0x3bb   : > { %v4695_v47 = vsel %vm3441_vm3, %v4694_v51, %v4690_v30  ;;  %3347 = vadd.xlane.f32.xlu0 %v3298_v14  ;;  %v3308_v51 = vand.u32 2147483647, %v6243_v29 }
 0x3bc   : > { %3349 = vadd.xlane.f32.xlu1 %v3299_v31  ;;  %v1930_v40 = vpop.xlane.xlu0 %1929  ;;  %v4700_v24 = vsel %vm3448_vm4, %v4699_v1, %v4695_v47  ;;  %v3309_v47 = vand.u32 2147483647, %v3262_v15 }
 0x3bd   : > { %v1932_v58 = vpop.xlane.xlu1 %1931  ;;  %v4128_v11 = vrot.slane %v1930_v40, %v7837_v7  ;;  %v3272_v40 = vpop.f32.mrf.mxu1 }
 0x3be   : > { %v4133_v9 = vrot.slane %v1932_v58, %v7833_v4  ;;  %v3311_v16 = vand.u32 2147483647, %v3272_v40 }
 0x3bf   : > { %v4129_v8 = vsel %vm3455_vm5, %v4128_v11, %v4124_v27  ;;  %3351 = vadd.xlane.f32.xlu0 %v3300_v18  ;;  %v3310_v11 = vand.u32 2147483647, %v6246_v19 }
 0x3c0   : > { %3353 = vadd.xlane.f32.xlu1 %v3301_v49  ;;  %v3001_v59 = vpop.xlane.xlu0 %3000  ;;  %v4134_v46 = vsel %vm8703_vm6, %v4133_v9, %v4129_v8 }
 0x3c1   : > { %v3003_v41 = vpop.xlane.xlu1 %3002  ;;  %v4704_v20 = vrot.slane %v3001_v59, %v7837_v7 }
 0x3c2   : > { %v4709_v35 = vrot.slane %v3003_v41, %v7833_v4 }
 0x3c3   : > { %v4705_v38 = vsel %vm3455_vm5, %v4704_v20, %v4700_v24  ;;  %3355 = vadd.xlane.f32.xlu0 %v3302_v12 }
 0x3c4   : > { %3357 = vadd.xlane.f32.xlu1 %v3303_v28  ;;  %v1934_v57 = vpop.xlane.xlu0 %1933  ;;  %v4710_v0 = vsel %vm8703_vm6, %v4709_v35, %v4705_v38  ;;  %v3296_v28 = vand.u32 2147483647, %v8371_v10  ;;  %v3312_v35 = vand.u32 2147483647, %v6249_v3 }
 0x3c5   : > { %v1936_v37 = vpop.xlane.xlu1 %1935  ;;  %v4138_v42 = vrot.slane %v1934_v57, %v7859_v60 }
 0x3c6   : > { %v4143_v30 = vrot.slane %v1936_v37, %v7855_v5 }
 0x3c7   : > { %v4139_v22 = vsel %vm3469_vm7, %v4138_v42, %v4134_v46  ;;  %3359 = vadd.xlane.f32.xlu0 %v3304_v36 }
 0x3c8   : > { %3361 = vadd.xlane.f32.xlu1 %v3305_v26  ;;  %v3005_v43 = vpop.xlane.xlu0 %3004  ;;  %v4144_v6 = vsel %vm8817_vm8, %v4143_v30, %v4139_v22  ;;  %vm8819_vm8 = vcmask 786112  }
 0x3c9   : > { %v3007_v53 = vpop.xlane.xlu1 %3006  ;;  %v4714_v34 = vrot.slane %v3005_v43, %v7859_v60 }
 0x3ca   : > { %v4719_v45 = vrot.slane %v3007_v53, %v7855_v5 }
 0x3cb   : > { %v4715_v27 = vsel %vm3469_vm7, %v4714_v34, %v4710_v0  ;;  %3363 = vadd.xlane.f32.xlu0 %v3306_v62 }
 0x3cc   : > { %3365 = vadd.xlane.f32.xlu1 %v3307_v21  ;;  %v1938_v31 = vpop.xlane.xlu0 %1937  ;;  %v4720_v1 = vsel %vm8818_vm10, %v4719_v45, %v4715_v27  ;;  %vm8820_vm10 = vmmov %vm8819_vm8 }
 0x3cd   : > { %v1940_v14 = vpop.xlane.xlu1 %1939  ;;  %v4148_v55 = vrot.slane %v1938_v31, %v7881_v61 }
 0x3ce   : > { %v4153_v58 = vrot.slane %v1940_v14, %v7877_v48 }
 0x3cf   : > { %v4149_v24 = vsel %vm3483_vm9, %v4148_v55, %v4144_v6  ;;  %3367 = vadd.xlane.f32.xlu0 %v3308_v51 }
 0x3d0   : > { %3369 = vadd.xlane.f32.xlu1 %v3309_v47  ;;  %v3009_v49 = vpop.xlane.xlu0 %3008  ;;  %v4154_v9 = vsel %vm8819_vm8, %v4153_v58, %v4149_v24  ;;  %vm8821_vm8 = vcmask 851712  }
 0x3d1   : > { %v3011_v18 = vpop.xlane.xlu1 %3010  ;;  %v4724_v29 = vrot.slane %v3009_v49, %v7881_v61 }
 0x3d2   : > { %v4729_v8 = vrot.slane %v3011_v18, %v7877_v48 }
 0x3d3   : > { %v4725_v41 = vsel %vm3483_vm9, %v4724_v29, %v4720_v1  ;;  %3371 = vadd.xlane.f32.xlu0 %v3310_v11 }
 0x3d4   : > { %3373 = vadd.xlane.f32.xlu1 %v3311_v16  ;;  %v1942_v46 = vpop.xlane.xlu0 %1941  ;;  %v4730_v12 = vsel %vm8820_vm10, %v4729_v8, %v4725_v41  ;;  %vm8822_vm10 = vmmov %vm8821_vm8 }
 0x3d5   : > { %v1944_v59 = vpop.xlane.xlu1 %1943  ;;  %v4158_v19 = vrot.slane %v1942_v46, %v7903_v44 }
 0x3d6   : > { %v4163_v20 = vrot.slane %v1944_v59, %v7899_v25 }
 0x3d7   : > { %v4159_v38 = vsel %vm8821_vm8, %v4158_v19, %v4154_v9  ;;  %3343 = vadd.xlane.f32.xlu0 %v3296_v28 }
 0x3d8   : > { %3375 = vadd.xlane.f32.xlu1 %v3312_v35  ;;  %v3013_v57 = vpop.xlane.xlu0 %3012  ;;  %v4164_v0 = vsel %vm3504_vm12, %v4163_v20, %v4159_v38 }
 0x3d9   : > { %v3015_v37 = vpop.xlane.xlu1 %3014  ;;  %v4734_v26 = vrot.slane %v3013_v57, %v7903_v44 }
 0x3da   : > { %v4739_v36 = vrot.slane %v3015_v37, %v7899_v25 }
 0x3db   : > { %v4735_v30 = vsel %vm8822_vm10, %v4734_v26, %v4730_v12  ;;  %vm4957_vm10 = vcmask 1044480  }
 0x3dc   : > { %v1946_v42 = vpop.xlane.xlu0 %1945  ;;  %v4740_v15 = vsel %vm3504_vm12, %v4739_v36, %v4735_v30 }
 0x3dd   : > { %v1948_v10 = vpop.xlane.xlu1 %1947  ;;  %v4168_v53 = vrot.slane %v1946_v42, %v7925_v50 }
 0x3de   : > { %v4173_v22 = vrot.slane %v1948_v10, %v7921_v54 }
 0x3df   : > { %v4169_v43 = vsel %vm3511_vm13, %v4168_v53, %v4164_v0 }
 0x3e0   : > { %v4174_v6 = vsel %vm3518_vm14, %v4173_v22, %v4169_v43  ;;  %v3017_v21 = vpop.xlane.xlu0 %3016 }
 0x3e1   : > { %v3019_v62 = vpop.xlane.xlu1 %3018  ;;  %v4953_v45 = vsel %vm4951_vm11, %v8297_v56, %v4174_v6  ;;  %v4744_v3 = vrot.slane %v3017_v21, %v7925_v50  ;;  %vm8823_vm11 = vcmask 654912  }
 0x3e2   : > { %v4749_v34 = vrot.slane %v3019_v62, %v7921_v54  ;;  %v8519_v27 = vsel %vm4954_vm15, %v4953_v45, %v8301_v23  ;;  %vm8824_vm15 = vcmask 786112  }
 0x3e3   : > { %v4745_v14 = vsel %vm3511_vm13, %v4744_v3, %v4740_v15 }
 0x3e4   : > { %v8523_v31 = vsel %vm3518_vm14, %v4749_v34, %v4745_v14  ;;  %v3316_v51 = vpop.xlane.xlu0 %3315 }
 0x3e5   : > { %v2602_v1 = vpop.xlane.xlu1 %2601  ;;  %v4792_v56 = vrot.slane %v3316_v51, %v7777_v39 }
 0x3e6   : > { %v4408_v55 = vrot.slane %v2602_v1, %v7777_v39 }
 0x3e8   : > { %v2600_v58 = vpop.xlane.xlu0 %2599 }
 0x3e9   : > { %v3314_v47 = vpop.xlane.xlu1 %3313  ;;  %v4404_v24 = vrot.slane %v2600_v58, %v7781_v13 }
 0x3ea   : > { %v4788_v40 = vrot.slane %v3314_v47, %v7781_v13 }
 0x3eb   : > { %v4409_v18 = vsel %vm3420_vm0, %v4408_v55, %v4404_v24 }
 0x3ec   : > { %v4793_v23 = vsel %vm3420_vm0, %v4792_v56, %v4788_v40  ;;  %v2604_v9 = vpop.xlane.xlu0 %2603 }
 0x3ed   : > { %v2606_v49 = vpop.xlane.xlu1 %2605  ;;  %v4413_v16 = vrot.slane %v2604_v9, %v7795_v2 }
 0x3ee   : > { %v4418_v11 = vrot.slane %v2606_v49, %v7804_v17 }
 0x3ef   : > { %v4414_v8 = vsel %vm3427_vm1, %v4413_v16, %v4409_v18 }
 0x3f0   : > { %v3318_v41 = vpop.xlane.xlu0 %3317  ;;  %v4419_v59 = vsel %vm3434_vm2, %v4418_v11, %v4414_v8 }
 0x3f1   : > { %v3320_v29 = vpop.xlane.xlu1 %3319  ;;  %v4797_v12 = vrot.slane %v3318_v41, %v7795_v2 }
 0x3f2   : > { %v4802_v46 = vrot.slane %v3320_v29, %v7804_v17 }
 0x3f3   : > { %v4798_v28 = vsel %vm3427_vm1, %v4797_v12, %v4793_v23 }
 0x3f4   : > { %v2608_v20 = vpop.xlane.xlu0 %2607  ;;  %v4803_v19 = vsel %vm3434_vm2, %v4802_v46, %v4798_v28 }
 0x3f5   : > { %v2610_v35 = vpop.xlane.xlu1 %2609  ;;  %v4423_v37 = vrot.slane %v2608_v20, %v7811_v52 }
 0x3f6   : > { %v4428_v38 = vrot.slane %v2610_v35, %v7808_v32 }
 0x3f7   : > { %v4424_v57 = vsel %vm3441_vm3, %v4423_v37, %v4419_v59 }
 0x3f8   : > { %v3322_v36 = vpop.xlane.xlu0 %3321  ;;  %v4429_v26 = vsel %vm3448_vm4, %v4428_v38, %v4424_v57 }
 0x3f9   : > { %v3324_v0 = vpop.xlane.xlu1 %3323  ;;  %v4807_v10 = vrot.slane %v3322_v36, %v7811_v52 }
 0x3fa   : > { %v4812_v30 = vrot.slane %v3324_v0, %v7808_v32 }
 0x3fb   : > { %v4808_v42 = vsel %vm3441_vm3, %v4807_v10, %v4803_v19 }
 0x3fc   : > { %v2612_v22 = vpop.xlane.xlu0 %2611  ;;  %v4813_v53 = vsel %vm3448_vm4, %v4812_v30, %v4808_v42 }
 0x3fd   : > { %v2614_v15 = vpop.xlane.xlu1 %2613  ;;  %v4433_v6 = vrot.slane %v2612_v22, %v7837_v7 }
 0x3fe   : > { %v4438_v43 = vrot.slane %v2614_v15, %v7833_v4 }
 0x3ff   : > { %v4434_v62 = vsel %vm3455_vm5, %v4433_v6, %v4429_v26 }
 0x400   : > { %v3326_v45 = vpop.xlane.xlu0 %3325  ;;  %v4439_v34 = vsel %vm8703_vm6, %v4438_v43, %v4434_v62 }
 0x401   : > { %v3328_v21 = vpop.xlane.xlu1 %3327  ;;  %v4817_v14 = vrot.slane %v3326_v45, %v7837_v7 }
 0x402   : > { %v4822_v3 = vrot.slane %v3328_v21, %v7833_v4 }
 0x403   : > { %v4818_v1 = vsel %vm3455_vm5, %v4817_v14, %v4813_v53 }
 0x404   : > { %v2616_v47 = vpop.xlane.xlu0 %2615  ;;  %v8555_v58 = vsel %vm8703_vm6, %v4822_v3, %v4818_v1 }
 0x405   : > { %v2618_v51 = vpop.xlane.xlu1 %2617  ;;  %v4443_v56 = vrot.slane %v2616_v47, %v7859_v60 }
 0x406   : > { %v4448_v55 = vrot.slane %v2618_v51, %v7855_v5 }
 0x407   : > { %v4444_v40 = vsel %vm3469_vm7, %v4443_v56, %v4439_v34 }
 0x408   : > { %v4449_v23 = vsel %vm8823_vm11, %v4448_v55, %v4444_v40  ;;  %v2620_v18 = vpop.xlane.xlu0 %2619  ;;  %vm4960_vm11 = vcmask 1045504  }
 0x409   : > { %v2622_v24 = vpop.xlane.xlu1 %2621  ;;  %v4453_v9 = vrot.slane %v2620_v18, %v7881_v61 }
 0x40a   : > { %v4458_v49 = vrot.slane %v2622_v24, %v7877_v48 }
 0x40b   : > { %v4454_v11 = vsel %vm3483_vm9, %v4453_v9, %v4449_v23 }
 0x40c   : > { %v4459_v8 = vsel %vm8824_vm15, %v4458_v49, %v4454_v11  ;;  %v2624_v29 = vpop.xlane.xlu0 %2623  ;;  %vm8825_vm15 = vcmask 654912  }
 0x40d   : > { %v2626_v16 = vpop.xlane.xlu1 %2625  ;;  %v4463_v59 = vrot.slane %v2624_v29, %v7903_v44 }
 0x40e   : > { %v4468_v41 = vrot.slane %v2626_v16, %v7899_v25 }
 0x40f   : > { %v4464_v46 = vsel %vm8821_vm8, %v4463_v59, %v4459_v8  ;;  %vm8826_vm8 = vcmask 786112  }
 0x410   : > { %v4469_v28 = vsel %vm3504_vm12, %v4468_v41, %v4464_v46  ;;  %v2628_v35 = vpop.xlane.xlu0 %2627 }
 0x411   : > { %v2630_v12 = vpop.xlane.xlu1 %2629  ;;  %v4473_v19 = vrot.slane %v2628_v35, %v7925_v50 }
 0x412   : > { %v4478_v20 = vrot.slane %v2630_v12, %v7921_v54 }
 0x413   : > { %v4474_v38 = vsel %vm3511_vm13, %v4473_v19, %v4469_v28 }
 0x414   : > { %v4479_v37 = vsel %vm3518_vm14, %v4478_v20, %v4474_v38  ;;  %v2632_v0 = vpop.xlane.xlu0 %2631 }
 0x415   : > { %v2634_v57 = vpop.xlane.xlu1 %2633  ;;  %v4958_v36 = vsel %vm4957_vm10, %v8425_v63, %v4479_v37  ;;  %v4483_v30 = vrot.slane %v2632_v0, %v7781_v13 }
 0x416   : > { %v4487_v26 = vrot.slane %v2634_v57, %v7777_v39  ;;  %v8579_v10 = vsel %vm4960_vm11, %v4958_v36, %v8429_v33 }
 0x418   : > { %v2636_v15 = vpop.xlane.xlu0 %2635  ;;  %v4488_v53 = vsel %vm3420_vm0, %v4487_v26, %v4483_v30 }
 0x419   : > { %v2638_v42 = vpop.xlane.xlu1 %2637  ;;  %v4492_v22 = vrot.slane %v2636_v15, %v7795_v2 }
 0x41a   : > { %v4497_v43 = vrot.slane %v2638_v42, %v7804_v17 }
 0x41b   : > { %v4493_v6 = vsel %vm3427_vm1, %v4492_v22, %v4488_v53 }
 0x41c   : > { %v2640_v63 = vpop.xlane.xlu0 %2639  ;;  %v4498_v34 = vsel %vm3434_vm2, %v4497_v43, %v4493_v6 }
 0x41d   : > { %v2642_v62 = vpop.xlane.xlu1 %2641  ;;  %v4502_v21 = vrot.slane %v2640_v63, %v7811_v52 }
 0x41e   : > { %v4507_v45 = vrot.slane %v2642_v62, %v7808_v32 }
 0x41f   : > { %v4503_v33 = vsel %vm3441_vm3, %v4502_v21, %v4498_v34 }
 0x420   : > { %v2644_v14 = vpop.xlane.xlu0 %2643  ;;  %v4508_v47 = vsel %vm3448_vm4, %v4507_v45, %v4503_v33 }
 0x421   : > { %v2646_v3 = vpop.xlane.xlu1 %2645  ;;  %v4512_v1 = vrot.slane %v2644_v14, %v7837_v7 }
 0x422   : > { %v4517_v51 = vrot.slane %v2646_v3, %v7833_v4 }
 0x423   : > { %v4513_v55 = vsel %vm3455_vm5, %v4512_v1, %v4508_v47 }
 0x424   : > { %v2648_v40 = vpop.xlane.xlu0 %2647  ;;  %v4518_v18 = vsel %vm8703_vm6, %v4517_v51, %v4513_v55  ;;  %vm8827_vm6 = vcmask 851712  }
 0x425   : > { %v2650_v56 = vpop.xlane.xlu1 %2649  ;;  %v4522_v24 = vrot.slane %v2648_v40, %v7859_v60 }
 0x426   : > { %v4527_v23 = vrot.slane %v2650_v56, %v7855_v5 }
 0x427   : > { %v4523_v49 = vsel %vm3469_vm7, %v4522_v24, %v4518_v18 }
 0x428   : > { %v2652_v11 = vpop.xlane.xlu0 %2651  ;;  %v4528_v29 = vsel %vm8825_vm15, %v4527_v23, %v4523_v49 }
 0x429   : > { %v2654_v9 = vpop.xlane.xlu1 %2653  ;;  %v4532_v16 = vrot.slane %v2652_v11, %v7881_v61 }
 0x42a   : > { %v4537_v8 = vrot.slane %v2654_v9, %v7877_v48 }
 0x42b   : > { %v4533_v41 = vsel %vm3483_vm9, %v4532_v16, %v4528_v29 }
 0x42c   : > { %v2656_v46 = vpop.xlane.xlu0 %2655  ;;  %v4538_v35 = vsel %vm8826_vm8, %v4537_v8, %v4533_v41 }
 0x42d   : > { %v2658_v59 = vpop.xlane.xlu1 %2657  ;;  %v4542_v12 = vrot.slane %v2656_v46, %v7903_v44 }
 0x42e   : > { %v4547_v28 = vrot.slane %v2658_v59, %v7899_v25 }
 0x42f   : > { %v4543_v20 = vsel %vm8827_vm6, %v4542_v12, %v4538_v35 }
 0x430   : > { %v2660_v38 = vpop.xlane.xlu0 %2659  ;;  %v4548_v0 = vsel %vm3504_vm12, %v4547_v28, %v4543_v20 }
 0x431   : > { %v2662_v19 = vpop.xlane.xlu1 %2661  ;;  %v4552_v57 = vrot.slane %v2660_v38, %v7925_v50 }
 0x432   : > { %v4557_v37 = vrot.slane %v2662_v19, %v7921_v54 }
 0x433   : > { %v4553_v36 = vsel %vm3511_vm13, %v4552_v57, %v4548_v0 }
 0x434   : > { %v4558_v26 = vsel %vm3518_vm14, %v4557_v37, %v4553_v36  ;;  %v3330_v42 = vpop.xlane.xlu0 %3329 }
 0x435   : > { %v3332_v30 = vpop.xlane.xlu1 %3331  ;;  %v4959_v15 = vsel %vm4957_vm10, %v8519_v27, %v4558_v26 }
 0x436   : > { %v8614_v22 = vsel %vm4960_vm11, %v4959_v15, %v8523_v31 }
 0x438   : > { %v3334_v43 = vpop.xlane.xlu0 %3333 }
 0x439   : > { %v3336_v53 = vpop.xlane.xlu1 %3335  ;;  %v4837_v59 = vrot.slane %v3334_v43, %v7881_v61 }
 0x43a   : > { %v4842_v35 = vrot.slane %v3336_v53, %v7877_v48 }
 0x43c   : > { %v3338_v62 = vpop.xlane.xlu0 %3337 }
 0x43d   : > { %v3340_v6 = vpop.xlane.xlu1 %3339 }
 0x43e   : > { %v4852_v36 = vrot.slane %v3340_v6, %v7899_v25 }
 0x440   : > { %v8616_v21 = vpop.xlane.xlu0 %3341 }
 0x441   : > { %v3346_v63 = vpop.xlane.xlu1 %3345 }
 0x442   : > { %v4867_v33 = vrot.slane %v3346_v63, %v7781_v13 }
 0x444   : > { %v3348_v34 = vpop.xlane.xlu0 %3347 }
 0x445   : > { %v3350_v45 = vpop.xlane.xlu1 %3349  ;;  %v4871_v3 = vrot.slane %v3348_v34, %v7777_v39 }
 0x446   : > { %v4876_v14 = vrot.slane %v3350_v45, %v7795_v2 }
 0x447   : > { %v4872_v27 = vsel %vm3420_vm0, %v4871_v3, %v4867_v33  ;;  %vm8828_vm0 = vcmask 523712  }
 0x448   : > { %v3352_v31 = vpop.xlane.xlu0 %3351  ;;  %v4877_v55 = vsel %vm3427_vm1, %v4876_v14, %v4872_v27  ;;  %vm8829_vm1 = vmmov %vm8825_vm15 }
 0x449   : > { %v3354_v1 = vpop.xlane.xlu1 %3353  ;;  %v4881_v51 = vrot.slane %v3352_v31, %v7804_v17 }
 0x44a   : > { %v4886_v47 = vrot.slane %v3354_v1, %v7811_v52  ;;  %v4827_v52 = vrot.slane %v3330_v42, %v7859_v60  ;;  %v4857_v42 = vrot.slane %v8616_v21, %v7925_v50 }
 0x44b   : > { %v4882_v56 = vsel %vm3434_vm2, %v4881_v51, %v4877_v55  ;;  %vm8830_vm2 = vmmov %vm8829_vm1 }
 0x44c   : > { %v3356_v24 = vpop.xlane.xlu0 %3355  ;;  %v4887_v2 = vsel %vm3441_vm3, %v4886_v47, %v4882_v56  ;;  %v4828_v41 = vsel %vm3469_vm7, %v4827_v52, %v8555_v58  ;;  %v4847_v58 = vrot.slane %v3338_v62, %v7903_v44  ;;  %vm8831_vm3 = vmmov %vm8826_vm8 }
 0x44d   : > { %v3358_v40 = vpop.xlane.xlu1 %3357  ;;  %v4891_v13 = vrot.slane %v3356_v24, %v7808_v32 }
 0x44e   : > { %v4896_v39 = vrot.slane %v3358_v40, %v7837_v7  ;;  %v4832_v7 = vrot.slane %v3332_v30, %v7855_v5 }
 0x44f   : > { %v4892_v23 = vsel %vm3448_vm4, %v4891_v13, %v4887_v2  ;;  %vm8832_vm4 = vmmov %vm8831_vm3 }
 0x450   : > { %v3360_v49 = vpop.xlane.xlu0 %3359  ;;  %v4897_v11 = vsel %vm3455_vm5, %v4896_v39, %v4892_v23  ;;  %v4833_v20 = vsel %vm8830_vm2, %v4832_v7, %v4828_v41  ;;  %vm8833_vm5 = vmmov %vm8827_vm6 }
 0x451   : > { %v3362_v18 = vpop.xlane.xlu1 %3361  ;;  %v4901_v17 = vrot.slane %v3360_v49, %v7833_v4  ;;  %vm8834_vm6 = vmmov %vm8833_vm5 }
 0x452   : > { %v4906_v9 = vrot.slane %v3362_v18, %v7859_v60 }
 0x453   : > { %v4902_v16 = vsel %vm8828_vm0, %v4901_v17, %v4897_v11 }
 0x454   : > { %v3364_v32 = vpop.xlane.xlu0 %3363  ;;  %v4907_v46 = vsel %vm3469_vm7, %v4906_v9, %v4902_v16  ;;  %vm4963_vm7 = vcmask 1046528  }
 0x455   : > { %v3366_v8 = vpop.xlane.xlu1 %3365  ;;  %v4911_v29 = vrot.slane %v3364_v32, %v7855_v5  ;;  %v4838_v5 = vsel %vm3483_vm9, %v4837_v59, %v4833_v20 }
 0x456   : > { %v4916_v4 = vrot.slane %v3366_v8, %v7881_v61  ;;  %v4843_v26 = vsel %vm8832_vm4, %v4842_v35, %v4838_v5 }
 0x457   : > { %v4912_v60 = vsel %vm8829_vm1, %v4911_v29, %v4907_v46 }
 0x458   : > { %v3368_v28 = vpop.xlane.xlu0 %3367  ;;  %v4917_v61 = vsel %vm3483_vm9, %v4916_v4, %v4912_v60 }
 0x459   : > { %v3370_v12 = vpop.xlane.xlu1 %3369  ;;  %v4921_v19 = vrot.slane %v3368_v28, %v7877_v48  ;;  %v4848_v48 = vsel %vm8833_vm5, %v4847_v58, %v4843_v26 }
 0x45a   : > { %v4926_v38 = vrot.slane %v3370_v12, %v7903_v44  ;;  %v4853_v63 = vsel %vm3504_vm12, %v4852_v36, %v4848_v48 }
 0x45b   : > { %v4922_v37 = vsel %vm8831_vm3, %v4921_v19, %v4917_v61  ;;  %v4858_v45 = vsel %vm3511_vm13, %v4857_v42, %v4853_v63 }
 0x45c   : > { %v3372_v0 = vpop.xlane.xlu0 %3371  ;;  %v4927_v15 = vsel %vm8834_vm6, %v4926_v38, %v4922_v37 }
 0x45d   : > { %v3374_v57 = vpop.xlane.xlu1 %3373  ;;  %v4931_v30 = vrot.slane %v3372_v0, %v7899_v25 }
 0x45e   : > { %v4936_v44 = vrot.slane %v3374_v57, %v7925_v50 }
 0x45f   : > { %v4932_v53 = vsel %vm3504_vm12, %v4931_v30, %v4927_v15 }
 0x460   : > { %v3344_v62 = vpop.xlane.xlu0 %3343  ;;  %v4937_v21 = vsel %vm3511_vm13, %v4936_v44, %v4932_v53 }
 0x461   : > { %v3376_v43 = vpop.xlane.xlu1 %3375  ;;  %v4862_v25 = vrot.slane %v3344_v62, %v7921_v54 }
 0x462   : > { %v4941_v6 = vrot.slane %v3376_v43, %v7921_v54 }
 0x463   : > { %v4863_v34 = vsel %vm3518_vm14, %v4862_v25, %v4858_v45 }
 0x464   : > { %v4942_v50 = vsel %vm3518_vm14, %v4941_v6, %v4937_v21  ;;  %v4964_v3 = vsel %vm4963_vm7, %v8579_v10, %v4863_v34 }
 0x465   : > { %v4965_v33 = vsel %vm4963_vm7, %v8614_v22, %v4942_v50  ;;  %v4966_v27 = vmul.f32 0.0625, %v4964_v3 }
 0x466   : > { %v4967_v14 = vmul.f32 0.0625, %v4965_v33 }
 0x467   : > { %4968 = vst [vmem:[%s245_s4] sm:$0xff] %v4966_v27 }
 0x468   : > { %4969 = vst [vmem:[%s245_s4 + $0x8] sm:$0xff] %v4967_v14 }
 0x469 PF: > { %s13_s14 = sadd.s32 1, %s6345_s14   ;;  %s8835_s12 = smov %s6341_s13 }
 0x46a   : > { %p10_p5 = scmp.ge.s32.totalorder %s13_s14, 4   ;;  %s8836_s13 = smov %s8838_s15 }
 0x46c   :  { %12 = sbr.rel (!%p10_p5) target bundleno = 2 (0x2), region = 68 }

</bundles_post_ra>
